<compile_context>
chip_gen: v5e
topology: v5e:2x2
jax: 0.10.0
libtpu: 0.0.40
codegen_flags: <defaults>
</compile_context>

<pallas_src>
import functools

import jax
import jax.numpy as jnp
import numpy as np
from jax.experimental import pallas as pl
from jax.experimental.pallas import tpu as pltpu

EPS = 1e-5
LANE = 128


def _round_up(x, m):
    return (x + m - 1) // m * m


# ----------------------------------------------------------------------------
# Kernels
# ----------------------------------------------------------------------------
def _conv1_kernel(*refs, stride, Ho, Wo, has_shortcut):
    """conv1 (3x3, pad=1, stride=s) [+ fused 1x1 shortcut conv] for one image.

    The input is phase-decomposed so every tap is a static unit-stride slice:
      xph_ref : (1, s*s, Hph, Wph, Cin)  f32
      w1_ref  : (9, Cin, Cout)           bf16  (tap-major: dh*3+dw)
      ws_ref  : (Cin, Cout)              bf16  (only if has_shortcut)
    Outputs:
      y1_ref  : (1, Ho, Wo, Cout)        bf16  conv1 output (bias dropped)
      st_ref  : (1, 8, Cout)             f32   rows 0/1: sum/sumsq of y1,
                                               rows 2/3: sum/sumsq of shortcut
      r_ref   : (1, Ho, Wo, Cout)        bf16  (only if has_shortcut)
    """
    if has_shortcut:
        xph_ref, w1_ref, ws_ref, y1_ref, st_ref, r_ref = refs
    else:
        xph_ref, w1_ref, y1_ref, st_ref = refs
    s = stride
    cin = xph_ref.shape[-1]
    cout = y1_ref.shape[-1]

    acc = jnp.zeros((Ho * Wo, cout), jnp.float32)
    r_acc = None
    for dh in range(3):
        for dw in range(3):
            ph = (dh % s) * s + (dw % s)
            a = xph_ref[0, ph, dh // s:dh // s + Ho, dw // s:dw // s + Wo, :]
            a = a.reshape(Ho * Wo, cin).astype(jnp.bfloat16)
            acc = acc + jnp.dot(a, w1_ref[dh * 3 + dw],
                                preferred_element_type=jnp.float32)
            if has_shortcut and dh == 1 and dw == 1:
                # The 1x1/stride-s shortcut conv reads exactly the centre-tap
                # window, so reuse `a` (shortcut GEMM fused into this pass).
                r_acc = jnp.dot(a, ws_ref[...],
                                preferred_element_type=jnp.float32)

    y1_ref[0] = acc.reshape(Ho, Wo, cout).astype(jnp.bfloat16)
    st_ref[0, 0:1, :] = jnp.sum(acc, axis=0, keepdims=True)
    st_ref[0, 1:2, :] = jnp.sum(acc * acc, axis=0, keepdims=True)
    if has_shortcut:
        r_ref[0] = r_acc.reshape(Ho, Wo, cout).astype(jnp.bfloat16)
        st_ref[0, 2:3, :] = jnp.sum(r_acc, axis=0, keepdims=True)
        st_ref[0, 3:4, :] = jnp.sum(r_acc * r_acc, axis=0, keepdims=True)
        st_ref[0, 4:8, :] = jnp.zeros((4, cout), jnp.float32)
    else:
        st_ref[0, 2:8, :] = jnp.zeros((6, cout), jnp.float32)


def _conv2_kernel(y1p_ref, a1_ref, b1_ref, w2_ref, y2_ref, st_ref, h_scr,
                  *, Ho, Wo):
    """Fused BN1-affine + ReLU + conv2 (3x3, pad=1, stride=1) for one image.

      y1p_ref : (1, Ho+2, Wo+2, Cout) bf16  zero-padded conv1 output
      a1/b1   : (1, Cout)             f32   folded BN1 scale / shift
      w2_ref  : (9, Cout, Cout)       bf16
      y2_ref  : (1, Ho, Wo, Cout)     bf16  conv2 output (bias dropped)
      st_ref  : (1, 8, Cout)          f32   rows 0/1: sum / sumsq of y2
      h_scr   : (Ho+2, Wo+2, Cout)    f32   VMEM scratch: padded relu(bn1(y1))
    """
    cout = y2_ref.shape[-1]
    hop, wop = Ho + 2, Wo + 2

    a1 = a1_ref[...].reshape(1, 1, cout)
    b1 = b1_ref[...].reshape(1, 1, cout)
    h_scr[...] = jnp.maximum(y1p_ref[0].astype(jnp.float32) * a1 + b1, 0.0)
    # Re-zero the spatial padding border (the BN shift makes padded zeros
    # non-zero, but conv2's zero-padding semantics require exact zeros).
    zrow = jnp.zeros((1, wop, cout), jnp.float32)
    zcol = jnp.zeros((hop, 1, cout), jnp.float32)
    h_scr[0:1, :, :] = zrow
    h_scr[hop - 1:hop, :, :] = zrow
    h_scr[:, 0:1, :] = zcol
    h_scr[:, wop - 1:wop, :] = zcol

    acc = jnp.zeros((Ho * Wo, cout), jnp.float32)
    for dh in range(3):
        for dw in range(3):
            a = h_scr[dh:dh + Ho, dw:dw + Wo, :]
            a = a.reshape(Ho * Wo, cout).astype(jnp.bfloat16)
            acc = acc + jnp.dot(a, w2_ref[dh * 3 + dw],
                                preferred_element_type=jnp.float32)

    y2_ref[0] = acc.reshape(Ho, Wo, cout).astype(jnp.bfloat16)
    st_ref[0, 0:1, :] = jnp.sum(acc, axis=0, keepdims=True)
    st_ref[0, 1:2, :] = jnp.sum(acc * acc, axis=0, keepdims=True)
    st_ref[0, 2:8, :] = jnp.zeros((6, cout), jnp.float32)


def _finalize_sc_kernel(y2_ref, r_ref, a2_ref, b2_ref, as_ref, bs_ref, o_ref):
    # out = relu( BN2(conv2) + BN_shortcut(shortcut_conv) ), one row tile.
    y2 = y2_ref[...].astype(jnp.float32)
    r = r_ref[...].astype(jnp.float32)
    out = (y2 * a2_ref[...] + b2_ref[...]) + (r * as_ref[...] + bs_ref[...])
    o_ref[...] = jnp.maximum(out, 0.0)


def _finalize_id_kernel(y2_ref, x_ref, a2_ref, b2_ref, o_ref):
    # out = relu( BN2(conv2) + x ), identity shortcut, one row tile.
    out = (y2_ref[...].astype(jnp.float32) * a2_ref[...] + b2_ref[...]
           + x_ref[...].astype(jnp.float32))
    o_ref[...] = jnp.maximum(out, 0.0)


# ----------------------------------------------------------------------------
# pallas_call wrappers
# ----------------------------------------------------------------------------
def _conv3x3_bn_stats(xph, w1, ws, stride, Ho, Wo, has_shortcut):
    N, P, Hph, Wph, cp_in = xph.shape
    cp_out = w1.shape[-1]
    out_shapes = [jax.ShapeDtypeStruct((N, Ho, Wo, cp_out), jnp.bfloat16),
                  jax.ShapeDtypeStruct((N, 8, cp_out), jnp.float32)]
    out_specs = [pl.BlockSpec((1, Ho, Wo, cp_out), lambda n: (n, 0, 0, 0)),
                 pl.BlockSpec((1, 8, cp_out), lambda n: (n, 0, 0))]
    in_specs = [pl.BlockSpec((1, P, Hph, Wph, cp_in), lambda n: (n, 0, 0, 0, 0)),
                pl.BlockSpec((9, cp_in, cp_out), lambda n: (0, 0, 0))]
    args = [xph, w1]
    if has_shortcut:
        in_specs.append(pl.BlockSpec((cp_in, cp_out), lambda n: (0, 0)))
        args.append(ws)
        out_shapes.append(jax.ShapeDtypeStruct((N, Ho, Wo, cp_out), jnp.bfloat16))
        out_specs.append(pl.BlockSpec((1, Ho, Wo, cp_out), lambda n: (n, 0, 0, 0)))
    kern = functools.partial(_conv1_kernel, stride=stride, Ho=Ho, Wo=Wo,
                             has_shortcut=has_shortcut)
    # TODO(synk): for very large H*W / channel counts, add a row-tile grid axis
    # (input kept resident via a constant index_map) and a K-axis accumulator
    # so the per-step blocks stay within v7x's 64 MiB VMEM.
    return pl.pallas_call(
        kern,
        out_shape=tuple(out_shapes),
        grid=(N,),
        in_specs=in_specs,
        out_specs=tuple(out_specs),
        compiler_params=pltpu.CompilerParams(dimension_semantics=("parallel",)),
    )(*args)


def _conv2_bn_stats(y1p, a1, b1, w2, Ho, Wo):
    N = y1p.shape[0]
    cp_out = y1p.shape[-1]
    kern = functools.partial(_conv2_kernel, Ho=Ho, Wo=Wo)
    return pl.pallas_call(
        kern,
        out_shape=(jax.ShapeDtypeStruct((N, Ho, Wo, cp_out), jnp.bfloat16),
                   jax.ShapeDtypeStruct((N, 8, cp_out), jnp.float32)),
        grid=(N,),
        in_specs=[pl.BlockSpec((1, Ho + 2, Wo + 2, cp_out), lambda n: (n, 0, 0, 0)),
                  pl.BlockSpec((1, cp_out), lambda n: (0, 0)),
                  pl.BlockSpec((1, cp_out), lambda n: (0, 0)),
                  pl.BlockSpec((9, cp_out, cp_out), lambda n: (0, 0, 0))],
        out_specs=(pl.BlockSpec((1, Ho, Wo, cp_out), lambda n: (n, 0, 0, 0)),
                   pl.BlockSpec((1, 8, cp_out), lambda n: (n, 0, 0))),
        scratch_shapes=[pltpu.VMEM((Ho + 2, Wo + 2, cp_out), jnp.float32)],
        compiler_params=pltpu.CompilerParams(dimension_semantics=("parallel",)),
    )(y1p, a1, b1, w2)


def _finalize(y2_flat, res_flat, a2, b2, a_s, b_s, has_shortcut):
    M, cp_out = y2_flat.shape
    if M >= 1024:
        tm = 512
    elif M >= 512:
        tm = 256
    else:
        tm = M
    row_spec = pl.BlockSpec((tm, cp_out), lambda i: (i, 0))
    par_spec = pl.BlockSpec((1, cp_out), lambda i: (0, 0))
    if has_shortcut:
        kern = _finalize_sc_kernel
        in_specs = [row_spec, row_spec, par_spec, par_spec, par_spec, par_spec]
        args = (y2_flat, res_flat, a2, b2, a_s, b_s)
    else:
        kern = _finalize_id_kernel
        in_specs = [row_spec, row_spec, par_spec, par_spec]
        args = (y2_flat, res_flat, a2, b2)
    return pl.pallas_call(
        kern,
        out_shape=jax.ShapeDtypeStruct((M, cp_out), jnp.float32),
        grid=(pl.cdiv(M, tm),),
        in_specs=in_specs,
        out_specs=pl.BlockSpec((tm, cp_out), lambda i: (i, 0)),
        compiler_params=pltpu.CompilerParams(dimension_semantics=("parallel",)),
    )(*args)


# ----------------------------------------------------------------------------
# Glue (plain JAX): layout prep, phase decomposition, BN affine folding.
# ----------------------------------------------------------------------------
def _pad_last(a, target):
    pad = target - a.shape[-1]
    if pad == 0:
        return a
    cfg = [(0, 0)] * (a.ndim - 1) + [(0, pad)]
    return jnp.pad(a, cfg)


def _prep_w3x3(w_oihw, cp_in, cp_out):
    co, ci, kh, kw = w_oihw.shape
    wm = jnp.transpose(w_oihw, (2, 3, 1, 0)).reshape(kh * kw, ci, co)
    wm = jnp.pad(wm, ((0, 0), (0, cp_in - ci), (0, cp_out - co)))
    return wm.astype(jnp.bfloat16)


def _prep_w1x1(w_oihw, cp_in, cp_out):
    co, ci = w_oihw.shape[0], w_oihw.shape[1]
    wm = jnp.transpose(w_oihw.reshape(co, ci), (1, 0))
    wm = jnp.pad(wm, ((0, cp_in - ci), (0, cp_out - co)))
    return wm.astype(jnp.bfloat16)


def _bn_affine(stat_sum, stat_sumsq, count, gamma, beta, cp):
    # Fold training-mode (batch, biased-variance) BN into y * scale + shift.
    mean = stat_sum / count
    var = jnp.maximum(stat_sumsq / count - mean * mean, 0.0)
    scale = _pad_last(gamma, cp) * jax.lax.rsqrt(var + EPS)
    shift = _pad_last(beta, cp) - mean * scale
    return (scale.reshape(1, cp).astype(jnp.float32),
            shift.reshape(1, cp).astype(jnp.float32))


def init_res_block_params(key, in_channels, out_channels, stride):
    ks = jax.random.split(key, 16)
    p = {
        "w1": jax.random.normal(ks[0], (out_channels, in_channels, 3, 3), jnp.float32) * 0.1,
        "b1": jax.random.normal(ks[1], (out_channels,), jnp.float32) * 0.1,
        "g1": 1.0 + 0.1 * jax.random.normal(ks[2], (out_channels,), jnp.float32),
        "be1": 0.1 * jax.random.normal(ks[3], (out_channels,), jnp.float32),
        "w2": jax.random.normal(ks[4], (out_channels, out_channels, 3, 3), jnp.float32) * 0.1,
        "b2": jax.random.normal(ks[5], (out_channels,), jnp.float32) * 0.1,
        "g2": 1.0 + 0.1 * jax.random.normal(ks[6], (out_channels,), jnp.float32),
        "be2": 0.1 * jax.random.normal(ks[7], (out_channels,), jnp.float32),
    }
    if stride != 1 or out_channels != in_channels:
        p["ws"] = jax.random.normal(ks[8], (out_channels, in_channels, 1, 1), jnp.float32) * 0.1
        p["bs"] = jax.random.normal(ks[9], (out_channels,), jnp.float32) * 0.1
        p["gs"] = 1.0 + 0.1 * jax.random.normal(ks[10], (out_channels,), jnp.float32)
        p["bes"] = 0.1 * jax.random.normal(ks[11], (out_channels,), jnp.float32)
    return p


@functools.partial(jax.jit, static_argnames=("stride",))
def res_block_forward(x_nchw, params, stride=1):
    """Pallas implementation of Res_block.forward. x: NCHW, returns NCHW."""
    N, Cin, H, W = x_nchw.shape
    Cout = params["w1"].shape[0]
    s = int(stride)
    Ho = (H - 1) // s + 1
    Wo = (W - 1) // s + 1
    cp_in = _round_up(Cin, LANE)
    cp_out = _round_up(Cout, LANE)
    has_sc = "ws" in params
    Mtot = N * Ho * Wo

    x_nhwc = jnp.transpose(x_nchw, (0, 2, 3, 1)).astype(jnp.float32)
    x_cp = _pad_last(x_nhwc, cp_in)                                   # (N,H,W,cp_in)
    xp = jnp.pad(x_cp, ((0, 0), (1, 1), (1, 1), (0, 0)))              # spatial pad=1

    # Phase decomposition: stride-s taps become static unit-stride slices
    # inside the kernel (for s == 1 this is a pure reshape -> no extra copy).
    Hph, Wph = Ho + 2 // s, Wo + 2 // s
    if s == 1:
        xph = xp[:, None]
    else:
        phases = []
        for p in range(s):
            for q in range(s):
                ph = xp[:, p::s, q::s, :][:, :Hph, :Wph, :]
                ph = jnp.pad(ph, ((0, 0), (0, Hph - ph.shape[1]),
                                  (0, Wph - ph.shape[2]), (0, 0)))
                phases.append(ph)
        xph = jnp.stack(phases, axis=1)

    w1m = _prep_w3x3(params["w1"], cp_in, cp_out)
    w2m = _prep_w3x3(params["w2"], cp_out, cp_out)
    wsm = _prep_w1x1(params["ws"], cp_in, cp_out) if has_sc else None

    # Pass 1: conv1 (+ fused 1x1 shortcut conv) with per-image BN partials.
    outs = _conv3x3_bn_stats(xph, w1m, wsm, s, Ho, Wo, has_sc)
    if has_sc:
        y1, st1, r_sc = outs
    else:
        y1, st1 = outs
        r_sc = None

    # Finalize BN1 batch statistics into a per-channel affine (tiny reduction).
    tot1 = jnp.sum(st1, axis=0)
    a1, b1 = _bn_affine(tot1[0], tot1[1], Mtot, params["g1"], params["be1"], cp_out)

    # Pass 2: BN1-affine + ReLU + conv2 fused; emits BN2 partial statistics.
    y1p = jnp.pad(y1, ((0, 0), (1, 1), (1, 1), (0, 0)))
    y2, st2 = _conv2_bn_stats(y1p, a1, b1, w2m, Ho, Wo)

    tot2 = jnp.sum(st2, axis=0)
    a2, b2 = _bn_affine(tot2[0], tot2[1], Mtot, params["g2"], params["be2"], cp_out)

    # Pass 3: BN2 + residual (+ shortcut BN) + ReLU, tiled lane-dense over rows.
    y2_flat = y2.reshape(Mtot, cp_out)
    if has_sc:
        a_s, b_s = _bn_affine(tot1[2], tot1[3], Mtot, params["gs"], params["bes"], cp_out)
        res_flat = r_sc.reshape(Mtot, cp_out)
    else:
        a_s = b_s = None
        res_flat = x_cp.reshape(Mtot, cp_out)      # identity: Cin==Cout, stride==1
    out_flat = _finalize(y2_flat, res_flat, a2, b2, a_s, b_s, has_sc)

    out = out_flat.reshape(N, Ho, Wo, cp_out)[:, :, :, :Cout]
    return jnp.transpose(out, (0, 3, 1, 2))


# ----------------------------------------------------------------------------
# Pure-JAX reference (NCHW, mirrors the PyTorch forward in training mode)
# ----------------------------------------------------------------------------
def res_block_reference(x, p, stride=1):
    def conv(x, w, b, s, pad):
        y = jax.lax.conv_general_dilated(
            x, w, (s, s), [(pad, pad), (pad, pad)],
            dimension_numbers=("NCHW", "OIHW", "NCHW"),
            precision=jax.lax.Precision.HIGHEST)
        return y + b[None, :, None, None]

    def bn(x, g, b):
        mean = jnp.mean(x, axis=(0, 2, 3), keepdims=True)
        var = jnp.mean((x - mean) ** 2, axis=(0, 2, 3), keepdims=True)
        return (x - mean) * jax.lax.rsqrt(var + EPS) * g[None, :, None, None] \
               + b[None, :, None, None]

    residual = x
    if "ws" in p:
        residual = bn(conv(x, p["ws"], p["bs"], stride, 0), p["gs"], p["bes"])
    out = jax.nn.relu(bn(conv(x, p["w1"], p["b1"], stride, 1), p["g1"], p["be1"]))
    out = bn(conv(out, p["w2"], p["b2"], 1, 1), p["g2"], p["be2"])
    return jax.nn.relu(out + residual)


if __name__ == "__main__":
    in_channels, out_channels, stride = 4, 8, 1
    key = jax.random.PRNGKey(0)
    k_x, k_p = jax.random.split(key)

    x = jax.random.normal(k_x, (2, in_channels, 16, 16), jnp.float32)
    params = init_res_block_params(k_p, in_channels, out_channels, stride)

    out = jax.block_until_ready(res_block_forward(x, params, stride=stride))

    ref = jax.block_until_ready(res_block_reference(x, params, stride=stride))
    # Tolerance reflects single-pass bf16 MXU inputs + bf16 intermediates vs an
    # f32 Precision.HIGHEST reference (observed error is well inside this).
    np.testing.assert_allclose(np.asarray(out), np.asarray(ref),
                               rtol=5e-2, atol=8e-2)
    print("KERNEL_OK")
</pallas_src>

<mosaic_0001>
module attributes {stable_mosaic.version = 11 : i64} {
  func.func @_conv1_kernel(%arg0: i32, %arg1: memref<1x1x18x18x128xf32, #tpu.memory_space<vmem>>, %arg2: memref<9x128x128xbf16, #tpu.memory_space<vmem>>, %arg3: memref<128x128xbf16, #tpu.memory_space<vmem>>, %arg4: memref<1x16x16x128xbf16, #tpu.memory_space<vmem>>, %arg5: memref<1x8x128xf32, #tpu.memory_space<vmem>>, %arg6: memref<1x16x16x128xbf16, #tpu.memory_space<vmem>>) attributes {dimension_semantics = [#tpu.dimension_semantics<parallel>], iteration_bounds = array<i64: 2>, scalar_prefetch = 0 : i64, scratch_operands = 0 : i64, tpu.core_type = #tpu.core_type<tc>, window_params = [{transform_indices = @transform_0, window_bounds = array<i64: 1, 1, 18, 18, 128>}, {pipeline_mode = #tpu.pipeline_mode<synchronous>, transform_indices = @transform_1, window_bounds = array<i64: 9, 128, 128>}, {pipeline_mode = #tpu.pipeline_mode<synchronous>, transform_indices = @transform_2, window_bounds = array<i64: 128, 128>}, {transform_indices = @transform_3, window_bounds = array<i64: 1, 16, 16, 128>}, {transform_indices = @transform_4, window_bounds = array<i64: 1, 8, 128>}, {transform_indices = @transform_5, window_bounds = array<i64: 1, 16, 16, 128>}]} {
    %cst = arith.constant 0.000000e+00 : f32
    %0 = vector.broadcast %cst : f32 to vector<256x128xf32>
    %c0 = arith.constant 0 : index
    %c0_0 = arith.constant 0 : index
    %c0_1 = arith.constant 0 : index
    %c0_2 = arith.constant 0 : index
    %c0_3 = arith.constant 0 : index
    %1 = vector.load %arg1[%c0, %c0_0, %c0_1, %c0_2, %c0_3] : memref<1x1x18x18x128xf32, #tpu.memory_space<vmem>>, vector<1x1x16x16x128xf32>
    %2 = vector.shape_cast %1 : vector<1x1x16x16x128xf32> to vector<16x16x128xf32>
    %3 = vector.shape_cast %2 : vector<16x16x128xf32> to vector<256x128xf32>
    %4 = arith.truncf %3 : vector<256x128xf32> to vector<256x128xbf16>
    %c0_4 = arith.constant 0 : index
    %c0_5 = arith.constant 0 : index
    %c0_6 = arith.constant 0 : index
    %5 = vector.load %arg2[%c0_4, %c0_5, %c0_6] : memref<9x128x128xbf16, #tpu.memory_space<vmem>>, vector<1x128x128xbf16>
    %6 = vector.shape_cast %5 : vector<1x128x128xbf16> to vector<128x128xbf16>
    %cst_7 = arith.constant dense<0.000000e+00> : vector<256x128xf32>
    %7 = tpu.matmul %4, %6, %cst_7 {dimension_numbers = #tpu.dot_dimension_numbers<[1], [0], [0], [1], [0, 0, 1, 1], [], []>} : vector<256x128xbf16>, vector<128x128xbf16>, vector<256x128xf32> -> vector<256x128xf32>
    %8 = arith.addf %0, %7 : vector<256x128xf32>
    %c0_8 = arith.constant 0 : index
    %c0_9 = arith.constant 0 : index
    %c0_10 = arith.constant 0 : index
    %c1 = arith.constant 1 : index
    %c0_11 = arith.constant 0 : index
    %9 = vector.load %arg1[%c0_8, %c0_9, %c0_10, %c1, %c0_11] : memref<1x1x18x18x128xf32, #tpu.memory_space<vmem>>, vector<1x1x16x16x128xf32>
    %10 = vector.shape_cast %9 : vector<1x1x16x16x128xf32> to vector<16x16x128xf32>
    %11 = vector.shape_cast %10 : vector<16x16x128xf32> to vector<256x128xf32>
    %12 = arith.truncf %11 : vector<256x128xf32> to vector<256x128xbf16>
    %c1_12 = arith.constant 1 : index
    %c0_13 = arith.constant 0 : index
    %c0_14 = arith.constant 0 : index
    %13 = vector.load %arg2[%c1_12, %c0_13, %c0_14] : memref<9x128x128xbf16, #tpu.memory_space<vmem>>, vector<1x128x128xbf16>
    %14 = vector.shape_cast %13 : vector<1x128x128xbf16> to vector<128x128xbf16>
    %cst_15 = arith.constant dense<0.000000e+00> : vector<256x128xf32>
    %15 = tpu.matmul %12, %14, %cst_15 {dimension_numbers = #tpu.dot_dimension_numbers<[1], [0], [0], [1], [0, 0, 1, 1], [], []>} : vector<256x128xbf16>, vector<128x128xbf16>, vector<256x128xf32> -> vector<256x128xf32>
    %16 = arith.addf %8, %15 : vector<256x128xf32>
    %c0_16 = arith.constant 0 : index
    %c0_17 = arith.constant 0 : index
    %c0_18 = arith.constant 0 : index
    %c2 = arith.constant 2 : index
    %c0_19 = arith.constant 0 : index
    %17 = vector.load %arg1[%c0_16, %c0_17, %c0_18, %c2, %c0_19] : memref<1x1x18x18x128xf32, #tpu.memory_space<vmem>>, vector<1x1x16x16x128xf32>
    %18 = vector.shape_cast %17 : vector<1x1x16x16x128xf32> to vector<16x16x128xf32>
    %19 = vector.shape_cast %18 : vector<16x16x128xf32> to vector<256x128xf32>
    %20 = arith.truncf %19 : vector<256x128xf32> to vector<256x128xbf16>
    %c2_20 = arith.constant 2 : index
    %c0_21 = arith.constant 0 : index
    %c0_22 = arith.constant 0 : index
    %21 = vector.load %arg2[%c2_20, %c0_21, %c0_22] : memref<9x128x128xbf16, #tpu.memory_space<vmem>>, vector<1x128x128xbf16>
    %22 = vector.shape_cast %21 : vector<1x128x128xbf16> to vector<128x128xbf16>
    %cst_23 = arith.constant dense<0.000000e+00> : vector<256x128xf32>
    %23 = tpu.matmul %20, %22, %cst_23 {dimension_numbers = #tpu.dot_dimension_numbers<[1], [0], [0], [1], [0, 0, 1, 1], [], []>} : vector<256x128xbf16>, vector<128x128xbf16>, vector<256x128xf32> -> vector<256x128xf32>
    %24 = arith.addf %16, %23 : vector<256x128xf32>
    %c0_24 = arith.constant 0 : index
    %c0_25 = arith.constant 0 : index
    %c1_26 = arith.constant 1 : index
    %c0_27 = arith.constant 0 : index
    %c0_28 = arith.constant 0 : index
    %25 = vector.load %arg1[%c0_24, %c0_25, %c1_26, %c0_27, %c0_28] : memref<1x1x18x18x128xf32, #tpu.memory_space<vmem>>, vector<1x1x16x16x128xf32>
    %26 = vector.shape_cast %25 : vector<1x1x16x16x128xf32> to vector<16x16x128xf32>
    %27 = vector.shape_cast %26 : vector<16x16x128xf32> to vector<256x128xf32>
    %28 = arith.truncf %27 : vector<256x128xf32> to vector<256x128xbf16>
    %c3 = arith.constant 3 : index
    %c0_29 = arith.constant 0 : index
    %c0_30 = arith.constant 0 : index
    %29 = vector.load %arg2[%c3, %c0_29, %c0_30] : memref<9x128x128xbf16, #tpu.memory_space<vmem>>, vector<1x128x128xbf16>
    %30 = vector.shape_cast %29 : vector<1x128x128xbf16> to vector<128x128xbf16>
    %cst_31 = arith.constant dense<0.000000e+00> : vector<256x128xf32>
    %31 = tpu.matmul %28, %30, %cst_31 {dimension_numbers = #tpu.dot_dimension_numbers<[1], [0], [0], [1], [0, 0, 1, 1], [], []>} : vector<256x128xbf16>, vector<128x128xbf16>, vector<256x128xf32> -> vector<256x128xf32>
    %32 = arith.addf %24, %31 : vector<256x128xf32>
    %c0_32 = arith.constant 0 : index
    %c0_33 = arith.constant 0 : index
    %c1_34 = arith.constant 1 : index
    %c1_35 = arith.constant 1 : index
    %c0_36 = arith.constant 0 : index
    %33 = vector.load %arg1[%c0_32, %c0_33, %c1_34, %c1_35, %c0_36] : memref<1x1x18x18x128xf32, #tpu.memory_space<vmem>>, vector<1x1x16x16x128xf32>
    %34 = vector.shape_cast %33 : vector<1x1x16x16x128xf32> to vector<16x16x128xf32>
    %35 = vector.shape_cast %34 : vector<16x16x128xf32> to vector<256x128xf32>
    %36 = arith.truncf %35 : vector<256x128xf32> to vector<256x128xbf16>
    %c4 = arith.constant 4 : index
    %c0_37 = arith.constant 0 : index
    %c0_38 = arith.constant 0 : index
    %37 = vector.load %arg2[%c4, %c0_37, %c0_38] : memref<9x128x128xbf16, #tpu.memory_space<vmem>>, vector<1x128x128xbf16>
    %38 = vector.shape_cast %37 : vector<1x128x128xbf16> to vector<128x128xbf16>
    %cst_39 = arith.constant dense<0.000000e+00> : vector<256x128xf32>
    %39 = tpu.matmul %36, %38, %cst_39 {dimension_numbers = #tpu.dot_dimension_numbers<[1], [0], [0], [1], [0, 0, 1, 1], [], []>} : vector<256x128xbf16>, vector<128x128xbf16>, vector<256x128xf32> -> vector<256x128xf32>
    %40 = arith.addf %32, %39 : vector<256x128xf32>
    %c0_40 = arith.constant 0 : index
    %c0_41 = arith.constant 0 : index
    %41 = vector.load %arg3[%c0_40, %c0_41] : memref<128x128xbf16, #tpu.memory_space<vmem>>, vector<128x128xbf16>
    %cst_42 = arith.constant dense<0.000000e+00> : vector<256x128xf32>
    %42 = tpu.matmul %36, %41, %cst_42 {dimension_numbers = #tpu.dot_dimension_numbers<[1], [0], [0], [1], [0, 0, 1, 1], [], []>} : vector<256x128xbf16>, vector<128x128xbf16>, vector<256x128xf32> -> vector<256x128xf32>
    %c0_43 = arith.constant 0 : index
    %c0_44 = arith.constant 0 : index
    %c1_45 = arith.constant 1 : index
    %c2_46 = arith.constant 2 : index
    %c0_47 = arith.constant 0 : index
    %43 = vector.load %arg1[%c0_43, %c0_44, %c1_45, %c2_46, %c0_47] : memref<1x1x18x18x128xf32, #tpu.memory_space<vmem>>, vector<1x1x16x16x128xf32>
    %44 = vector.shape_cast %43 : vector<1x1x16x16x128xf32> to vector<16x16x128xf32>
    %45 = vector.shape_cast %44 : vector<16x16x128xf32> to vector<256x128xf32>
    %46 = arith.truncf %45 : vector<256x128xf32> to vector<256x128xbf16>
    %c5 = arith.constant 5 : index
    %c0_48 = arith.constant 0 : index
    %c0_49 = arith.constant 0 : index
    %47 = vector.load %arg2[%c5, %c0_48, %c0_49] : memref<9x128x128xbf16, #tpu.memory_space<vmem>>, vector<1x128x128xbf16>
    %48 = vector.shape_cast %47 : vector<1x128x128xbf16> to vector<128x128xbf16>
    %cst_50 = arith.constant dense<0.000000e+00> : vector<256x128xf32>
    %49 = tpu.matmul %46, %48, %cst_50 {dimension_numbers = #tpu.dot_dimension_numbers<[1], [0], [0], [1], [0, 0, 1, 1], [], []>} : vector<256x128xbf16>, vector<128x128xbf16>, vector<256x128xf32> -> vector<256x128xf32>
    %50 = arith.addf %40, %49 : vector<256x128xf32>
    %c0_51 = arith.constant 0 : index
    %c0_52 = arith.constant 0 : index
    %c2_53 = arith.constant 2 : index
    %c0_54 = arith.constant 0 : index
    %c0_55 = arith.constant 0 : index
    %51 = vector.load %arg1[%c0_51, %c0_52, %c2_53, %c0_54, %c0_55] : memref<1x1x18x18x128xf32, #tpu.memory_space<vmem>>, vector<1x1x16x16x128xf32>
    %52 = vector.shape_cast %51 : vector<1x1x16x16x128xf32> to vector<16x16x128xf32>
    %53 = vector.shape_cast %52 : vector<16x16x128xf32> to vector<256x128xf32>
    %54 = arith.truncf %53 : vector<256x128xf32> to vector<256x128xbf16>
    %c6 = arith.constant 6 : index
    %c0_56 = arith.constant 0 : index
    %c0_57 = arith.constant 0 : index
    %55 = vector.load %arg2[%c6, %c0_56, %c0_57] : memref<9x128x128xbf16, #tpu.memory_space<vmem>>, vector<1x128x128xbf16>
    %56 = vector.shape_cast %55 : vector<1x128x128xbf16> to vector<128x128xbf16>
    %cst_58 = arith.constant dense<0.000000e+00> : vector<256x128xf32>
    %57 = tpu.matmul %54, %56, %cst_58 {dimension_numbers = #tpu.dot_dimension_numbers<[1], [0], [0], [1], [0, 0, 1, 1], [], []>} : vector<256x128xbf16>, vector<128x128xbf16>, vector<256x128xf32> -> vector<256x128xf32>
    %58 = arith.addf %50, %57 : vector<256x128xf32>
    %c0_59 = arith.constant 0 : index
    %c0_60 = arith.constant 0 : index
    %c2_61 = arith.constant 2 : index
    %c1_62 = arith.constant 1 : index
    %c0_63 = arith.constant 0 : index
    %59 = vector.load %arg1[%c0_59, %c0_60, %c2_61, %c1_62, %c0_63] : memref<1x1x18x18x128xf32, #tpu.memory_space<vmem>>, vector<1x1x16x16x128xf32>
    %60 = vector.shape_cast %59 : vector<1x1x16x16x128xf32> to vector<16x16x128xf32>
    %61 = vector.shape_cast %60 : vector<16x16x128xf32> to vector<256x128xf32>
    %62 = arith.truncf %61 : vector<256x128xf32> to vector<256x128xbf16>
    %c7 = arith.constant 7 : index
    %c0_64 = arith.constant 0 : index
    %c0_65 = arith.constant 0 : index
    %63 = vector.load %arg2[%c7, %c0_64, %c0_65] : memref<9x128x128xbf16, #tpu.memory_space<vmem>>, vector<1x128x128xbf16>
    %64 = vector.shape_cast %63 : vector<1x128x128xbf16> to vector<128x128xbf16>
    %cst_66 = arith.constant dense<0.000000e+00> : vector<256x128xf32>
    %65 = tpu.matmul %62, %64, %cst_66 {dimension_numbers = #tpu.dot_dimension_numbers<[1], [0], [0], [1], [0, 0, 1, 1], [], []>} : vector<256x128xbf16>, vector<128x128xbf16>, vector<256x128xf32> -> vector<256x128xf32>
    %66 = arith.addf %58, %65 : vector<256x128xf32>
    %c0_67 = arith.constant 0 : index
    %c0_68 = arith.constant 0 : index
    %c2_69 = arith.constant 2 : index
    %c2_70 = arith.constant 2 : index
    %c0_71 = arith.constant 0 : index
    %67 = vector.load %arg1[%c0_67, %c0_68, %c2_69, %c2_70, %c0_71] : memref<1x1x18x18x128xf32, #tpu.memory_space<vmem>>, vector<1x1x16x16x128xf32>
    %68 = vector.shape_cast %67 : vector<1x1x16x16x128xf32> to vector<16x16x128xf32>
    %69 = vector.shape_cast %68 : vector<16x16x128xf32> to vector<256x128xf32>
    %70 = arith.truncf %69 : vector<256x128xf32> to vector<256x128xbf16>
    %c8 = arith.constant 8 : index
    %c0_72 = arith.constant 0 : index
    %c0_73 = arith.constant 0 : index
    %71 = vector.load %arg2[%c8, %c0_72, %c0_73] : memref<9x128x128xbf16, #tpu.memory_space<vmem>>, vector<1x128x128xbf16>
    %72 = vector.shape_cast %71 : vector<1x128x128xbf16> to vector<128x128xbf16>
    %cst_74 = arith.constant dense<0.000000e+00> : vector<256x128xf32>
    %73 = tpu.matmul %70, %72, %cst_74 {dimension_numbers = #tpu.dot_dimension_numbers<[1], [0], [0], [1], [0, 0, 1, 1], [], []>} : vector<256x128xbf16>, vector<128x128xbf16>, vector<256x128xf32> -> vector<256x128xf32>
    %74 = arith.addf %66, %73 : vector<256x128xf32>
    %75 = vector.shape_cast %74 : vector<256x128xf32> to vector<16x16x128xf32>
    %76 = arith.truncf %75 : vector<16x16x128xf32> to vector<16x16x128xbf16>
    %c0_75 = arith.constant 0 : index
    %c0_76 = arith.constant 0 : index
    %c0_77 = arith.constant 0 : index
    %c0_78 = arith.constant 0 : index
    %77 = vector.load %arg4[%c0_75, %c0_76, %c0_77, %c0_78] : memref<1x16x16x128xbf16, #tpu.memory_space<vmem>>, vector<1x16x16x128xbf16>
    %78 = vector.shape_cast %77 : vector<1x16x16x128xbf16> to vector<16x16x128xbf16>
    %79 = vector.shape_cast %76 : vector<16x16x128xbf16> to vector<1x16x16x128xbf16>
    tpu.vector_store %arg4[%c0_75, %c0_76, %c0_77, %c0_78], %79 {strides = array<i32>} : memref<1x16x16x128xbf16, #tpu.memory_space<vmem>>, vector<1x16x16x128xbf16>,
    %cst_79 = arith.constant dense<0.000000e+00> : vector<128xf32>
    %80 = vector.multi_reduction <add>, %74, %cst_79 [0] : vector<256x128xf32> to vector<128xf32>
    %81 = vector.shape_cast %80 : vector<128xf32> to vector<1x128xf32>
    %c0_80 = arith.constant 0 : index
    %c0_81 = arith.constant 0 : index
    %c0_82 = arith.constant 0 : index
    %82 = vector.load %arg5[%c0_80, %c0_81, %c0_82] : memref<1x8x128xf32, #tpu.memory_space<vmem>>, vector<1x1x128xf32>
    %83 = vector.shape_cast %82 : vector<1x1x128xf32> to vector<1x128xf32>
    %84 = vector.shape_cast %81 : vector<1x128xf32> to vector<1x1x128xf32>
    tpu.vector_store %arg5[%c0_80, %c0_81, %c0_82], %84 {strides = array<i32>} : memref<1x8x128xf32, #tpu.memory_space<vmem>>, vector<1x1x128xf32>,
    %85 = arith.mulf %74, %74 : vector<256x128xf32>
    %cst_83 = arith.constant dense<0.000000e+00> : vector<128xf32>
    %86 = vector.multi_reduction <add>, %85, %cst_83 [0] : vector<256x128xf32> to vector<128xf32>
    %87 = vector.shape_cast %86 : vector<128xf32> to vector<1x128xf32>
    %c0_84 = arith.constant 0 : index
    %c1_85 = arith.constant 1 : index
    %c0_86 = arith.constant 0 : index
    %88 = vector.load %arg5[%c0_84, %c1_85, %c0_86] : memref<1x8x128xf32, #tpu.memory_space<vmem>>, vector<1x1x128xf32>
    %89 = vector.shape_cast %88 : vector<1x1x128xf32> to vector<1x128xf32>
    %90 = vector.shape_cast %87 : vector<1x128xf32> to vector<1x1x128xf32>
    tpu.vector_store %arg5[%c0_84, %c1_85, %c0_86], %90 {strides = array<i32>} : memref<1x8x128xf32, #tpu.memory_space<vmem>>, vector<1x1x128xf32>,
    %91 = vector.shape_cast %42 : vector<256x128xf32> to vector<16x16x128xf32>
    %92 = arith.truncf %91 : vector<16x16x128xf32> to vector<16x16x128xbf16>
    %c0_87 = arith.constant 0 : index
    %c0_88 = arith.constant 0 : index
    %c0_89 = arith.constant 0 : index
    %c0_90 = arith.constant 0 : index
    %93 = vector.load %arg6[%c0_87, %c0_88, %c0_89, %c0_90] : memref<1x16x16x128xbf16, #tpu.memory_space<vmem>>, vector<1x16x16x128xbf16>
    %94 = vector.shape_cast %93 : vector<1x16x16x128xbf16> to vector<16x16x128xbf16>
    %95 = vector.shape_cast %92 : vector<16x16x128xbf16> to vector<1x16x16x128xbf16>
    tpu.vector_store %arg6[%c0_87, %c0_88, %c0_89, %c0_90], %95 {strides = array<i32>} : memref<1x16x16x128xbf16, #tpu.memory_space<vmem>>, vector<1x16x16x128xbf16>,
    %cst_91 = arith.constant dense<0.000000e+00> : vector<128xf32>
    %96 = vector.multi_reduction <add>, %42, %cst_91 [0] : vector<256x128xf32> to vector<128xf32>
    %97 = vector.shape_cast %96 : vector<128xf32> to vector<1x128xf32>
    %c0_92 = arith.constant 0 : index
    %c2_93 = arith.constant 2 : index
    %c0_94 = arith.constant 0 : index
    %98 = vector.load %arg5[%c0_92, %c2_93, %c0_94] : memref<1x8x128xf32, #tpu.memory_space<vmem>>, vector<1x1x128xf32>
    %99 = vector.shape_cast %98 : vector<1x1x128xf32> to vector<1x128xf32>
    %100 = vector.shape_cast %97 : vector<1x128xf32> to vector<1x1x128xf32>
    tpu.vector_store %arg5[%c0_92, %c2_93, %c0_94], %100 {strides = array<i32>} : memref<1x8x128xf32, #tpu.memory_space<vmem>>, vector<1x1x128xf32>,
    %101 = arith.mulf %42, %42 : vector<256x128xf32>
    %cst_95 = arith.constant dense<0.000000e+00> : vector<128xf32>
    %102 = vector.multi_reduction <add>, %101, %cst_95 [0] : vector<256x128xf32> to vector<128xf32>
    %103 = vector.shape_cast %102 : vector<128xf32> to vector<1x128xf32>
    %c0_96 = arith.constant 0 : index
    %c3_97 = arith.constant 3 : index
    %c0_98 = arith.constant 0 : index
    %104 = vector.load %arg5[%c0_96, %c3_97, %c0_98] : memref<1x8x128xf32, #tpu.memory_space<vmem>>, vector<1x1x128xf32>
    %105 = vector.shape_cast %104 : vector<1x1x128xf32> to vector<1x128xf32>
    %106 = vector.shape_cast %103 : vector<1x128xf32> to vector<1x1x128xf32>
    tpu.vector_store %arg5[%c0_96, %c3_97, %c0_98], %106 {strides = array<i32>} : memref<1x8x128xf32, #tpu.memory_space<vmem>>, vector<1x1x128xf32>,
    %cst_99 = arith.constant 0.000000e+00 : f32
    %107 = vector.broadcast %cst_99 : f32 to vector<4x128xf32>
    %c0_100 = arith.constant 0 : index
    %c4_101 = arith.constant 4 : index
    %c0_102 = arith.constant 0 : index
    %108 = vector.load %arg5[%c0_100, %c4_101, %c0_102] : memref<1x8x128xf32, #tpu.memory_space<vmem>>, vector<1x4x128xf32>
    %109 = vector.shape_cast %108 : vector<1x4x128xf32> to vector<4x128xf32>
    %110 = vector.shape_cast %107 : vector<4x128xf32> to vector<1x4x128xf32>
    tpu.vector_store %arg5[%c0_100, %c4_101, %c0_102], %110 {strides = array<i32>} : memref<1x8x128xf32, #tpu.memory_space<vmem>>, vector<1x4x128xf32>,
    return
  }
  func.func @transform_0(%arg0: i32) -> (i32, i32, i32, i32, i32) {
    %c0_i32 = arith.constant 0 : i32
    %c0_i32_0 = arith.constant 0 : i32
    %c0_i32_1 = arith.constant 0 : i32
    %c0_i32_2 = arith.constant 0 : i32
    %c0_i32_3 = arith.constant 0 : i32
    return %arg0, %c0_i32, %c0_i32_0, %c0_i32_1, %c0_i32_2 : i32, i32, i32, i32, i32
  }
  func.func @transform_1(%arg0: i32) -> (i32, i32, i32) {
    %c0_i32 = arith.constant 0 : i32
    %c0_i32_0 = arith.constant 0 : i32
    %c0_i32_1 = arith.constant 0 : i32
    %c0_i32_2 = arith.constant 0 : i32
    return %c0_i32, %c0_i32_0, %c0_i32_1 : i32, i32, i32
  }
  func.func @transform_2(%arg0: i32) -> (i32, i32) {
    %c0_i32 = arith.constant 0 : i32
    %c0_i32_0 = arith.constant 0 : i32
    %c0_i32_1 = arith.constant 0 : i32
    return %c0_i32, %c0_i32_0 : i32, i32
  }
  func.func @transform_3(%arg0: i32) -> (i32, i32, i32, i32) {
    %c0_i32 = arith.constant 0 : i32
    %c0_i32_0 = arith.constant 0 : i32
    %c0_i32_1 = arith.constant 0 : i32
    %c0_i32_2 = arith.constant 0 : i32
    return %arg0, %c0_i32, %c0_i32_0, %c0_i32_1 : i32, i32, i32, i32
  }
  func.func @transform_4(%arg0: i32) -> (i32, i32, i32) {
    %c0_i32 = arith.constant 0 : i32
    %c0_i32_0 = arith.constant 0 : i32
    %c0_i32_1 = arith.constant 0 : i32
    return %arg0, %c0_i32, %c0_i32_0 : i32, i32, i32
  }
  func.func @transform_5(%arg0: i32) -> (i32, i32, i32, i32) {
    %c0_i32 = arith.constant 0 : i32
    %c0_i32_0 = arith.constant 0 : i32
    %c0_i32_1 = arith.constant 0 : i32
    %c0_i32_2 = arith.constant 0 : i32
    return %arg0, %c0_i32, %c0_i32_0, %c0_i32_1 : i32, i32, i32, i32
  }
}

module attributes {stable_mosaic.version = 11 : i64} {
  func.func @_conv2_kernel(%arg0: i32, %arg1: memref<1x18x18x128xbf16, #tpu.memory_space<vmem>>, %arg2: memref<1x128xf32, #tpu.memory_space<vmem>>, %arg3: memref<1x128xf32, #tpu.memory_space<vmem>>, %arg4: memref<9x128x128xbf16, #tpu.memory_space<vmem>>, %arg5: memref<1x16x16x128xbf16, #tpu.memory_space<vmem>>, %arg6: memref<1x8x128xf32, #tpu.memory_space<vmem>>, %arg7: memref<18x18x128xf32, #tpu.memory_space<vmem>>) attributes {dimension_semantics = [#tpu.dimension_semantics<parallel>], iteration_bounds = array<i64: 2>, scalar_prefetch = 0 : i64, scratch_operands = 1 : i64, tpu.core_type = #tpu.core_type<tc>, window_params = [{transform_indices = @transform_0, window_bounds = array<i64: 1, 18, 18, 128>}, {pipeline_mode = #tpu.pipeline_mode<synchronous>, transform_indices = @transform_1, window_bounds = array<i64: 1, 128>}, {pipeline_mode = #tpu.pipeline_mode<synchronous>, transform_indices = @transform_2, window_bounds = array<i64: 1, 128>}, {pipeline_mode = #tpu.pipeline_mode<synchronous>, transform_indices = @transform_3, window_bounds = array<i64: 9, 128, 128>}, {transform_indices = @transform_4, window_bounds = array<i64: 1, 16, 16, 128>}, {transform_indices = @transform_5, window_bounds = array<i64: 1, 8, 128>}]} {
    %c0 = arith.constant 0 : index
    %c0_0 = arith.constant 0 : index
    %0 = vector.load %arg2[%c0, %c0_0] : memref<1x128xf32, #tpu.memory_space<vmem>>, vector<1x128xf32>
    %1 = vector.shape_cast %0 : vector<1x128xf32> to vector<1x1x128xf32>
    %c0_1 = arith.constant 0 : index
    %c0_2 = arith.constant 0 : index
    %2 = vector.load %arg3[%c0_1, %c0_2] : memref<1x128xf32, #tpu.memory_space<vmem>>, vector<1x128xf32>
    %3 = vector.shape_cast %2 : vector<1x128xf32> to vector<1x1x128xf32>
    %c0_3 = arith.constant 0 : index
    %c0_4 = arith.constant 0 : index
    %c0_5 = arith.constant 0 : index
    %c0_6 = arith.constant 0 : index
    %4 = vector.load %arg1[%c0_3, %c0_4, %c0_5, %c0_6] : memref<1x18x18x128xbf16, #tpu.memory_space<vmem>>, vector<1x18x18x128xbf16>
    %5 = vector.shape_cast %4 : vector<1x18x18x128xbf16> to vector<18x18x128xbf16>
    %6 = arith.extf %5 : vector<18x18x128xbf16> to vector<18x18x128xf32>
    %7 = vector.broadcast %1 : vector<1x1x128xf32> to vector<18x18x128xf32>
    %8 = arith.mulf %6, %7 : vector<18x18x128xf32>
    %9 = vector.broadcast %3 : vector<1x1x128xf32> to vector<18x18x128xf32>
    %10 = arith.addf %8, %9 : vector<18x18x128xf32>
    %cst = arith.constant 0.000000e+00 : f32
    %11 = vector.broadcast %cst : f32 to vector<18x18x128xf32>
    %12 = arith.maximumf %10, %11 : vector<18x18x128xf32>
    %c0_7 = arith.constant 0 : index
    %c0_8 = arith.constant 0 : index
    %c0_9 = arith.constant 0 : index
    %13 = vector.load %arg7[%c0_7, %c0_8, %c0_9] : memref<18x18x128xf32, #tpu.memory_space<vmem>>, vector<18x18x128xf32>
    tpu.vector_store %arg7[%c0_7, %c0_8, %c0_9], %12 {strides = array<i32>} : memref<18x18x128xf32, #tpu.memory_space<vmem>>, vector<18x18x128xf32>,
    %cst_10 = arith.constant 0.000000e+00 : f32
    %14 = vector.broadcast %cst_10 : f32 to vector<1x18x128xf32>
    %cst_11 = arith.constant 0.000000e+00 : f32
    %15 = vector.broadcast %cst_11 : f32 to vector<18x1x128xf32>
    %c0_12 = arith.constant 0 : index
    %c0_13 = arith.constant 0 : index
    %c0_14 = arith.constant 0 : index
    %16 = vector.load %arg7[%c0_12, %c0_13, %c0_14] : memref<18x18x128xf32, #tpu.memory_space<vmem>>, vector<1x18x128xf32>
    tpu.vector_store %arg7[%c0_12, %c0_13, %c0_14], %14 {strides = array<i32>} : memref<18x18x128xf32, #tpu.memory_space<vmem>>, vector<1x18x128xf32>,
    %c17 = arith.constant 17 : index
    %c0_15 = arith.constant 0 : index
    %c0_16 = arith.constant 0 : index
    %17 = vector.load %arg7[%c17, %c0_15, %c0_16] : memref<18x18x128xf32, #tpu.memory_space<vmem>>, vector<1x18x128xf32>
    tpu.vector_store %arg7[%c17, %c0_15, %c0_16], %14 {strides = array<i32>} : memref<18x18x128xf32, #tpu.memory_space<vmem>>, vector<1x18x128xf32>,
    %c0_17 = arith.constant 0 : index
    %c0_18 = arith.constant 0 : index
    %c0_19 = arith.constant 0 : index
    %18 = vector.load %arg7[%c0_17, %c0_18, %c0_19] : memref<18x18x128xf32, #tpu.memory_space<vmem>>, vector<18x1x128xf32>
    tpu.vector_store %arg7[%c0_17, %c0_18, %c0_19], %15 {strides = array<i32>} : memref<18x18x128xf32, #tpu.memory_space<vmem>>, vector<18x1x128xf32>,
    %c0_20 = arith.constant 0 : index
    %c17_21 = arith.constant 17 : index
    %c0_22 = arith.constant 0 : index
    %19 = vector.load %arg7[%c0_20, %c17_21, %c0_22] : memref<18x18x128xf32, #tpu.memory_space<vmem>>, vector<18x1x128xf32>
    tpu.vector_store %arg7[%c0_20, %c17_21, %c0_22], %15 {strides = array<i32>} : memref<18x18x128xf32, #tpu.memory_space<vmem>>, vector<18x1x128xf32>,
    %cst_23 = arith.constant 0.000000e+00 : f32
    %20 = vector.broadcast %cst_23 : f32 to vector<256x128xf32>
    %c0_24 = arith.constant 0 : index
    %c0_25 = arith.constant 0 : index
    %c0_26 = arith.constant 0 : index
    %21 = vector.load %arg7[%c0_24, %c0_25, %c0_26] : memref<18x18x128xf32, #tpu.memory_space<vmem>>, vector<16x16x128xf32>
    %22 = vector.shape_cast %21 : vector<16x16x128xf32> to vector<256x128xf32>
    %23 = arith.truncf %22 : vector<256x128xf32> to vector<256x128xbf16>
    %c0_27 = arith.constant 0 : index
    %c0_28 = arith.constant 0 : index
    %c0_29 = arith.constant 0 : index
    %24 = vector.load %arg4[%c0_27, %c0_28, %c0_29] : memref<9x128x128xbf16, #tpu.memory_space<vmem>>, vector<1x128x128xbf16>
    %25 = vector.shape_cast %24 : vector<1x128x128xbf16> to vector<128x128xbf16>
    %cst_30 = arith.constant dense<0.000000e+00> : vector<256x128xf32>
    %26 = tpu.matmul %23, %25, %cst_30 {dimension_numbers = #tpu.dot_dimension_numbers<[1], [0], [0], [1], [0, 0, 1, 1], [], []>} : vector<256x128xbf16>, vector<128x128xbf16>, vector<256x128xf32> -> vector<256x128xf32>
    %27 = arith.addf %20, %26 : vector<256x128xf32>
    %c0_31 = arith.constant 0 : index
    %c1 = arith.constant 1 : index
    %c0_32 = arith.constant 0 : index
    %28 = vector.load %arg7[%c0_31, %c1, %c0_32] : memref<18x18x128xf32, #tpu.memory_space<vmem>>, vector<16x16x128xf32>
    %29 = vector.shape_cast %28 : vector<16x16x128xf32> to vector<256x128xf32>
    %30 = arith.truncf %29 : vector<256x128xf32> to vector<256x128xbf16>
    %c1_33 = arith.constant 1 : index
    %c0_34 = arith.constant 0 : index
    %c0_35 = arith.constant 0 : index
    %31 = vector.load %arg4[%c1_33, %c0_34, %c0_35] : memref<9x128x128xbf16, #tpu.memory_space<vmem>>, vector<1x128x128xbf16>
    %32 = vector.shape_cast %31 : vector<1x128x128xbf16> to vector<128x128xbf16>
    %cst_36 = arith.constant dense<0.000000e+00> : vector<256x128xf32>
    %33 = tpu.matmul %30, %32, %cst_36 {dimension_numbers = #tpu.dot_dimension_numbers<[1], [0], [0], [1], [0, 0, 1, 1], [], []>} : vector<256x128xbf16>, vector<128x128xbf16>, vector<256x128xf32> -> vector<256x128xf32>
    %34 = arith.addf %27, %33 : vector<256x128xf32>
    %c0_37 = arith.constant 0 : index
    %c2 = arith.constant 2 : index
    %c0_38 = arith.constant 0 : index
    %35 = vector.load %arg7[%c0_37, %c2, %c0_38] : memref<18x18x128xf32, #tpu.memory_space<vmem>>, vector<16x16x128xf32>
    %36 = vector.shape_cast %35 : vector<16x16x128xf32> to vector<256x128xf32>
    %37 = arith.truncf %36 : vector<256x128xf32> to vector<256x128xbf16>
    %c2_39 = arith.constant 2 : index
    %c0_40 = arith.constant 0 : index
    %c0_41 = arith.constant 0 : index
    %38 = vector.load %arg4[%c2_39, %c0_40, %c0_41] : memref<9x128x128xbf16, #tpu.memory_space<vmem>>, vector<1x128x128xbf16>
    %39 = vector.shape_cast %38 : vector<1x128x128xbf16> to vector<128x128xbf16>
    %cst_42 = arith.constant dense<0.000000e+00> : vector<256x128xf32>
    %40 = tpu.matmul %37, %39, %cst_42 {dimension_numbers = #tpu.dot_dimension_numbers<[1], [0], [0], [1], [0, 0, 1, 1], [], []>} : vector<256x128xbf16>, vector<128x128xbf16>, vector<256x128xf32> -> vector<256x128xf32>
    %41 = arith.addf %34, %40 : vector<256x128xf32>
    %c1_43 = arith.constant 1 : index
    %c0_44 = arith.constant 0 : index
    %c0_45 = arith.constant 0 : index
    %42 = vector.load %arg7[%c1_43, %c0_44, %c0_45] : memref<18x18x128xf32, #tpu.memory_space<vmem>>, vector<16x16x128xf32>
    %43 = vector.shape_cast %42 : vector<16x16x128xf32> to vector<256x128xf32>
    %44 = arith.truncf %43 : vector<256x128xf32> to vector<256x128xbf16>
    %c3 = arith.constant 3 : index
    %c0_46 = arith.constant 0 : index
    %c0_47 = arith.constant 0 : index
    %45 = vector.load %arg4[%c3, %c0_46, %c0_47] : memref<9x128x128xbf16, #tpu.memory_space<vmem>>, vector<1x128x128xbf16>
    %46 = vector.shape_cast %45 : vector<1x128x128xbf16> to vector<128x128xbf16>
    %cst_48 = arith.constant dense<0.000000e+00> : vector<256x128xf32>
    %47 = tpu.matmul %44, %46, %cst_48 {dimension_numbers = #tpu.dot_dimension_numbers<[1], [0], [0], [1], [0, 0, 1, 1], [], []>} : vector<256x128xbf16>, vector<128x128xbf16>, vector<256x128xf32> -> vector<256x128xf32>
    %48 = arith.addf %41, %47 : vector<256x128xf32>
    %c1_49 = arith.constant 1 : index
    %c1_50 = arith.constant 1 : index
    %c0_51 = arith.constant 0 : index
    %49 = vector.load %arg7[%c1_49, %c1_50, %c0_51] : memref<18x18x128xf32, #tpu.memory_space<vmem>>, vector<16x16x128xf32>
    %50 = vector.shape_cast %49 : vector<16x16x128xf32> to vector<256x128xf32>
    %51 = arith.truncf %50 : vector<256x128xf32> to vector<256x128xbf16>
    %c4 = arith.constant 4 : index
    %c0_52 = arith.constant 0 : index
    %c0_53 = arith.constant 0 : index
    %52 = vector.load %arg4[%c4, %c0_52, %c0_53] : memref<9x128x128xbf16, #tpu.memory_space<vmem>>, vector<1x128x128xbf16>
    %53 = vector.shape_cast %52 : vector<1x128x128xbf16> to vector<128x128xbf16>
    %cst_54 = arith.constant dense<0.000000e+00> : vector<256x128xf32>
    %54 = tpu.matmul %51, %53, %cst_54 {dimension_numbers = #tpu.dot_dimension_numbers<[1], [0], [0], [1], [0, 0, 1, 1], [], []>} : vector<256x128xbf16>, vector<128x128xbf16>, vector<256x128xf32> -> vector<256x128xf32>
    %55 = arith.addf %48, %54 : vector<256x128xf32>
    %c1_55 = arith.constant 1 : index
    %c2_56 = arith.constant 2 : index
    %c0_57 = arith.constant 0 : index
    %56 = vector.load %arg7[%c1_55, %c2_56, %c0_57] : memref<18x18x128xf32, #tpu.memory_space<vmem>>, vector<16x16x128xf32>
    %57 = vector.shape_cast %56 : vector<16x16x128xf32> to vector<256x128xf32>
    %58 = arith.truncf %57 : vector<256x128xf32> to vector<256x128xbf16>
    %c5 = arith.constant 5 : index
    %c0_58 = arith.constant 0 : index
    %c0_59 = arith.constant 0 : index
    %59 = vector.load %arg4[%c5, %c0_58, %c0_59] : memref<9x128x128xbf16, #tpu.memory_space<vmem>>, vector<1x128x128xbf16>
    %60 = vector.shape_cast %59 : vector<1x128x128xbf16> to vector<128x128xbf16>
    %cst_60 = arith.constant dense<0.000000e+00> : vector<256x128xf32>
    %61 = tpu.matmul %58, %60, %cst_60 {dimension_numbers = #tpu.dot_dimension_numbers<[1], [0], [0], [1], [0, 0, 1, 1], [], []>} : vector<256x128xbf16>, vector<128x128xbf16>, vector<256x128xf32> -> vector<256x128xf32>
    %62 = arith.addf %55, %61 : vector<256x128xf32>
    %c2_61 = arith.constant 2 : index
    %c0_62 = arith.constant 0 : index
    %c0_63 = arith.constant 0 : index
    %63 = vector.load %arg7[%c2_61, %c0_62, %c0_63] : memref<18x18x128xf32, #tpu.memory_space<vmem>>, vector<16x16x128xf32>
    %64 = vector.shape_cast %63 : vector<16x16x128xf32> to vector<256x128xf32>
    %65 = arith.truncf %64 : vector<256x128xf32> to vector<256x128xbf16>
    %c6 = arith.constant 6 : index
    %c0_64 = arith.constant 0 : index
    %c0_65 = arith.constant 0 : index
    %66 = vector.load %arg4[%c6, %c0_64, %c0_65] : memref<9x128x128xbf16, #tpu.memory_space<vmem>>, vector<1x128x128xbf16>
    %67 = vector.shape_cast %66 : vector<1x128x128xbf16> to vector<128x128xbf16>
    %cst_66 = arith.constant dense<0.000000e+00> : vector<256x128xf32>
    %68 = tpu.matmul %65, %67, %cst_66 {dimension_numbers = #tpu.dot_dimension_numbers<[1], [0], [0], [1], [0, 0, 1, 1], [], []>} : vector<256x128xbf16>, vector<128x128xbf16>, vector<256x128xf32> -> vector<256x128xf32>
    %69 = arith.addf %62, %68 : vector<256x128xf32>
    %c2_67 = arith.constant 2 : index
    %c1_68 = arith.constant 1 : index
    %c0_69 = arith.constant 0 : index
    %70 = vector.load %arg7[%c2_67, %c1_68, %c0_69] : memref<18x18x128xf32, #tpu.memory_space<vmem>>, vector<16x16x128xf32>
    %71 = vector.shape_cast %70 : vector<16x16x128xf32> to vector<256x128xf32>
    %72 = arith.truncf %71 : vector<256x128xf32> to vector<256x128xbf16>
    %c7 = arith.constant 7 : index
    %c0_70 = arith.constant 0 : index
    %c0_71 = arith.constant 0 : index
    %73 = vector.load %arg4[%c7, %c0_70, %c0_71] : memref<9x128x128xbf16, #tpu.memory_space<vmem>>, vector<1x128x128xbf16>
    %74 = vector.shape_cast %73 : vector<1x128x128xbf16> to vector<128x128xbf16>
    %cst_72 = arith.constant dense<0.000000e+00> : vector<256x128xf32>
    %75 = tpu.matmul %72, %74, %cst_72 {dimension_numbers = #tpu.dot_dimension_numbers<[1], [0], [0], [1], [0, 0, 1, 1], [], []>} : vector<256x128xbf16>, vector<128x128xbf16>, vector<256x128xf32> -> vector<256x128xf32>
    %76 = arith.addf %69, %75 : vector<256x128xf32>
    %c2_73 = arith.constant 2 : index
    %c2_74 = arith.constant 2 : index
    %c0_75 = arith.constant 0 : index
    %77 = vector.load %arg7[%c2_73, %c2_74, %c0_75] : memref<18x18x128xf32, #tpu.memory_space<vmem>>, vector<16x16x128xf32>
    %78 = vector.shape_cast %77 : vector<16x16x128xf32> to vector<256x128xf32>
    %79 = arith.truncf %78 : vector<256x128xf32> to vector<256x128xbf16>
    %c8 = arith.constant 8 : index
    %c0_76 = arith.constant 0 : index
    %c0_77 = arith.constant 0 : index
    %80 = vector.load %arg4[%c8, %c0_76, %c0_77] : memref<9x128x128xbf16, #tpu.memory_space<vmem>>, vector<1x128x128xbf16>
    %81 = vector.shape_cast %80 : vector<1x128x128xbf16> to vector<128x128xbf16>
    %cst_78 = arith.constant dense<0.000000e+00> : vector<256x128xf32>
    %82 = tpu.matmul %79, %81, %cst_78 {dimension_numbers = #tpu.dot_dimension_numbers<[1], [0], [0], [1], [0, 0, 1, 1], [], []>} : vector<256x128xbf16>, vector<128x128xbf16>, vector<256x128xf32> -> vector<256x128xf32>
    %83 = arith.addf %76, %82 : vector<256x128xf32>
    %84 = vector.shape_cast %83 : vector<256x128xf32> to vector<16x16x128xf32>
    %85 = arith.truncf %84 : vector<16x16x128xf32> to vector<16x16x128xbf16>
    %c0_79 = arith.constant 0 : index
    %c0_80 = arith.constant 0 : index
    %c0_81 = arith.constant 0 : index
    %c0_82 = arith.constant 0 : index
    %86 = vector.load %arg5[%c0_79, %c0_80, %c0_81, %c0_82] : memref<1x16x16x128xbf16, #tpu.memory_space<vmem>>, vector<1x16x16x128xbf16>
    %87 = vector.shape_cast %86 : vector<1x16x16x128xbf16> to vector<16x16x128xbf16>
    %88 = vector.shape_cast %85 : vector<16x16x128xbf16> to vector<1x16x16x128xbf16>
    tpu.vector_store %arg5[%c0_79, %c0_80, %c0_81, %c0_82], %88 {strides = array<i32>} : memref<1x16x16x128xbf16, #tpu.memory_space<vmem>>, vector<1x16x16x128xbf16>,
    %cst_83 = arith.constant dense<0.000000e+00> : vector<128xf32>
    %89 = vector.multi_reduction <add>, %83, %cst_83 [0] : vector<256x128xf32> to vector<128xf32>
    %90 = vector.shape_cast %89 : vector<128xf32> to vector<1x128xf32>
    %c0_84 = arith.constant 0 : index
    %c0_85 = arith.constant 0 : index
    %c0_86 = arith.constant 0 : index
    %91 = vector.load %arg6[%c0_84, %c0_85, %c0_86] : memref<1x8x128xf32, #tpu.memory_space<vmem>>, vector<1x1x128xf32>
    %92 = vector.shape_cast %91 : vector<1x1x128xf32> to vector<1x128xf32>
    %93 = vector.shape_cast %90 : vector<1x128xf32> to vector<1x1x128xf32>
    tpu.vector_store %arg6[%c0_84, %c0_85, %c0_86], %93 {strides = array<i32>} : memref<1x8x128xf32, #tpu.memory_space<vmem>>, vector<1x1x128xf32>,
    %94 = arith.mulf %83, %83 : vector<256x128xf32>
    %cst_87 = arith.constant dense<0.000000e+00> : vector<128xf32>
    %95 = vector.multi_reduction <add>, %94, %cst_87 [0] : vector<256x128xf32> to vector<128xf32>
    %96 = vector.shape_cast %95 : vector<128xf32> to vector<1x128xf32>
    %c0_88 = arith.constant 0 : index
    %c1_89 = arith.constant 1 : index
    %c0_90 = arith.constant 0 : index
    %97 = vector.load %arg6[%c0_88, %c1_89, %c0_90] : memref<1x8x128xf32, #tpu.memory_space<vmem>>, vector<1x1x128xf32>
    %98 = vector.shape_cast %97 : vector<1x1x128xf32> to vector<1x128xf32>
    %99 = vector.shape_cast %96 : vector<1x128xf32> to vector<1x1x128xf32>
    tpu.vector_store %arg6[%c0_88, %c1_89, %c0_90], %99 {strides = array<i32>} : memref<1x8x128xf32, #tpu.memory_space<vmem>>, vector<1x1x128xf32>,
    %cst_91 = arith.constant 0.000000e+00 : f32
    %100 = vector.broadcast %cst_91 : f32 to vector<6x128xf32>
    %c0_92 = arith.constant 0 : index
    %c2_93 = arith.constant 2 : index
    %c0_94 = arith.constant 0 : index
    %101 = vector.load %arg6[%c0_92, %c2_93, %c0_94] : memref<1x8x128xf32, #tpu.memory_space<vmem>>, vector<1x6x128xf32>
    %102 = vector.shape_cast %101 : vector<1x6x128xf32> to vector<6x128xf32>
    %103 = vector.shape_cast %100 : vector<6x128xf32> to vector<1x6x128xf32>
    tpu.vector_store %arg6[%c0_92, %c2_93, %c0_94], %103 {strides = array<i32>} : memref<1x8x128xf32, #tpu.memory_space<vmem>>, vector<1x6x128xf32>,
    return
  }
  func.func @transform_0(%arg0: i32) -> (i32, i32, i32, i32) {
    %c0_i32 = arith.constant 0 : i32
    %c0_i32_0 = arith.constant 0 : i32
    %c0_i32_1 = arith.constant 0 : i32
    %c0_i32_2 = arith.constant 0 : i32
    return %arg0, %c0_i32, %c0_i32_0, %c0_i32_1 : i32, i32, i32, i32
  }
  func.func @transform_1(%arg0: i32) -> (i32, i32) {
    %c0_i32 = arith.constant 0 : i32
    %c0_i32_0 = arith.constant 0 : i32
    %c0_i32_1 = arith.constant 0 : i32
    return %c0_i32, %c0_i32_0 : i32, i32
  }
  func.func @transform_2(%arg0: i32) -> (i32, i32) {
    %c0_i32 = arith.constant 0 : i32
    %c0_i32_0 = arith.constant 0 : i32
    %c0_i32_1 = arith.constant 0 : i32
    return %c0_i32, %c0_i32_0 : i32, i32
  }
  func.func @transform_3(%arg0: i32) -> (i32, i32, i32) {
    %c0_i32 = arith.constant 0 : i32
    %c0_i32_0 = arith.constant 0 : i32
    %c0_i32_1 = arith.constant 0 : i32
    %c0_i32_2 = arith.constant 0 : i32
    return %c0_i32, %c0_i32_0, %c0_i32_1 : i32, i32, i32
  }
  func.func @transform_4(%arg0: i32) -> (i32, i32, i32, i32) {
    %c0_i32 = arith.constant 0 : i32
    %c0_i32_0 = arith.constant 0 : i32
    %c0_i32_1 = arith.constant 0 : i32
    %c0_i32_2 = arith.constant 0 : i32
    return %arg0, %c0_i32, %c0_i32_0, %c0_i32_1 : i32, i32, i32, i32
  }
  func.func @transform_5(%arg0: i32) -> (i32, i32, i32) {
    %c0_i32 = arith.constant 0 : i32
    %c0_i32_0 = arith.constant 0 : i32
    %c0_i32_1 = arith.constant 0 : i32
    return %arg0, %c0_i32, %c0_i32_0 : i32, i32, i32
  }
}

module attributes {stable_mosaic.version = 11 : i64} {
  func.func @_finalize_sc_kernel(%arg0: i32, %arg1: memref<256x128xbf16, #tpu.memory_space<vmem>>, %arg2: memref<256x128xbf16, #tpu.memory_space<vmem>>, %arg3: memref<1x128xf32, #tpu.memory_space<vmem>>, %arg4: memref<1x128xf32, #tpu.memory_space<vmem>>, %arg5: memref<1x128xf32, #tpu.memory_space<vmem>>, %arg6: memref<1x128xf32, #tpu.memory_space<vmem>>, %arg7: memref<256x128xf32, #tpu.memory_space<vmem>>) attributes {dimension_semantics = [#tpu.dimension_semantics<parallel>], iteration_bounds = array<i64: 2>, scalar_prefetch = 0 : i64, scratch_operands = 0 : i64, tpu.core_type = #tpu.core_type<tc>, window_params = [{transform_indices = @transform_0, window_bounds = array<i64: 256, 128>}, {transform_indices = @transform_1, window_bounds = array<i64: 256, 128>}, {pipeline_mode = #tpu.pipeline_mode<synchronous>, transform_indices = @transform_2, window_bounds = array<i64: 1, 128>}, {pipeline_mode = #tpu.pipeline_mode<synchronous>, transform_indices = @transform_3, window_bounds = array<i64: 1, 128>}, {pipeline_mode = #tpu.pipeline_mode<synchronous>, transform_indices = @transform_4, window_bounds = array<i64: 1, 128>}, {pipeline_mode = #tpu.pipeline_mode<synchronous>, transform_indices = @transform_5, window_bounds = array<i64: 1, 128>}, {transform_indices = @transform_6, window_bounds = array<i64: 256, 128>}]} {
    %c0 = arith.constant 0 : index
    %c0_0 = arith.constant 0 : index
    %0 = vector.load %arg1[%c0, %c0_0] : memref<256x128xbf16, #tpu.memory_space<vmem>>, vector<256x128xbf16>
    %1 = arith.extf %0 : vector<256x128xbf16> to vector<256x128xf32>
    %c0_1 = arith.constant 0 : index
    %c0_2 = arith.constant 0 : index
    %2 = vector.load %arg2[%c0_1, %c0_2] : memref<256x128xbf16, #tpu.memory_space<vmem>>, vector<256x128xbf16>
    %3 = arith.extf %2 : vector<256x128xbf16> to vector<256x128xf32>
    %c0_3 = arith.constant 0 : index
    %c0_4 = arith.constant 0 : index
    %4 = vector.load %arg3[%c0_3, %c0_4] : memref<1x128xf32, #tpu.memory_space<vmem>>, vector<1x128xf32>
    %5 = vector.broadcast %4 : vector<1x128xf32> to vector<256x128xf32>
    %6 = arith.mulf %1, %5 : vector<256x128xf32>
    %c0_5 = arith.constant 0 : index
    %c0_6 = arith.constant 0 : index
    %7 = vector.load %arg4[%c0_5, %c0_6] : memref<1x128xf32, #tpu.memory_space<vmem>>, vector<1x128xf32>
    %8 = vector.broadcast %7 : vector<1x128xf32> to vector<256x128xf32>
    %9 = arith.addf %6, %8 : vector<256x128xf32>
    %c0_7 = arith.constant 0 : index
    %c0_8 = arith.constant 0 : index
    %10 = vector.load %arg5[%c0_7, %c0_8] : memref<1x128xf32, #tpu.memory_space<vmem>>, vector<1x128xf32>
    %11 = vector.broadcast %10 : vector<1x128xf32> to vector<256x128xf32>
    %12 = arith.mulf %3, %11 : vector<256x128xf32>
    %c0_9 = arith.constant 0 : index
    %c0_10 = arith.constant 0 : index
    %13 = vector.load %arg6[%c0_9, %c0_10] : memref<1x128xf32, #tpu.memory_space<vmem>>, vector<1x128xf32>
    %14 = vector.broadcast %13 : vector<1x128xf32> to vector<256x128xf32>
    %15 = arith.addf %12, %14 : vector<256x128xf32>
    %16 = arith.addf %9, %15 : vector<256x128xf32>
    %cst = arith.constant 0.000000e+00 : f32
    %17 = vector.broadcast %cst : f32 to vector<256x128xf32>
    %18 = arith.maximumf %16, %17 : vector<256x128xf32>
    %c0_11 = arith.constant 0 : index
    %c0_12 = arith.constant 0 : index
    %19 = vector.load %arg7[%c0_11, %c0_12] : memref<256x128xf32, #tpu.memory_space<vmem>>, vector<256x128xf32>
    tpu.vector_store %arg7[%c0_11, %c0_12], %18 {strides = array<i32>} : memref<256x128xf32, #tpu.memory_space<vmem>>, vector<256x128xf32>,
    return
  }
  func.func @transform_0(%arg0: i32) -> (i32, i32) {
    %c0_i32 = arith.constant 0 : i32
    %c0_i32_0 = arith.constant 0 : i32
    return %arg0, %c0_i32 : i32, i32
  }
  func.func @transform_1(%arg0: i32) -> (i32, i32) {
    %c0_i32 = arith.constant 0 : i32
    %c0_i32_0 = arith.constant 0 : i32
    return %arg0, %c0_i32 : i32, i32
  }
  func.func @transform_2(%arg0: i32) -> (i32, i32) {
    %c0_i32 = arith.constant 0 : i32
    %c0_i32_0 = arith.constant 0 : i32
    %c0_i32_1 = arith.constant 0 : i32
    return %c0_i32, %c0_i32_0 : i32, i32
  }
  func.func @transform_3(%arg0: i32) -> (i32, i32) {
    %c0_i32 = arith.constant 0 : i32
    %c0_i32_0 = arith.constant 0 : i32
    %c0_i32_1 = arith.constant 0 : i32
    return %c0_i32, %c0_i32_0 : i32, i32
  }
  func.func @transform_4(%arg0: i32) -> (i32, i32) {
    %c0_i32 = arith.constant 0 : i32
    %c0_i32_0 = arith.constant 0 : i32
    %c0_i32_1 = arith.constant 0 : i32
    return %c0_i32, %c0_i32_0 : i32, i32
  }
  func.func @transform_5(%arg0: i32) -> (i32, i32) {
    %c0_i32 = arith.constant 0 : i32
    %c0_i32_0 = arith.constant 0 : i32
    %c0_i32_1 = arith.constant 0 : i32
    return %c0_i32, %c0_i32_0 : i32, i32
  }
  func.func @transform_6(%arg0: i32) -> (i32, i32) {
    %c0_i32 = arith.constant 0 : i32
    %c0_i32_0 = arith.constant 0 : i32
    return %arg0, %c0_i32 : i32, i32
  }
}

</mosaic_0001>

<bundles_post_ra>
// kernel: res_block_forward.5
= control target key start
LH: loop header
LB: loop body
LE: loop exit
PB: predicated region body
PF: predicated region fallthrough
CT: control target
= control target key end

     0   :  { %s939_s21 = smov 0   ;;  %s1181_s0 = inlined_call_operand.vmem [shape: bf16[512,128], index: 0, kind: input, shape index: {}]   ;;  %s1182_s1 = inlined_call_operand.vmem [shape: bf16[512,128], index: 1, kind: input, shape index: {}]   ;;  %s1183_s2 = inlined_call_operand.vmem [shape: f32[1,128], index: 2, kind: input, shape index: {}]   ;;  %s1184_s3 = inlined_call_operand.vmem [shape: f32[1,128], index: 3, kind: input, shape index: {}]   ;;  %s1185_s4 = inlined_call_operand.vmem [shape: f32[1,128], index: 4, kind: input, shape index: {}]   ;;  %s1186_s5 = inlined_call_operand.vmem [shape: f32[1,128], index: 5, kind: input, shape index: {}]   ;;  %s1187_s6 = inlined_call_operand.vmem [shape: f32[512,128], index: 6, kind: output, shape index: {}]  }
   0x1 LB: > { %s713_s22 = sadd.s32 4294967295, %s902_s21   ;;  %p717_p0 = scmp.ge.s32.totalorder %s902_s21, 1  ;;  %s902_s21 = sphi %s939_s21, %s16_s21  }
   0x2   : > { %p224_p1 = scmp.lt.s32.totalorder %s902_s21, 3 }
   0x4   : > { %p225_p2 = pnand %p717_p0, %p224_p1 }
   0x5   : > { %s718_s23 = sshll.u32 (!%p225_p2), %s713_s22, 5 }
   0x6   : > { %228 = sbr.rel (%p225_p2) target bundleno = 86 (0x56), region = 44  ;;  %p260_p3 = scmp.lt.s32.totalorder (!%p225_p2), %s718_s23, 63 }
   0xb   : > { %s1189_s23 = smov (!%p260_p3, %s718_s23), 63  ;;  %v963_v0 = vld [vmem:[%s1183_s2] ss:$0 sm:$0xff] }
   0xc   : > { %s719_s24 = sshll.u32 %s1189_s23, 2  ;;  %v968_v1 = vld [vmem:[%s1185_s4] ss:$0 sm:$0xff]  ;;  %s723_s15 = sshll.u32 %s1189_s23, 3 }
   0xd   : > { %s953_s27 = scalar_lea.vmem %s1181_s0, %s719_s24  ;;  %s958_s30 = scalar_lea.vmem %s1182_s1, %s719_s24  ;;  %v976_v7 = vld [vmem:[%s1184_s3] ss:$0 sm:$0xff] }
   0xe   : > { %v727_v2 = vld [vmem:[%s953_s27] sm:$0xff]   ;;  %v854_v4 = vld [vmem:[%s953_s27 + $0x8] sm:$0xff]   ;;  %v855_v24 = vld [vmem:[%s953_s27 + $0x10] sm:$0xff]   ;;  %s1006_s18 = scalar_lea.vmem %s1187_s6, %s723_s15 }
   0xf   : > { %v791_v3 = vld [vmem:[%s958_s30] sm:$0xff]   ;;  %v728_v5 = vunpack.c.l.bf16 %v727_v2  ;;  %v729_v9 = vunpack.c.h.bf16 %v727_v2  ;;  %v869_v11 = vld [vmem:[%s958_s30 + $0x8] sm:$0xff]   ;;  %v732_v12 = vunpack.c.l.bf16 %v854_v4  ;;  %v733_v14 = vunpack.c.h.bf16 %v854_v4  ;;  %v870_v25 = vld [vmem:[%s958_s30 + $0x10] sm:$0xff]  }
  0x10   : > { %v792_v6 = vunpack.c.l.bf16 %v791_v3  ;;  %v981_v8 = vld [vmem:[%s1186_s5] ss:$0 sm:$0xff]  ;;  %v793_v10 = vunpack.c.h.bf16 %v791_v3  ;;  %v796_v13 = vunpack.c.l.bf16 %v869_v11  ;;  %v797_v15 = vunpack.c.h.bf16 %v869_v11  ;;  %v856_v42 = vld [vmem:[%s953_s27 + $0x18] sm:$0xff]  }
  0x11   : > { %v409_v16 = vmul.f32 %v963_v0, %v728_v5  ;;  %v410_v18 = vmul.f32 %v963_v0, %v729_v9  ;;  %v411_v20 = vmul.f32 %v963_v0, %v732_v12  ;;  %v412_v22 = vmul.f32 %v963_v0, %v733_v14  ;;  %v871_v43 = vld [vmem:[%s958_s30 + $0x18] sm:$0xff]   ;;  %v857_v52 = vld [vmem:[%s953_s27 + $0x20] sm:$0xff]   ;;  %v858_v14 = vld [vmem:[%s953_s27 + $0x28] sm:$0xff]  }
  0x12   : > { %v481_v17 = vmul.f32 %v968_v1, %v792_v6  ;;  %v482_v19 = vmul.f32 %v968_v1, %v793_v10  ;;  %v483_v21 = vmul.f32 %v968_v1, %v796_v13  ;;  %v484_v23 = vmul.f32 %v968_v1, %v797_v15  ;;  %v872_v57 = vld [vmem:[%s958_s30 + $0x20] sm:$0xff]   ;;  %v873_v15 = vld [vmem:[%s958_s30 + $0x28] sm:$0xff]  }
  0x13   : > { %v445_v26 = vadd.f32 %v976_v7, %v409_v16  ;;  %v446_v28 = vadd.f32 %v976_v7, %v410_v18  ;;  %v447_v30 = vadd.f32 %v976_v7, %v411_v20  ;;  %v448_v32 = vadd.f32 %v976_v7, %v412_v22 }
  0x14   : > { %v517_v27 = vadd.f32 %v981_v8, %v481_v17  ;;  %v518_v29 = vadd.f32 %v981_v8, %v482_v19  ;;  %v519_v31 = vadd.f32 %v981_v8, %v483_v21  ;;  %v520_v33 = vadd.f32 %v981_v8, %v484_v23 }
  0x15   : > { %v736_v36 = vunpack.c.l.bf16 %v855_v24  ;;  %v800_v37 = vunpack.c.l.bf16 %v870_v25  ;;  %v737_v40 = vunpack.c.h.bf16 %v855_v24  ;;  %v801_v41 = vunpack.c.h.bf16 %v870_v25 }
  0x16   : > { %v549_v34 = vadd.f32 %v517_v27, %v445_v26  ;;  %v550_v35 = vadd.f32 %v518_v29, %v446_v28  ;;  %v551_v38 = vadd.f32 %v519_v31, %v447_v30  ;;  %v552_v39 = vadd.f32 %v520_v33, %v448_v32  ;;  %v859_v32 = vld [vmem:[%s953_s27 + $0x30] sm:$0xff]  }
  0x17   : > { %v413_v46 = vmul.f32 %v963_v0, %v736_v36  ;;  %v485_v47 = vmul.f32 %v968_v1, %v800_v37  ;;  %v414_v50 = vmul.f32 %v963_v0, %v737_v40  ;;  %v486_v51 = vmul.f32 %v968_v1, %v801_v41  ;;  %v874_v37 = vld [vmem:[%s958_s30 + $0x30] sm:$0xff]  }
  0x18   : > { %v581_v44 = vmax.f32 %v549_v34, 0.0  ;;  %v582_v45 = vmax.f32 %v550_v35, 0.0  ;;  %v583_v48 = vmax.f32 %v551_v38, 0.0  ;;  %v584_v49 = vmax.f32 %v552_v39, 0.0 }
  0x19   : > { %v449_v53 = vadd.f32 %v976_v7, %v413_v46  ;;  %v521_v54 = vadd.f32 %v981_v8, %v485_v47  ;;  %v740_v55 = vunpack.c.l.bf16 %v856_v42  ;;  %v804_v56 = vunpack.c.l.bf16 %v871_v43  ;;  %v860_v46 = vld [vmem:[%s953_s27 + $0x38] sm:$0xff]  }
  0x1a   : > { %613 = vst [vmem:[%s1006_s18] sm:$0xff] %v581_v44  ;;  %v450_v58 = vadd.f32 %v976_v7, %v414_v50  ;;  %v522_v59 = vadd.f32 %v981_v8, %v486_v51  ;;  %v741_v60 = vunpack.c.h.bf16 %v856_v42  ;;  %v805_v61 = vunpack.c.h.bf16 %v871_v43 }
  0x1b   : > { %614 = vst [vmem:[%s1006_s18 + $0x8] sm:$0xff] %v582_v45  ;;  %v553_v62 = vadd.f32 %v521_v54, %v449_v53  ;;  %v415_v63 = vmul.f32 %v963_v0, %v740_v55  ;;  %v487_v2 = vmul.f32 %v968_v1, %v804_v56  ;;  %v744_v3 = vunpack.c.l.bf16 %v857_v52  ;;  %v875_v55 = vld [vmem:[%s958_s30 + $0x38] sm:$0xff]  }
  0x1c   : > { %615 = vst [vmem:[%s1006_s18 + $0x10] sm:$0xff] %v583_v48  ;;  %v554_v4 = vadd.f32 %v522_v59, %v450_v58  ;;  %v416_v5 = vmul.f32 %v963_v0, %v741_v60  ;;  %v488_v6 = vmul.f32 %v968_v1, %v805_v61  ;;  %v808_v9 = vunpack.c.l.bf16 %v872_v57 }
  0x1d   : > { %616 = vst [vmem:[%s1006_s18 + $0x18] sm:$0xff] %v584_v49  ;;  %v585_v10 = vmax.f32 %v553_v62, 0.0  ;;  %v451_v11 = vadd.f32 %v976_v7, %v415_v63  ;;  %v523_v12 = vadd.f32 %v981_v8, %v487_v2  ;;  %v417_v13 = vmul.f32 %v963_v0, %v744_v3 }
  0x1e   : > { %v586_v16 = vmax.f32 %v554_v4, 0.0  ;;  %v452_v17 = vadd.f32 %v976_v7, %v416_v5  ;;  %v524_v18 = vadd.f32 %v981_v8, %v488_v6  ;;  %v489_v19 = vmul.f32 %v968_v1, %v808_v9  ;;  %v861_v6 = vld [vmem:[%s953_s27 + $0x40] sm:$0xff]  }
  0x1f   : > { %617 = vst [vmem:[%s1006_s18 + $0x20] sm:$0xff] %v585_v10  ;;  %v555_v20 = vadd.f32 %v523_v12, %v451_v11  ;;  %v453_v21 = vadd.f32 %v976_v7, %v417_v13  ;;  %v745_v22 = vunpack.c.h.bf16 %v857_v52  ;;  %v809_v23 = vunpack.c.h.bf16 %v872_v57  ;;  %v876_v13 = vld [vmem:[%s958_s30 + $0x40] sm:$0xff]  }
  0x20   : > { %618 = vst [vmem:[%s1006_s18 + $0x28] sm:$0xff] %v586_v16  ;;  %v556_v24 = vadd.f32 %v524_v18, %v452_v17  ;;  %v525_v25 = vadd.f32 %v981_v8, %v489_v19  ;;  %v748_v26 = vunpack.c.l.bf16 %v858_v14  ;;  %v812_v27 = vunpack.c.l.bf16 %v873_v15 }
  0x21   : > { %v587_v28 = vmax.f32 %v555_v20, 0.0  ;;  %v418_v29 = vmul.f32 %v963_v0, %v745_v22  ;;  %v490_v30 = vmul.f32 %v968_v1, %v809_v23  ;;  %v749_v31 = vunpack.c.h.bf16 %v858_v14 }
  0x22   : > { %v588_v33 = vmax.f32 %v556_v24, 0.0  ;;  %v557_v34 = vadd.f32 %v525_v25, %v453_v21  ;;  %v419_v35 = vmul.f32 %v963_v0, %v748_v26  ;;  %v491_v36 = vmul.f32 %v968_v1, %v812_v27  ;;  %v862_v26 = vld [vmem:[%s953_s27 + $0x48] sm:$0xff]  }
  0x23   : > { %619 = vst [vmem:[%s1006_s18 + $0x30] sm:$0xff] %v587_v28  ;;  %v454_v38 = vadd.f32 %v976_v7, %v418_v29  ;;  %v526_v39 = vadd.f32 %v981_v8, %v490_v30  ;;  %v813_v40 = vunpack.c.h.bf16 %v873_v15  ;;  %v420_v41 = vmul.f32 %v963_v0, %v749_v31  ;;  %v877_v27 = vld [vmem:[%s958_s30 + $0x48] sm:$0xff]  }
  0x24   : > { %620 = vst [vmem:[%s1006_s18 + $0x38] sm:$0xff] %v588_v33  ;;  %v589_v42 = vmax.f32 %v557_v34, 0.0  ;;  %v455_v43 = vadd.f32 %v976_v7, %v419_v35  ;;  %v527_v44 = vadd.f32 %v981_v8, %v491_v36  ;;  %v752_v45 = vunpack.c.l.bf16 %v859_v32 }
  0x25   : > { %v558_v47 = vadd.f32 %v526_v39, %v454_v38  ;;  %v456_v48 = vadd.f32 %v976_v7, %v420_v41  ;;  %v492_v49 = vmul.f32 %v968_v1, %v813_v40  ;;  %v816_v50 = vunpack.c.l.bf16 %v874_v37  ;;  %v863_v40 = vld [vmem:[%s953_s27 + $0x50] sm:$0xff]  }
  0x26   : > { %621 = vst [vmem:[%s1006_s18 + $0x40] sm:$0xff] %v589_v42  ;;  %v559_v51 = vadd.f32 %v527_v44, %v455_v43  ;;  %v421_v52 = vmul.f32 %v963_v0, %v752_v45  ;;  %v753_v53 = vunpack.c.h.bf16 %v859_v32  ;;  %v817_v54 = vunpack.c.h.bf16 %v874_v37  ;;  %v878_v45 = vld [vmem:[%s958_s30 + $0x50] sm:$0xff]  }
  0x27   : > { %v590_v56 = vmax.f32 %v558_v47, 0.0  ;;  %v528_v57 = vadd.f32 %v981_v8, %v492_v49  ;;  %v493_v58 = vmul.f32 %v968_v1, %v816_v50  ;;  %v756_v59 = vunpack.c.l.bf16 %v860_v46 }
  0x28   : > { %v591_v60 = vmax.f32 %v559_v51, 0.0  ;;  %v457_v61 = vadd.f32 %v976_v7, %v421_v52  ;;  %v422_v62 = vmul.f32 %v963_v0, %v753_v53  ;;  %v494_v63 = vmul.f32 %v968_v1, %v817_v54 }
  0x29   : > { %622 = vst [vmem:[%s1006_s18 + $0x48] sm:$0xff] %v590_v56  ;;  %v560_v2 = vadd.f32 %v528_v57, %v456_v48  ;;  %v529_v3 = vadd.f32 %v981_v8, %v493_v58  ;;  %v820_v4 = vunpack.c.l.bf16 %v875_v55  ;;  %v423_v5 = vmul.f32 %v963_v0, %v756_v59 }
  0x2a   : > { %623 = vst [vmem:[%s1006_s18 + $0x50] sm:$0xff] %v591_v60  ;;  %v458_v9 = vadd.f32 %v976_v7, %v422_v62  ;;  %v530_v10 = vadd.f32 %v981_v8, %v494_v63  ;;  %v757_v11 = vunpack.c.h.bf16 %v860_v46  ;;  %v821_v12 = vunpack.c.h.bf16 %v875_v55  ;;  %v864_v62 = vld [vmem:[%s953_s27 + $0x58] sm:$0xff]  }
  0x2b   : > { %v592_v14 = vmax.f32 %v560_v2, 0.0  ;;  %v561_v15 = vadd.f32 %v529_v3, %v457_v61  ;;  %v459_v16 = vadd.f32 %v976_v7, %v423_v5  ;;  %v495_v17 = vmul.f32 %v968_v1, %v820_v4  ;;  %v879_v5 = vld [vmem:[%s958_s30 + $0x58] sm:$0xff]  }
  0x2c   : > { %v562_v18 = vadd.f32 %v530_v10, %v458_v9  ;;  %v424_v19 = vmul.f32 %v963_v0, %v757_v11  ;;  %v496_v20 = vmul.f32 %v968_v1, %v821_v12  ;;  %v760_v21 = vunpack.c.l.bf16 %v861_v6 }
  0x2d   : > { %624 = vst [vmem:[%s1006_s18 + $0x58] sm:$0xff] %v592_v14  ;;  %v593_v22 = vmax.f32 %v561_v15, 0.0  ;;  %v531_v23 = vadd.f32 %v981_v8, %v495_v17  ;;  %v824_v24 = vunpack.c.l.bf16 %v876_v13  ;;  %v761_v25 = vunpack.c.h.bf16 %v861_v6 }
  0x2e   : > { %v594_v28 = vmax.f32 %v562_v18, 0.0  ;;  %v460_v29 = vadd.f32 %v976_v7, %v424_v19  ;;  %v532_v30 = vadd.f32 %v981_v8, %v496_v20  ;;  %v425_v31 = vmul.f32 %v963_v0, %v760_v21  ;;  %v865_v20 = vld [vmem:[%s953_s27 + $0x60] sm:$0xff]  }
  0x2f   : > { %625 = vst [vmem:[%s1006_s18 + $0x60] sm:$0xff] %v593_v22  ;;  %v563_v32 = vadd.f32 %v531_v23, %v459_v16  ;;  %v497_v33 = vmul.f32 %v968_v1, %v824_v24  ;;  %v825_v34 = vunpack.c.h.bf16 %v876_v13  ;;  %v426_v35 = vmul.f32 %v963_v0, %v761_v25  ;;  %v880_v25 = vld [vmem:[%s958_s30 + $0x60] sm:$0xff]  }
  0x30   : > { %626 = vst [vmem:[%s1006_s18 + $0x68] sm:$0xff] %v594_v28  ;;  %v564_v36 = vadd.f32 %v532_v30, %v460_v29  ;;  %v461_v37 = vadd.f32 %v976_v7, %v425_v31  ;;  %v764_v38 = vunpack.c.l.bf16 %v862_v26  ;;  %v828_v39 = vunpack.c.l.bf16 %v877_v27 }
  0x31   : > { %v595_v41 = vmax.f32 %v563_v32, 0.0  ;;  %v533_v42 = vadd.f32 %v981_v8, %v497_v33  ;;  %v462_v43 = vadd.f32 %v976_v7, %v426_v35  ;;  %v498_v44 = vmul.f32 %v968_v1, %v825_v34  ;;  %v866_v34 = vld [vmem:[%s953_s27 + $0x68] sm:$0xff]  }
  0x32   : > { %v596_v46 = vmax.f32 %v564_v36, 0.0  ;;  %v427_v47 = vmul.f32 %v963_v0, %v764_v38  ;;  %v499_v48 = vmul.f32 %v968_v1, %v828_v39  ;;  %v765_v49 = vunpack.c.h.bf16 %v862_v26 }
  0x33   : > { %627 = vst [vmem:[%s1006_s18 + $0x70] sm:$0xff] %v595_v41  ;;  %v565_v50 = vadd.f32 %v533_v42, %v461_v37  ;;  %v534_v51 = vadd.f32 %v981_v8, %v498_v44  ;;  %v829_v52 = vunpack.c.h.bf16 %v877_v27  ;;  %v768_v53 = vunpack.c.l.bf16 %v863_v40 }
  0x34   : > { %628 = vst [vmem:[%s1006_s18 + $0x78] sm:$0xff] %v596_v46  ;;  %v463_v54 = vadd.f32 %v976_v7, %v427_v47  ;;  %v535_v55 = vadd.f32 %v981_v8, %v499_v48  ;;  %v428_v56 = vmul.f32 %v963_v0, %v765_v49  ;;  %v832_v57 = vunpack.c.l.bf16 %v878_v45 }
  0x35   : > { %v597_v58 = vmax.f32 %v565_v50, 0.0  ;;  %v566_v59 = vadd.f32 %v534_v51, %v462_v43  ;;  %v500_v60 = vmul.f32 %v968_v1, %v829_v52  ;;  %v429_v61 = vmul.f32 %v963_v0, %v768_v53  ;;  %v881_v43 = vld [vmem:[%s958_s30 + $0x68] sm:$0xff]  }
  0x36   : > { %v567_v63 = vadd.f32 %v535_v55, %v463_v54  ;;  %v464_v2 = vadd.f32 %v976_v7, %v428_v56  ;;  %v501_v3 = vmul.f32 %v968_v1, %v832_v57  ;;  %v769_v4 = vunpack.c.h.bf16 %v863_v40  ;;  %v867_v56 = vld [vmem:[%s953_s27 + $0x70] sm:$0xff]  }
  0x37   : > { %629 = vst [vmem:[%s1006_s18 + $0x80] sm:$0xff] %v597_v58  ;;  %v598_v6 = vmax.f32 %v566_v59, 0.0  ;;  %v536_v9 = vadd.f32 %v981_v8, %v500_v60  ;;  %v465_v10 = vadd.f32 %v976_v7, %v429_v61  ;;  %v833_v11 = vunpack.c.h.bf16 %v878_v45  ;;  %v882_v57 = vld [vmem:[%s958_s30 + $0x70] sm:$0xff]  }
  0x38   : > { %v599_v12 = vmax.f32 %v567_v63, 0.0  ;;  %v537_v13 = vadd.f32 %v981_v8, %v501_v3  ;;  %v430_v14 = vmul.f32 %v963_v0, %v769_v4  ;;  %v772_v15 = vunpack.c.l.bf16 %v864_v62 }
  0x39   : > { %630 = vst [vmem:[%s1006_s18 + $0x88] sm:$0xff] %v598_v6  ;;  %v568_v16 = vadd.f32 %v536_v9, %v464_v2  ;;  %v502_v17 = vmul.f32 %v968_v1, %v833_v11  ;;  %v836_v18 = vunpack.c.l.bf16 %v879_v5  ;;  %v773_v19 = vunpack.c.h.bf16 %v864_v62 }
  0x3a   : > { %631 = vst [vmem:[%s1006_s18 + $0x90] sm:$0xff] %v599_v12  ;;  %v569_v21 = vadd.f32 %v537_v13, %v465_v10  ;;  %v466_v22 = vadd.f32 %v976_v7, %v430_v14  ;;  %v431_v23 = vmul.f32 %v963_v0, %v772_v15  ;;  %v837_v24 = vunpack.c.h.bf16 %v879_v5  ;;  %v868_v14 = vld [vmem:[%s953_s27 + $0x78] sm:$0xff]  }
  0x3b   : > { %v600_v26 = vmax.f32 %v568_v16, 0.0  ;;  %v538_v27 = vadd.f32 %v981_v8, %v502_v17  ;;  %v503_v28 = vmul.f32 %v968_v1, %v836_v18  ;;  %v432_v29 = vmul.f32 %v963_v0, %v773_v19  ;;  %v883_v15 = vld [vmem:[%s958_s30 + $0x78] sm:$0xff]  }
  0x3c   : > { %v601_v30 = vmax.f32 %v569_v21, 0.0  ;;  %v467_v31 = vadd.f32 %v976_v7, %v431_v23  ;;  %v504_v32 = vmul.f32 %v968_v1, %v837_v24  ;;  %v776_v33 = vunpack.c.l.bf16 %v865_v20 }
  0x3d   : > { %632 = vst [vmem:[%s1006_s18 + $0x98] sm:$0xff] %v600_v26  ;;  %v570_v35 = vadd.f32 %v538_v27, %v466_v22  ;;  %v539_v36 = vadd.f32 %v981_v8, %v503_v28  ;;  %v468_v37 = vadd.f32 %v976_v7, %v432_v29  ;;  %v840_v38 = vunpack.c.l.bf16 %v880_v25 }
  0x3e   : > { %633 = vst [vmem:[%s1006_s18 + $0xa0] sm:$0xff] %v601_v30  ;;  %v540_v39 = vadd.f32 %v981_v8, %v504_v32  ;;  %v433_v40 = vmul.f32 %v963_v0, %v776_v33  ;;  %v777_v41 = vunpack.c.h.bf16 %v865_v20  ;;  %v841_v42 = vunpack.c.h.bf16 %v880_v25 }
  0x3f   : > { %v602_v44 = vmax.f32 %v570_v35, 0.0  ;;  %v571_v45 = vadd.f32 %v539_v36, %v467_v31  ;;  %v505_v46 = vmul.f32 %v968_v1, %v840_v38  ;;  %v780_v47 = vunpack.c.l.bf16 %v866_v34 }
  0x40   : > { %v572_v48 = vadd.f32 %v540_v39, %v468_v37  ;;  %v469_v49 = vadd.f32 %v976_v7, %v433_v40  ;;  %v434_v50 = vmul.f32 %v963_v0, %v777_v41  ;;  %v506_v51 = vmul.f32 %v968_v1, %v841_v42 }
  0x41   : > { %634 = vst [vmem:[%s1006_s18 + $0xa8] sm:$0xff] %v602_v44  ;;  %v603_v52 = vmax.f32 %v571_v45, 0.0  ;;  %v541_v53 = vadd.f32 %v981_v8, %v505_v46  ;;  %v844_v54 = vunpack.c.l.bf16 %v881_v43  ;;  %v435_v55 = vmul.f32 %v963_v0, %v780_v47 }
  0x42   : > { %v604_v58 = vmax.f32 %v572_v48, 0.0  ;;  %v470_v59 = vadd.f32 %v976_v7, %v434_v50  ;;  %v542_v60 = vadd.f32 %v981_v8, %v506_v51  ;;  %v781_v61 = vunpack.c.h.bf16 %v866_v34 }
  0x43   : > { %635 = vst [vmem:[%s1006_s18 + $0xb0] sm:$0xff] %v603_v52  ;;  %v573_v62 = vadd.f32 %v541_v53, %v469_v49  ;;  %v471_v63 = vadd.f32 %v976_v7, %v435_v55  ;;  %v507_v2 = vmul.f32 %v968_v1, %v844_v54  ;;  %v845_v3 = vunpack.c.h.bf16 %v881_v43 }
  0x44   : > { %636 = vst [vmem:[%s1006_s18 + $0xb8] sm:$0xff] %v604_v58  ;;  %v574_v4 = vadd.f32 %v542_v60, %v470_v59  ;;  %v436_v5 = vmul.f32 %v963_v0, %v781_v61  ;;  %v784_v6 = vunpack.c.l.bf16 %v867_v56  ;;  %v848_v9 = vunpack.c.l.bf16 %v882_v57 }
  0x45   : > { %v605_v10 = vmax.f32 %v573_v62, 0.0  ;;  %v543_v11 = vadd.f32 %v981_v8, %v507_v2  ;;  %v508_v12 = vmul.f32 %v968_v1, %v845_v3  ;;  %v785_v13 = vunpack.c.h.bf16 %v867_v56 }
  0x46   : > { %v606_v16 = vmax.f32 %v574_v4, 0.0  ;;  %v472_v17 = vadd.f32 %v976_v7, %v436_v5  ;;  %v437_v18 = vmul.f32 %v963_v0, %v784_v6  ;;  %v509_v19 = vmul.f32 %v968_v1, %v848_v9 }
  0x47   : > { %637 = vst [vmem:[%s1006_s18 + $0xc0] sm:$0xff] %v605_v10  ;;  %v575_v20 = vadd.f32 %v543_v11, %v471_v63  ;;  %v544_v21 = vadd.f32 %v981_v8, %v508_v12  ;;  %v849_v22 = vunpack.c.h.bf16 %v882_v57  ;;  %v438_v23 = vmul.f32 %v963_v0, %v785_v13 }
  0x48   : > { %638 = vst [vmem:[%s1006_s18 + $0xc8] sm:$0xff] %v606_v16  ;;  %v473_v24 = vadd.f32 %v976_v7, %v437_v18  ;;  %v545_v25 = vadd.f32 %v981_v8, %v509_v19  ;;  %v788_v26 = vunpack.c.l.bf16 %v868_v14  ;;  %v852_v27 = vunpack.c.l.bf16 %v883_v15 }
  0x49   : > { %v607_v28 = vmax.f32 %v575_v20, 0.0  ;;  %v576_v29 = vadd.f32 %v544_v21, %v472_v17  ;;  %v474_v30 = vadd.f32 %v976_v7, %v438_v23  ;;  %v510_v31 = vmul.f32 %v968_v1, %v849_v22 }
  0x4a   : > { %v577_v32 = vadd.f32 %v545_v25, %v473_v24  ;;  %v439_v33 = vmul.f32 %v963_v0, %v788_v26  ;;  %v511_v34 = vmul.f32 %v968_v1, %v852_v27  ;;  %v789_v35 = vunpack.c.h.bf16 %v868_v14 }
  0x4b   : > { %639 = vst [vmem:[%s1006_s18 + $0xd0] sm:$0xff] %v607_v28  ;;  %v608_v36 = vmax.f32 %v576_v29, 0.0  ;;  %v546_v37 = vadd.f32 %v981_v8, %v510_v31  ;;  %v853_v38 = vunpack.c.h.bf16 %v883_v15 }
  0x4c   : > { %v609_v39 = vmax.f32 %v577_v32, 0.0  ;;  %v475_v40 = vadd.f32 %v976_v7, %v439_v33  ;;  %v547_v41 = vadd.f32 %v981_v8, %v511_v34  ;;  %v440_v42 = vmul.f32 %v963_v0, %v789_v35 }
  0x4d   : > { %640 = vst [vmem:[%s1006_s18 + $0xd8] sm:$0xff] %v608_v36  ;;  %v578_v43 = vadd.f32 %v546_v37, %v474_v30  ;;  %v512_v44 = vmul.f32 %v968_v1, %v853_v38 }
  0x4e   : > { %641 = vst [vmem:[%s1006_s18 + $0xe0] sm:$0xff] %v609_v39  ;;  %v579_v45 = vadd.f32 %v547_v41, %v475_v40  ;;  %v476_v46 = vadd.f32 %v976_v7, %v440_v42 }
  0x4f   : > { %v610_v47 = vmax.f32 %v578_v43, 0.0  ;;  %v548_v48 = vadd.f32 %v981_v8, %v512_v44 }
  0x50   : > { %v611_v49 = vmax.f32 %v579_v45, 0.0 }
  0x51   : > { %642 = vst [vmem:[%s1006_s18 + $0xe8] sm:$0xff] %v610_v47  ;;  %v580_v50 = vadd.f32 %v548_v48, %v476_v46 }
  0x52   : > { %643 = vst [vmem:[%s1006_s18 + $0xf0] sm:$0xff] %v611_v49 }
  0x53   : > { %v612_v51 = vmax.f32 %v580_v50, 0.0 }
  0x55   : > { %644 = vst [vmem:[%s1006_s18 + $0xf8] sm:$0xff] %v612_v51 }
  0x56 PF: > { %s16_s21 = sadd.s32 1, %s902_s21  }
  0x57   : > { %p13_p4 = scmp.ge.s32.totalorder %s16_s21, 4  }
  0x59   :  { %15 = sbr.rel (!%p13_p4) target bundleno = 1 (0x1), region = 77 }

// kernel: res_block_forward.4
= control target key start
LH: loop header
LB: loop body
LE: loop exit
PB: predicated region body
PF: predicated region fallthrough
CT: control target
= control target key end

     0   :  { %s3633_s18 = smov 0   ;;  %s4422_s0 = inlined_call_operand.vmem [shape: bf16[2,18,18,128], index: 0, kind: input, shape index: {}]   ;;  %s4423_s1 = inlined_call_operand.vmem [shape: f32[1,128], index: 1, kind: input, shape index: {}]   ;;  %s4424_s2 = inlined_call_operand.vmem [shape: f32[1,128], index: 2, kind: input, shape index: {}]   ;;  %s4425_s3 = inlined_call_operand.vmem [shape: bf16[9,128,128], index: 3, kind: input, shape index: {}]   ;;  %s4426_s4 = inlined_call_operand.vmem [shape: bf16[2,16,16,128], index: 4, kind: output, shape index: {0}]   ;;  %s4427_s5 = inlined_call_operand.vmem [shape: f32[2,8,128], index: 5, kind: output, shape index: {1}]  }
   0x1 LB: > { %s2913_s19 = sadd.s32 4294967295, %s3600_s18   ;;  %p2917_p0 = scmp.ge.s32.totalorder %s3600_s18, 1  ;;  %s3600_s18 = sphi %s3633_s18, %s16_s18  }
   0x2   : > { %p190_p1 = scmp.lt.s32.totalorder %s3600_s18, 3 }
   0x4   : > { %p191_p2 = pnand %p2917_p0, %p190_p1 }
   0x6   : > { %194 = sbr.rel (%p191_p2) target bundleno = 779 (0x30b), region = 36 }
   0xb   : > { %v3356_v0 = vld [vmem:[%s4425_s3 + $0x78] sm:$0xff]  ;;  %p222_p3 = scmp.lt.s32.totalorder %s2913_s19, 1  ;;  %v3602_v1 = vmov 0.0   ;;  %v3355_v2 = vld [vmem:[%s4425_s3 + $0x70] sm:$0xff]  ;;  %v3354_v3 = vld [vmem:[%s4425_s3 + $0x68] sm:$0xff] }
   0xc   : > { %568 = vst [vmem:[#allocation2] sm:$0xff] %v3602_v1  ;;  %3552 = vmatpush.bf16.msra.mxu1 %v3356_v0  ;;  %3553 = vmatpush.bf16.msra.mxu2 %v3356_v0  ;;  %v3665_v4 = vld [vmem:[%s4423_s1] ss:$0 sm:$0xff]  ;;  %v3352_v38 = vld [vmem:[%s4425_s3 + $0x58] sm:$0xff]  ;;  %v3351_v52 = vld [vmem:[%s4425_s3 + $0x50] sm:$0xff] }
   0xd   : > { %s4437_s19 = smov (!%p222_p3, %s2913_s19), 1  ;;  %569 = vst [vmem:[#allocation2 + $0x8] sm:$0xff] %v3602_v1  ;;  %3554 = vmatpush.bf16.msra.mxu3 %v3356_v0  ;;  %788 = vmatpush.bf16.msra.mxu0 %v3356_v0  ;;  %v3670_v5 = vld [vmem:[%s4424_s2] ss:$0 sm:$0xff]  ;;  %v3350_v62 = vld [vmem:[%s4425_s3 + $0x48] sm:$0xff] }
   0xe   : > { %s3576_s24 = smul.u32 216, %s4437_s19  ;;  %575 = vst [vmem:[#allocation2] sm:$0x1] %v3602_v1  ;;  %v3353_v21 = vld [vmem:[%s4425_s3 + $0x60] sm:$0xff]  ;;  %s3340_s21 = sshll.u32 %s4437_s19, 7 }
   0xf   : > { %572 = vst [vmem:[#allocation2 + $0x198] sm:$0xff] %v3602_v1  ;;  %s2921_s28 = sshll.u32 %s4437_s19, 3 }
  0x10   : > { %3555 = vmatpush.bf16.msra.mxu1 %v3355_v2  ;;  %3556 = vmatpush.bf16.msra.mxu2 %v3355_v2  ;;  %s3660_s29 = scalar_lea.vmem %s4422_s0, %s3576_s24  ;;  %573 = vst [vmem:[#allocation2 + $0x1a0] sm:$0xff] %v3602_v1  ;;  %s4345_s24 = scalar_lea.vmem %s4426_s4, %s3340_s21 }
  0x11   : > { %3557 = vmatpush.bf16.msra.mxu3 %v3355_v2  ;;  %789 = vmatpush.bf16.msra.mxu0 %v3355_v2  ;;  %v3530_v6 = vld [vmem:[%s3660_s29 + $0x30] sm:$0xff]   ;;  %v252_v7 = vld [vmem:[%s3660_s29 + $0x38] sm:$0x1]  ;;  %v3532_v8 = vld [vmem:[%s3660_s29 + $0x60] sm:$0xff]   ;;  %592 = vst [vmem:[#allocation2 + $0x198] sm:$0x1] %v3602_v1  ;;  %s4388_s7 = scalar_lea.vmem %s4427_s5, %s2921_s28 }
  0x12   : > { %v3423_v9 = vunpack.c.l.bf16 %v3530_v6  ;;  %v3424_v10 = vunpack.c.h.bf16 %v3530_v6  ;;  %v306_v11 = vunpack.c.l.bf16 %v252_v7  ;;  %v3431_v12 = vunpack.c.l.bf16 %v3532_v8  ;;  %v264_v13 = vld [vmem:[%s3660_s29 + $0x68] sm:$0x1]  ;;  %v3534_v14 = vld [vmem:[%s3660_s29 + $0x90] sm:$0xff]   ;;  %v276_v15 = vld [vmem:[%s3660_s29 + $0x98] sm:$0x1] }
  0x13   : > { %v3432_v16 = vunpack.c.h.bf16 %v3532_v8  ;;  %v318_v17 = vunpack.c.l.bf16 %v264_v13  ;;  %v3439_v18 = vunpack.c.l.bf16 %v3534_v14  ;;  %v3440_v19 = vunpack.c.h.bf16 %v3534_v14  ;;  %v240_v20 = vld [vmem:[%s3660_s29 + $0x8] sm:$0x1]  ;;  %v253_v45 = vld [vmem:[%s3660_s29 + $0x3c] sm:$0xff]   ;;  %v255_v50 = vld [vmem:[%s3660_s29 + $0x44] sm:$0x1] }
  0x14   : > { %3558 = vmatpush.bf16.msra.mxu1 %v3354_v3  ;;  %3559 = vmatpush.bf16.msra.mxu2 %v3354_v3  ;;  %v361_v22 = vmul.f32 %v3665_v4, %v3423_v9  ;;  %v362_v23 = vmul.f32 %v3665_v4, %v3424_v10  ;;  %v363_v24 = vmul.f32 %v3665_v4, %v306_v11  ;;  %v330_v25 = vunpack.c.l.bf16 %v276_v15  ;;  %v265_v60 = vld [vmem:[%s3660_s29 + $0x6c] sm:$0xff]   ;;  %v267_v0 = vld [vmem:[%s3660_s29 + $0x74] sm:$0x1]  ;;  %v277_v9 = vld [vmem:[%s3660_s29 + $0x9c] sm:$0xff]  }
  0x15   : > { %3560 = vmatpush.bf16.msra.mxu3 %v3354_v3  ;;  %790 = vmatpush.bf16.msra.mxu0 %v3354_v3  ;;  %v373_v26 = vmul.f32 %v3665_v4, %v3431_v12  ;;  %v374_v27 = vmul.f32 %v3665_v4, %v3432_v16  ;;  %v375_v28 = vmul.f32 %v3665_v4, %v318_v17  ;;  %v294_v29 = vunpack.c.l.bf16 %v240_v20  ;;  %v3349_v10 = vld [vmem:[%s4425_s3 + $0x40] sm:$0xff]  ;;  %v3364_v20 = vld [vmem:[%s4425_s3 + $0xb8] sm:$0xff] }
  0x16   : > { %v418_v30 = vadd.f32 %v3670_v5, %v361_v22  ;;  %v419_v31 = vadd.f32 %v3670_v5, %v362_v23  ;;  %v420_v32 = vadd.f32 %v3670_v5, %v363_v24  ;;  %v385_v33 = vmul.f32 %v3665_v4, %v3439_v18  ;;  %v279_v18 = vld [vmem:[%s3660_s29 + $0xa4] sm:$0x1] }
  0x17   : > { %v430_v34 = vadd.f32 %v3670_v5, %v373_v26  ;;  %v431_v35 = vadd.f32 %v3670_v5, %v374_v27  ;;  %v432_v36 = vadd.f32 %v3670_v5, %v375_v28  ;;  %v386_v37 = vmul.f32 %v3665_v4, %v3440_v19  ;;  %v3348_v26 = vld [vmem:[%s4425_s3 + $0x38] sm:$0xff] }
  0x18   : > { %3561 = vmatpush.bf16.msra.mxu1 %v3353_v21  ;;  %3562 = vmatpush.bf16.msra.mxu2 %v3353_v21  ;;  %v472_v39 = vmax.f32 %v418_v30, 0.0  ;;  %v473_v40 = vmax.f32 %v419_v31, 0.0  ;;  %v474_v41 = vmax.f32 %v420_v32, 0.0  ;;  %v387_v42 = vmul.f32 %v3665_v4, %v330_v25  ;;  %v3380_v30 = vld [vmem:[%s4425_s3 + $0x138] sm:$0xff] }
  0x19   : > { %3563 = vmatpush.bf16.msra.mxu3 %v3353_v21  ;;  %791 = vmatpush.bf16.msra.mxu0 %v3353_v21  ;;  %v484_v43 = vmax.f32 %v430_v34, 0.0  ;;  %v442_v44 = vadd.f32 %v3670_v5, %v385_v33  ;;  %v485_v46 = vmax.f32 %v431_v35, 0.0  ;;  %v443_v47 = vadd.f32 %v3670_v5, %v386_v37  ;;  %v3372_v21 = vld [vmem:[%s4425_s3 + $0xf8] sm:$0xff]  ;;  %v241_v33 = vld [vmem:[%s3660_s29 + $0xc] sm:$0xff]   ;;  %v675_v35 = vld [vmem:[#allocation2 + $0x1] sm:$0xff] }
  0x1a   : > { %526 = vst [vmem:[#allocation2 + $0x60] sm:$0xff] %v472_v39  ;;  %v444_v48 = vadd.f32 %v3670_v5, %v387_v42  ;;  %v351_v49 = vmul.f32 %v3665_v4, %v294_v29  ;;  %v486_v51 = vmax.f32 %v432_v36, 0.0  ;;  %v307_v55 = vunpack.c.l.bf16 %v253_v45 }
  0x1b   : > { %527 = vst [vmem:[#allocation2 + $0x68] sm:$0xff] %v473_v40  ;;  %v496_v53 = vmax.f32 %v442_v44, 0.0  ;;  %v497_v56 = vmax.f32 %v443_v47, 0.0  ;;  %v308_v57 = vunpack.c.h.bf16 %v253_v45  ;;  %v309_v58 = vunpack.c.l.bf16 %v255_v50  ;;  %v3363_v40 = vld [vmem:[%s4425_s3 + $0xb0] sm:$0xff] }
  0x1c   : > { %3564 = vmatpush.bf16.msra.mxu1 %v3352_v38  ;;  %3565 = vmatpush.bf16.msra.mxu2 %v3352_v38  ;;  %528 = vst [vmem:[#allocation2 + $0x70] sm:$0x3] %v474_v41  ;;  %v408_v54 = vadd.f32 %v3670_v5, %v351_v49  ;;  %v498_v59 = vmax.f32 %v444_v48, 0.0  ;;  %v364_v63 = vmul.f32 %v3665_v4, %v307_v55  ;;  %v319_v6 = vunpack.c.l.bf16 %v265_v60  ;;  %v3371_v45 = vld [vmem:[%s4425_s3 + $0xf0] sm:$0xff] }
  0x1d   : > { %3566 = vmatpush.bf16.msra.mxu3 %v3352_v38  ;;  %792 = vmatpush.bf16.msra.mxu0 %v3352_v38  ;;  %538 = vst [vmem:[#allocation2 + $0xc0] sm:$0xff] %v484_v43  ;;  %v365_v2 = vmul.f32 %v3665_v4, %v308_v57  ;;  %v366_v3 = vmul.f32 %v3665_v4, %v309_v58  ;;  %v320_v7 = vunpack.c.h.bf16 %v265_v60  ;;  %v321_v8 = vunpack.c.l.bf16 %v267_v0  ;;  %v243_v43 = vld [vmem:[%s3660_s29 + $0x14] sm:$0x1]  ;;  %v258_v0 = vld [vmem:[%s3660_s29 + $0x50] sm:$0x1] }
  0x1e   : > { %539 = vst [vmem:[#allocation2 + $0xc8] sm:$0xff] %v485_v46  ;;  %v462_v61 = vmax.f32 %v408_v54, 0.0  ;;  %v421_v13 = vadd.f32 %v3670_v5, %v364_v63  ;;  %v376_v17 = vmul.f32 %v3665_v4, %v319_v6  ;;  %v331_v23 = vunpack.c.l.bf16 %v277_v9  ;;  %v3347_v50 = vld [vmem:[%s4425_s3 + $0x30] sm:$0xff]  ;;  %v3370_v63 = vld [vmem:[%s4425_s3 + $0xe8] sm:$0xff] }
  0x1f   : > { %540 = vst [vmem:[#allocation2 + $0xd0] sm:$0x3] %v486_v51  ;;  %v3728_v15 = vadd.f32 %v3670_v5, %v365_v2  ;;  %v423_v16 = vadd.f32 %v3670_v5, %v366_v3  ;;  %v377_v22 = vmul.f32 %v3665_v4, %v320_v7  ;;  %v378_v27 = vmul.f32 %v3665_v4, %v321_v8  ;;  %v3379_v55 = vld [vmem:[%s4425_s3 + $0x130] sm:$0xff]  ;;  %v3346_v6 = vld [vmem:[%s4425_s3 + $0x28] sm:$0xff] }
  0x20   : > { %3567 = vmatpush.bf16.msra.mxu1 %v3351_v52  ;;  %3568 = vmatpush.bf16.msra.mxu2 %v3351_v52  ;;  %550 = vst [vmem:[#allocation2 + $0x120] sm:$0xff] %v496_v53  ;;  %v332_v28 = vunpack.c.h.bf16 %v277_v9  ;;  %v475_v31 = vmax.f32 %v421_v13, 0.0  ;;  %v333_v32 = vunpack.c.l.bf16 %v279_v18  ;;  %v433_v38 = vadd.f32 %v3670_v5, %v376_v17  ;;  %v3378_v9 = vld [vmem:[%s4425_s3 + $0x128] sm:$0xff]  ;;  %v3369_v18 = vld [vmem:[%s4425_s3 + $0xe0] sm:$0xff] }
  0x21   : > { %3569 = vmatpush.bf16.msra.mxu3 %v3351_v52  ;;  %793 = vmatpush.bf16.msra.mxu0 %v3351_v52  ;;  %551 = vst [vmem:[#allocation2 + $0x128] sm:$0xff] %v497_v56  ;;  %v476_v36 = vmax.f32 %v3728_v15, 0.0  ;;  %v477_v37 = vmax.f32 %v423_v16, 0.0  ;;  %v434_v41 = vadd.f32 %v3670_v5, %v377_v22  ;;  %v388_v42 = vmul.f32 %v3665_v4, %v331_v23  ;;  %v3531_v56 = vld [vmem:[%s3660_s29 + $0x48] sm:$0xff]   ;;  %v3345_v23 = vld [vmem:[%s4425_s3 + $0x20] sm:$0xff] }
  0x22   : > { %552 = vst [vmem:[#allocation2 + $0x130] sm:$0x3] %v498_v59  ;;  %v683_v11 = vld [vmem:[#allocation2 + $0x61] sm:$0xff]  ;;  %v435_v46 = vadd.f32 %v3670_v5, %v378_v27  ;;  %v389_v47 = vmul.f32 %v3665_v4, %v332_v28  ;;  %v295_v48 = vunpack.c.l.bf16 %v241_v33  ;;  %v390_v51 = vmul.f32 %v3665_v4, %v333_v32 }
  0x23   : > { %516 = vst [vmem:[#allocation2 + $0x10] sm:$0x3] %v462_v61  ;;  %v684_v12 = vld [vmem:[#allocation2 + $0x69] sm:$0xff]  ;;  %v296_v52 = vunpack.c.h.bf16 %v241_v33  ;;  %v487_v53 = vmax.f32 %v433_v38, 0.0  ;;  %v297_v54 = vunpack.c.l.bf16 %v243_v43  ;;  %v488_v57 = vmax.f32 %v434_v41, 0.0  ;;  %v3401_v15 = vld [vmem:[%s4425_s3 + $0x1e0] sm:$0xff] }
  0x24   : > { %3570 = vmatpush.bf16.msra.mxu1 %v3350_v62  ;;  %3571 = vmatpush.bf16.msra.mxu2 %v3350_v62  ;;  %570 = vst [vmem:[#allocation2 + $0x10] sm:$0x3] %v3602_v1  ;;  %v711_v24 = vpack.c.bf16 %v684_v12, %v683_v11  ;;  %v445_v58 = vadd.f32 %v3670_v5, %v388_v42  ;;  %v3362_v59 = vld [vmem:[%s4425_s3 + $0xa8] sm:$0xff]  ;;  %v489_v60 = vmax.f32 %v435_v46, 0.0  ;;  %v3427_v7 = vunpack.c.l.bf16 %v3531_v56  ;;  %v3361_v12 = vld [vmem:[%s4425_s3 + $0xa0] sm:$0xff] }
  0x25   : > { %3572 = vmatpush.bf16.msra.mxu3 %v3350_v62  ;;  %794 = vmatpush.bf16.msra.mxu0 %v3350_v62  ;;  %v691_v14 = vld [vmem:[#allocation2 + $0xc1] sm:$0xff]  ;;  %593 = vst [vmem:[#allocation2 + $0x11] sm:$0x1] %v3602_v1  ;;  %v446_v61 = vadd.f32 %v3670_v5, %v389_v47  ;;  %v352_v62 = vmul.f32 %v3665_v4, %v295_v48  ;;  %v312_v13 = vunpack.c.l.bf16 %v258_v0  ;;  %v282_v43 = vld [vmem:[%s3660_s29 + $0xb0] sm:$0x1] }
  0x26   : > { %v692_v19 = vld [vmem:[#allocation2 + $0xc9] sm:$0xff]  ;;  %579 = vst [vmem:[#allocation2 + $0x60] sm:$0x1] %v3602_v1  ;;  %v447_v2 = vadd.f32 %v3670_v5, %v390_v51  ;;  %v353_v3 = vmul.f32 %v3665_v4, %v296_v52  ;;  %v354_v8 = vmul.f32 %v3665_v4, %v297_v54  ;;  %v499_v11 = vmax.f32 %v445_v58, 0.0  ;;  %v3368_v51 = vld [vmem:[%s4425_s3 + $0xd8] sm:$0xff]  ;;  %v3377_v52 = vld [vmem:[%s4425_s3 + $0x120] sm:$0xff] }
  0x27   : > { %v715_v25 = vpack.c.bf16 %v692_v19, %v691_v14  ;;  %583 = vst [vmem:[#allocation2 + $0xc0] sm:$0x1] %v3602_v1  ;;  %v3533_v14 = vld [vmem:[%s3660_s29 + $0x78] sm:$0xff]   ;;  %v500_v16 = vmax.f32 %v446_v61, 0.0  ;;  %v409_v17 = vadd.f32 %v3670_v5, %v352_v62  ;;  %v270_v19 = vld [vmem:[%s3660_s29 + $0x80] sm:$0x1] }
  0x28   : > { %3573 = vmatpush.bf16.msra.mxu1 %v3349_v10  ;;  %3574 = vmatpush.bf16.msra.mxu2 %v3349_v10  ;;  %v699_v29 = vld [vmem:[#allocation2 + $0x121] sm:$0xff]  ;;  %587 = vst [vmem:[#allocation2 + $0x120] sm:$0x1] %v3602_v1  ;;  %v3809_v22 = vadd.f32 %v3670_v5, %v353_v3  ;;  %v3435_v28 = vunpack.c.l.bf16 %v3533_v14  ;;  %v3367_v61 = vld [vmem:[%s4425_s3 + $0xd0] sm:$0xff]  ;;  %v3376_v3 = vld [vmem:[%s4425_s3 + $0x118] sm:$0xff] }
  0x29   : > { %3575 = vmatpush.bf16.msra.mxu3 %v3349_v10  ;;  %795 = vmatpush.bf16.msra.mxu0 %v3349_v10  ;;  %v700_v34 = vld [vmem:[#allocation2 + $0x129] sm:$0xff]  ;;  %597 = vst [vmem:[#allocation2 + $0x71] sm:$0x1] %v3602_v1  ;;  %v3428_v10 = vunpack.c.h.bf16 %v3531_v56  ;;  %v463_v33 = vmax.f32 %v409_v17, 0.0  ;;  %v3529_v56 = vld [vmem:[%s3660_s29 + $0x18] sm:$0xff]  }
  0x2a   : > { %v719_v39 = vpack.c.bf16 %v700_v34, %v699_v29  ;;  %601 = vst [vmem:[#allocation2 + $0xd1] sm:$0x1] %v3602_v1  ;;  %v369_v29 = vmul.f32 %v3665_v4, %v312_v13  ;;  %v324_v34 = vunpack.c.l.bf16 %v270_v19  ;;  %v379_v42 = vmul.f32 %v3665_v4, %v3435_v28  ;;  %v259_v17 = vld [vmem:[%s3660_s29 + $0x54] sm:$0xff]  }
  0x2b   : > { %816 = vmatmul.bf16.vlgmr.msra.gmra.mxu1 %v711_v24  ;;  %836 = vmatmul.bf16.vlgmr.msra.gmra.mxu2 %v715_v25  ;;  %v676_v44 = vld [vmem:[#allocation2 + $0x9] sm:$0xff]  ;;  %605 = vst [vmem:[#allocation2 + $0x131] sm:$0x1] %v3602_v1  ;;  %v367_v24 = vmul.f32 %v3665_v4, %v3427_v7  ;;  %v368_v27 = vmul.f32 %v3665_v4, %v3428_v10  ;;  %v3420_v13 = vunpack.c.h.bf16 %v3529_v56 }
  0x2c   : > { %1127 = vmatpush.bf16.msrb.mxu2 %v3364_v20  ;;  %856 = vmatmul.bf16.vlgmr.msra.gmra.mxu3 %v719_v39  ;;  %v707_v49 = vpack.c.bf16 %v676_v44, %v675_v35  ;;  %529 = vst [vmem:[#allocation2 + $0x78] sm:$0xff] %v475_v31  ;;  %v3360_v31 = vld [vmem:[%s4425_s3 + $0x98] sm:$0xff]  ;;  %v3535_v35 = vld [vmem:[%s3660_s29 + $0xa8] sm:$0xff]   ;;  %v3343_v10 = vld [vmem:[%s4425_s3 + $0x10] sm:$0xff] }
  0x2d   : > { %1362 = vmatpush.bf16.msrb.mxu3 %v3372_v21  ;;  %925 = vmatpush.bf16.msrb.mxu1 %v3348_v26  ;;  %530 = vst [vmem:[#allocation2 + $0x80] sm:$0xff] %v476_v36  ;;  %v501_v21 = vmax.f32 %v447_v2, 0.0  ;;  %v411_v26 = vadd.f32 %v3670_v5, %v354_v8  ;;  %v424_v38 = vadd.f32 %v3670_v5, %v367_v24  ;;  %v3443_v47 = vunpack.c.l.bf16 %v3535_v35 }
  0x2e   : > { %1596 = vmatpush.bf16.msrb.mxu0 %v3380_v30  ;;  %531 = vst [vmem:[#allocation2 + $0x88] sm:$0x3] %v477_v37  ;;  %v3436_v30 = vunpack.c.h.bf16 %v3533_v14  ;;  %v464_v37 = vmax.f32 %v3809_v22, 0.0  ;;  %v3829_v41 = vadd.f32 %v3670_v5, %v368_v27  ;;  %v356_v28 = vmul.f32 %v3665_v4, %v3420_v13  ;;  %v3366_v13 = vld [vmem:[%s4425_s3 + $0xc8] sm:$0xff]  ;;  %v3411_v22 = vld [vmem:[%s4425_s3 + $0x230] sm:$0xff] }
  0x2f   : > { %796 = vmatmul.bf16.vlgmr.msra.gmra.mxu0 %v707_v49  ;;  %580 = vst [vmem:[#allocation2 + $0x78] sm:$0x1] %v3602_v1  ;;  %v381_v49 = vmul.f32 %v3665_v4, %v324_v34  ;;  %v478_v54 = vmax.f32 %v424_v38, 0.0  ;;  %v391_v2 = vmul.f32 %v3665_v4, %v3443_v47  ;;  %v271_v38 = vld [vmem:[%s3660_s29 + $0x84] sm:$0xff]  }
  0x30   : > { %1128 = vmatpush.bf16.msrb.mxu2 %v3363_v40  ;;  %598 = vst [vmem:[#allocation2 + $0x89] sm:$0x1] %v3602_v1  ;;  %v465_v40 = vmax.f32 %v411_v26, 0.0  ;;  %v380_v46 = vmul.f32 %v3665_v4, %v3436_v30  ;;  %v479_v58 = vmax.f32 %v3829_v41, 0.0 }
  0x31   : > { %1363 = vmatpush.bf16.msrb.mxu3 %v3371_v45  ;;  %926 = vmatpush.bf16.msrb.mxu1 %v3347_v50  ;;  %541 = vst [vmem:[#allocation2 + $0xd8] sm:$0xff] %v487_v53  ;;  %v426_v45 = vadd.f32 %v3670_v5, %v369_v29  ;;  %v3444_v50 = vunpack.c.h.bf16 %v3535_v35  ;;  %v3344_v53 = vld [vmem:[%s4425_s3 + $0x18] sm:$0xff]  ;;  %v438_v7 = vadd.f32 %v3670_v5, %v381_v49  ;;  %v313_v29 = vunpack.c.l.bf16 %v259_v17 }
  0x32   : > { %1597 = vmatpush.bf16.msrb.mxu0 %v3379_v55  ;;  %542 = vst [vmem:[#allocation2 + $0xe0] sm:$0xff] %v488_v57  ;;  %v336_v55 = vunpack.c.l.bf16 %v282_v43  ;;  %v3359_v57 = vld [vmem:[%s4425_s3 + $0x90] sm:$0xff]  ;;  %v3861_v0 = vadd.f32 %v3670_v5, %v380_v46  ;;  %v448_v19 = vadd.f32 %v3670_v5, %v391_v2  ;;  %v273_v46 = vld [vmem:[%s3660_s29 + $0x8c] sm:$0x1] }
  0x33   : > { %543 = vst [vmem:[#allocation2 + $0xe8] sm:$0x3] %v489_v60  ;;  %v246_v60 = vld [vmem:[%s3660_s29 + $0x20] sm:$0x1]  ;;  %v392_v8 = vmul.f32 %v3665_v4, %v3444_v50  ;;  %v325_v50 = vunpack.c.l.bf16 %v271_v38 }
  0x34   : > { %1129 = vmatpush.bf16.msrb.mxu2 %v3362_v59  ;;  %v685_v20 = vld [vmem:[#allocation2 + $0x79] sm:$0xff]  ;;  %584 = vst [vmem:[#allocation2 + $0xd8] sm:$0x1] %v3602_v1  ;;  %v436_v59 = vadd.f32 %v3670_v5, %v379_v42  ;;  %v502_v34 = vmax.f32 %v448_v19, 0.0 }
  0x35   : > { %1364 = vmatpush.bf16.msrb.mxu3 %v3370_v63  ;;  %927 = vmatpush.bf16.msrb.mxu1 %v3346_v6  ;;  %v686_v25 = vld [vmem:[#allocation2 + $0x81] sm:$0xff]  ;;  %602 = vst [vmem:[#allocation2 + $0xe9] sm:$0x1] %v3602_v1  ;;  %v480_v63 = vmax.f32 %v426_v45, 0.0  ;;  %v370_v45 = vmul.f32 %v3665_v4, %v313_v29  ;;  %v382_v2 = vmul.f32 %v3665_v4, %v325_v50 }
  0x36   : > { %1598 = vmatpush.bf16.msrb.mxu0 %v3378_v9  ;;  %553 = vst [vmem:[#allocation2 + $0x138] sm:$0xff] %v499_v11  ;;  %v3822_v32 = vpack.c.bf16 %v686_v25, %v685_v20  ;;  %v3419_v9 = vunpack.c.l.bf16 %v3529_v56  ;;  %v490_v14 = vmax.f32 %v436_v59, 0.0  ;;  %v261_v25 = vld [vmem:[%s3660_s29 + $0x5c] sm:$0x1]  ;;  %v327_v56 = vunpack.c.l.bf16 %v273_v46  ;;  %v3373_v50 = vld [vmem:[%s4425_s3 + $0x100] sm:$0xff] }
  0x37   : > { %554 = vst [vmem:[#allocation2 + $0x140] sm:$0xff] %v500_v16  ;;  %v300_v16 = vunpack.c.l.bf16 %v246_v60  ;;  %v315_v35 = vunpack.c.l.bf16 %v261_v25  ;;  %v427_v60 = vadd.f32 %v3670_v5, %v370_v45  ;;  %v249_v25 = vld [vmem:[%s3660_s29 + $0x2c] sm:$0x1] }
  0x38   : > { %1130 = vmatpush.bf16.msrb.mxu2 %v3361_v12  ;;  %555 = vst [vmem:[#allocation2 + $0x148] sm:$0x3] %v501_v21  ;;  %v393_v12 = vmul.f32 %v3665_v4, %v336_v55  ;;  %v492_v21 = vmax.f32 %v438_v7, 0.0  ;;  %v355_v24 = vmul.f32 %v3665_v4, %v3419_v9 }
  0x39   : > { %1365 = vmatpush.bf16.msrb.mxu3 %v3369_v18  ;;  %928 = vmatpush.bf16.msrb.mxu1 %v3345_v23  ;;  %v693_v39 = vld [vmem:[#allocation2 + $0xd9] sm:$0xff]  ;;  %588 = vst [vmem:[#allocation2 + $0x138] sm:$0x1] %v3602_v1  ;;  %v491_v18 = vmax.f32 %v3861_v0, 0.0  ;;  %v449_v23 = vadd.f32 %v3670_v5, %v392_v8 }
  0x3a   : > { %v694_v44 = vld [vmem:[#allocation2 + $0xe1] sm:$0xff]  ;;  %606 = vst [vmem:[#allocation2 + $0x149] sm:$0x1] %v3602_v1  ;;  %1599 = vmatpush.bf16.msrb.mxu0 %v3377_v52  ;;  %v450_v27 = vadd.f32 %v3670_v5, %v393_v12  ;;  %v372_v52 = vmul.f32 %v3665_v4, %v315_v35 }
  0x3b   : > { %821 = vmatmul.bf16.gmra.mxu1 %v3822_v32  ;;  %v716_v48 = vpack.c.bf16 %v694_v44, %v693_v39  ;;  %517 = vst [vmem:[#allocation2 + $0x18] sm:$0xff] %v463_v33  ;;  %v314_v33 = vunpack.c.h.bf16 %v259_v17  ;;  %v503_v39 = vmax.f32 %v449_v23, 0.0  ;;  %v3896_v44 = vadd.f32 %v3670_v5, %v356_v28 }
  0x3c   : > { %1131 = vmatpush.bf16.msrb.mxu2 %v3360_v31  ;;  %518 = vst [vmem:[#allocation2 + $0x20] sm:$0xff] %v464_v37  ;;  %v357_v31 = vmul.f32 %v3665_v4, %v300_v16  ;;  %v504_v43 = vmax.f32 %v450_v27, 0.0  ;;  %v429_v7 = vadd.f32 %v3670_v5, %v372_v52  ;;  %v3342_v16 = vld [vmem:[%s4425_s3 + $0x8] sm:$0xff]  ;;  %v481_v17 = vmax.f32 %v427_v60, 0.0 }
  0x3d   : > { %841 = vmatmul.bf16.gmra.mxu2 %v716_v48  ;;  %519 = vst [vmem:[#allocation2 + $0x28] sm:$0x3] %v465_v40  ;;  %1366 = vmatpush.bf16.msrb.mxu3 %v3368_v51  ;;  %v412_v40 = vadd.f32 %v3670_v5, %v355_v24  ;;  %v371_v49 = vmul.f32 %v3665_v4, %v314_v33  ;;  %v467_v59 = vmax.f32 %v3896_v44, 0.0  ;;  %v3374_v33 = vld [vmem:[%s4425_s3 + $0x108] sm:$0xff] }
  0x3e   : > { %v701_v62 = vld [vmem:[#allocation2 + $0x139] sm:$0xff]  ;;  %576 = vst [vmem:[#allocation2 + $0x18] sm:$0x1] %v3602_v1  ;;  %929 = vmatpush.bf16.msrb.mxu1 %v3344_v53  ;;  %1600 = vmatpush.bf16.msrb.mxu0 %v3376_v3  ;;  %v414_v48 = vadd.f32 %v3670_v5, %v357_v31  ;;  %v326_v53 = vunpack.c.h.bf16 %v271_v38  ;;  %v439_v24 = vadd.f32 %v3670_v5, %v382_v2  ;;  %v483_v28 = vmax.f32 %v429_v7, 0.0 }
  0x3f   : > { %v702_v6 = vld [vmem:[#allocation2 + $0x141] sm:$0xff]  ;;  %594 = vst [vmem:[#allocation2 + $0x29] sm:$0x1] %v3602_v1  ;;  %v466_v55 = vmax.f32 %v412_v40, 0.0  ;;  %v285_v3 = vld [vmem:[%s3660_s29 + $0xbc] sm:$0x1] }
  0x40   : > { %1132 = vmatpush.bf16.msrb.mxu2 %v3359_v57  ;;  %v720_v11 = vpack.c.bf16 %v702_v6, %v701_v62  ;;  %532 = vst [vmem:[#allocation2 + $0x90] sm:$0xff] %v478_v54  ;;  %v3358_v54 = vld [vmem:[%s4425_s3 + $0x88] sm:$0xff]  ;;  %v283_v57 = vld [vmem:[%s3660_s29 + $0xb4] sm:$0xff]   ;;  %v468_v62 = vmax.f32 %v414_v48, 0.0  ;;  %v383_v8 = vmul.f32 %v3665_v4, %v326_v53  ;;  %v339_v19 = vunpack.c.l.bf16 %v285_v3  ;;  %v3341_v40 = vld [vmem:[%s4425_s3] sm:$0xff] }
  0x41   : > { %533 = vst [vmem:[#allocation2 + $0x98] sm:$0xff] %v479_v58  ;;  %1367 = vmatpush.bf16.msrb.mxu3 %v3367_v61  ;;  %v337_v9 = vunpack.c.l.bf16 %v283_v57  ;;  %v338_v12 = vunpack.c.h.bf16 %v283_v57  ;;  %v493_v46 = vmax.f32 %v439_v24, 0.0  ;;  %v3396_v3 = vld [vmem:[%s4425_s3 + $0x1b8] sm:$0xff] }
  0x42   : > { %861 = vmatmul.bf16.gmra.mxu3 %v720_v11  ;;  %534 = vst [vmem:[#allocation2 + $0xa0] sm:$0x3] %v480_v63  ;;  %930 = vmatpush.bf16.msrb.mxu1 %v3343_v10  ;;  %v3915_v63 = vadd.f32 %v3670_v5, %v371_v49  ;;  %v384_v11 = vmul.f32 %v3665_v4, %v327_v56 }
  0x43   : > { %v677_v20 = vld [vmem:[#allocation2 + $0x19] sm:$0xff]  ;;  %581 = vst [vmem:[#allocation2 + $0x90] sm:$0x1] %v3602_v1  ;;  %v3949_v29 = vadd.f32 %v3670_v5, %v383_v8  ;;  %v394_v31 = vmul.f32 %v3665_v4, %v337_v9  ;;  %v395_v38 = vmul.f32 %v3665_v4, %v338_v12 }
  0x44   : > { %v678_v26 = vld [vmem:[#allocation2 + $0x21] sm:$0xff]  ;;  %599 = vst [vmem:[#allocation2 + $0xa1] sm:$0x1] %v3602_v1  ;;  %1133 = vmatpush.bf16.msrb.mxu2 %v3358_v54  ;;  %v482_v23 = vmax.f32 %v3915_v63, 0.0  ;;  %v441_v35 = vadd.f32 %v3670_v5, %v384_v11  ;;  %v3400_v63 = vld [vmem:[%s4425_s3 + $0x1d8] sm:$0xff] }
  0x45   : > { %v3886_v30 = vpack.c.bf16 %v678_v26, %v677_v20  ;;  %544 = vst [vmem:[#allocation2 + $0xf0] sm:$0xff] %v490_v14  ;;  %v3375_v14 = vld [vmem:[%s4425_s3 + $0x110] sm:$0xff]  ;;  %v247_v20 = vld [vmem:[%s3660_s29 + $0x24] sm:$0xff]   ;;  %1368 = vmatpush.bf16.msrb.mxu3 %v3366_v13  ;;  %v494_v48 = vmax.f32 %v3949_v29, 0.0  ;;  %v451_v49 = vadd.f32 %v3670_v5, %v394_v31  ;;  %v452_v54 = vadd.f32 %v3670_v5, %v395_v38 }
  0x46   : > { %545 = vst [vmem:[#allocation2 + $0xf8] sm:$0xff] %v491_v18  ;;  %v3365_v26 = vld [vmem:[%s4425_s3 + $0xc0] sm:$0xff]  ;;  %1601 = vmatpush.bf16.msrb.mxu0 %v3375_v14  ;;  %931 = vmatpush.bf16.msrb.mxu1 %v3342_v16  ;;  %v302_v45 = vunpack.c.h.bf16 %v247_v20  ;;  %v495_v53 = vmax.f32 %v441_v35, 0.0  ;;  %v3404_v16 = vld [vmem:[%s4425_s3 + $0x1f8] sm:$0xff] }
  0x47   : > { %801 = vmatmul.bf16.gmra.mxu0 %v3886_v30  ;;  %546 = vst [vmem:[#allocation2 + $0x100] sm:$0x3] %v492_v21  ;;  %v3357_v21 = vld [vmem:[%s4425_s3 + $0x80] sm:$0xff]  ;;  %v505_v2 = vmax.f32 %v451_v49, 0.0  ;;  %v3403_v49 = vld [vmem:[%s4425_s3 + $0x1f0] sm:$0xff] }
  0x48   : > { %v687_v42 = vld [vmem:[#allocation2 + $0x91] sm:$0xff]  ;;  %585 = vst [vmem:[#allocation2 + $0xf0] sm:$0x1] %v3602_v1  ;;  %1134 = vmatpush.bf16.msrb.mxu2 %v3357_v21  ;;  %v359_v60 = vmul.f32 %v3665_v4, %v302_v45  ;;  %v611_v31 = vld [vmem:[#allocation2] sm:$0xff] }
  0x49   : > { %v688_v47 = vld [vmem:[#allocation2 + $0x99] sm:$0xff]  ;;  %603 = vst [vmem:[#allocation2 + $0x101] sm:$0x1] %v3602_v1  ;;  %1369 = vmatpush.bf16.msrb.mxu3 %v3365_v26  ;;  %v643_v35 = vpack.c.bf16 0.0, %v611_v31 }
  0x4a   : > { %v3903_v51 = vpack.c.bf16 %v688_v47, %v687_v42  ;;  %556 = vst [vmem:[#allocation2 + $0x150] sm:$0xff] %v502_v34  ;;  %v303_v47 = vunpack.c.l.bf16 %v249_v25  ;;  %1602 = vmatpush.bf16.msrb.mxu0 %v3374_v33  ;;  %932 = vmatpush.bf16.msrb.mxu1 %v3341_v40  ;;  %v1015_v40 = vld [vmem:[#allocation2 + $0xa] sm:$0xff] }
  0x4b   : > { %557 = vst [vmem:[#allocation2 + $0x158] sm:$0xff] %v503_v39  ;;  %v301_v39 = vunpack.c.l.bf16 %v247_v20 }
  0x4c   : > { %826 = vmatmul.bf16.gmra.mxu1 %v3903_v51  ;;  %558 = vst [vmem:[#allocation2 + $0x160] sm:$0x3] %v504_v43  ;;  %v396_v43 = vmul.f32 %v3665_v4, %v339_v19  ;;  %2065 = vmatpush.bf16.msra.mxu2 %v3396_v3  ;;  %v3412_v19 = vld [vmem:[%s4425_s3 + $0x238] sm:$0xff] }
  0x4d   : > { %v695_v61 = vld [vmem:[#allocation2 + $0xf1] sm:$0xff]  ;;  %589 = vst [vmem:[#allocation2 + $0x150] sm:$0x1] %v3602_v1  ;;  %2299 = vmatpush.bf16.msra.mxu3 %v3404_v16 }
  0x4e   : > { %v696_v6 = vld [vmem:[#allocation2 + $0xf9] sm:$0xff]  ;;  %607 = vst [vmem:[#allocation2 + $0x161] sm:$0x1] %v3602_v1  ;;  %v453_v57 = vadd.f32 %v3670_v5, %v396_v43  ;;  %1603 = vmatpush.bf16.msrb.mxu0 %v3373_v50  ;;  %v3387_v50 = vld [vmem:[%s4425_s3 + $0x170] sm:$0xff] }
  0x4f   : > { %v3922_v10 = vpack.c.bf16 %v696_v6, %v695_v61  ;;  %520 = vst [vmem:[#allocation2 + $0x30] sm:$0xff] %v466_v55  ;;  %v358_v55 = vmul.f32 %v3665_v4, %v301_v39  ;;  %v506_v6 = vmax.f32 %v452_v54, 0.0  ;;  %v1014_v39 = vld [vmem:[#allocation2 + $0x2] sm:$0xff]  ;;  %v1249_v43 = vld [vmem:[#allocation2 + $0x18] sm:$0xff]  ;;  %v1023_v16 = vld [vmem:[#allocation2 + $0x6a] sm:$0xff] }
  0x50   : > { %521 = vst [vmem:[#allocation2 + $0x38] sm:$0xff] %v467_v59  ;;  %v507_v9 = vmax.f32 %v453_v57, 0.0  ;;  %v1281_v45 = vpack.c.bf16 %v464_v37, %v1249_v43  ;;  %v1034_v0 = vld [vmem:[#allocation2 + $0xf2] sm:$0xff] }
  0x51   : > { %846 = vmatmul.bf16.gmra.mxu2 %v3922_v10  ;;  %522 = vst [vmem:[#allocation2 + $0x40] sm:$0x3] %v468_v62  ;;  %v360_v62 = vmul.f32 %v3665_v4, %v303_v47  ;;  %v415_v7 = vadd.f32 %v3670_v5, %v358_v55  ;;  %v3987_v4 = vadd.f32 %v3670_v5, %v359_v60  ;;  %v1017_v47 = vld [vmem:[#allocation2 + $0x22] sm:$0xff] }
  0x52   : > { %v703_v27 = vld [vmem:[#allocation2 + $0x151] sm:$0xff]  ;;  %577 = vst [vmem:[#allocation2 + $0x30] sm:$0x1] %v3602_v1  ;;  %2533 = vmatpush.bf16.msra.mxu0 %v3412_v19  ;;  %2300 = vmatpush.bf16.msra.mxu3 %v3403_v49  ;;  %v3394_v60 = vld [vmem:[%s4425_s3 + $0x1a8] sm:$0xff] }
  0x53   : > { %v704_v34 = vld [vmem:[#allocation2 + $0x159] sm:$0xff]  ;;  %595 = vst [vmem:[#allocation2 + $0x41] sm:$0x1] %v3602_v1  ;;  %v417_v12 = vadd.f32 %v3670_v5, %v360_v62  ;;  %v469_v14 = vmax.f32 %v415_v7, 0.0  ;;  %v470_v5 = vmax.f32 %v3987_v4, 0.0  ;;  %v3386_v62 = vld [vmem:[%s4425_s3 + $0x168] sm:$0xff] }
  0x54   : > { %v721_v42 = vpack.c.bf16 %v704_v34, %v703_v27  ;;  %535 = vst [vmem:[#allocation2 + $0xa8] sm:$0xff] %v481_v17  ;;  %v3388_v17 = vld [vmem:[%s4425_s3 + $0x178] sm:$0xff]  ;;  %v1256_v7 = vld [vmem:[#allocation2 + $0x68] sm:$0xff] }
  0x55   : > { %536 = vst [vmem:[#allocation2 + $0xb0] sm:$0xff] %v482_v23  ;;  %v471_v21 = vmax.f32 %v417_v12, 0.0  ;;  %1830 = vmatpush.bf16.msra.mxu1 %v3388_v17  ;;  %v1490_v4 = vld [vmem:[#allocation2 + $0x69] sm:$0xff] }
  0x56   : > { %866 = vmatmul.bf16.gmra.mxu3 %v721_v42  ;;  %537 = vst [vmem:[#allocation2 + $0xb8] sm:$0x3] %v483_v28  ;;  %v1046_v42 = vpack.c.bf16 %v1015_v40, %v1014_v39  ;;  %2534 = vmatpush.bf16.msra.mxu0 %v3411_v22  ;;  %v1026_v22 = vld [vmem:[#allocation2 + $0x92] sm:$0xff] }
  0x57   : > { %v679_v52 = vld [vmem:[#allocation2 + $0x31] sm:$0xff]  ;;  %582 = vst [vmem:[#allocation2 + $0xa8] sm:$0x1] %v3602_v1 }
  0x58   : > { %v680_v56 = vld [vmem:[#allocation2 + $0x39] sm:$0xff]  ;;  %600 = vst [vmem:[#allocation2 + $0xb9] sm:$0x1] %v3602_v1 }
  0x59   : > { %v3975_v61 = vpack.c.bf16 %v680_v56, %v679_v52  ;;  %547 = vst [vmem:[#allocation2 + $0x108] sm:$0xff] %v493_v46  ;;  %v1016_v46 = vld [vmem:[#allocation2 + $0x1a] sm:$0xff]  ;;  %1831 = vmatpush.bf16.msra.mxu1 %v3387_v50  ;;  %v1251_v52 = vld [vmem:[#allocation2 + $0x30] sm:$0xff] }
  0x5a   : > { %548 = vst [vmem:[#allocation2 + $0x110] sm:$0xff] %v494_v48  ;;  %v1047_v37 = vpack.c.bf16 %v1017_v47, %v1016_v46  ;;  %v1019_v54 = vld [vmem:[#allocation2 + $0x3a] sm:$0xff] }
  0x5b   : > { %806 = vmatmul.bf16.gmra.mxu0 %v3975_v61  ;;  %549 = vst [vmem:[#allocation2 + $0x118] sm:$0x3] %v495_v53  ;;  %v1018_v53 = vld [vmem:[#allocation2 + $0x32] sm:$0xff] }
  0x5c   : > { %v689_v8 = vld [vmem:[#allocation2 + $0xa9] sm:$0xff]  ;;  %586 = vst [vmem:[#allocation2 + $0x108] sm:$0x1] %v3602_v1  ;;  %v4029_v55 = vpack.c.bf16 %v1019_v54, %v1018_v53 }
  0x5d   : > { %v690_v11 = vld [vmem:[#allocation2 + $0xb1] sm:$0xff]  ;;  %604 = vst [vmem:[#allocation2 + $0x119] sm:$0x1] %v3602_v1  ;;  %1832 = vmatpush.bf16.msra.mxu1 %v3386_v62 }
  0x5e   : > { %v3991_v13 = vpack.c.bf16 %v690_v11, %v689_v8  ;;  %559 = vst [vmem:[#allocation2 + $0x168] sm:$0xff] %v505_v2  ;;  %v3410_v2 = vld [vmem:[%s4425_s3 + $0x228] sm:$0xff] }
  0x5f   : > { %560 = vst [vmem:[#allocation2 + $0x170] sm:$0xff] %v506_v6  ;;  %2535 = vmatpush.bf16.msra.mxu0 %v3410_v2  ;;  %v1255_v6 = vld [vmem:[#allocation2 + $0x60] sm:$0xff]  ;;  %v1261_v53 = vld [vmem:[#allocation2 + $0xa8] sm:$0xff] }
  0x60   : > { %831 = vmatmul.bf16.gmra.mxu1 %v3991_v13  ;;  %561 = vst [vmem:[#allocation2 + $0x178] sm:$0x3] %v507_v9  ;;  %v1284_v8 = vpack.c.bf16 %v1256_v7, %v1255_v6  ;;  %v1489_v9 = vld [vmem:[#allocation2 + $0x61] sm:$0xff] }
  0x61   : > { %v697_v20 = vld [vmem:[#allocation2 + $0x109] sm:$0xff]  ;;  %590 = vst [vmem:[#allocation2 + $0x168] sm:$0x1] %v3602_v1  ;;  %v1518_v12 = vpack.c.bf16 %v1490_v4, %v1489_v9  ;;  %v1263_v7 = vld [vmem:[#allocation2 + $0xc0] sm:$0xff] }
  0x62   : > { %v698_v24 = vld [vmem:[#allocation2 + $0x111] sm:$0xff]  ;;  %608 = vst [vmem:[#allocation2 + $0x179] sm:$0x1] %v3602_v1 }
  0x63   : > { %v4006_v25 = vpack.c.bf16 %v698_v24, %v697_v20  ;;  %523 = vst [vmem:[#allocation2 + $0x48] sm:$0xff] %v469_v14  ;;  %v1022_v14 = vld [vmem:[#allocation2 + $0x62] sm:$0xff]  ;;  %v1257_v24 = vld [vmem:[#allocation2 + $0x78] sm:$0xff] }
  0x64   : > { %524 = vst [vmem:[#allocation2 + $0x50] sm:$0xff] %v470_v5  ;;  %v1050_v20 = vpack.c.bf16 %v1023_v16, %v1022_v14  ;;  %v1498_v14 = vld [vmem:[#allocation2 + $0xc9] sm:$0xff]  ;;  %v1037_v29 = vld [vmem:[#allocation2 + $0x112] sm:$0xff] }
  0x65   : > { %851 = vmatmul.bf16.gmra.mxu2 %v4006_v25  ;;  %525 = vst [vmem:[#allocation2 + $0x58] sm:$0x3] %v471_v21 }
  0x66   : > { %v705_v26 = vld [vmem:[#allocation2 + $0x169] sm:$0xff]  ;;  %578 = vst [vmem:[#allocation2 + $0x48] sm:$0x1] %v3602_v1 }
  0x67   : > { %v706_v27 = vld [vmem:[#allocation2 + $0x171] sm:$0xff]  ;;  %596 = vst [vmem:[#allocation2 + $0x59] sm:$0x1] %v3602_v1 }
  0x68   : > { %v722_v28 = vpack.c.bf16 %v706_v27, %v705_v26  ;;  %v3395_v1 = vld [vmem:[%s4425_s3 + $0x1b0] sm:$0xff]  ;;  %v1285_v26 = vpack.c.bf16 %v476_v36, %v1257_v24  ;;  %v3385_v36 = vld [vmem:[%s4425_s3 + $0x160] sm:$0xff] }
  0x69   : > { %2066 = vmatpush.bf16.msra.mxu2 %v3395_v1  ;;  %1833 = vmatpush.bf16.msra.mxu1 %v3385_v36 }
  0x6a   : > { %871 = vmatmul.bf16.gmra.mxu3 %v722_v28 }
  0x6b   : > { %v681_v33 = vld [vmem:[#allocation2 + $0x49] sm:$0xff] }
  0x6c   : > { %v682_v34 = vld [vmem:[#allocation2 + $0x51] sm:$0xff] }
  0x6d   : > { %v710_v38 = vpack.c.bf16 %v682_v34, %v681_v33  ;;  %v1253_v56 = vld [vmem:[#allocation2 + $0x48] sm:$0xff]  ;;  %2067 = vmatpush.bf16.msra.mxu2 %v3394_v60  ;;  %v3393_v33 = vld [vmem:[%s4425_s3 + $0x1a0] sm:$0xff] }
  0x6e   : > { %v1283_v57 = vpack.c.bf16 %v470_v5, %v1253_v56  ;;  %v1020_v44 = vld [vmem:[#allocation2 + $0x4a] sm:$0xff] }
  0x6f   : > { %811 = vmatmul.bf16.gmra.mxu0 %v710_v38 }
  0x70   : > { %933 = vmatmul.bf16.vlgmr.msrb.gmra.mxu1 %v643_v35  ;;  %v1024_v35 = vld [vmem:[#allocation2 + $0x7a] sm:$0xff] }
  0x71   : > { %2068 = vmatpush.bf16.msra.mxu2 %v3393_v33 }
  0x75   : > { %1135 = vmatmul.bf16.vlgmr.msrb.gmra.mxu2 %v1046_v42  ;;  %v3409_v42 = vld [vmem:[%s4425_s3 + $0x220] sm:$0xff] }
  0x76   : > { %2536 = vmatpush.bf16.msra.mxu0 %v3409_v42 }
  0x7a   : > { %1370 = vmatmul.bf16.vlgmr.msrb.gmra.mxu3 %v1281_v45 }
  0x7f   : > { %1604 = vmatmul.bf16.vlgmr.msrb.gmra.mxu0 %v3886_v30  ;;  %v1282_v30 = vpack.c.bf16 %v467_v59, %v1251_v52  ;;  %v1021_v59 = vld [vmem:[#allocation2 + $0x52] sm:$0xff] }
  0x80   : > { %938 = vmatmul.bf16.gmra.mxu1 %v1281_v45  ;;  %v4044_v3 = vpack.c.bf16 %v1021_v59, %v1020_v44  ;;  %v1028_v59 = vld [vmem:[#allocation2 + $0xaa] sm:$0xff] }
  0x85   : > { %1140 = vmatmul.bf16.gmra.mxu2 %v1047_v37  ;;  %v1027_v37 = vld [vmem:[#allocation2 + $0x9a] sm:$0xff] }
  0x8a   : > { %1375 = vmatmul.bf16.gmra.mxu3 %v1282_v30 }
  0x8f   : > { %1609 = vmatmul.bf16.gmra.mxu0 %v3975_v61  ;;  %v3402_v61 = vld [vmem:[%s4425_s3 + $0x1e8] sm:$0xff] }
  0x90   : > { %943 = vmatmul.bf16.gmra.mxu1 %v1282_v30  ;;  %2301 = vmatpush.bf16.msra.mxu3 %v3402_v61  ;;  %v1052_v30 = vpack.c.bf16 %v1027_v37, %v1026_v22  ;;  %v1029_v61 = vld [vmem:[#allocation2 + $0xb2] sm:$0xff] }
  0x91   : > { %v4126_v62 = vpack.c.bf16 %v1029_v61, %v1028_v59 }
  0x94   : > { %2302 = vmatpush.bf16.msra.mxu3 %v3401_v15  ;;  %v1031_v15 = vld [vmem:[#allocation2 + $0xca] sm:$0xff] }
  0x95   : > { %1145 = vmatmul.bf16.gmra.mxu2 %v4029_v55 }
  0x98   : > { %2303 = vmatpush.bf16.msra.mxu3 %v3400_v63 }
  0x9a   : > { %1380 = vmatmul.bf16.gmra.mxu3 %v1283_v57 }
  0x9f   : > { %1614 = vmatmul.bf16.gmra.mxu0 %v710_v38  ;;  %v1025_v38 = vld [vmem:[#allocation2 + $0x82] sm:$0xff] }
  0xa0   : > { %948 = vmatmul.bf16.gmra.mxu1 %v1283_v57  ;;  %v4084_v43 = vpack.c.bf16 %v1025_v38, %v1024_v35  ;;  %v1030_v38 = vld [vmem:[#allocation2 + $0xc2] sm:$0xff] }
  0xa1   : > { %v4147_v42 = vpack.c.bf16 %v1031_v15, %v1030_v38 }
  0xa5   : > { %1150 = vmatmul.bf16.gmra.mxu2 %v4044_v3 }
  0xa8   : > { %v4047_v11 = vpop.f32.mrf.mxu1 }
  0xaa   : > { %1385 = vmatmul.bf16.gmra.mxu3 %v1284_v8 }
  0xac   : > { %v4051_v19 = vpop.f32.mrf.mxu0 }
  0xae   : > { %v4049_v17 = vpop.f32.mrf.mxu2 }
  0xaf   : > { %1619 = vmatmul.bf16.gmra.mxu0 %v1518_v12  ;;  %v4055_v21 = vpop.f32.mrf.mxu3  ;;  %v1497_v12 = vld [vmem:[#allocation2 + $0xc1] sm:$0xff] }
  0xb0   : > { %953 = vmatmul.bf16.gmra.mxu1 %v1284_v8  ;;  %v4053_v5 = vpop.f32.mrf.mxu1  ;;  %v1264_v8 = vld [vmem:[#allocation2 + $0xc8] sm:$0xff] }
  0xb1   : > { %v1288_v4 = vpack.c.bf16 %v1264_v8, %v1263_v7  ;;  %v3391_v7 = vld [vmem:[%s4425_s3 + $0x190] sm:$0xff] }
  0xb4   : > { %v4063_v31 = vpop.f32.mrf.mxu0 }
  0xb5   : > { %1155 = vmatmul.bf16.gmra.mxu2 %v1050_v20  ;;  %v1522_v20 = vpack.c.bf16 %v1498_v14, %v1497_v12  ;;  %v1032_v14 = vld [vmem:[#allocation2 + $0xda] sm:$0xff] }
  0xb6   : > { %v4059_v27 = vpop.f32.mrf.mxu2 }
  0xb7   : > { %v4068_v34 = vpop.f32.mrf.mxu3 }
  0xb8   : > { %v4061_v28 = vpop.f32.mrf.mxu1 }
  0xba   : > { %1390 = vmatmul.bf16.gmra.mxu3 %v1285_v26 }
  0xbf   : > { %1624 = vmatmul.bf16.gmra.mxu0 %v3822_v32  ;;  %v1259_v32 = vld [vmem:[#allocation2 + $0x90] sm:$0xff] }
  0xc0   : > { %958 = vmatmul.bf16.gmra.mxu1 %v1285_v26  ;;  %v4077_v39 = vpop.f32.mrf.mxu2  ;;  %v4079_v40 = vpop.f32.mrf.mxu1  ;;  %v1286_v46 = vpack.c.bf16 %v479_v58, %v1259_v32  ;;  %v1287_v58 = vpack.c.bf16 %v482_v23, %v1261_v53  ;;  %v3384_v23 = vld [vmem:[%s4425_s3 + $0x158] sm:$0xff] }
  0xc1   : > { %1834 = vmatpush.bf16.msra.mxu1 %v3384_v23  ;;  %v1265_v32 = vld [vmem:[#allocation2 + $0xd8] sm:$0xff] }
  0xc4   : > { %v4086_v45 = vpop.f32.mrf.mxu0 }
  0xc5   : > { %1160 = vmatmul.bf16.gmra.mxu2 %v4084_v43  ;;  %v4089_v1 = vpop.f32.mrf.mxu3 }
  0xc8   : > { %v4095_v49 = vpop.f32.mrf.mxu2 }
  0xc9   : > { %v4093_v47 = vpop.f32.mrf.mxu1 }
  0xca   : > { %1395 = vmatmul.bf16.gmra.mxu3 %v1286_v46 }
  0xcc   : > { %v4097_v50 = vpop.f32.mrf.mxu0 }
  0xcd   : > { %v4100_v52 = vpop.f32.mrf.mxu3 }
  0xcf   : > { %1629 = vmatmul.bf16.gmra.mxu0 %v3903_v51  ;;  %v3392_v51 = vld [vmem:[%s4425_s3 + $0x198] sm:$0xff] }
  0xd0   : > { %963 = vmatmul.bf16.gmra.mxu1 %v1286_v46  ;;  %2069 = vmatpush.bf16.msra.mxu2 %v3392_v51  ;;  %v1266_v46 = vld [vmem:[#allocation2 + $0xe0] sm:$0xff] }
  0xd1   : > { %v4102_v54 = vpop.f32.mrf.mxu1  ;;  %v1289_v53 = vpack.c.bf16 %v1266_v46, %v1265_v32  ;;  %v1500_v51 = vld [vmem:[#allocation2 + $0xe1] sm:$0xff] }
  0xd4   : > { %v4104_v41 = vpop.f32.mrf.mxu2  ;;  %2070 = vmatpush.bf16.msra.mxu2 %v3391_v7  ;;  %v4178_v7 = vld [vmem:[#allocation2 + $0xf8] sm:$0xff] }
  0xd5   : > { %1165 = vmatmul.bf16.gmra.mxu2 %v1052_v30 }
  0xd8   : > { %v4108_v56 = vpop.f32.mrf.mxu0 }
  0xd9   : > { %v4110_v57 = vpop.f32.mrf.mxu3 }
  0xda   : > { %1400 = vmatmul.bf16.gmra.mxu3 %v1287_v58 }
  0xdc   : > { %v4117_v44 = vpop.f32.mrf.mxu2 }
  0xdd   : > { %v4115_v60 = vpop.f32.mrf.mxu1 }
  0xdf   : > { %1634 = vmatmul.bf16.gmra.mxu0 %v3991_v13  ;;  %v3408_v13 = vld [vmem:[%s4425_s3 + $0x218] sm:$0xff] }
  0xe0   : > { %968 = vmatmul.bf16.gmra.mxu1 %v1287_v58  ;;  %v4128_v2 = vpop.f32.mrf.mxu0  ;;  %2537 = vmatpush.bf16.msra.mxu0 %v3408_v13  ;;  %v1499_v58 = vld [vmem:[#allocation2 + $0xd9] sm:$0xff] }
  0xe1   : > { %v4130_v6 = vpop.f32.mrf.mxu3  ;;  %v1523_v63 = vpack.c.bf16 %v1500_v51, %v1499_v58 }
  0xe5   : > { %1170 = vmatmul.bf16.gmra.mxu2 %v4126_v62  ;;  %v4136_v9 = vpop.f32.mrf.mxu1 }
  0xe8   : > { %v4138_v16 = vpop.f32.mrf.mxu2 }
  0xea   : > { %1405 = vmatmul.bf16.gmra.mxu3 %v1288_v4 }
  0xec   : > { %v4140_v24 = vpop.f32.mrf.mxu0 }
  0xed   : > { %v4142_v26 = vpop.f32.mrf.mxu3  ;;  %v934_v33 = vpop.f32.mrf.mxu1 }
  0xee   : > { %v935_v35 = vadd.f32 %v934_v33, %v4051_v19  ;;  %v3383_v33 = vld [vmem:[%s4425_s3 + $0x150] sm:$0xff] }
  0xef   : > { %1639 = vmatmul.bf16.gmra.mxu0 %v1522_v20  ;;  %v1033_v20 = vld [vmem:[#allocation2 + $0xe2] sm:$0xff]  ;;  %1835 = vmatpush.bf16.msra.mxu1 %v3383_v33 }
  0xf0   : > { %v4145_v36 = vpop.f32.mrf.mxu2  ;;  %973 = vmatmul.bf16.gmra.mxu1 %v1288_v4  ;;  %v4167_v32 = vpack.c.bf16 %v1033_v20, %v1032_v14 }
  0xf4   : > { %v4149_v22 = vpop.f32.mrf.mxu0 }
  0xf5   : > { %v4151_v37 = vpop.f32.mrf.mxu3  ;;  %1175 = vmatmul.bf16.gmra.mxu2 %v4147_v42  ;;  %v936_v30 = vpop.f32.mrf.mxu1 }
  0xf6   : > { %v937_v19 = vadd.f32 %v936_v30, %v4063_v31  ;;  %v3399_v31 = vld [vmem:[%s4425_s3 + $0x1d0] sm:$0xff] }
  0xf7   : > { %2304 = vmatpush.bf16.msra.mxu3 %v3399_v31  ;;  %v3407_v30 = vld [vmem:[%s4425_s3 + $0x210] sm:$0xff] }
  0xf8   : > { %v1136_v59 = vpop.f32.mrf.mxu2  ;;  %2538 = vmatpush.bf16.msra.mxu0 %v3407_v30 }
  0xf9   : > { %v1216_v61 = vadd.f32 %v1136_v59, %v935_v35 }
  0xfa   : > { %1410 = vmatmul.bf16.gmra.mxu3 %v1289_v53 }
  0xfc   : > { %v1605_v23 = vpop.f32.mrf.mxu0 }
  0xfd   : > { %v1371_v8 = vpop.f32.mrf.mxu3  ;;  %v939_v13 = vpop.f32.mrf.mxu1 }
  0xfe   : > { %v1451_v4 = vadd.f32 %v1371_v8, %v1216_v61  ;;  %v940_v12 = vadd.f32 %v939_v13, %v4086_v45  ;;  %v1267_v45 = vld [vmem:[#allocation2 + $0xf0] sm:$0xff] }
  0xff   : > { %1644 = vmatmul.bf16.gmra.mxu0 %v1523_v63  ;;  %v653_v13 = vpack.c.bf16 %v4178_v7, %v1267_v45 }
 0x100   : > { %v1138_v35 = vpop.f32.mrf.mxu2  ;;  %978 = vmatmul.bf16.gmra.mxu1 %v1289_v53  ;;  %v4165_v38 = vadd.f32 %v1605_v23, %v1451_v4  ;;  %v1290_v53 = vpack.c.bf16 %v491_v18, %v1267_v45  ;;  %v1035_v18 = vld [vmem:[#allocation2 + $0xfa] sm:$0xff] }
 0x101   : > { %v1217_v15 = vadd.f32 %v1138_v35, %v937_v19  ;;  %v4185_v35 = vpack.c.bf16 %v1035_v18, %v1034_v0 }
 0x104   : > { %v1607_v46 = vpop.f32.mrf.mxu0 }
 0x105   : > { %v1373_v58 = vpop.f32.mrf.mxu3  ;;  %1180 = vmatmul.bf16.gmra.mxu2 %v4167_v32  ;;  %v941_v51 = vpop.f32.mrf.mxu1 }
 0x106   : > { %v1452_v59 = vadd.f32 %v1373_v58, %v1217_v15  ;;  %v942_v19 = vadd.f32 %v941_v51, %v4097_v50  ;;  %v1269_v15 = vld [vmem:[#allocation2 + $0x108] sm:$0xff] }
 0x108   : > { %v1141_v61 = vpop.f32.mrf.mxu2  ;;  %v4176_v63 = vadd.f32 %v1607_v46, %v1452_v59 }
 0x109   : > { %v1218_v23 = vadd.f32 %v1141_v61, %v940_v12  ;;  %v3390_v61 = vld [vmem:[%s4425_s3 + $0x188] sm:$0xff] }
 0x10a   : > { %1415 = vmatmul.bf16.gmra.mxu3 %v1290_v53  ;;  %2071 = vmatpush.bf16.msra.mxu2 %v3390_v61 }
 0x10c   : > { %v1610_v8 = vpop.f32.mrf.mxu0 }
 0x10d   : > { %v1376_v4 = vpop.f32.mrf.mxu3  ;;  %v944_v14 = vpop.f32.mrf.mxu1 }
 0x10e   : > { %v1453_v20 = vadd.f32 %v1376_v4, %v1218_v23  ;;  %v945_v31 = vadd.f32 %v944_v14, %v4108_v56  ;;  %v1291_v56 = vpack.c.bf16 %v494_v48, %v1269_v15  ;;  %v1036_v14 = vld [vmem:[#allocation2 + $0x10a] sm:$0xff] }
 0x10f   : > { %1649 = vmatmul.bf16.gmra.mxu0 %v3922_v10  ;;  %v3398_v48 = vld [vmem:[%s4425_s3 + $0x1c8] sm:$0xff]  ;;  %v4206_v18 = vpack.c.bf16 %v1037_v29, %v1036_v14 }
 0x110   : > { %v1143_v50 = vpop.f32.mrf.mxu2  ;;  %983 = vmatmul.bf16.gmra.mxu1 %v653_v13  ;;  %v4183_v33 = vadd.f32 %v1610_v8, %v1453_v20  ;;  %2305 = vmatpush.bf16.msra.mxu3 %v3398_v48  ;;  %v1038_v29 = vld [vmem:[#allocation2 + $0x122] sm:$0xff]  ;;  %v1039_v48 = vld [vmem:[#allocation2 + $0x12a] sm:$0xff] }
 0x111   : > { %v1219_v12 = vadd.f32 %v1143_v50, %v942_v19  ;;  %v1272_v50 = vld [vmem:[#allocation2 + $0x128] sm:$0xff] }
 0x114   : > { %v1612_v46 = vpop.f32.mrf.mxu0 }
 0x115   : > { %v1378_v30 = vpop.f32.mrf.mxu3  ;;  %1185 = vmatmul.bf16.gmra.mxu2 %v4185_v35  ;;  %v946_v45 = vpop.f32.mrf.mxu1 }
 0x116   : > { %v1454_v58 = vadd.f32 %v1378_v30, %v1219_v12  ;;  %v947_v51 = vadd.f32 %v946_v45, %v4128_v2  ;;  %v3382_v2 = vld [vmem:[%s4425_s3 + $0x148] sm:$0xff] }
 0x117   : > { %1836 = vmatpush.bf16.msra.mxu1 %v3382_v2  ;;  %v3406_v12 = vld [vmem:[%s4425_s3 + $0x208] sm:$0xff] }
 0x118   : > { %v1146_v10 = vpop.f32.mrf.mxu2  ;;  %v4191_v59 = vadd.f32 %v1612_v46, %v1454_v58  ;;  %2539 = vmatpush.bf16.msra.mxu0 %v3406_v12 }
 0x119   : > { %v1220_v53 = vadd.f32 %v1146_v10, %v945_v31 }
 0x11a   : > { %1420 = vmatmul.bf16.gmra.mxu3 %v1291_v56 }
 0x11c   : > { %v1615_v19 = vpop.f32.mrf.mxu0 }
 0x11d   : > { %v1381_v23 = vpop.f32.mrf.mxu3  ;;  %v949_v8 = vpop.f32.mrf.mxu1 }
 0x11e   : > { %v1455_v13 = vadd.f32 %v1381_v23, %v1220_v53  ;;  %v950_v4 = vadd.f32 %v949_v8, %v4140_v24  ;;  %v1271_v24 = vld [vmem:[#allocation2 + $0x120] sm:$0xff] }
 0x11f   : > { %1654 = vmatmul.bf16.gmra.mxu0 %v4006_v25  ;;  %v1292_v45 = vpack.c.bf16 %v1272_v50, %v1271_v24  ;;  %v1273_v24 = vld [vmem:[#allocation2 + $0x138] sm:$0xff]  ;;  %v1274_v50 = vld [vmem:[#allocation2 + $0x140] sm:$0xff] }
 0x120   : > { %v1148_v20 = vpop.f32.mrf.mxu2  ;;  %988 = vmatmul.bf16.gmra.mxu1 %v1291_v56  ;;  %v4204_v31 = vadd.f32 %v1615_v19, %v1455_v13  ;;  %v1505_v56 = vld [vmem:[#allocation2 + $0x121] sm:$0xff] }
 0x121   : > { %v1221_v0 = vadd.f32 %v1148_v20, %v947_v51  ;;  %v1506_v51 = vld [vmem:[#allocation2 + $0x129] sm:$0xff] }
 0x122   : > { %v1526_v61 = vpack.c.bf16 %v1506_v51, %v1505_v56  ;;  %v1507_v56 = vld [vmem:[#allocation2 + $0x139] sm:$0xff] }
 0x124   : > { %v1617_v25 = vpop.f32.mrf.mxu0 }
 0x125   : > { %v1383_v15 = vpop.f32.mrf.mxu3  ;;  %1190 = vmatmul.bf16.gmra.mxu2 %v4206_v18  ;;  %v951_v46 = vpop.f32.mrf.mxu1 }
 0x126   : > { %v1456_v30 = vadd.f32 %v1383_v15, %v1221_v0  ;;  %v952_v58 = vadd.f32 %v951_v46, %v4149_v22  ;;  %v4217_v0 = vpack.c.bf16 %v1039_v48, %v1038_v29  ;;  %v1293_v46 = vpack.c.bf16 %v1274_v50, %v1273_v24  ;;  %v1040_v50 = vld [vmem:[#allocation2 + $0x13a] sm:$0xff] }
 0x128   : > { %v1151_v10 = vpop.f32.mrf.mxu2  ;;  %v4213_v53 = vadd.f32 %v1617_v25, %v1456_v30 }
 0x129   : > { %v1222_v19 = vadd.f32 %v1151_v10, %v950_v4 }
 0x12a   : > { %1425 = vmatmul.bf16.gmra.mxu3 %v1292_v45 }
 0x12c   : > { %v1620_v23 = vpop.f32.mrf.mxu0 }
 0x12d   : > { %v1386_v8 = vpop.f32.mrf.mxu3  ;;  %v954_v13 = vpop.f32.mrf.mxu1 }
 0x12e   : > { %v1457_v14 = vadd.f32 %v1386_v8, %v1222_v19  ;;  %v955_v30 = vadd.f32 %v954_v13, %v4047_v11  ;;  %v3536_v19 = vld [vmem:[%s3660_s29 + $0xc0] sm:$0xff]  }
 0x12f   : > { %1659 = vmatmul.bf16.gmra.mxu0 %v1526_v61  ;;  %v3447_v61 = vunpack.c.l.bf16 %v3536_v19  ;;  %v3588_v11 = vld [vmem:[%s4423_s1] ss:$0 sm:$0xff] }
 0x130   : > { %v1153_v2 = vpop.f32.mrf.mxu2  ;;  %993 = vmatmul.bf16.gmra.mxu1 %v1292_v45  ;;  %v4215_v20 = vadd.f32 %v1620_v23, %v1457_v14  ;;  %v1508_v45 = vld [vmem:[#allocation2 + $0x141] sm:$0xff] }
 0x131   : > { %v1223_v22 = vadd.f32 %v1153_v2, %v952_v58  ;;  %v1527_v23 = vpack.c.bf16 %v1508_v45, %v1507_v56  ;;  %v3389_v14 = vld [vmem:[%s4425_s3 + $0x180] sm:$0xff]  ;;  %v397_v13 = vmul.f32 %v3588_v11, %v3447_v61  ;;  %v3448_v2 = vunpack.c.h.bf16 %v3536_v19 }
 0x132   : > { %4429 = vst [vmem:[#allocation3_spill] sm:$0xff] %v4215_v20  ;;  %2072 = vmatpush.bf16.msra.mxu2 %v3389_v14  ;;  %v3397_v45 = vld [vmem:[%s4425_s3 + $0x1c0] sm:$0xff] }
 0x133   : > { %2306 = vmatpush.bf16.msra.mxu3 %v3397_v45 }
 0x134   : > { %v1622_v4 = vpop.f32.mrf.mxu0 }
 0x135   : > { %v1388_v25 = vpop.f32.mrf.mxu3  ;;  %1195 = vmatmul.bf16.gmra.mxu2 %v4217_v0  ;;  %v956_v12 = vpop.f32.mrf.mxu1 }
 0x136   : > { %v1458_v15 = vadd.f32 %v1388_v25, %v1223_v22  ;;  %v288_v22 = vld [vmem:[%s3660_s29 + $0xc8] sm:$0x1]  ;;  %v3589_v25 = vld [vmem:[%s4424_s2] ss:$0 sm:$0xff]  ;;  %v957_v56 = vadd.f32 %v956_v12, %v4053_v5 }
 0x138   : > { %v1156_v51 = vpop.f32.mrf.mxu2  ;;  %v4221_v10 = vadd.f32 %v1622_v4, %v1458_v15  ;;  %v1041_v4 = vld [vmem:[#allocation2 + $0x142] sm:$0xff]  ;;  %v454_v15 = vadd.f32 %v3589_v25, %v397_v13 }
 0x139   : > { %v1224_v58 = vadd.f32 %v1156_v51, %v955_v30  ;;  %v342_v30 = vunpack.c.l.bf16 %v288_v22  ;;  %v3381_v51 = vld [vmem:[%s4425_s3 + $0x140] sm:$0xff]  ;;  %v4243_v22 = vpack.c.bf16 %v1041_v4, %v1040_v50 }
 0x13a   : > { %4430 = vst [vmem:[#allocation4_spill] sm:$0xff] %v4221_v10  ;;  %1430 = vmatmul.bf16.gmra.mxu3 %v1293_v46  ;;  %v508_v61 = vmax.f32 %v454_v15, 0.0  ;;  %1837 = vmatpush.bf16.msra.mxu1 %v3381_v51  ;;  %v1276_v10 = vld [vmem:[#allocation2 + $0x158] sm:$0xff] }
 0x13b   : > { %v399_v14 = vmul.f32 %v3588_v11, %v342_v30  ;;  %v1509_v30 = vld [vmem:[#allocation2 + $0x151] sm:$0xff] }
 0x13c   : > { %v1625_v8 = vpop.f32.mrf.mxu0  ;;  %562 = vst [vmem:[#allocation2 + $0x180] sm:$0xff] %v508_v61 }
 0x13d   : > { %v1391_v29 = vpop.f32.mrf.mxu3  ;;  %v959_v48 = vpop.f32.mrf.mxu1  ;;  %v456_v12 = vadd.f32 %v3589_v25, %v399_v14 }
 0x13e   : > { %v1459_v24 = vadd.f32 %v1391_v29, %v1224_v58  ;;  %v398_v58 = vmul.f32 %v3588_v11, %v3448_v2  ;;  %v3590_v2 = vld [vmem:[#allocation2 + $0x8] sm:$0xff]  ;;  %v960_v15 = vadd.f32 %v959_v48, %v4061_v28 }
 0x13f   : > { %1664 = vmatmul.bf16.gmra.mxu0 %v1527_v23  ;;  %v1275_v23 = vld [vmem:[#allocation2 + $0x150] sm:$0xff]  ;;  %591 = vst [vmem:[#allocation2 + $0x180] sm:$0x1] %v3590_v2  ;;  %v510_v11 = vmax.f32 %v456_v12, 0.0 }
 0x140   : > { %v1158_v19 = vpop.f32.mrf.mxu2  ;;  %998 = vmatmul.bf16.gmra.mxu1 %v1293_v46  ;;  %v4241_v29 = vadd.f32 %v1625_v8, %v1459_v24  ;;  %v4245_v5 = vadd.f32 %v3589_v25, %v398_v58  ;;  %v3405_v8 = vld [vmem:[%s4425_s3 + $0x200] sm:$0xff]  ;;  %v1294_v25 = vpack.c.bf16 %v1276_v10, %v1275_v23 }
 0x141   : > { %v1225_v13 = vadd.f32 %v1158_v19, %v957_v56  ;;  %2540 = vmatpush.bf16.msra.mxu0 %v3405_v8  ;;  %564 = vst [vmem:[#allocation2 + $0x190] sm:$0x3] %v510_v11  ;;  %v1510_v56 = vld [vmem:[#allocation2 + $0x159] sm:$0xff]  ;;  %v1278_v8 = vld [vmem:[#allocation2 + $0x170] sm:$0xff] }
 0x142   : > { %4431 = vst [vmem:[#allocation5_spill] sm:$0xff] %v4241_v29  ;;  %v4428_v20 = vmax.f32 %v4245_v5, 0.0  ;;  %v1528_v19 = vpack.c.bf16 %v1510_v56, %v1509_v30 }
 0x143   : > { %609 = vst [vmem:[#allocation2 + $0x191] sm:$0x1] %v3590_v2 }
 0x144   : > { %v1627_v46 = vpop.f32.mrf.mxu0  ;;  %563 = vst [vmem:[#allocation2 + $0x188] sm:$0xff] %v4428_v20  ;;  %v1042_v20 = vld [vmem:[#allocation2 + $0x152] sm:$0xff] }
 0x145   : > { %v1393_v24 = vpop.f32.mrf.mxu3  ;;  %1200 = vmatmul.bf16.gmra.mxu2 %v4243_v22  ;;  %v961_v50 = vpop.f32.mrf.mxu1 }
 0x146   : > { %v1460_v4 = vadd.f32 %v1393_v24, %v1225_v13  ;;  %v1043_v13 = vld [vmem:[#allocation2 + $0x15a] sm:$0xff]  ;;  %v962_v10 = vadd.f32 %v961_v50, %v4079_v40  ;;  %v1512_v40 = vld [vmem:[#allocation2 + $0x171] sm:$0xff] }
 0x147   : > { %v4260_v2 = vpack.c.bf16 %v1043_v13, %v1042_v20  ;;  %v1044_v13 = vld [vmem:[#allocation2 + $0x16a] sm:$0xff] }
 0x148   : > { %v1161_v45 = vpop.f32.mrf.mxu2  ;;  %v4255_v51 = vadd.f32 %v1627_v46, %v1460_v4  ;;  %v1277_v46 = vld [vmem:[#allocation2 + $0x168] sm:$0xff] }
 0x149   : > { %v1226_v58 = vadd.f32 %v1161_v45, %v960_v15  ;;  %v1295_v30 = vpack.c.bf16 %v1278_v8, %v1277_v46  ;;  %v1511_v45 = vld [vmem:[#allocation2 + $0x169] sm:$0xff]  ;;  %v1279_v8 = vld [vmem:[#allocation2 + $0x180] sm:$0xff] }
 0x14a   : > { %1435 = vmatmul.bf16.gmra.mxu3 %v1294_v25  ;;  %v1529_v20 = vpack.c.bf16 %v1512_v40, %v1511_v45  ;;  %v4432_v45 = vmax.f32 %v4245_v5, 0.0  ;;  %v1953_v5 = vld [vmem:[#allocation2 + $0x38] sm:$0xff] }
 0x14c   : > { %v1630_v61 = vpop.f32.mrf.mxu0  ;;  %v1296_v40 = vpack.c.bf16 %v4432_v45, %v1279_v8  ;;  %v2186_v45 = vld [vmem:[#allocation2 + $0x31] sm:$0xff] }
 0x14d   : > { %v1396_v14 = vpop.f32.mrf.mxu3  ;;  %v964_v12 = vpop.f32.mrf.mxu1 }
 0x14e   : > { %v1461_v29 = vadd.f32 %v1396_v14, %v1226_v58  ;;  %v965_v56 = vadd.f32 %v964_v12, %v4093_v47 }
 0x14f   : > { %1669 = vmatmul.bf16.gmra.mxu0 %v1528_v19 }
 0x150   : > { %v1163_v23 = vpop.f32.mrf.mxu2  ;;  %1003 = vmatmul.bf16.gmra.mxu1 %v1294_v25  ;;  %v4258_v28 = vadd.f32 %v1630_v61, %v1461_v29 }
 0x151   : > { %v1227_v48 = vadd.f32 %v1163_v23, %v962_v10  ;;  %v1045_v10 = vld [vmem:[#allocation2 + $0x172] sm:$0xff] }
 0x152   : > { %v4269_v46 = vpack.c.bf16 %v1045_v10, %v1044_v13 }
 0x154   : > { %v1632_v11 = vpop.f32.mrf.mxu0 }
 0x155   : > { %v1398_v24 = vpop.f32.mrf.mxu3  ;;  %1205 = vmatmul.bf16.gmra.mxu2 %v4260_v2  ;;  %v966_v4 = vpop.f32.mrf.mxu1 }
 0x156   : > { %v1462_v15 = vadd.f32 %v1398_v24, %v1227_v48  ;;  %v967_v23 = vadd.f32 %v966_v4, %v4102_v54  ;;  %v1513_v54 = vld [vmem:[#allocation2 + $0x181] sm:$0xff]  ;;  %v1514_v4 = vld [vmem:[#allocation2 + $0x189] sm:$0xff] }
 0x158   : > { %v1166_v50 = vpop.f32.mrf.mxu2  ;;  %v4264_v25 = vadd.f32 %v1632_v11, %v1462_v15 }
 0x159   : > { %v1228_v29 = vadd.f32 %v1166_v50, %v965_v56 }
 0x15a   : > { %1440 = vmatmul.bf16.gmra.mxu3 %v1295_v30 }
 0x15c   : > { %v1635_v58 = vpop.f32.mrf.mxu0 }
 0x15d   : > { %v1401_v19 = vpop.f32.mrf.mxu3  ;;  %v969_v61 = vpop.f32.mrf.mxu1 }
 0x15e   : > { %v1463_v14 = vadd.f32 %v1401_v19, %v1228_v29  ;;  %v970_v50 = vadd.f32 %v969_v61, %v4115_v60  ;;  %v1718_v19 = vld [vmem:[#allocation2 + $0x22] sm:$0xff] }
 0x15f   : > { %1674 = vmatmul.bf16.gmra.mxu0 %v1529_v20 }
 0x160   : > { %v1168_v48 = vpop.f32.mrf.mxu2  ;;  %1008 = vmatmul.bf16.gmra.mxu1 %v1295_v30  ;;  %v4267_v47 = vadd.f32 %v1635_v58, %v1463_v14  ;;  %v1717_v58 = vld [vmem:[#allocation2 + $0x1a] sm:$0xff]  ;;  %v1530_v14 = vpack.c.bf16 %v1514_v4, %v1513_v54 }
 0x161   : > { %v1229_v12 = vadd.f32 %v1168_v48, %v967_v23  ;;  %v1749_v10 = vpack.c.bf16 %v1718_v19, %v1717_v58 }
 0x164   : > { %v1637_v11 = vpop.f32.mrf.mxu0 }
 0x165   : > { %v1403_v24 = vpop.f32.mrf.mxu3  ;;  %1210 = vmatmul.bf16.gmra.mxu2 %v4269_v46  ;;  %v971_v15 = vpop.f32.mrf.mxu1 }
 0x166   : > { %v1464_v56 = vadd.f32 %v1403_v24, %v1229_v12  ;;  %v1952_v24 = vld [vmem:[#allocation2 + $0x30] sm:$0xff]  ;;  %v972_v60 = vadd.f32 %v971_v15, %v4136_v9 }
 0x167   : > { %v1719_v15 = vld [vmem:[#allocation2 + $0x32] sm:$0xff] }
 0x168   : > { %v1171_v30 = vpop.f32.mrf.mxu2  ;;  %v4275_v29 = vadd.f32 %v1637_v11, %v1464_v56  ;;  %v1984_v56 = vpack.c.bf16 %v1953_v5, %v1952_v24 }
 0x169   : > { %v1230_v20 = vadd.f32 %v1171_v30, %v970_v50  ;;  %v2187_v50 = vld [vmem:[#allocation2 + $0x39] sm:$0xff] }
 0x16a   : > { %1445 = vmatmul.bf16.gmra.mxu3 %v1296_v40  ;;  %v2218_v58 = vpack.c.bf16 %v2187_v50, %v2186_v45  ;;  %v2188_v50 = vld [vmem:[#allocation2 + $0x49] sm:$0xff] }
 0x16c   : > { %v1640_v13 = vpop.f32.mrf.mxu0 }
 0x16d   : > { %v1406_v23 = vpop.f32.mrf.mxu3  ;;  %v974_v48 = vpop.f32.mrf.mxu1 }
 0x16e   : > { %v1465_v12 = vadd.f32 %v1406_v23, %v1230_v20  ;;  %v975_v20 = vadd.f32 %v974_v48, %v4049_v17 }
 0x16f   : > { %1679 = vmatmul.bf16.gmra.mxu0 %v1530_v14 }
 0x170   : > { %v1173_v61 = vpop.f32.mrf.mxu2  ;;  %1838 = vmatmul.bf16.vlgmr.msra.gmra.mxu1 %v1749_v10  ;;  %v4278_v8 = vadd.f32 %v1640_v13, %v1465_v12  ;;  %v1720_v10 = vld [vmem:[#allocation2 + $0x3a] sm:$0xff] }
 0x171   : > { %v1231_v11 = vadd.f32 %v1173_v61, %v972_v60  ;;  %v1750_v23 = vpack.c.bf16 %v1720_v10, %v1719_v15  ;;  %v1954_v60 = vld [vmem:[#allocation2 + $0x48] sm:$0xff]  ;;  %v1955_v61 = vld [vmem:[#allocation2 + $0x50] sm:$0xff] }
 0x172   : > { %v1985_v45 = vpack.c.bf16 %v1955_v61, %v1954_v60  ;;  %v1722_v10 = vld [vmem:[#allocation2 + $0x52] sm:$0xff]  ;;  %v1956_v61 = vld [vmem:[#allocation2 + $0x60] sm:$0xff] }
 0x174   : > { %v1642_v40 = vpop.f32.mrf.mxu0 }
 0x175   : > { %v1408_v54 = vpop.f32.mrf.mxu3  ;;  %2073 = vmatmul.bf16.vlgmr.msra.gmra.mxu2 %v1984_v56  ;;  %v976_v4 = vpop.f32.mrf.mxu1 }
 0x176   : > { %v1466_v30 = vadd.f32 %v1408_v54, %v1231_v11  ;;  %v977_v11 = vadd.f32 %v976_v4, %v4059_v27  ;;  %v1721_v4 = vld [vmem:[#allocation2 + $0x4a] sm:$0xff] }
 0x178   : > { %v1176_v19 = vpop.f32.mrf.mxu2  ;;  %v4281_v14 = vadd.f32 %v1642_v40, %v1466_v30  ;;  %v2189_v40 = vld [vmem:[#allocation2 + $0x51] sm:$0xff] }
 0x179   : > { %v1232_v9 = vadd.f32 %v1176_v19, %v975_v20  ;;  %v2219_v19 = vpack.c.bf16 %v2189_v40, %v2188_v50  ;;  %v2190_v50 = vld [vmem:[#allocation2 + $0x61] sm:$0xff]  ;;  %v2191_v40 = vld [vmem:[#allocation2 + $0x69] sm:$0xff] }
 0x17a   : > { %2307 = vmatmul.bf16.vlgmr.msra.gmra.mxu3 %v2218_v58 }
 0x17c   : > { %v1645_v13 = vpop.f32.mrf.mxu0 }
 0x17d   : > { %v1411_v12 = vpop.f32.mrf.mxu3  ;;  %v979_v24 = vpop.f32.mrf.mxu1 }
 0x17e   : > { %v1467_v5 = vadd.f32 %v1411_v12, %v1232_v9  ;;  %v980_v9 = vadd.f32 %v979_v24, %v4077_v39 }
 0x17f   : > { %2541 = vmatmul.bf16.vlgmr.msra.gmra.mxu0 %v4029_v55 }
 0x180   : > { %v1178_v56 = vpop.f32.mrf.mxu2  ;;  %1843 = vmatmul.bf16.gmra.mxu1 %v1750_v23  ;;  %v4285_v17 = vadd.f32 %v1645_v13, %v1467_v5  ;;  %v1751_v23 = vpack.c.bf16 %v1722_v10, %v1721_v4 }
 0x181   : > { %v1233_v48 = vadd.f32 %v1178_v56, %v977_v11  ;;  %v1957_v11 = vld [vmem:[#allocation2 + $0x68] sm:$0xff] }
 0x184   : > { %v1647_v54 = vpop.f32.mrf.mxu0 }
 0x185   : > { %v1413_v30 = vpop.f32.mrf.mxu3  ;;  %2078 = vmatmul.bf16.gmra.mxu2 %v1985_v45  ;;  %v981_v58 = vpop.f32.mrf.mxu1  ;;  %v1986_v45 = vpack.c.bf16 %v1957_v11, %v1956_v61  ;;  %v1958_v61 = vld [vmem:[#allocation2 + $0x78] sm:$0xff]  ;;  %v1959_v11 = vld [vmem:[#allocation2 + $0x80] sm:$0xff] }
 0x186   : > { %v1468_v20 = vadd.f32 %v1413_v30, %v1233_v48  ;;  %v982_v56 = vadd.f32 %v981_v58, %v4095_v49 }
 0x188   : > { %v1181_v15 = vpop.f32.mrf.mxu2  ;;  %v4288_v55 = vadd.f32 %v1647_v54, %v1468_v20 }
 0x189   : > { %v1234_v27 = vadd.f32 %v1181_v15, %v980_v9  ;;  %v2220_v9 = vpack.c.bf16 %v2191_v40, %v2190_v50  ;;  %v2193_v50 = vld [vmem:[#allocation2 + $0x81] sm:$0xff] }
 0x18a   : > { %2312 = vmatmul.bf16.gmra.mxu3 %v2219_v19 }
 0x18c   : > { %v1650_v13 = vpop.f32.mrf.mxu0 }
 0x18d   : > { %v1416_v12 = vpop.f32.mrf.mxu3  ;;  %v984_v5 = vpop.f32.mrf.mxu1 }
 0x18e   : > { %v1469_v60 = vadd.f32 %v1416_v12, %v1234_v27  ;;  %v985_v15 = vadd.f32 %v984_v5, %v4104_v41  ;;  %v2424_v27 = vld [vmem:[#allocation2 + $0x62] sm:$0xff] }
 0x18f   : > { %2546 = vmatmul.bf16.gmra.mxu0 %v4044_v3  ;;  %v2425_v3 = vld [vmem:[#allocation2 + $0x6a] sm:$0xff] }
 0x190   : > { %v1183_v48 = vpop.f32.mrf.mxu2  ;;  %1848 = vmatmul.bf16.gmra.mxu1 %v1751_v23  ;;  %v4292_v39 = vadd.f32 %v1650_v13, %v1469_v60  ;;  %v2454_v10 = vpack.c.bf16 %v2425_v3, %v2424_v27 }
 0x191   : > { %v1235_v24 = vadd.f32 %v1183_v48, %v982_v56 }
 0x194   : > { %v1652_v54 = vpop.f32.mrf.mxu0 }
 0x195   : > { %v1418_v30 = vpop.f32.mrf.mxu3  ;;  %2083 = vmatmul.bf16.gmra.mxu2 %v1986_v45  ;;  %v986_v20 = vpop.f32.mrf.mxu1  ;;  %v2192_v45 = vld [vmem:[#allocation2 + $0x79] sm:$0xff] }
 0x196   : > { %v1470_v19 = vadd.f32 %v1418_v30, %v1235_v24  ;;  %v987_v56 = vadd.f32 %v986_v20, %v4117_v44  ;;  %v1987_v24 = vpack.c.bf16 %v1959_v11, %v1958_v61  ;;  %v1725_v20 = vld [vmem:[#allocation2 + $0x7a] sm:$0xff]  ;;  %v1960_v61 = vld [vmem:[#allocation2 + $0x90] sm:$0xff] }
 0x197   : > { %v1961_v11 = vld [vmem:[#allocation2 + $0x98] sm:$0xff] }
 0x198   : > { %v1186_v4 = vpop.f32.mrf.mxu2  ;;  %v4295_v49 = vadd.f32 %v1652_v54, %v1470_v19 }
 0x199   : > { %v1236_v58 = vadd.f32 %v1186_v4, %v985_v15  ;;  %v1726_v4 = vld [vmem:[#allocation2 + $0x82] sm:$0xff] }
 0x19a   : > { %2317 = vmatmul.bf16.gmra.mxu3 %v2220_v9  ;;  %v2221_v9 = vpack.c.bf16 %v2193_v50, %v2192_v45  ;;  %v2195_v45 = vld [vmem:[#allocation2 + $0x99] sm:$0xff] }
 0x19c   : > { %v1655_v13 = vpop.f32.mrf.mxu0 }
 0x19d   : > { %v1421_v23 = vpop.f32.mrf.mxu3  ;;  %v989_v12 = vpop.f32.mrf.mxu1 }
 0x19e   : > { %v1471_v60 = vadd.f32 %v1421_v23, %v1236_v58  ;;  %v990_v15 = vadd.f32 %v989_v12, %v4138_v16 }
 0x19f   : > { %2551 = vmatmul.bf16.gmra.mxu0 %v2454_v10 }
 0x1a0   : > { %v1188_v48 = vpop.f32.mrf.mxu2  ;;  %1853 = vmatmul.bf16.gmra.mxu1 %v2454_v10  ;;  %v4298_v41 = vadd.f32 %v1655_v13, %v1471_v60  ;;  %v1753_v10 = vpack.c.bf16 %v1726_v4, %v1725_v20 }
 0x1a1   : > { %v1237_v5 = vadd.f32 %v1188_v48, %v987_v56 }
 0x1a4   : > { %v1657_v40 = vpop.f32.mrf.mxu0 }
 0x1a5   : > { %v1423_v54 = vpop.f32.mrf.mxu3  ;;  %2088 = vmatmul.bf16.gmra.mxu2 %v1987_v24  ;;  %v991_v30 = vpop.f32.mrf.mxu1  ;;  %v2194_v24 = vld [vmem:[#allocation2 + $0x91] sm:$0xff] }
 0x1a6   : > { %v1472_v19 = vadd.f32 %v1423_v54, %v1237_v5  ;;  %v992_v56 = vadd.f32 %v991_v30, %v4145_v36  ;;  %v1988_v5 = vpack.c.bf16 %v1961_v11, %v1960_v61  ;;  %v1963_v61 = vld [vmem:[#allocation2 + $0xb0] sm:$0xff] }
 0x1a8   : > { %v1191_v27 = vpop.f32.mrf.mxu2  ;;  %v4301_v3 = vadd.f32 %v1657_v40, %v1472_v19 }
 0x1a9   : > { %v1238_v44 = vadd.f32 %v1191_v27, %v990_v15  ;;  %v2428_v27 = vld [vmem:[#allocation2 + $0x92] sm:$0xff] }
 0x1aa   : > { %2322 = vmatmul.bf16.gmra.mxu3 %v2221_v9  ;;  %v2222_v9 = vpack.c.bf16 %v2195_v45, %v2194_v24 }
 0x1ac   : > { %v1660_v58 = vpop.f32.mrf.mxu0 }
 0x1ad   : > { %v1426_v13 = vpop.f32.mrf.mxu3  ;;  %v994_v23 = vpop.f32.mrf.mxu1 }
 0x1ae   : > { %v1473_v60 = vadd.f32 %v1426_v13, %v1238_v44  ;;  %v995_v15 = vadd.f32 %v994_v23, %v4055_v21 }
 0x1af   : > { %2556 = vmatmul.bf16.gmra.mxu0 %v4084_v43  ;;  %v2429_v43 = vld [vmem:[#allocation2 + $0x9a] sm:$0xff] }
 0x1b0   : > { %v1193_v48 = vpop.f32.mrf.mxu2  ;;  %1858 = vmatmul.bf16.gmra.mxu1 %v1753_v10  ;;  %v4305_v16 = vadd.f32 %v1660_v58, %v1473_v60  ;;  %v2456_v20 = vpack.c.bf16 %v2429_v43, %v2428_v27  ;;  %v1962_v60 = vld [vmem:[#allocation2 + $0xa8] sm:$0xff]  ;;  %v1730_v43 = vld [vmem:[#allocation2 + $0xb2] sm:$0xff] }
 0x1b1   : > { %v1239_v12 = vadd.f32 %v1193_v48, %v992_v56  ;;  %v1989_v48 = vpack.c.bf16 %v1963_v61, %v1962_v60  ;;  %v1965_v60 = vld [vmem:[#allocation2 + $0xc8] sm:$0xff] }
 0x1b4   : > { %v1662_v50 = vpop.f32.mrf.mxu0 }
 0x1b5   : > { %v1428_v40 = vpop.f32.mrf.mxu3  ;;  %2093 = vmatmul.bf16.gmra.mxu2 %v1988_v5  ;;  %v996_v54 = vpop.f32.mrf.mxu1  ;;  %v2197_v5 = vld [vmem:[#allocation2 + $0xb1] sm:$0xff] }
 0x1b6   : > { %v1474_v19 = vadd.f32 %v1428_v40, %v1239_v12  ;;  %v997_v11 = vadd.f32 %v996_v54, %v4068_v34  ;;  %v2196_v12 = vld [vmem:[#allocation2 + $0xa9] sm:$0xff] }
 0x1b7   : > { %v1729_v54 = vld [vmem:[#allocation2 + $0xaa] sm:$0xff] }
 0x1b8   : > { %v1196_v44 = vpop.f32.mrf.mxu2  ;;  %v4308_v36 = vadd.f32 %v1662_v50, %v1474_v19  ;;  %v2223_v19 = vpack.c.bf16 %v2197_v5, %v2196_v12 }
 0x1b9   : > { %v1240_v30 = vadd.f32 %v1196_v44, %v995_v15 }
 0x1ba   : > { %2327 = vmatmul.bf16.gmra.mxu3 %v2222_v9 }
 0x1bc   : > { %v1665_v4 = vpop.f32.mrf.mxu0 }
 0x1bd   : > { %v1431_v58 = vpop.f32.mrf.mxu3  ;;  %v999_v10 = vpop.f32.mrf.mxu1 }
 0x1be   : > { %v1475_v13 = vadd.f32 %v1431_v58, %v1240_v30  ;;  %v1000_v9 = vadd.f32 %v999_v10, %v4089_v1  ;;  %v1755_v30 = vpack.c.bf16 %v1730_v43, %v1729_v54 }
 0x1bf   : > { %2561 = vmatmul.bf16.gmra.mxu0 %v2456_v20 }
 0x1c0   : > { %v1198_v56 = vpop.f32.mrf.mxu2  ;;  %1863 = vmatmul.bf16.gmra.mxu1 %v2456_v20  ;;  %v4311_v21 = vadd.f32 %v1665_v4, %v1475_v13  ;;  %v1964_v13 = vld [vmem:[#allocation2 + $0xc0] sm:$0xff] }
 0x1c1   : > { %v1241_v23 = vadd.f32 %v1198_v56, %v997_v11  ;;  %v1990_v56 = vpack.c.bf16 %v1965_v60, %v1964_v13 }
 0x1c4   : > { %v1667_v24 = vpop.f32.mrf.mxu0 }
 0x1c5   : > { %v1433_v45 = vpop.f32.mrf.mxu3  ;;  %2098 = vmatmul.bf16.gmra.mxu2 %v1989_v48  ;;  %v1001_v50 = vpop.f32.mrf.mxu1  ;;  %v2199_v48 = vld [vmem:[#allocation2 + $0xc9] sm:$0xff] }
 0x1c6   : > { %v1476_v40 = vadd.f32 %v1433_v45, %v1241_v23  ;;  %v1002_v61 = vadd.f32 %v1001_v50, %v4100_v52  ;;  %v2198_v23 = vld [vmem:[#allocation2 + $0xc1] sm:$0xff] }
 0x1c7   : > { %v1731_v50 = vld [vmem:[#allocation2 + $0xc2] sm:$0xff] }
 0x1c8   : > { %v1201_v15 = vpop.f32.mrf.mxu2  ;;  %v4314_v27 = vadd.f32 %v1667_v24, %v1476_v40  ;;  %v2224_v40 = vpack.c.bf16 %v2199_v48, %v2198_v23 }
 0x1c9   : > { %v1242_v34 = vadd.f32 %v1201_v15, %v1000_v9  ;;  %v1732_v15 = vld [vmem:[#allocation2 + $0xca] sm:$0xff] }
 0x1ca   : > { %2332 = vmatmul.bf16.gmra.mxu3 %v2223_v19  ;;  %v1756_v54 = vpack.c.bf16 %v1732_v15, %v1731_v50 }
 0x1cc   : > { %v1670_v44 = vpop.f32.mrf.mxu0 }
 0x1cd   : > { %v1436_v20 = vpop.f32.mrf.mxu3  ;;  %v1004_v4 = vpop.f32.mrf.mxu1 }
 0x1ce   : > { %v1477_v58 = vadd.f32 %v1436_v20, %v1242_v34  ;;  %v1005_v19 = vadd.f32 %v1004_v4, %v4110_v57  ;;  %v1966_v20 = vld [vmem:[#allocation2 + $0xd8] sm:$0xff] }
 0x1cf   : > { %2566 = vmatmul.bf16.gmra.mxu0 %v4126_v62 }
 0x1d0   : > { %v1203_v11 = vpop.f32.mrf.mxu2  ;;  %1868 = vmatmul.bf16.gmra.mxu1 %v1755_v30  ;;  %v4318_v1 = vadd.f32 %v1670_v44, %v1477_v58  ;;  %v1967_v58 = vld [vmem:[#allocation2 + $0xe0] sm:$0xff] }
 0x1d1   : > { %v1243_v10 = vadd.f32 %v1203_v11, %v1002_v61  ;;  %v1991_v61 = vpack.c.bf16 %v1967_v58, %v1966_v20  ;;  %v2200_v11 = vld [vmem:[#allocation2 + $0xd9] sm:$0xff]  ;;  %v2202_v58 = vld [vmem:[#allocation2 + $0xf1] sm:$0xff] }
 0x1d4   : > { %v1672_v12 = vpop.f32.mrf.mxu0 }
 0x1d5   : > { %v1438_v5 = vpop.f32.mrf.mxu3  ;;  %2103 = vmatmul.bf16.gmra.mxu2 %v1990_v56  ;;  %v1006_v24 = vpop.f32.mrf.mxu1 }
 0x1d6   : > { %v1478_v45 = vadd.f32 %v1438_v5, %v1243_v10  ;;  %v1007_v13 = vadd.f32 %v1006_v24, %v4130_v6  ;;  %v2201_v10 = vld [vmem:[#allocation2 + $0xe1] sm:$0xff] }
 0x1d7   : > { %v2225_v5 = vpack.c.bf16 %v2201_v10, %v2200_v11  ;;  %v1733_v24 = vld [vmem:[#allocation2 + $0xda] sm:$0xff] }
 0x1d8   : > { %v1206_v9 = vpop.f32.mrf.mxu2  ;;  %v4321_v62 = vadd.f32 %v1672_v12, %v1478_v45 }
 0x1d9   : > { %v1244_v52 = vadd.f32 %v1206_v9, %v1005_v19  ;;  %v1734_v19 = vld [vmem:[#allocation2 + $0xe2] sm:$0xff] }
 0x1da   : > { %2337 = vmatmul.bf16.gmra.mxu3 %v2224_v40 }
 0x1dc   : > { %v1675_v34 = vpop.f32.mrf.mxu0 }
 0x1dd   : > { %v1441_v43 = vpop.f32.mrf.mxu3  ;;  %v1009_v44 = vpop.f32.mrf.mxu1 }
 0x1de   : > { %v1479_v30 = vadd.f32 %v1441_v43, %v1244_v52  ;;  %v1010_v45 = vadd.f32 %v1009_v44, %v4142_v26  ;;  %v1757_v52 = vpack.c.bf16 %v1734_v19, %v1733_v24  ;;  %v1971_v24 = vld [vmem:[#allocation2 + $0x110] sm:$0xff] }
 0x1df   : > { %2571 = vmatmul.bf16.gmra.mxu0 %v4147_v42 }
 0x1e0   : > { %v1208_v60 = vpop.f32.mrf.mxu2  ;;  %1873 = vmatmul.bf16.gmra.mxu1 %v1756_v54  ;;  %v4325_v57 = vadd.f32 %v1675_v34, %v1479_v30  ;;  %v1968_v54 = vld [vmem:[#allocation2 + $0xf0] sm:$0xff] }
 0x1e1   : > { %v1245_v4 = vadd.f32 %v1208_v60, %v1007_v13  ;;  %v1992_v20 = vpack.c.bf16 %v4178_v7, %v1968_v54  ;;  %v2203_v13 = vld [vmem:[#allocation2 + $0xf9] sm:$0xff]  ;;  %v2204_v54 = vld [vmem:[#allocation2 + $0x109] sm:$0xff] }
 0x1e2   : > { %v2226_v10 = vpack.c.bf16 %v2203_v13, %v2202_v58 }
 0x1e4   : > { %v1677_v56 = vpop.f32.mrf.mxu0 }
 0x1e5   : > { %v1443_v23 = vpop.f32.mrf.mxu3  ;;  %2108 = vmatmul.bf16.gmra.mxu2 %v1991_v61  ;;  %v1011_v48 = vpop.f32.mrf.mxu1 }
 0x1e6   : > { %v1480_v12 = vadd.f32 %v1443_v23, %v1245_v4  ;;  %v1012_v43 = vadd.f32 %v1011_v48, %v4151_v37  ;;  %v1736_v37 = vld [vmem:[#allocation2 + $0xfa] sm:$0xff] }
 0x1e8   : > { %v1211_v40 = vpop.f32.mrf.mxu2  ;;  %v4328_v42 = vadd.f32 %v1677_v56, %v1480_v12 }
 0x1e9   : > { %v1246_v6 = vadd.f32 %v1211_v40, %v1010_v45 }
 0x1ea   : > { %2342 = vmatmul.bf16.gmra.mxu3 %v2225_v5 }
 0x1ec   : > { %v1680_v9 = vpop.f32.mrf.mxu0 }
 0x1ed   : > { %v1446_v50 = vpop.f32.mrf.mxu3  ;;  %v1839_v15 = vpop.f32.mrf.mxu1 }
 0x1ee   : > { %v1481_v34 = vadd.f32 %v1446_v50, %v1246_v6  ;;  %v1919_v48 = vadd.f32 %v1839_v15, %v4165_v38  ;;  %v1970_v6 = vld [vmem:[#allocation2 + $0x108] sm:$0xff] }
 0x1ef   : > { %2576 = vmatmul.bf16.gmra.mxu0 %v4167_v32  ;;  %v1735_v32 = vld [vmem:[#allocation2 + $0xf2] sm:$0xff]  ;;  %v1993_v50 = vpack.c.bf16 %v1971_v24, %v1970_v6 }
 0x1f0   : > { %v1213_v30 = vpop.f32.mrf.mxu2  ;;  %1878 = vmatmul.bf16.gmra.mxu1 %v1757_v52  ;;  %v4332_v26 = vadd.f32 %v1680_v9, %v1481_v34  ;;  %v1758_v5 = vpack.c.bf16 %v1736_v37, %v1735_v32 }
 0x1f1   : > { %v1247_v44 = vadd.f32 %v1213_v30, %v1012_v43  ;;  %v2205_v43 = vld [vmem:[#allocation2 + $0x111] sm:$0xff] }
 0x1f2   : > { %v2227_v58 = vpack.c.bf16 %v2205_v43, %v2204_v54  ;;  %v2206_v54 = vld [vmem:[#allocation2 + $0x121] sm:$0xff]  ;;  %v2207_v43 = vld [vmem:[#allocation2 + $0x129] sm:$0xff] }
 0x1f4   : > { %v1682_v60 = vpop.f32.mrf.mxu0 }
 0x1f5   : > { %v1448_v4 = vpop.f32.mrf.mxu3  ;;  %2113 = vmatmul.bf16.gmra.mxu2 %v1992_v20  ;;  %v1841_v61 = vpop.f32.mrf.mxu1 }
 0x1f6   : > { %v1482_v11 = vadd.f32 %v1448_v4, %v1247_v44  ;;  %v1920_v19 = vadd.f32 %v1841_v61, %v4176_v63  ;;  %v1737_v4 = vld [vmem:[#allocation2 + $0x10a] sm:$0xff]  ;;  %v1738_v61 = vld [vmem:[#allocation2 + $0x112] sm:$0xff] }
 0x1f8   : > { %v2074_v56 = vpop.f32.mrf.mxu2  ;;  %v4335_v23 = vadd.f32 %v1682_v60, %v1482_v11 }
 0x1f9   : > { %v2154_v45 = vadd.f32 %v2074_v56, %v1919_v48 }
 0x1fa   : > { %2347 = vmatmul.bf16.gmra.mxu3 %v2226_v10 }
 0x1fc   : > { %v2542_v12 = vpop.f32.mrf.mxu0 }
 0x1fd   : > { %v2308_v7 = vpop.f32.mrf.mxu3  ;;  %v1844_v40 = vpop.f32.mrf.mxu1 }
 0x1fe   : > { %v2388_v52 = vadd.f32 %v2308_v7, %v2154_v45  ;;  %v1972_v7 = vld [vmem:[#allocation2 + $0x120] sm:$0xff] }
 0x1ff   : > { %2581 = vmatmul.bf16.gmra.mxu0 %v4185_v35  ;;  %v1921_v35 = vadd.f32 %v1844_v40, %v4183_v33  ;;  %v1973_v40 = vld [vmem:[#allocation2 + $0x128] sm:$0xff] }
 0x200   : > { %v2076_v9 = vpop.f32.mrf.mxu2  ;;  %1883 = vmatmul.bf16.gmra.mxu1 %v1758_v5  ;;  %v2622_v15 = vadd.f32 %v2542_v12, %v2388_v52  ;;  %v1759_v12 = vpack.c.bf16 %v1738_v61, %v1737_v4 }
 0x201   : > { %v2155_v34 = vadd.f32 %v2076_v9, %v1920_v19  ;;  %v1994_v9 = vpack.c.bf16 %v1973_v40, %v1972_v7 }
 0x202   : > { %v2756_v63 = vmul.f32 %v2622_v15, %v2622_v15 }
 0x204   : > { %v2544_v38 = vpop.f32.mrf.mxu0 }
 0x205   : > { %v2310_v30 = vpop.f32.mrf.mxu3  ;;  %2118 = vmatmul.bf16.gmra.mxu2 %v1993_v50  ;;  %v1846_v44 = vpop.f32.mrf.mxu1 }
 0x206   : > { %v2389_v20 = vadd.f32 %v2310_v30, %v2155_v34  ;;  %v1922_v24 = vadd.f32 %v1846_v44, %v4191_v59  ;;  %v1739_v44 = vld [vmem:[#allocation2 + $0x122] sm:$0xff] }
 0x208   : > { %v2623_v13 = vadd.f32 %v2544_v38, %v2389_v20  ;;  %v2079_v60 = vpop.f32.mrf.mxu2 }
 0x209   : > { %v2156_v32 = vadd.f32 %v2079_v60, %v1921_v35  ;;  %v1740_v60 = vld [vmem:[#allocation2 + $0x12a] sm:$0xff] }
 0x20a   : > { %v3452_v11 = vpack.c.bf16 %v2623_v13, %v2622_v15  ;;  %v2718_v10 = vadd.f32 %v2623_v13, %v2622_v15  ;;  %v2757_v56 = vmul.f32 %v2623_v13, %v2623_v13  ;;  %2352 = vmatmul.bf16.gmra.mxu3 %v2227_v58  ;;  %v2228_v13 = vpack.c.bf16 %v2207_v43, %v2206_v54 }
 0x20c   : > { %3453 = vst [vmem:[%s4345_s24] sm:$0xff] %v3452_v11   ;;  %v2788_v37 = vadd.f32 %v2757_v56, %v2756_v63  ;;  %v2547_v48 = vpop.f32.mrf.mxu0 }
 0x20d   : > { %v2313_v33 = vpop.f32.mrf.mxu3  ;;  %v1849_v5 = vpop.f32.mrf.mxu1 }
 0x20e   : > { %v2390_v45 = vadd.f32 %v2313_v33, %v2156_v32  ;;  %v1923_v35 = vadd.f32 %v1849_v5, %v4204_v31  ;;  %v1760_v32 = vpack.c.bf16 %v1740_v60, %v1739_v44  ;;  %v1974_v33 = vld [vmem:[#allocation2 + $0x138] sm:$0xff] }
 0x20f   : > { %2586 = vmatmul.bf16.gmra.mxu0 %v4206_v18 }
 0x210   : > { %v2624_v6 = vadd.f32 %v2547_v48, %v2390_v45  ;;  %v2081_v19 = vpop.f32.mrf.mxu2  ;;  %1888 = vmatmul.bf16.gmra.mxu1 %v1759_v12  ;;  %v1975_v45 = vld [vmem:[#allocation2 + $0x140] sm:$0xff] }
 0x211   : > { %v2157_v34 = vadd.f32 %v2081_v19, %v1922_v24  ;;  %v1995_v40 = vpack.c.bf16 %v1975_v45, %v1974_v33 }
 0x212   : > { %v2719_v52 = vadd.f32 %v2718_v10, %v2624_v6  ;;  %v2758_v50 = vmul.f32 %v2624_v6, %v2624_v6 }
 0x214   : > { %v2789_v38 = vadd.f32 %v2788_v37, %v2758_v50  ;;  %v2549_v15 = vpop.f32.mrf.mxu0 }
 0x215   : > { %v2315_v30 = vpop.f32.mrf.mxu3  ;;  %2123 = vmatmul.bf16.gmra.mxu2 %v1994_v9  ;;  %v1851_v20 = vpop.f32.mrf.mxu1  ;;  %v2208_v9 = vld [vmem:[#allocation2 + $0x139] sm:$0xff] }
 0x216   : > { %v2391_v58 = vadd.f32 %v2315_v30, %v2157_v34  ;;  %v1924_v5 = vadd.f32 %v1851_v20, %v4213_v53  ;;  %v4433_v30 = vld [vmem:[#allocation3_spill] sm:$0xff]  ;;  %v1741_v20 = vld [vmem:[#allocation2 + $0x13a] sm:$0xff] }
 0x218   : > { %v2625_v18 = vadd.f32 %v2549_v15, %v2391_v58  ;;  %v2084_v59 = vpop.f32.mrf.mxu2 }
 0x219   : > { %v2158_v11 = vadd.f32 %v2084_v59, %v1923_v35 }
 0x21a   : > { %v3457_v63 = vpack.c.bf16 %v2625_v18, %v2624_v6  ;;  %v2720_v4 = vadd.f32 %v2719_v52, %v2625_v18  ;;  %v2759_v61 = vmul.f32 %v2625_v18, %v2625_v18  ;;  %2357 = vmatmul.bf16.gmra.mxu3 %v2228_v13  ;;  %v2209_v52 = vld [vmem:[#allocation2 + $0x141] sm:$0xff] }
 0x21b   : > { %v2229_v15 = vpack.c.bf16 %v2209_v52, %v2208_v9  ;;  %v1742_v13 = vld [vmem:[#allocation2 + $0x142] sm:$0xff] }
 0x21c   : > { %3537 = vst [vmem:[%s4345_s24 + $0x8] sm:$0xff] %v3457_v63   ;;  %v2790_v10 = vadd.f32 %v2789_v38, %v2759_v61  ;;  %v2552_v56 = vpop.f32.mrf.mxu0 }
 0x21d   : > { %v2318_v37 = vpop.f32.mrf.mxu3  ;;  %v1854_v48 = vpop.f32.mrf.mxu1 }
 0x21e   : > { %v2392_v12 = vadd.f32 %v2318_v37, %v2158_v11  ;;  %v1925_v58 = vadd.f32 %v1854_v48, %v4433_v30  ;;  %v4434_v48 = vld [vmem:[#allocation4_spill] sm:$0xff] }
 0x21f   : > { %2591 = vmatmul.bf16.gmra.mxu0 %v4217_v0  ;;  %v1744_v30 = vld [vmem:[#allocation2 + $0x15a] sm:$0xff] }
 0x220   : > { %v2626_v31 = vadd.f32 %v2552_v56, %v2392_v12  ;;  %v2086_v7 = vpop.f32.mrf.mxu2  ;;  %1893 = vmatmul.bf16.gmra.mxu1 %v1760_v32  ;;  %v1976_v56 = vld [vmem:[#allocation2 + $0x150] sm:$0xff]  ;;  %v1977_v32 = vld [vmem:[#allocation2 + $0x158] sm:$0xff] }
 0x221   : > { %v2159_v19 = vadd.f32 %v2086_v7, %v1924_v5  ;;  %v1996_v45 = vpack.c.bf16 %v1977_v32, %v1976_v56  ;;  %v1979_v56 = vld [vmem:[#allocation2 + $0x170] sm:$0xff]  ;;  %v3592_v32 = vld [vmem:[%s4424_s2] ss:$0 sm:$0xff] }
 0x222   : > { %v2721_v6 = vadd.f32 %v2720_v4, %v2626_v31  ;;  %v2760_v24 = vmul.f32 %v2626_v31, %v2626_v31  ;;  %v1761_v4 = vpack.c.bf16 %v1742_v13, %v1741_v20 }
 0x224   : > { %v2791_v50 = vadd.f32 %v2790_v10, %v2760_v24  ;;  %v2554_v34 = vpop.f32.mrf.mxu0 }
 0x225   : > { %v2320_v54 = vpop.f32.mrf.mxu3  ;;  %2128 = vmatmul.bf16.gmra.mxu2 %v1995_v40  ;;  %v1856_v43 = vpop.f32.mrf.mxu1  ;;  %v2210_v40 = vld [vmem:[#allocation2 + $0x151] sm:$0xff] }
 0x226   : > { %v2393_v38 = vadd.f32 %v2320_v54, %v2159_v19  ;;  %v1926_v12 = vadd.f32 %v1856_v43, %v4434_v48 }
 0x228   : > { %v2627_v0 = vadd.f32 %v2554_v34, %v2393_v38  ;;  %v2089_v53 = vpop.f32.mrf.mxu2  ;;  %v4435_v34 = vld [vmem:[#allocation5_spill] sm:$0xff] }
 0x229   : > { %v2160_v44 = vadd.f32 %v2089_v53, %v1925_v58  ;;  %v291_v58 = vld [vmem:[%s3660_s29 + $0xd4] sm:$0x1] }
 0x22a   : > { %v3462_v18 = vpack.c.bf16 %v2627_v0, %v2626_v31  ;;  %v2722_v35 = vadd.f32 %v2721_v6, %v2627_v0  ;;  %v2761_v59 = vmul.f32 %v2627_v0, %v2627_v0  ;;  %2362 = vmatmul.bf16.gmra.mxu3 %v2229_v15  ;;  %v2211_v6 = vld [vmem:[#allocation2 + $0x159] sm:$0xff] }
 0x22b   : > { %v1743_v0 = vld [vmem:[#allocation2 + $0x152] sm:$0xff] }
 0x22c   : > { %3538 = vst [vmem:[%s4345_s24 + $0x10] sm:$0xff] %v3462_v18   ;;  %v2792_v60 = vadd.f32 %v2791_v50, %v2761_v59  ;;  %v2557_v63 = vpop.f32.mrf.mxu0  ;;  %v345_v18 = vunpack.c.l.bf16 %v291_v58 }
 0x22d   : > { %v2323_v61 = vpop.f32.mrf.mxu3  ;;  %v1859_v11 = vpop.f32.mrf.mxu1 }
 0x22e   : > { %v2394_v10 = vadd.f32 %v2323_v61, %v2160_v44  ;;  %v1927_v54 = vadd.f32 %v1859_v11, %v4435_v34  ;;  %v1762_v44 = vpack.c.bf16 %v1744_v30, %v1743_v0 }
 0x22f   : > { %2596 = vmatmul.bf16.gmra.mxu0 %v4243_v22  ;;  %v2230_v22 = vpack.c.bf16 %v2211_v6, %v2210_v40  ;;  %v2212_v6 = vld [vmem:[#allocation2 + $0x169] sm:$0xff] }
 0x230   : > { %v2628_v37 = vadd.f32 %v2557_v63, %v2394_v10  ;;  %v2091_v33 = vpop.f32.mrf.mxu2  ;;  %1898 = vmatmul.bf16.gmra.mxu1 %v1761_v4  ;;  %v1978_v10 = vld [vmem:[#allocation2 + $0x168] sm:$0xff] }
 0x231   : > { %v2161_v7 = vadd.f32 %v2091_v33, %v1926_v12 }
 0x232   : > { %v2723_v31 = vadd.f32 %v2722_v35, %v2628_v37  ;;  %v2762_v5 = vmul.f32 %v2628_v37, %v2628_v37 }
 0x234   : > { %v2793_v24 = vadd.f32 %v2792_v60, %v2762_v5  ;;  %v2559_v19 = vpop.f32.mrf.mxu0  ;;  %v3591_v60 = vld [vmem:[%s4423_s1] ss:$0 sm:$0xff] }
 0x235   : > { %v2325_v9 = vpop.f32.mrf.mxu3  ;;  %2133 = vmatmul.bf16.gmra.mxu2 %v1996_v45  ;;  %v1861_v52 = vpop.f32.mrf.mxu1  ;;  %v402_v63 = vmul.f32 %v3591_v60, %v345_v18  ;;  %v1980_v60 = vld [vmem:[#allocation2 + $0x180] sm:$0xff] }
 0x236   : > { %v2395_v50 = vadd.f32 %v2325_v9, %v2161_v7  ;;  %v1928_v12 = vadd.f32 %v1861_v52, %v4255_v51 }
 0x238   : > { %v2629_v43 = vadd.f32 %v2559_v19, %v2395_v50  ;;  %v2094_v38 = vpop.f32.mrf.mxu2  ;;  %v4369_v19 = vld [vmem:[#allocation2 + $0x8] sm:$0xff] }
 0x239   : > { %v2162_v15 = vadd.f32 %v2094_v38, %v1927_v54  ;;  %v1745_v38 = vld [vmem:[#allocation2 + $0x16a] sm:$0xff]  ;;  %2826 = vst [vmem:[%s4388_s7 + $0x2] sm:$0x3f] %v4369_v19 }
 0x23a   : > { %v3467_v53 = vpack.c.bf16 %v2629_v43, %v2628_v37  ;;  %v2724_v20 = vadd.f32 %v2723_v31, %v2629_v43  ;;  %v2763_v13 = vmul.f32 %v2629_v43, %v2629_v43  ;;  %2367 = vmatmul.bf16.gmra.mxu3 %v2230_v22  ;;  %v459_v37 = vadd.f32 %v3592_v32, %v402_v63  ;;  %v1981_v63 = vld [vmem:[#allocation2 + $0x188] sm:$0xff] }
 0x23b   : > { %v1997_v31 = vpack.c.bf16 %v1979_v56, %v1978_v10 }
 0x23c   : > { %3539 = vst [vmem:[%s4345_s24 + $0x18] sm:$0xff] %v3467_v53   ;;  %v2794_v35 = vadd.f32 %v2793_v24, %v2763_v13  ;;  %v2562_v59 = vpop.f32.mrf.mxu0  ;;  %v513_v45 = vmax.f32 %v459_v37, 0.0  ;;  %v2213_v24 = vld [vmem:[#allocation2 + $0x171] sm:$0xff]  ;;  %v2214_v37 = vld [vmem:[#allocation2 + $0x181] sm:$0xff] }
 0x23d   : > { %v2328_v4 = vpop.f32.mrf.mxu3  ;;  %v1864_v61 = vpop.f32.mrf.mxu1  ;;  %v2231_v22 = vpack.c.bf16 %v2213_v24, %v2212_v6  ;;  %v2449_v6 = vld [vmem:[#allocation2 + $0x18a] sm:$0xff] }
 0x23e   : > { %v2396_v11 = vadd.f32 %v2328_v4, %v2162_v15  ;;  %567 = vst [vmem:[#allocation2 + $0x1a8] sm:$0x3] %v513_v45  ;;  %v1929_v54 = vadd.f32 %v1864_v61, %v4258_v28  ;;  %v1746_v15 = vld [vmem:[#allocation2 + $0x172] sm:$0xff] }
 0x23f   : > { %2601 = vmatmul.bf16.gmra.mxu0 %v4260_v2  ;;  %574 = vst [vmem:[#allocation2 + $0x1a8] sm:$0x3] %v4369_v19  ;;  %v1763_v18 = vpack.c.bf16 %v1746_v15, %v1745_v38  ;;  %v1982_v15 = vld [vmem:[#allocation2 + $0x198] sm:$0xff] }
 0x240   : > { %v2630_v48 = vadd.f32 %v2562_v59, %v2396_v11  ;;  %v2096_v33 = vpop.f32.mrf.mxu2  ;;  %1903 = vmatmul.bf16.gmra.mxu1 %v1762_v44  ;;  %610 = vst [vmem:[#allocation2 + $0x1a9] sm:$0x1] %v4369_v19  ;;  %v1998_v11 = vpack.c.bf16 %v1981_v63, %v1980_v60 }
 0x241   : > { %v2163_v40 = vadd.f32 %v2096_v33, %v1928_v12 }
 0x242   : > { %v2725_v5 = vadd.f32 %v2724_v20, %v2630_v48  ;;  %v2764_v7 = vmul.f32 %v2630_v48, %v2630_v48 }
 0x244   : > { %v2795_v9 = vadd.f32 %v2794_v35, %v2764_v7  ;;  %v2564_v50 = vpop.f32.mrf.mxu0 }
 0x245   : > { %v2330_v51 = vpop.f32.mrf.mxu3  ;;  %2138 = vmatmul.bf16.gmra.mxu2 %v1997_v31  ;;  %v1866_v2 = vpop.f32.mrf.mxu1 }
 0x246   : > { %v2397_v52 = vadd.f32 %v2330_v51, %v2163_v40  ;;  %v1930_v4 = vadd.f32 %v1866_v2, %v4264_v25  ;;  %v2448_v25 = vld [vmem:[#allocation2 + $0x182] sm:$0xff] }
 0x248   : > { %v2631_v34 = vadd.f32 %v2564_v50, %v2397_v52  ;;  %v2099_v43 = vpop.f32.mrf.mxu2  ;;  %v2466_v52 = vpack.c.bf16 %v2449_v6, %v2448_v25 }
 0x249   : > { %v2164_v53 = vadd.f32 %v2099_v43, %v1929_v54 }
 0x24a   : > { %v3472_v0 = vpack.c.bf16 %v2631_v34, %v2630_v48  ;;  %v2726_v30 = vadd.f32 %v2725_v5, %v2631_v34  ;;  %v2765_v58 = vmul.f32 %v2631_v34, %v2631_v34  ;;  %2372 = vmatmul.bf16.gmra.mxu3 %v2231_v22  ;;  %v2215_v48 = vld [vmem:[#allocation2 + $0x189] sm:$0xff] }
 0x24b   : > { %v2232_v7 = vpack.c.bf16 %v2215_v48, %v2214_v37 }
 0x24c   : > { %3540 = vst [vmem:[%s4345_s24 + $0x20] sm:$0xff] %v3472_v0   ;;  %v2796_v20 = vadd.f32 %v2795_v9, %v2765_v58  ;;  %v2567_v13 = vpop.f32.mrf.mxu0  ;;  %v1999_v58 = vpack.c.bf16 %v4369_v19, %v1982_v15 }
 0x24d   : > { %v2333_v35 = vpop.f32.mrf.mxu3  ;;  %v1869_v59 = vpop.f32.mrf.mxu1 }
 0x24e   : > { %v2398_v44 = vadd.f32 %v2333_v35, %v2164_v53  ;;  %v1931_v40 = vadd.f32 %v1869_v59, %v4267_v47  ;;  %v2217_v35 = vld [vmem:[#allocation2 + $0x1a1] sm:$0xff] }
 0x24f   : > { %2606 = vmatmul.bf16.gmra.mxu0 %v4269_v46 }
 0x250   : > { %v2632_v28 = vadd.f32 %v2567_v13, %v2398_v44  ;;  %v2101_v61 = vpop.f32.mrf.mxu2  ;;  %1908 = vmatmul.bf16.gmra.mxu1 %v1763_v18  ;;  %v2216_v18 = vld [vmem:[#allocation2 + $0x199] sm:$0xff] }
 0x251   : > { %v2165_v32 = vadd.f32 %v2101_v61, %v1930_v4  ;;  %v2233_v4 = vpack.c.bf16 %v2217_v35, %v2216_v18 }
 0x252   : > { %v2727_v10 = vadd.f32 %v2726_v30, %v2632_v28  ;;  %v2766_v56 = vmul.f32 %v2632_v28, %v2632_v28 }
 0x254   : > { %v2797_v12 = vadd.f32 %v2796_v20, %v2766_v56  ;;  %v2569_v33 = vpop.f32.mrf.mxu0 }
 0x255   : > { %v2335_v45 = vpop.f32.mrf.mxu3  ;;  %2143 = vmatmul.bf16.gmra.mxu2 %v1998_v11  ;;  %v1871_v31 = vpop.f32.mrf.mxu1  ;;  %v2450_v11 = vld [vmem:[#allocation2 + $0x19a] sm:$0xff] }
 0x256   : > { %v2399_v5 = vadd.f32 %v2335_v45, %v2165_v32  ;;  %v1932_v47 = vadd.f32 %v1871_v31, %v4275_v29 }
 0x258   : > { %v2633_v46 = vadd.f32 %v2569_v33, %v2399_v5  ;;  %v2104_v24 = vpop.f32.mrf.mxu2 }
 0x259   : > { %v2166_v2 = vadd.f32 %v2104_v24, %v1931_v40 }
 0x25a   : > { %v3477_v9 = vpack.c.bf16 %v2633_v46, %v2632_v28  ;;  %v2728_v50 = vadd.f32 %v2727_v10, %v2633_v46  ;;  %v2767_v51 = vmul.f32 %v2633_v46, %v2633_v46  ;;  %2377 = vmatmul.bf16.gmra.mxu3 %v2232_v7  ;;  %v2451_v10 = vld [vmem:[#allocation2 + $0x1a2] sm:$0xff] }
 0x25b   : > { %v2467_v33 = vpack.c.bf16 %v2451_v10, %v2450_v11 }
 0x25c   : > { %3541 = vst [vmem:[%s4345_s24 + $0x28] sm:$0xff] %v3477_v9   ;;  %v2798_v22 = vadd.f32 %v2797_v12, %v2767_v51  ;;  %v2572_v34 = vpop.f32.mrf.mxu0 }
 0x25d   : > { %v2338_v54 = vpop.f32.mrf.mxu3  ;;  %v1874_v43 = vpop.f32.mrf.mxu1 }
 0x25e   : > { %v2400_v38 = vadd.f32 %v2338_v54, %v2166_v2  ;;  %v1933_v29 = vadd.f32 %v1874_v43, %v4278_v8 }
 0x25f   : > { %2611 = vmatmul.bf16.gmra.mxu0 %v2466_v52 }
 0x260   : > { %v2634_v0 = vadd.f32 %v2572_v34, %v2400_v38  ;;  %v2106_v30 = vpop.f32.mrf.mxu2  ;;  %1913 = vmatmul.bf16.gmra.mxu1 %v2466_v52 }
 0x261   : > { %v2167_v13 = vadd.f32 %v2106_v30, %v1932_v47 }
 0x262   : > { %v2729_v53 = vadd.f32 %v2728_v50, %v2634_v0  ;;  %v2768_v20 = vmul.f32 %v2634_v0, %v2634_v0 }
 0x264   : > { %v2799_v59 = vadd.f32 %v2798_v22, %v2768_v20  ;;  %v2574_v44 = vpop.f32.mrf.mxu0 }
 0x265   : > { %v2340_v60 = vpop.f32.mrf.mxu3  ;;  %2148 = vmatmul.bf16.gmra.mxu2 %v1999_v58  ;;  %v1876_v63 = vpop.f32.mrf.mxu1 }
 0x266   : > { %v2401_v28 = vadd.f32 %v2340_v60, %v2167_v13  ;;  %v1934_v8 = vadd.f32 %v1876_v63, %v4281_v14 }
 0x268   : > { %v2635_v61 = vadd.f32 %v2574_v44, %v2401_v28  ;;  %v2109_v56 = vpop.f32.mrf.mxu2 }
 0x269   : > { %v2168_v12 = vadd.f32 %v2109_v56, %v1933_v29 }
 0x26a   : > { %v3482_v32 = vpack.c.bf16 %v2635_v61, %v2634_v0  ;;  %v2730_v37 = vadd.f32 %v2729_v53, %v2635_v61  ;;  %v2769_v48 = vmul.f32 %v2635_v61, %v2635_v61  ;;  %2382 = vmatmul.bf16.gmra.mxu3 %v2233_v4 }
 0x26c   : > { %3542 = vst [vmem:[%s4345_s24 + $0x30] sm:$0xff] %v3482_v32   ;;  %v2800_v45 = vadd.f32 %v2799_v59, %v2769_v48  ;;  %v2577_v31 = vpop.f32.mrf.mxu0 }
 0x26d   : > { %v2343_v5 = vpop.f32.mrf.mxu3  ;;  %v1879_v7 = vpop.f32.mrf.mxu1 }
 0x26e   : > { %v2402_v46 = vadd.f32 %v2343_v5, %v2168_v12  ;;  %v1935_v34 = vadd.f32 %v1879_v7, %v4285_v17 }
 0x26f   : > { %2616 = vmatmul.bf16.gmra.mxu0 %v2467_v33 }
 0x270   : > { %v2636_v40 = vadd.f32 %v2577_v31, %v2402_v46  ;;  %v2111_v25 = vpop.f32.mrf.mxu2 }
 0x271   : > { %v2169_v9 = vadd.f32 %v2111_v25, %v1934_v8 }
 0x272   : > { %v2731_v6 = vadd.f32 %v2730_v37, %v2636_v40  ;;  %v2770_v24 = vmul.f32 %v2636_v40, %v2636_v40 }
 0x274   : > { %v2801_v50 = vadd.f32 %v2800_v45, %v2770_v24  ;;  %v2579_v51 = vpop.f32.mrf.mxu0 }
 0x275   : > { %v2345_v2 = vpop.f32.mrf.mxu3  ;;  %v1881_v52 = vpop.f32.mrf.mxu1 }
 0x276   : > { %v2403_v22 = vadd.f32 %v2345_v2, %v2169_v9  ;;  %v1936_v18 = vadd.f32 %v1881_v52, %v4288_v55 }
 0x278   : > { %v2637_v14 = vadd.f32 %v2579_v51, %v2403_v22  ;;  %v2114_v54 = vpop.f32.mrf.mxu2 }
 0x279   : > { %v2170_v0 = vadd.f32 %v2114_v54, %v1935_v34 }
 0x27a   : > { %v3487_v43 = vpack.c.bf16 %v2637_v14, %v2636_v40  ;;  %v2732_v38 = vadd.f32 %v2731_v6, %v2637_v14  ;;  %v2771_v15 = vmul.f32 %v2637_v14, %v2637_v14 }
 0x27c   : > { %3543 = vst [vmem:[%s4345_s24 + $0x38] sm:$0xff] %v3487_v43   ;;  %v2802_v47 = vadd.f32 %v2801_v50, %v2771_v15  ;;  %v2582_v30 = vpop.f32.mrf.mxu0 }
 0x27d   : > { %v2348_v58 = vpop.f32.mrf.mxu3  ;;  %v1884_v53 = vpop.f32.mrf.mxu1 }
 0x27e   : > { %v2404_v20 = vadd.f32 %v2348_v58, %v2170_v0  ;;  %v1937_v29 = vadd.f32 %v1884_v53, %v4292_v39 }
 0x280   : > { %v2638_v13 = vadd.f32 %v2582_v30, %v2404_v20  ;;  %v2116_v35 = vpop.f32.mrf.mxu2 }
 0x281   : > { %v2171_v44 = vadd.f32 %v2116_v35, %v1936_v18 }
 0x282   : > { %v2733_v19 = vadd.f32 %v2732_v38, %v2638_v13  ;;  %v2772_v59 = vmul.f32 %v2638_v13, %v2638_v13 }
 0x284   : > { %v2803_v17 = vadd.f32 %v2802_v47, %v2772_v59  ;;  %v2584_v60 = vpop.f32.mrf.mxu0 }
 0x285   : > { %v2350_v63 = vpop.f32.mrf.mxu3  ;;  %v1886_v28 = vpop.f32.mrf.mxu1 }
 0x286   : > { %v2405_v4 = vadd.f32 %v2350_v63, %v2171_v44  ;;  %v1938_v5 = vadd.f32 %v1886_v28, %v4295_v49 }
 0x288   : > { %v2639_v61 = vadd.f32 %v2584_v60, %v2405_v4  ;;  %v2119_v11 = vpop.f32.mrf.mxu2 }
 0x289   : > { %v2172_v37 = vadd.f32 %v2119_v11, %v1937_v29 }
 0x28a   : > { %v3492_v10 = vpack.c.bf16 %v2639_v61, %v2638_v13  ;;  %v2734_v56 = vadd.f32 %v2733_v19, %v2639_v61  ;;  %v2773_v32 = vmul.f32 %v2639_v61, %v2639_v61 }
 0x28c   : > { %3544 = vst [vmem:[%s4345_s24 + $0x40] sm:$0xff] %v3492_v10   ;;  %v2804_v55 = vadd.f32 %v2803_v17, %v2773_v32  ;;  %v2587_v48 = vpop.f32.mrf.mxu0 }
 0x28d   : > { %v2353_v12 = vpop.f32.mrf.mxu3  ;;  %v1889_v33 = vpop.f32.mrf.mxu1 }
 0x28e   : > { %v2406_v45 = vadd.f32 %v2353_v12, %v2172_v37  ;;  %v1939_v51 = vadd.f32 %v1889_v33, %v4298_v41 }
 0x290   : > { %v2640_v31 = vadd.f32 %v2587_v48, %v2406_v45  ;;  %v2121_v7 = vpop.f32.mrf.mxu2 }
 0x291   : > { %v2173_v8 = vadd.f32 %v2121_v7, %v1938_v5 }
 0x292   : > { %v2735_v46 = vadd.f32 %v2734_v56, %v2640_v31  ;;  %v2774_v40 = vmul.f32 %v2640_v31, %v2640_v31 }
 0x294   : > { %v2805_v39 = vadd.f32 %v2804_v55, %v2774_v40  ;;  %v2589_v25 = vpop.f32.mrf.mxu0 }
 0x295   : > { %v2355_v6 = vpop.f32.mrf.mxu3  ;;  %v1891_v24 = vpop.f32.mrf.mxu1 }
 0x296   : > { %v2407_v9 = vadd.f32 %v2355_v6, %v2173_v8  ;;  %v1940_v47 = vadd.f32 %v1891_v24, %v4301_v3 }
 0x298   : > { %v2641_v50 = vadd.f32 %v2589_v25, %v2407_v9  ;;  %v2124_v2 = vpop.f32.mrf.mxu2 }
 0x299   : > { %v2174_v34 = vadd.f32 %v2124_v2, %v1939_v51 }
 0x29a   : > { %v3497_v52 = vpack.c.bf16 %v2641_v50, %v2640_v31  ;;  %v2736_v22 = vadd.f32 %v2735_v46, %v2641_v50  ;;  %v2775_v14 = vmul.f32 %v2641_v50, %v2641_v50 }
 0x29c   : > { %3545 = vst [vmem:[%s4345_s24 + $0x48] sm:$0xff] %v3497_v52   ;;  %v2806_v49 = vadd.f32 %v2805_v39, %v2775_v14  ;;  %v2592_v54 = vpop.f32.mrf.mxu0 }
 0x29d   : > { %v2358_v43 = vpop.f32.mrf.mxu3  ;;  %v1894_v38 = vpop.f32.mrf.mxu1 }
 0x29e   : > { %v2408_v15 = vadd.f32 %v2358_v43, %v2174_v34  ;;  %v1941_v44 = vadd.f32 %v1894_v38, %v4305_v16 }
 0x2a0   : > { %v2642_v0 = vadd.f32 %v2592_v54, %v2408_v15  ;;  %v2126_v30 = vpop.f32.mrf.mxu2 }
 0x2a1   : > { %v2175_v20 = vadd.f32 %v2126_v30, %v1940_v47 }
 0x2a2   : > { %v2737_v58 = vadd.f32 %v2736_v22, %v2642_v0  ;;  %v2776_v53 = vmul.f32 %v2642_v0, %v2642_v0 }
 0x2a4   : > { %v2807_v41 = vadd.f32 %v2806_v49, %v2776_v53  ;;  %v2594_v13 = vpop.f32.mrf.mxu0 }
 0x2a5   : > { %v2360_v18 = vpop.f32.mrf.mxu3  ;;  %v1896_v35 = vpop.f32.mrf.mxu1 }
 0x2a6   : > { %v2409_v19 = vadd.f32 %v2360_v18, %v2175_v20  ;;  %v1942_v32 = vadd.f32 %v1896_v35, %v4308_v36 }
 0x2a8   : > { %v2643_v59 = vadd.f32 %v2594_v13, %v2409_v19  ;;  %v2129_v17 = vpop.f32.mrf.mxu2 }
 0x2a9   : > { %v2176_v4 = vadd.f32 %v2129_v17, %v1941_v44 }
 0x2aa   : > { %v3502_v60 = vpack.c.bf16 %v2643_v59, %v2642_v0  ;;  %v2738_v63 = vadd.f32 %v2737_v58, %v2643_v59  ;;  %v2777_v28 = vmul.f32 %v2643_v59, %v2643_v59 }
 0x2ac   : > { %3546 = vst [vmem:[%s4345_s24 + $0x50] sm:$0xff] %v3502_v60   ;;  %v2808_v3 = vadd.f32 %v2807_v41, %v2777_v28  ;;  %v2597_v61 = vpop.f32.mrf.mxu0 }
 0x2ad   : > { %v2363_v29 = vpop.f32.mrf.mxu3  ;;  %v1899_v11 = vpop.f32.mrf.mxu1 }
 0x2ae   : > { %v2410_v10 = vadd.f32 %v2363_v29, %v2176_v4  ;;  %v1943_v46 = vadd.f32 %v1899_v11, %v4311_v21 }
 0x2b0   : > { %v2644_v56 = vadd.f32 %v2597_v61, %v2410_v10  ;;  %v2131_v37 = vpop.f32.mrf.mxu2 }
 0x2b1   : > { %v2177_v12 = vadd.f32 %v2131_v37, %v1942_v32 }
 0x2b2   : > { %v2739_v55 = vadd.f32 %v2738_v63, %v2644_v56  ;;  %v2778_v48 = vmul.f32 %v2644_v56, %v2644_v56 }
 0x2b4   : > { %v2809_v16 = vadd.f32 %v2808_v3, %v2778_v48  ;;  %v2599_v33 = vpop.f32.mrf.mxu0 }
 0x2b5   : > { %v2365_v45 = vpop.f32.mrf.mxu3  ;;  %v1901_v31 = vpop.f32.mrf.mxu1 }
 0x2b6   : > { %v2411_v5 = vadd.f32 %v2365_v45, %v2177_v12  ;;  %v1944_v52 = vadd.f32 %v1901_v31, %v4314_v27 }
 0x2b8   : > { %v2645_v7 = vadd.f32 %v2599_v33, %v2411_v5  ;;  %v2134_v40 = vpop.f32.mrf.mxu2 }
 0x2b9   : > { %v2178_v6 = vadd.f32 %v2134_v40, %v1943_v46 }
 0x2ba   : > { %v3507_v8 = vpack.c.bf16 %v2645_v7, %v2644_v56  ;;  %v2740_v39 = vadd.f32 %v2739_v55, %v2645_v7  ;;  %v2779_v25 = vmul.f32 %v2645_v7, %v2645_v7 }
 0x2bc   : > { %3547 = vst [vmem:[%s4345_s24 + $0x58] sm:$0xff] %v3507_v8   ;;  %v2810_v36 = vadd.f32 %v2809_v16, %v2779_v25  ;;  %v2602_v24 = vpop.f32.mrf.mxu0 }
 0x2bd   : > { %v2368_v9 = vpop.f32.mrf.mxu3  ;;  %v1904_v50 = vpop.f32.mrf.mxu1 }
 0x2be   : > { %v2412_v51 = vadd.f32 %v2368_v9, %v2178_v6  ;;  %v1945_v47 = vadd.f32 %v1904_v50, %v4318_v1 }
 0x2c0   : > { %v2646_v2 = vadd.f32 %v2602_v24, %v2412_v51  ;;  %v2136_v22 = vpop.f32.mrf.mxu2 }
 0x2c1   : > { %v2179_v49 = vadd.f32 %v2136_v22, %v1944_v52 }
 0x2c2   : > { %v2741_v14 = vadd.f32 %v2740_v39, %v2646_v2  ;;  %v2780_v34 = vmul.f32 %v2646_v2, %v2646_v2 }
 0x2c4   : > { %v2811_v21 = vadd.f32 %v2810_v36, %v2780_v34  ;;  %v2604_v54 = vpop.f32.mrf.mxu0 }
 0x2c5   : > { %v2370_v43 = vpop.f32.mrf.mxu3  ;;  %v1906_v38 = vpop.f32.mrf.mxu1 }
 0x2c6   : > { %v2413_v15 = vadd.f32 %v2370_v43, %v2179_v49  ;;  %v1946_v44 = vadd.f32 %v1906_v38, %v4321_v62 }
 0x2c8   : > { %v2647_v0 = vadd.f32 %v2604_v54, %v2413_v15  ;;  %v2139_v30 = vpop.f32.mrf.mxu2 }
 0x2c9   : > { %v2180_v41 = vadd.f32 %v2139_v30, %v1945_v47 }
 0x2ca   : > { %v3512_v58 = vpack.c.bf16 %v2647_v0, %v2646_v2  ;;  %v2742_v53 = vadd.f32 %v2741_v14, %v2647_v0  ;;  %v2781_v20 = vmul.f32 %v2647_v0, %v2647_v0 }
 0x2cc   : > { %3548 = vst [vmem:[%s4345_s24 + $0x60] sm:$0xff] %v3512_v58   ;;  %v2812_v27 = vadd.f32 %v2811_v21, %v2781_v20  ;;  %v2607_v13 = vpop.f32.mrf.mxu0 }
 0x2cd   : > { %v2373_v18 = vpop.f32.mrf.mxu3  ;;  %v1909_v19 = vpop.f32.mrf.mxu1 }
 0x2ce   : > { %v2414_v35 = vadd.f32 %v2373_v18, %v2180_v41  ;;  %v1947_v11 = vadd.f32 %v1909_v19, %v4325_v57 }
 0x2d0   : > { %v2648_v59 = vadd.f32 %v2607_v13, %v2414_v35  ;;  %v2141_v17 = vpop.f32.mrf.mxu2 }
 0x2d1   : > { %v2181_v28 = vadd.f32 %v2141_v17, %v1946_v44 }
 0x2d2   : > { %v2743_v60 = vadd.f32 %v2742_v53, %v2648_v59  ;;  %v2782_v63 = vmul.f32 %v2648_v59, %v2648_v59 }
 0x2d4   : > { %v2813_v1 = vadd.f32 %v2812_v27, %v2782_v63  ;;  %v2609_v4 = vpop.f32.mrf.mxu0 }
 0x2d5   : > { %v2375_v3 = vpop.f32.mrf.mxu3  ;;  %v1911_v56 = vpop.f32.mrf.mxu1 }
 0x2d6   : > { %v2415_v61 = vadd.f32 %v2375_v3, %v2181_v28  ;;  %v1948_v31 = vadd.f32 %v1911_v56, %v4328_v42 }
 0x2d8   : > { %v2649_v29 = vadd.f32 %v2609_v4, %v2415_v61  ;;  %v2144_v10 = vpop.f32.mrf.mxu2 }
 0x2d9   : > { %v2182_v48 = vadd.f32 %v2144_v10, %v1947_v11 }
 0x2da   : > { %v3517_v32 = vpack.c.bf16 %v2649_v29, %v2648_v59  ;;  %v2744_v37 = vadd.f32 %v2743_v60, %v2649_v29  ;;  %v2783_v55 = vmul.f32 %v2649_v29, %v2649_v29 }
 0x2dc   : > { %3549 = vst [vmem:[%s4345_s24 + $0x68] sm:$0xff] %v3517_v32   ;;  %v2814_v62 = vadd.f32 %v2813_v1, %v2783_v55  ;;  %v2612_v12 = vpop.f32.mrf.mxu0 }
 0x2dd   : > { %v2378_v16 = vpop.f32.mrf.mxu3  ;;  %v1914_v57 = vpop.f32.mrf.mxu1 }
 0x2de   : > { %v2416_v33 = vadd.f32 %v2378_v16, %v2182_v48  ;;  %v1949_v24 = vadd.f32 %v1914_v57, %v4332_v26 }
 0x2e0   : > { %v2650_v45 = vadd.f32 %v2612_v12, %v2416_v33  ;;  %v2146_v5 = vpop.f32.mrf.mxu2 }
 0x2e1   : > { %v2183_v40 = vadd.f32 %v2146_v5, %v1948_v31 }
 0x2e2   : > { %v2745_v7 = vadd.f32 %v2744_v37, %v2650_v45  ;;  %v2784_v46 = vmul.f32 %v2650_v45, %v2650_v45 }
 0x2e4   : > { %v2815_v8 = vadd.f32 %v2814_v62, %v2784_v46  ;;  %v2614_v39 = vpop.f32.mrf.mxu0 }
 0x2e5   : > { %v2380_v25 = vpop.f32.mrf.mxu3  ;;  %v1916_v22 = vpop.f32.mrf.mxu1 }
 0x2e6   : > { %v2417_v6 = vadd.f32 %v2380_v25, %v2183_v40  ;;  %v1950_v54 = vadd.f32 %v1916_v22, %v4335_v23 }
 0x2e8   : > { %v2651_v36 = vadd.f32 %v2614_v39, %v2417_v6  ;;  %v2149_v9 = vpop.f32.mrf.mxu2 }
 0x2e9   : > { %v2184_v52 = vadd.f32 %v2149_v9, %v1949_v24 }
 0x2ea   : > { %v3522_v50 = vpack.c.bf16 %v2651_v36, %v2650_v45  ;;  %v2746_v51 = vadd.f32 %v2745_v7, %v2651_v36  ;;  %v2785_v2 = vmul.f32 %v2651_v36, %v2651_v36 }
 0x2ec   : > { %3550 = vst [vmem:[%s4345_s24 + $0x70] sm:$0xff] %v3522_v50   ;;  %v2816_v42 = vadd.f32 %v2815_v8, %v2785_v2  ;;  %v2617_v14 = vpop.f32.mrf.mxu0 }
 0x2ed   : > { %v2383_v34 = vpop.f32.mrf.mxu3 }
 0x2ee   : > { %v2418_v49 = vadd.f32 %v2383_v34, %v2184_v52 }
 0x2f0   : > { %v2652_v21 = vadd.f32 %v2617_v14, %v2418_v49  ;;  %v2151_v43 = vpop.f32.mrf.mxu2 }
 0x2f1   : > { %v2185_v0 = vadd.f32 %v2151_v43, %v1950_v54 }
 0x2f2   : > { %v2747_v38 = vadd.f32 %v2746_v51, %v2652_v21  ;;  %v2786_v15 = vmul.f32 %v2652_v21, %v2652_v21 }
 0x2f4   : > { %v2817_v26 = vadd.f32 %v2816_v42, %v2786_v15  ;;  %v2619_v58 = vpop.f32.mrf.mxu0 }
 0x2f5   : > { %v2385_v47 = vpop.f32.mrf.mxu3 }
 0x2f6   : > { %v2419_v30 = vadd.f32 %v2385_v47, %v2185_v0 }
 0x2f8   : > { %v2653_v53 = vadd.f32 %v2619_v58, %v2419_v30 }
 0x2fa   : > { %v3527_v20 = vpack.c.bf16 %v2653_v53, %v2652_v21  ;;  %v2748_v41 = vadd.f32 %v2747_v38, %v2653_v53  ;;  %v2787_v27 = vmul.f32 %v2653_v53, %v2653_v53 }
 0x2fc   : > { %3551 = vst [vmem:[%s4345_s24 + $0x78] sm:$0xff] %v3527_v20   ;;  %v2749_v13 = vrot.slane %v2748_v41, 4  ;;  %v2818_v18 = vadd.f32 %v2817_v26, %v2787_v27 }
 0x2fe   : > { %v2750_v35 = vadd.f32 %v2749_v13, %v2748_v41  ;;  %v2819_v19 = vrot.slane %v2818_v18, 4 }
 0x300   : > { %v2751_v23 = vrot.slane %v2750_v35, 2  ;;  %v2820_v59 = vadd.f32 %v2819_v19, %v2818_v18 }
 0x302   : > { %v2752_v44 = vadd.f32 %v2751_v23, %v2750_v35  ;;  %v2821_v17 = vrot.slane %v2820_v59, 2 }
 0x304   : > { %v2753_v60 = vrot.slane %v2752_v44, 1  ;;  %v2822_v63 = vadd.f32 %v2821_v17, %v2820_v59 }
 0x306   : > { %v2754_v28 = vadd.f32 %v2753_v60, %v2752_v44  ;;  %v2823_v1 = vrot.slane %v2822_v63, 1 }
 0x308   : > { %2755 = vst [vmem:[%s4388_s7] sm:$0x1] %v2754_v28  ;;  %v2824_v4 = vadd.f32 %v2823_v1, %v2822_v63 }
 0x30a   : > { %2825 = vst [vmem:[%s4388_s7 + $0x1] sm:$0x1] %v2824_v4 }
 0x30b PF: > { %s16_s18 = sadd.s32 1, %s3600_s18  }
 0x30c   : > { %p13_p4 = scmp.ge.s32.totalorder %s16_s18, 4  }
 0x30e   :  { %15 = sbr.rel (!%p13_p4) target bundleno = 1 (0x1), region = 89 }

// kernel: res_block_forward.3
= control target key start
LH: loop header
LB: loop body
LE: loop exit
PB: predicated region body
PF: predicated region fallthrough
CT: control target
= control target key end

     0   :  { %s3898_s18 = smov 0   ;;  %s4770_s0 = inlined_call_operand.vmem [shape: f32[2,1,18,18,128], index: 0, kind: input, shape index: {}]   ;;  %s4771_s1 = inlined_call_operand.vmem [shape: bf16[9,128,128], index: 1, kind: input, shape index: {}]   ;;  %s4772_s2 = inlined_call_operand.vmem [shape: bf16[128,128], index: 2, kind: input, shape index: {}]   ;;  %s4773_s3 = inlined_call_operand.vmem [shape: bf16[2,16,16,128], index: 3, kind: output, shape index: {0}]   ;;  %s4774_s4 = inlined_call_operand.vmem [shape: f32[2,8,128], index: 4, kind: output, shape index: {1}]   ;;  %s4775_s5 = inlined_call_operand.vmem [shape: bf16[2,16,16,128], index: 5, kind: output, shape index: {2}]  }
   0x1 LB: > { %s2908_s19 = sadd.s32 4294967295, %s3865_s18   ;;  %p2912_p0 = scmp.ge.s32.totalorder %s3865_s18, 1  ;;  %s3865_s18 = sphi %s3898_s18, %s16_s18  }
   0x2   : > { %p192_p1 = scmp.lt.s32.totalorder %s3865_s18, 3 }
   0x4   : > { %p193_p2 = pnand %p2912_p0, %p192_p1 }
   0x5   : > { %p229_p3 = scmp.lt.s32.totalorder (!%p193_p2), %s2908_s19, 1 }
   0x6   : > { %196 = sbr.rel (%p193_p2) target bundleno = 833 (0x341), region = 32 }
   0xb   : > { %v3578_v0 = vld [vmem:[%s4771_s1 + $0x78] sm:$0xff]  ;;  %v3577_v2 = vld [vmem:[%s4771_s1 + $0x70] sm:$0xff]  ;;  %v3576_v4 = vld [vmem:[%s4771_s1 + $0x68] sm:$0xff]  ;;  %s4777_s19 = smov (!%p229_p3, %s2908_s19), 1 }
   0xc   : > { %v3570_v1 = vld [vmem:[%s4771_s1 + $0x38] sm:$0xff]  ;;  %3833 = vmatpush.bf16.msra.mxu2 %v3578_v0  ;;  %v3569_v3 = vld [vmem:[%s4771_s1 + $0x30] sm:$0xff]  ;;  %425 = vmatpush.bf16.msra.mxu0 %v3578_v0  ;;  %v3568_v5 = vld [vmem:[%s4771_s1 + $0x28] sm:$0xff]  ;;  %s3849_s21 = smul.u32 432, %s4777_s19  ;;  %s3561_s6 = sshll.u32 %s4777_s19, 7 }
   0xd   : > { %562 = vmatpush.bf16.msra.mxu1 %v3570_v1  ;;  %3841 = vmatpush.bf16.msra.mxu3 %v3570_v1  ;;  %v3575_v6 = vld [vmem:[%s4771_s1 + $0x60] sm:$0xff]  ;;  %v3574_v8 = vld [vmem:[%s4771_s1 + $0x58] sm:$0xff]  ;;  %v3573_v10 = vld [vmem:[%s4771_s1 + $0x50] sm:$0xff]  ;;  %s4368_s9 = scalar_lea.vmem %s4775_s5, %s3561_s6  ;;  %s2916_s10 = sshll.u32 %s4777_s19, 3 }
   0xe   : > { %v3567_v7 = vld [vmem:[%s4771_s1 + $0x20] sm:$0xff]  ;;  %v3566_v9 = vld [vmem:[%s4771_s1 + $0x18] sm:$0xff]  ;;  %v3565_v11 = vld [vmem:[%s4771_s1 + $0x10] sm:$0xff]  ;;  %s3958_s28 = scalar_lea.vmem %s4770_s0, %s3849_s21  ;;  %s4631_s13 = scalar_lea.vmem %s4774_s4, %s2916_s10 }
   0xf   : > { %v3572_v12 = vld [vmem:[%s4771_s1 + $0x48] sm:$0xff]  ;;  %v3571_v14 = vld [vmem:[%s4771_s1 + $0x40] sm:$0xff]  ;;  %v3586_v24 = vld [vmem:[%s4771_s1 + $0xb8] sm:$0xff]  ;;  %s4681_s15 = scalar_lea.vmem %s4773_s3, %s3561_s6 }
  0x10   : > { %3834 = vmatpush.bf16.msra.mxu2 %v3577_v2  ;;  %426 = vmatpush.bf16.msra.mxu0 %v3577_v2  ;;  %v3564_v13 = vld [vmem:[%s4771_s1 + $0x8] sm:$0xff]  ;;  %v3563_v15 = vld [vmem:[%s4771_s1] sm:$0xff]  ;;  %v3594_v25 = vld [vmem:[%s4771_s1 + $0xf8] sm:$0xff] }
  0x11   : > { %563 = vmatpush.bf16.msra.mxu1 %v3569_v3  ;;  %3842 = vmatpush.bf16.msra.mxu3 %v3569_v3  ;;  %v328_v16 = vld [vmem:[%s3958_s28 + $0xc1] sm:$0xff]  ;;  %v329_v17 = vld [vmem:[%s3958_s28 + $0xc9] sm:$0xff]  ;;  %v3602_v30 = vld [vmem:[%s4771_s1 + $0x138] sm:$0xff] }
  0x12   : > { %v248_v18 = vld [vmem:[%s3958_s28] sm:$0xff]  ;;  %v249_v19 = vld [vmem:[%s3958_s28 + $0x8] sm:$0xff]  ;;  %v3980_v26 = vpack.c.bf16 %v329_v17, %v328_v16  ;;  %v3610_v31 = vld [vmem:[%s4772_s2 + $0x38] sm:$0xff] }
  0x13   : > { %v264_v20 = vld [vmem:[%s3958_s28 + $0xc0] sm:$0xff]  ;;  %v265_v21 = vld [vmem:[%s3958_s28 + $0xc8] sm:$0xff]  ;;  %v280_v27 = vpack.c.bf16 %v249_v19, %v248_v18  ;;  %v3585_v32 = vld [vmem:[%s4771_s1 + $0xb0] sm:$0xff] }
  0x14   : > { %3835 = vmatpush.bf16.msra.mxu2 %v3576_v4  ;;  %427 = vmatpush.bf16.msra.mxu0 %v3576_v4  ;;  %v312_v22 = vld [vmem:[%s3958_s28 + $0x1] sm:$0xff]  ;;  %v313_v23 = vld [vmem:[%s3958_s28 + $0x9] sm:$0xff]  ;;  %v3982_v28 = vpack.c.bf16 %v265_v21, %v264_v20  ;;  %v330_v40 = vld [vmem:[%s3958_s28 + $0xd9] sm:$0xff] }
  0x15   : > { %564 = vmatpush.bf16.msra.mxu1 %v3568_v5  ;;  %3843 = vmatpush.bf16.msra.mxu3 %v3568_v5  ;;  %v344_v29 = vpack.c.bf16 %v313_v23, %v312_v22  ;;  %v3593_v33 = vld [vmem:[%s4771_s1 + $0xf0] sm:$0xff]  ;;  %v3584_v36 = vld [vmem:[%s4771_s1 + $0xa8] sm:$0xff]  ;;  %v250_v42 = vld [vmem:[%s3958_s28 + $0x18] sm:$0xff] }
  0x16   : > { %v3601_v34 = vld [vmem:[%s4771_s1 + $0x130] sm:$0xff]  ;;  %v3592_v37 = vld [vmem:[%s4771_s1 + $0xe8] sm:$0xff]  ;;  %v251_v43 = vld [vmem:[%s3958_s28 + $0x20] sm:$0xff] }
  0x17   : > { %v3609_v35 = vld [vmem:[%s4772_s2 + $0x30] sm:$0xff]  ;;  %v3600_v38 = vld [vmem:[%s4771_s1 + $0x128] sm:$0xff]  ;;  %v266_v44 = vld [vmem:[%s3958_s28 + $0xd8] sm:$0xff]  ;;  %v4026_v49 = vpack.c.bf16 %v251_v43, %v250_v42 }
  0x18   : > { %3836 = vmatpush.bf16.msra.mxu2 %v3575_v6  ;;  %428 = vmatpush.bf16.msra.mxu0 %v3575_v6  ;;  %v3608_v39 = vld [vmem:[%s4772_s2 + $0x28] sm:$0xff]  ;;  %v267_v45 = vld [vmem:[%s3958_s28 + $0xe0] sm:$0xff]  ;;  %v332_v56 = vld [vmem:[%s3958_s28 + $0xf1] sm:$0xff] }
  0x19   : > { %565 = vmatpush.bf16.msra.mxu1 %v3567_v7  ;;  %3844 = vmatpush.bf16.msra.mxu3 %v3567_v7  ;;  %v331_v41 = vld [vmem:[%s3958_s28 + $0xe1] sm:$0xff]  ;;  %v314_v46 = vld [vmem:[%s3958_s28 + $0x19] sm:$0xff]  ;;  %v4028_v50 = vpack.c.bf16 %v267_v45, %v266_v44  ;;  %v252_v58 = vld [vmem:[%s3958_s28 + $0x30] sm:$0xff] }
  0x1a   : > { %v315_v47 = vld [vmem:[%s3958_s28 + $0x21] sm:$0xff]  ;;  %v4024_v48 = vpack.c.bf16 %v331_v41, %v330_v40  ;;  %v333_v57 = vld [vmem:[%s3958_s28 + $0xf9] sm:$0xff]  ;;  %v268_v60 = vld [vmem:[%s3958_s28 + $0xf0] sm:$0xff] }
  0x1b   : > { %v4030_v51 = vpack.c.bf16 %v315_v47, %v314_v46  ;;  %v3583_v52 = vld [vmem:[%s4771_s1 + $0xa0] sm:$0xff]  ;;  %v253_v59 = vld [vmem:[%s3958_s28 + $0x38] sm:$0xff]  ;;  %v354_v0 = vpack.c.bf16 %v333_v57, %v332_v56  ;;  %v3581_v20 = vld [vmem:[%s4771_s1 + $0x90] sm:$0xff] }
  0x1c   : > { %3837 = vmatpush.bf16.msra.mxu2 %v3574_v8  ;;  %429 = vmatpush.bf16.msra.mxu0 %v3574_v8  ;;  %v3591_v53 = vld [vmem:[%s4771_s1 + $0xe0] sm:$0xff]  ;;  %v269_v61 = vld [vmem:[%s3958_s28 + $0xf8] sm:$0xff]  ;;  %v4056_v1 = vpack.c.bf16 %v253_v59, %v252_v58  ;;  %v334_v8 = vld [vmem:[%s3958_s28 + $0x109] sm:$0xff] }
  0x1d   : > { %566 = vmatpush.bf16.msra.mxu1 %v3566_v9  ;;  %3845 = vmatpush.bf16.msra.mxu3 %v3566_v9  ;;  %v3599_v54 = vld [vmem:[%s4771_s1 + $0x120] sm:$0xff]  ;;  %v316_v62 = vld [vmem:[%s3958_s28 + $0x31] sm:$0xff]  ;;  %v4058_v2 = vpack.c.bf16 %v269_v61, %v268_v60  ;;  %v3596_v40 = vld [vmem:[%s4771_s1 + $0x108] sm:$0xff] }
  0x1e   : > { %v3607_v55 = vld [vmem:[%s4772_s2 + $0x20] sm:$0xff]  ;;  %v3582_v4 = vld [vmem:[%s4771_s1 + $0x98] sm:$0xff]  ;;  %v3589_v21 = vld [vmem:[%s4771_s1 + $0xd0] sm:$0xff] }
  0x1f   : > { %v317_v63 = vld [vmem:[%s3958_s28 + $0x39] sm:$0xff]  ;;  %v335_v9 = vld [vmem:[%s3958_s28 + $0x111] sm:$0xff]  ;;  %v3604_v41 = vld [vmem:[%s4772_s2 + $0x8] sm:$0xff] }
  0x20   : > { %3838 = vmatpush.bf16.msra.mxu2 %v3573_v10  ;;  %430 = vmatpush.bf16.msra.mxu0 %v3573_v10  ;;  %v4060_v3 = vpack.c.bf16 %v317_v63, %v316_v62  ;;  %v3590_v5 = vld [vmem:[%s4771_s1 + $0xd8] sm:$0xff]  ;;  %v254_v10 = vld [vmem:[%s3958_s28 + $0x48] sm:$0xff]  ;;  %v355_v16 = vpack.c.bf16 %v335_v9, %v334_v8  ;;  %v3597_v22 = vld [vmem:[%s4771_s1 + $0x110] sm:$0xff] }
  0x21   : > { %567 = vmatpush.bf16.msra.mxu1 %v3565_v11  ;;  %3846 = vmatpush.bf16.msra.mxu3 %v3565_v11  ;;  %v3598_v6 = vld [vmem:[%s4771_s1 + $0x118] sm:$0xff]  ;;  %v255_v11 = vld [vmem:[%s3958_s28 + $0x50] sm:$0xff]  ;;  %v339_v43 = vld [vmem:[%s3958_s28 + $0x141] sm:$0xff] }
  0x22   : > { %v3606_v7 = vld [vmem:[%s4772_s2 + $0x18] sm:$0xff]  ;;  %v4085_v17 = vpack.c.bf16 %v255_v11, %v254_v10  ;;  %v3605_v23 = vld [vmem:[%s4772_s2 + $0x10] sm:$0xff]  ;;  %v259_v45 = vld [vmem:[%s3958_s28 + $0x80] sm:$0xff] }
  0x23   : > { %v338_v42 = vld [vmem:[%s3958_s28 + $0x139] sm:$0xff]  ;;  %v340_v62 = vld [vmem:[%s3958_s28 + $0x151] sm:$0xff] }
  0x24   : > { %3839 = vmatpush.bf16.msra.mxu2 %v3572_v12  ;;  %431 = vmatpush.bf16.msra.mxu0 %v3572_v12  ;;  %v270_v12 = vld [vmem:[%s3958_s28 + $0x108] sm:$0xff]  ;;  %v258_v44 = vld [vmem:[%s3958_s28 + $0x78] sm:$0xff]  ;;  %v275_v47 = vld [vmem:[%s3958_s28 + $0x140] sm:$0xff] }
  0x25   : > { %568 = vmatpush.bf16.msra.mxu1 %v3564_v13  ;;  %3847 = vmatpush.bf16.msra.mxu3 %v3564_v13  ;;  %v271_v13 = vld [vmem:[%s3958_s28 + $0x110] sm:$0xff]  ;;  %v274_v46 = vld [vmem:[%s3958_s28 + $0x138] sm:$0xff]  ;;  %v3579_v58 = vld [vmem:[%s4771_s1 + $0x80] sm:$0xff] }
  0x26   : > { %v4087_v18 = vpack.c.bf16 %v271_v13, %v270_v12  ;;  %v293_v56 = vpack.c.bf16 %v275_v47, %v274_v46  ;;  %v3587_v59 = vld [vmem:[%s4771_s1 + $0xc0] sm:$0xff]  ;;  %v3618_v13 = vld [vmem:[%s4771_s1 + $0x178] sm:$0xff] }
  0x27   : > { %v3595_v60 = vld [vmem:[%s4771_s1 + $0x100] sm:$0xff] }
  0x28   : > { %3840 = vmatpush.bf16.msra.mxu2 %v3571_v14  ;;  %432 = vmatpush.bf16.msra.mxu0 %v3571_v14  ;;  %v318_v14 = vld [vmem:[%s3958_s28 + $0x49] sm:$0xff]  ;;  %v3603_v61 = vld [vmem:[%s4772_s2] sm:$0xff] }
  0x29   : > { %569 = vmatpush.bf16.msra.mxu1 %v3563_v15  ;;  %3848 = vmatpush.bf16.msra.mxu3 %v3563_v15  ;;  %v319_v15 = vld [vmem:[%s3958_s28 + $0x51] sm:$0xff]  ;;  %v341_v63 = vld [vmem:[%s3958_s28 + $0x159] sm:$0xff] }
  0x2a   : > { %v4089_v19 = vpack.c.bf16 %v319_v15, %v318_v14  ;;  %v325_v8 = vld [vmem:[%s3958_s28 + $0x99] sm:$0xff]  ;;  %v358_v9 = vpack.c.bf16 %v341_v63, %v340_v62  ;;  %v3641_v62 = vld [vmem:[%s4771_s1 + $0x230] sm:$0xff] }
  0x2b   : > { %473 = vmatmul.bf16.vlgmr.msra.gmra.mxu2 %v3980_v26  ;;  %433 = vmatmul.bf16.vlgmr.msra.gmra.mxu0 %v344_v29  ;;  %v257_v29 = vld [vmem:[%s3958_s28 + $0x68] sm:$0xff]  ;;  %v3626_v14 = vld [vmem:[%s4771_s1 + $0x1b8] sm:$0xff] }
  0x2c   : > { %764 = vmatpush.bf16.msrb.mxu2 %v3586_v24  ;;  %570 = vmatmul.bf16.vlgmr.msra.gmra.mxu1 %v280_v27  ;;  %v336_v24 = vld [vmem:[%s3958_s28 + $0x121] sm:$0xff]  ;;  %v3634_v15 = vld [vmem:[%s4771_s1 + $0x1f8] sm:$0xff] }
  0x2d   : > { %999 = vmatpush.bf16.msrb.mxu3 %v3594_v25  ;;  %1233 = vmatpush.bf16.msrb.mxu0 %v3602_v30  ;;  %v337_v25 = vld [vmem:[%s3958_s28 + $0x129] sm:$0xff]  ;;  %v256_v27 = vld [vmem:[%s3958_s28 + $0x60] sm:$0xff] }
  0x2e   : > { %610 = vmatmul.bf16.vlgmr.msra.gmra.mxu3 %v3982_v28  ;;  %1418 = vmatpush.bf16.msrb.mxu1 %v3610_v31  ;;  %v272_v30 = vld [vmem:[%s3958_s28 + $0x120] sm:$0xff]  ;;  %v273_v31 = vld [vmem:[%s3958_s28 + $0x128] sm:$0xff] }
  0x30   : > { %765 = vmatpush.bf16.msrb.mxu2 %v3585_v32  ;;  %v320_v32 = vld [vmem:[%s3958_s28 + $0x61] sm:$0xff] }
  0x31   : > { %1000 = vmatpush.bf16.msrb.mxu3 %v3593_v33  ;;  %1234 = vmatpush.bf16.msrb.mxu0 %v3601_v34  ;;  %v321_v33 = vld [vmem:[%s3958_s28 + $0x69] sm:$0xff]  ;;  %v356_v34 = vpack.c.bf16 %v337_v25, %v336_v24 }
  0x32   : > { %1419 = vmatpush.bf16.msrb.mxu1 %v3609_v35  ;;  %v4114_v35 = vpack.c.bf16 %v257_v29, %v256_v27  ;;  %v279_v24 = vld [vmem:[%s3958_s28 + $0x170] sm:$0xff] }
  0x33   : > { %v326_v25 = vld [vmem:[%s3958_s28 + $0xa9] sm:$0xff]  ;;  %v327_v27 = vld [vmem:[%s3958_s28 + $0xb1] sm:$0xff] }
  0x34   : > { %766 = vmatpush.bf16.msrb.mxu2 %v3584_v36  ;;  %v292_v36 = vpack.c.bf16 %v273_v31, %v272_v30 }
  0x35   : > { %1001 = vmatpush.bf16.msrb.mxu3 %v3592_v37  ;;  %1235 = vmatpush.bf16.msrb.mxu0 %v3600_v38  ;;  %v4116_v37 = vpack.c.bf16 %v321_v33, %v320_v32  ;;  %v3580_v38 = vld [vmem:[%s4771_s1 + $0x88] sm:$0xff]  ;;  %v4191_v32 = vpack.c.bf16 %v327_v27, %v326_v25  ;;  %v3642_v33 = vld [vmem:[%s4771_s1 + $0x238] sm:$0xff] }
  0x36   : > { %1420 = vmatpush.bf16.msrb.mxu1 %v3608_v39  ;;  %v3588_v39 = vld [vmem:[%s4771_s1 + $0xc8] sm:$0xff] }
  0x38   : > { %767 = vmatpush.bf16.msrb.mxu2 %v3583_v52  ;;  %v322_v52 = vld [vmem:[%s3958_s28 + $0x79] sm:$0xff] }
  0x39   : > { %1002 = vmatpush.bf16.msrb.mxu3 %v3591_v53  ;;  %1236 = vmatpush.bf16.msrb.mxu0 %v3599_v54  ;;  %v323_v53 = vld [vmem:[%s3958_s28 + $0x81] sm:$0xff]  ;;  %v357_v54 = vpack.c.bf16 %v339_v43, %v338_v42  ;;  %v3617_v42 = vld [vmem:[%s4771_s1 + $0x170] sm:$0xff] }
  0x3a   : > { %1421 = vmatpush.bf16.msrb.mxu1 %v3607_v55  ;;  %v4140_v55 = vpack.c.bf16 %v259_v45, %v258_v44  ;;  %v4142_v57 = vpack.c.bf16 %v323_v53, %v322_v52  ;;  %v3625_v43 = vld [vmem:[%s4771_s1 + $0x1b0] sm:$0xff] }
  0x3b   : > { %478 = vmatmul.bf16.gmra.mxu2 %v4024_v48  ;;  %438 = vmatmul.bf16.gmra.mxu0 %v4030_v51 }
  0x3c   : > { %575 = vmatmul.bf16.gmra.mxu1 %v4026_v49  ;;  %768 = vmatpush.bf16.msrb.mxu2 %v3582_v4  ;;  %v261_v4 = vld [vmem:[%s3958_s28 + $0x98] sm:$0xff] }
  0x3d   : > { %1003 = vmatpush.bf16.msrb.mxu3 %v3590_v5  ;;  %1237 = vmatpush.bf16.msrb.mxu0 %v3598_v6  ;;  %v276_v5 = vld [vmem:[%s3958_s28 + $0x150] sm:$0xff]  ;;  %v277_v6 = vld [vmem:[%s3958_s28 + $0x158] sm:$0xff] }
  0x3e   : > { %615 = vmatmul.bf16.gmra.mxu3 %v4028_v50  ;;  %1422 = vmatpush.bf16.msrb.mxu1 %v3606_v7  ;;  %v324_v7 = vld [vmem:[%s3958_s28 + $0x91] sm:$0xff]  ;;  %v294_v11 = vpack.c.bf16 %v277_v6, %v276_v5 }
  0x3f   : > { %v4168_v12 = vpack.c.bf16 %v325_v8, %v324_v7 }
  0x40   : > { %769 = vmatpush.bf16.msrb.mxu2 %v3581_v20  ;;  %v343_v20 = vld [vmem:[%s3958_s28 + $0x171] sm:$0xff] }
  0x41   : > { %1004 = vmatpush.bf16.msrb.mxu3 %v3589_v21  ;;  %1238 = vmatpush.bf16.msrb.mxu0 %v3597_v22  ;;  %v262_v21 = vld [vmem:[%s3958_s28 + $0xa8] sm:$0xff]  ;;  %v263_v22 = vld [vmem:[%s3958_s28 + $0xb0] sm:$0xff] }
  0x42   : > { %1423 = vmatpush.bf16.msrb.mxu1 %v3605_v23  ;;  %v278_v23 = vld [vmem:[%s3958_s28 + $0x168] sm:$0xff]  ;;  %v4189_v30 = vpack.c.bf16 %v263_v22, %v262_v21 }
  0x43   : > { %v295_v31 = vpack.c.bf16 %v279_v24, %v278_v23  ;;  %v3624_v23 = vld [vmem:[%s4771_s1 + $0x1a8] sm:$0xff] }
  0x44   : > { %770 = vmatpush.bf16.msrb.mxu2 %v3580_v38 }
  0x45   : > { %1005 = vmatpush.bf16.msrb.mxu3 %v3588_v39  ;;  %1239 = vmatpush.bf16.msrb.mxu0 %v3596_v40 }
  0x46   : > { %1424 = vmatpush.bf16.msrb.mxu1 %v3604_v41 }
  0x48   : > { %771 = vmatpush.bf16.msrb.mxu2 %v3579_v58 }
  0x49   : > { %1006 = vmatpush.bf16.msrb.mxu3 %v3587_v59  ;;  %1240 = vmatpush.bf16.msrb.mxu0 %v3595_v60 }
  0x4a   : > { %1425 = vmatpush.bf16.msrb.mxu1 %v3603_v61 }
  0x4b   : > { %483 = vmatmul.bf16.gmra.mxu2 %v354_v0  ;;  %443 = vmatmul.bf16.gmra.mxu0 %v4060_v3  ;;  %v260_v0 = vld [vmem:[%s3958_s28 + $0x90] sm:$0xff] }
  0x4c   : > { %580 = vmatmul.bf16.gmra.mxu1 %v4056_v1  ;;  %v4166_v10 = vpack.c.bf16 %v261_v4, %v260_v0  ;;  %1620 = vmatpush.bf16.msra.mxu2 %v3618_v13  ;;  %v656_v13 = vld [vmem:[%s3958_s28 + $0x3a] sm:$0xff] }
  0x4d   : > { %1855 = vmatpush.bf16.msra.mxu3 %v3626_v14  ;;  %2089 = vmatpush.bf16.msra.mxu0 %v3634_v15 }
  0x4e   : > { %620 = vmatmul.bf16.gmra.mxu3 %v4058_v2  ;;  %2323 = vmatpush.bf16.msra.mxu1 %v3642_v33 }
  0x50   : > { %1621 = vmatpush.bf16.msra.mxu2 %v3617_v42 }
  0x51   : > { %1856 = vmatpush.bf16.msra.mxu3 %v3625_v43  ;;  %v3640_v43 = vld [vmem:[%s4771_s1 + $0x228] sm:$0xff] }
  0x52   : > { %2324 = vmatpush.bf16.msra.mxu1 %v3641_v62 }
  0x55   : > { %1857 = vmatpush.bf16.msra.mxu3 %v3624_v23 }
  0x56   : > { %2325 = vmatpush.bf16.msra.mxu1 %v3640_v43 }
  0x5b   : > { %488 = vmatmul.bf16.gmra.mxu2 %v355_v16  ;;  %448 = vmatmul.bf16.gmra.mxu0 %v4089_v19  ;;  %v342_v16 = vld [vmem:[%s3958_s28 + $0x169] sm:$0xff] }
  0x5c   : > { %585 = vmatmul.bf16.gmra.mxu1 %v4085_v17  ;;  %v359_v29 = vpack.c.bf16 %v343_v20, %v342_v16 }
  0x5e   : > { %625 = vmatmul.bf16.gmra.mxu3 %v4087_v18 }
  0x6b   : > { %493 = vmatmul.bf16.gmra.mxu2 %v356_v34  ;;  %453 = vmatmul.bf16.gmra.mxu0 %v4116_v37  ;;  %v651_v34 = vld [vmem:[%s3958_s28 + $0x2] sm:$0xff] }
  0x6c   : > { %590 = vmatmul.bf16.gmra.mxu1 %v4114_v35 }
  0x6e   : > { %630 = vmatmul.bf16.gmra.mxu3 %v292_v36  ;;  %v652_v36 = vld [vmem:[%s3958_s28 + $0xa] sm:$0xff] }
  0x6f   : > { %v683_v38 = vpack.c.bf16 %v652_v36, %v651_v34  ;;  %v658_v34 = vld [vmem:[%s3958_s28 + $0x52] sm:$0xff] }
  0x7b   : > { %498 = vmatmul.bf16.gmra.mxu2 %v357_v54  ;;  %458 = vmatmul.bf16.gmra.mxu0 %v4142_v57  ;;  %v654_v54 = vld [vmem:[%s3958_s28 + $0x22] sm:$0xff] }
  0x7c   : > { %595 = vmatmul.bf16.gmra.mxu1 %v4140_v55 }
  0x7e   : > { %635 = vmatmul.bf16.gmra.mxu3 %v293_v56 }
  0x8b   : > { %503 = vmatmul.bf16.gmra.mxu2 %v358_v9  ;;  %463 = vmatmul.bf16.gmra.mxu0 %v4168_v12 }
  0x8c   : > { %600 = vmatmul.bf16.gmra.mxu1 %v4166_v10 }
  0x8e   : > { %640 = vmatmul.bf16.gmra.mxu3 %v294_v11  ;;  %v655_v11 = vld [vmem:[%s3958_s28 + $0x32] sm:$0xff] }
  0x8f   : > { %v685_v16 = vpack.c.bf16 %v656_v13, %v655_v11 }
  0x9b   : > { %508 = vmatmul.bf16.gmra.mxu2 %v359_v29  ;;  %468 = vmatmul.bf16.gmra.mxu0 %v4191_v32 }
  0x9c   : > { %605 = vmatmul.bf16.gmra.mxu1 %v4189_v30 }
  0x9e   : > { %645 = vmatmul.bf16.gmra.mxu3 %v295_v31 }
  0xa8   : > { %v434_v40 = vpop.f32.mrf.mxu0 }
  0xa9   : > { %v571_v39 = vpop.f32.mrf.mxu1 }
  0xaa   : > { %v4200_v41 = vadd.f32 %v571_v39, %v434_v40 }
  0xab   : > { %772 = vmatmul.bf16.vlgmr.msrb.gmra.mxu2 %v683_v38  ;;  %1241 = vmatmul.bf16.vlgmr.msrb.gmra.mxu0 %v4030_v51 }
  0xac   : > { %1426 = vmatmul.bf16.vlgmr.msrb.gmra.mxu1 %v4030_v51  ;;  %v653_v51 = vld [vmem:[%s3958_s28 + $0x1a] sm:$0xff] }
  0xad   : > { %v684_v59 = vpack.c.bf16 %v654_v54, %v653_v51 }
  0xae   : > { %1007 = vmatmul.bf16.vlgmr.msrb.gmra.mxu3 %v4026_v49  ;;  %v474_v44 = vpop.f32.mrf.mxu2  ;;  %v3633_v49 = vld [vmem:[%s4771_s1 + $0x1f0] sm:$0xff] }
  0xaf   : > { %2090 = vmatpush.bf16.msra.mxu0 %v3633_v49 }
  0xb0   : > { %v436_v52 = vpop.f32.mrf.mxu0 }
  0xb1   : > { %v611_v45 = vpop.f32.mrf.mxu3  ;;  %v573_v47 = vpop.f32.mrf.mxu1 }
  0xb2   : > { %v4211_v46 = vadd.f32 %v611_v45, %v474_v44  ;;  %v4213_v53 = vadd.f32 %v573_v47, %v436_v52 }
  0xb6   : > { %v476_v56 = vpop.f32.mrf.mxu2 }
  0xb8   : > { %v439_v63 = vpop.f32.mrf.mxu0 }
  0xb9   : > { %v613_v58 = vpop.f32.mrf.mxu3  ;;  %v576_v61 = vpop.f32.mrf.mxu1 }
  0xba   : > { %v4220_v60 = vadd.f32 %v613_v58, %v476_v56  ;;  %v4225_v0 = vadd.f32 %v576_v61, %v439_v63  ;;  %v659_v58 = vld [vmem:[%s3958_s28 + $0x62] sm:$0xff] }
  0xbb   : > { %777 = vmatmul.bf16.gmra.mxu2 %v684_v59  ;;  %1246 = vmatmul.bf16.gmra.mxu0 %v4060_v3  ;;  %v660_v59 = vld [vmem:[%s3958_s28 + $0x6a] sm:$0xff] }
  0xbc   : > { %1431 = vmatmul.bf16.gmra.mxu1 %v4060_v3  ;;  %v3616_v3 = vld [vmem:[%s4771_s1 + $0x168] sm:$0xff]  ;;  %v687_v63 = vpack.c.bf16 %v660_v59, %v659_v58 }
  0xbd   : > { %1622 = vmatpush.bf16.msra.mxu2 %v3616_v3 }
  0xbe   : > { %1012 = vmatmul.bf16.gmra.mxu3 %v4056_v1  ;;  %v479_v4 = vpop.f32.mrf.mxu2 }
  0xc0   : > { %v441_v8 = vpop.f32.mrf.mxu0 }
  0xc1   : > { %v616_v5 = vpop.f32.mrf.mxu3  ;;  %v578_v7 = vpop.f32.mrf.mxu1 }
  0xc2   : > { %v4230_v6 = vadd.f32 %v616_v5, %v479_v4  ;;  %v4232_v9 = vadd.f32 %v578_v7, %v441_v8  ;;  %v3623_v8 = vld [vmem:[%s4771_s1 + $0x1a0] sm:$0xff] }
  0xc3   : > { %1858 = vmatpush.bf16.msra.mxu3 %v3623_v8 }
  0xc6   : > { %v481_v14 = vpop.f32.mrf.mxu2 }
  0xc8   : > { %v444_v22 = vpop.f32.mrf.mxu0 }
  0xc9   : > { %v618_v15 = vpop.f32.mrf.mxu3  ;;  %v581_v21 = vpop.f32.mrf.mxu1 }
  0xca   : > { %v4236_v20 = vadd.f32 %v618_v15, %v481_v14  ;;  %v4238_v1 = vadd.f32 %v581_v21, %v444_v22  ;;  %v662_v22 = vld [vmem:[%s3958_s28 + $0x82] sm:$0xff] }
  0xcb   : > { %782 = vmatmul.bf16.gmra.mxu2 %v685_v16  ;;  %1251 = vmatmul.bf16.gmra.mxu0 %v4089_v19 }
  0xcc   : > { %1436 = vmatmul.bf16.gmra.mxu1 %v4089_v19  ;;  %v657_v19 = vld [vmem:[%s3958_s28 + $0x4a] sm:$0xff] }
  0xcd   : > { %v686_v39 = vpack.c.bf16 %v658_v34, %v657_v19 }
  0xce   : > { %1017 = vmatmul.bf16.gmra.mxu3 %v4085_v17  ;;  %v484_v24 = vpop.f32.mrf.mxu2  ;;  %v3632_v17 = vld [vmem:[%s4771_s1 + $0x1e8] sm:$0xff] }
  0xcf   : > { %2091 = vmatpush.bf16.msra.mxu0 %v3632_v17 }
  0xd0   : > { %v446_v31 = vpop.f32.mrf.mxu0 }
  0xd1   : > { %v621_v25 = vpop.f32.mrf.mxu3  ;;  %v583_v29 = vpop.f32.mrf.mxu1 }
  0xd2   : > { %v4249_v27 = vadd.f32 %v621_v25, %v484_v24  ;;  %v4251_v33 = vadd.f32 %v583_v29, %v446_v31  ;;  %v3639_v31 = vld [vmem:[%s4771_s1 + $0x220] sm:$0xff] }
  0xd3   : > { %2326 = vmatpush.bf16.msra.mxu1 %v3639_v31 }
  0xd6   : > { %v486_v36 = vpop.f32.mrf.mxu2 }
  0xd8   : > { %v449_v44 = vpop.f32.mrf.mxu0 }
  0xd9   : > { %v623_v38 = vpop.f32.mrf.mxu3  ;;  %v586_v42 = vpop.f32.mrf.mxu1 }
  0xda   : > { %v4258_v40 = vadd.f32 %v623_v38, %v486_v36  ;;  %v4263_v45 = vadd.f32 %v586_v42, %v449_v44  ;;  %v663_v44 = vld [vmem:[%s3958_s28 + $0x92] sm:$0xff] }
  0xdb   : > { %787 = vmatmul.bf16.gmra.mxu2 %v686_v39  ;;  %1256 = vmatmul.bf16.gmra.mxu0 %v4116_v37 }
  0xdc   : > { %1441 = vmatmul.bf16.gmra.mxu1 %v4116_v37  ;;  %v3615_v37 = vld [vmem:[%s4771_s1 + $0x160] sm:$0xff] }
  0xdd   : > { %1623 = vmatpush.bf16.msra.mxu2 %v3615_v37 }
  0xde   : > { %1022 = vmatmul.bf16.gmra.mxu3 %v4114_v35  ;;  %v489_v47 = vpop.f32.mrf.mxu2 }
  0xe0   : > { %v451_v54 = vpop.f32.mrf.mxu0 }
  0xe1   : > { %v626_v52 = vpop.f32.mrf.mxu3  ;;  %v588_v51 = vpop.f32.mrf.mxu1 }
  0xe2   : > { %v4268_v49 = vadd.f32 %v626_v52, %v489_v47  ;;  %v4270_v56 = vadd.f32 %v588_v51, %v451_v54  ;;  %v664_v47 = vld [vmem:[%s3958_s28 + $0x9a] sm:$0xff] }
  0xe3   : > { %v689_v54 = vpack.c.bf16 %v664_v47, %v663_v44  ;;  %v668_v44 = vld [vmem:[%s3958_s28 + $0xca] sm:$0xff] }
  0xe6   : > { %v491_v61 = vpop.f32.mrf.mxu2 }
  0xe8   : > { %v454_v7 = vpop.f32.mrf.mxu0 }
  0xe9   : > { %v628_v62 = vpop.f32.mrf.mxu3  ;;  %v591_v5 = vpop.f32.mrf.mxu1 }
  0xea   : > { %v4274_v4 = vadd.f32 %v628_v62, %v491_v61  ;;  %v4276_v35 = vadd.f32 %v591_v5, %v454_v7  ;;  %v3622_v62 = vld [vmem:[%s4771_s1 + $0x198] sm:$0xff] }
  0xeb   : > { %792 = vmatmul.bf16.gmra.mxu2 %v687_v63  ;;  %1261 = vmatmul.bf16.gmra.mxu0 %v4142_v57 }
  0xec   : > { %1446 = vmatmul.bf16.gmra.mxu1 %v4142_v57  ;;  %v661_v57 = vld [vmem:[%s3958_s28 + $0x7a] sm:$0xff]  ;;  %1859 = vmatpush.bf16.msra.mxu3 %v3622_v62 }
  0xed   : > { %v688_v24 = vpack.c.bf16 %v662_v22, %v661_v57 }
  0xee   : > { %1027 = vmatmul.bf16.gmra.mxu3 %v4140_v55  ;;  %v494_v11 = vpop.f32.mrf.mxu2  ;;  %v3631_v55 = vld [vmem:[%s4771_s1 + $0x1e0] sm:$0xff] }
  0xef   : > { %2092 = vmatpush.bf16.msra.mxu0 %v3631_v55 }
  0xf0   : > { %v456_v16 = vpop.f32.mrf.mxu0 }
  0xf1   : > { %v631_v13 = vpop.f32.mrf.mxu3  ;;  %v593_v15 = vpop.f32.mrf.mxu1 }
  0xf2   : > { %v4287_v14 = vadd.f32 %v631_v13, %v494_v11  ;;  %v4289_v21 = vadd.f32 %v593_v15, %v456_v16  ;;  %v666_v13 = vld [vmem:[%s3958_s28 + $0xb2] sm:$0xff] }
  0xf6   : > { %v496_v3 = vpop.f32.mrf.mxu2 }
  0xf8   : > { %v459_v17 = vpop.f32.mrf.mxu0 }
  0xf9   : > { %v633_v23 = vpop.f32.mrf.mxu3  ;;  %v596_v29 = vpop.f32.mrf.mxu1 }
  0xfa   : > { %v4296_v25 = vadd.f32 %v633_v23, %v496_v3  ;;  %v4301_v19 = vadd.f32 %v596_v29, %v459_v17  ;;  %v3638_v23 = vld [vmem:[%s4771_s1 + $0x218] sm:$0xff] }
  0xfb   : > { %797 = vmatmul.bf16.gmra.mxu2 %v688_v24  ;;  %1266 = vmatmul.bf16.gmra.mxu0 %v4168_v12 }
  0xfc   : > { %1451 = vmatmul.bf16.gmra.mxu1 %v4168_v12  ;;  %v3614_v12 = vld [vmem:[%s4771_s1 + $0x158] sm:$0xff] }
  0xfd   : > { %1624 = vmatpush.bf16.msra.mxu2 %v3614_v12  ;;  %2327 = vmatpush.bf16.msra.mxu1 %v3638_v23 }
  0xfe   : > { %1032 = vmatmul.bf16.gmra.mxu3 %v4166_v10  ;;  %v499_v34 = vpop.f32.mrf.mxu2 }
 0x100   : > { %v461_v42 = vpop.f32.mrf.mxu0 }
 0x101   : > { %v636_v36 = vpop.f32.mrf.mxu3  ;;  %v598_v39 = vpop.f32.mrf.mxu1 }
 0x102   : > { %v4306_v38 = vadd.f32 %v636_v36, %v499_v34  ;;  %v4308_v43 = vadd.f32 %v598_v39, %v461_v42  ;;  %v667_v42 = vld [vmem:[%s3958_s28 + $0xc2] sm:$0xff] }
 0x106   : > { %v501_v52 = vpop.f32.mrf.mxu2 }
 0x108   : > { %v464_v61 = vpop.f32.mrf.mxu0 }
 0x109   : > { %v638_v51 = vpop.f32.mrf.mxu3  ;;  %v601_v59 = vpop.f32.mrf.mxu1 }
 0x10a   : > { %v4312_v58 = vadd.f32 %v638_v51, %v501_v52  ;;  %v4314_v10 = vadd.f32 %v601_v59, %v464_v61  ;;  %v691_v51 = vpack.c.bf16 %v668_v44, %v667_v42  ;;  %v3613_v59 = vld [vmem:[%s4771_s1 + $0x150] sm:$0xff] }
 0x10b   : > { %802 = vmatmul.bf16.gmra.mxu2 %v689_v54  ;;  %1271 = vmatmul.bf16.gmra.mxu0 %v4191_v32  ;;  %v3621_v61 = vld [vmem:[%s4771_s1 + $0x190] sm:$0xff] }
 0x10c   : > { %1456 = vmatmul.bf16.gmra.mxu1 %v4191_v32  ;;  %v665_v32 = vld [vmem:[%s3958_s28 + $0xaa] sm:$0xff]  ;;  %1625 = vmatpush.bf16.msra.mxu2 %v3613_v59 }
 0x10d   : > { %v690_v55 = vpack.c.bf16 %v666_v13, %v665_v32  ;;  %1860 = vmatpush.bf16.msra.mxu3 %v3621_v61 }
 0x10e   : > { %1037 = vmatmul.bf16.gmra.mxu3 %v4189_v30  ;;  %v504_v63 = vpop.f32.mrf.mxu2  ;;  %v3630_v30 = vld [vmem:[%s4771_s1 + $0x1d8] sm:$0xff] }
 0x10f   : > { %2093 = vmatpush.bf16.msra.mxu0 %v3630_v30 }
 0x110   : > { %v466_v8 = vpop.f32.mrf.mxu0 }
 0x111   : > { %v641_v5 = vpop.f32.mrf.mxu3  ;;  %v603_v37 = vpop.f32.mrf.mxu1 }
 0x112   : > { %v4325_v7 = vadd.f32 %v641_v5, %v504_v63  ;;  %v4327_v11 = vadd.f32 %v603_v37, %v466_v8 }
 0x116   : > { %v506_v15 = vpop.f32.mrf.mxu2 }
 0x118   : > { %v469_v3 = vpop.f32.mrf.mxu0 }
 0x119   : > { %v643_v16 = vpop.f32.mrf.mxu3  ;;  %v606_v22 = vpop.f32.mrf.mxu1 }
 0x11a   : > { %v4334_v57 = vadd.f32 %v643_v16, %v506_v15  ;;  %v4339_v24 = vadd.f32 %v606_v22, %v469_v3  ;;  %v669_v15 = vld [vmem:[%s3958_s28 + $0xda] sm:$0xff]  ;;  %v3145_v22 = vld [vmem:[%s3958_s28 + $0xf1] sm:$0xff] }
 0x11b   : > { %807 = vmatmul.bf16.gmra.mxu2 %v690_v55  ;;  %1276 = vmatmul.bf16.gmra.mxu0 %v3980_v26  ;;  %v670_v55 = vld [vmem:[%s3958_s28 + $0xe2] sm:$0xff]  ;;  %v3146_v3 = vld [vmem:[%s3958_s28 + $0xf9] sm:$0xff] }
 0x11c   : > { %1461 = vmatmul.bf16.gmra.mxu1 %v3980_v26 }
 0x11e   : > { %1042 = vmatmul.bf16.gmra.mxu3 %v3982_v28  ;;  %v509_v29 = vpop.f32.mrf.mxu2 }
 0x120   : > { %v471_v36 = vpop.f32.mrf.mxu0 }
 0x121   : > { %v646_v31 = vpop.f32.mrf.mxu3  ;;  %v608_v34 = vpop.f32.mrf.mxu1 }
 0x122   : > { %v4344_v17 = vadd.f32 %v646_v31, %v509_v29  ;;  %v4346_v39 = vadd.f32 %v608_v34, %v471_v36  ;;  %v692_v34 = vpack.c.bf16 %v670_v55, %v669_v15  ;;  %v1161_v36 = vpack.c.bf16 %v3146_v3, %v3145_v22  ;;  %v3148_v15 = vld [vmem:[%s3958_s28 + $0x111] sm:$0xff] }
 0x126   : > { %v511_v47 = vpop.f32.mrf.mxu2 }
 0x128   : > { %v1242_v26 = vpop.f32.mrf.mxu0 }
 0x129   : > { %v648_v52 = vpop.f32.mrf.mxu3  ;;  %v1427_v28 = vpop.f32.mrf.mxu1 }
 0x12a   : > { %v4350_v54 = vadd.f32 %v648_v52, %v511_v47  ;;  %v2718_v62 = vmul.f32 %v1427_v28, %v1427_v28 }
 0x12b   : > { %812 = vmatmul.bf16.gmra.mxu2 %v691_v51  ;;  %1281 = vmatmul.bf16.gmra.mxu0 %v4024_v48 }
 0x12c   : > { %1466 = vmatmul.bf16.gmra.mxu1 %v4024_v48 }
 0x12e   : > { %1047 = vmatmul.bf16.gmra.mxu3 %v4028_v50  ;;  %v773_v12 = vpop.f32.mrf.mxu2 }
 0x12f   : > { %v853_v50 = vadd.f32 %v773_v12, %v4200_v41  ;;  %v3629_v41 = vld [vmem:[%s4771_s1 + $0x1d0] sm:$0xff] }
 0x130   : > { %v1244_v30 = vpop.f32.mrf.mxu0  ;;  %2094 = vmatpush.bf16.msra.mxu0 %v3629_v41 }
 0x131   : > { %v1008_v48 = vpop.f32.mrf.mxu3  ;;  %v1429_v63 = vpop.f32.mrf.mxu1 }
 0x132   : > { %v1088_v5 = vadd.f32 %v1008_v48, %v853_v50  ;;  %v3726_v37 = vpack.c.bf16 %v1429_v63, %v1427_v28  ;;  %v2719_v8 = vmul.f32 %v1429_v63, %v1429_v63  ;;  %v2680_v32 = vadd.f32 %v1429_v63, %v1427_v28  ;;  %v3637_v28 = vld [vmem:[%s4771_s1 + $0x210] sm:$0xff] }
 0x133   : > { %2328 = vmatpush.bf16.msra.mxu1 %v3637_v28 }
 0x134   : > { %3727 = vst [vmem:[%s4368_s9] sm:$0xff] %v3726_v37   ;;  %v2750_v13 = vadd.f32 %v2719_v8, %v2718_v62  ;;  %v4375_v16 = vadd.f32 %v1242_v26, %v1088_v5 }
 0x136   : > { %v775_v23 = vpop.f32.mrf.mxu2 }
 0x137   : > { %v854_v29 = vadd.f32 %v775_v23, %v4213_v53 }
 0x138   : > { %v1247_v51 = vpop.f32.mrf.mxu0 }
 0x139   : > { %v1010_v31 = vpop.f32.mrf.mxu3  ;;  %v1432_v42 = vpop.f32.mrf.mxu1 }
 0x13a   : > { %v1089_v44 = vadd.f32 %v1010_v31, %v854_v29  ;;  %v2681_v47 = vadd.f32 %v2680_v32, %v1432_v42  ;;  %v2720_v52 = vmul.f32 %v1432_v42, %v1432_v42 }
 0x13b   : > { %817 = vmatmul.bf16.gmra.mxu2 %v692_v34  ;;  %1286 = vmatmul.bf16.gmra.mxu0 %v1161_v36 }
 0x13c   : > { %v2751_v26 = vadd.f32 %v2750_v13, %v2720_v52  ;;  %1471 = vmatmul.bf16.gmra.mxu1 %v1161_v36  ;;  %v4384_v59 = vadd.f32 %v1244_v30, %v1089_v44  ;;  %v671_v30 = vld [vmem:[%s3958_s28 + $0xf2] sm:$0xff]  ;;  %v3147_v13 = vld [vmem:[%s3958_s28 + $0x109] sm:$0xff] }
 0x13d   : > { %v1162_v3 = vpack.c.bf16 %v3148_v15, %v3147_v13  ;;  %v3612_v44 = vld [vmem:[%s4771_s1 + $0x148] sm:$0xff] }
 0x13e   : > { %1052 = vmatmul.bf16.gmra.mxu3 %v4058_v2  ;;  %v778_v53 = vpop.f32.mrf.mxu2  ;;  %v672_v2 = vld [vmem:[%s3958_s28 + $0xfa] sm:$0xff]  ;;  %1626 = vmatpush.bf16.msra.mxu2 %v3612_v44 }
 0x13f   : > { %v855_v61 = vadd.f32 %v778_v53, %v4225_v0  ;;  %v693_v0 = vpack.c.bf16 %v672_v2, %v671_v30  ;;  %v3069_v30 = vld [vmem:[%s3958_s28 + $0x120] sm:$0xff]  ;;  %v3070_v2 = vld [vmem:[%s3958_s28 + $0x128] sm:$0xff] }
 0x140   : > { %v1249_v5 = vpop.f32.mrf.mxu0 }
 0x141   : > { %v1013_v12 = vpop.f32.mrf.mxu3  ;;  %v1434_v62 = vpop.f32.mrf.mxu1 }
 0x142   : > { %v1090_v50 = vadd.f32 %v1013_v12, %v855_v61  ;;  %v3731_v48 = vpack.c.bf16 %v1434_v62, %v1432_v42  ;;  %v2721_v63 = vmul.f32 %v1434_v62, %v1434_v62  ;;  %v2682_v37 = vadd.f32 %v2681_v47, %v1434_v62 }
 0x144   : > { %3818 = vst [vmem:[%s4368_s9 + $0x8] sm:$0xff] %v3731_v48   ;;  %v2752_v8 = vadd.f32 %v2751_v26, %v2721_v63  ;;  %v4390_v32 = vadd.f32 %v1247_v51, %v1090_v50  ;;  %v673_v48 = vld [vmem:[%s3958_s28 + $0x10a] sm:$0xff] }
 0x145   : > { %v3628_v63 = vld [vmem:[%s4771_s1 + $0x1c8] sm:$0xff] }
 0x146   : > { %v780_v41 = vpop.f32.mrf.mxu2  ;;  %2095 = vmatpush.bf16.msra.mxu0 %v3628_v63  ;;  %v3151_v63 = vld [vmem:[%s3958_s28 + $0x139] sm:$0xff] }
 0x147   : > { %v856_v55 = vadd.f32 %v780_v41, %v4232_v9  ;;  %v3620_v9 = vld [vmem:[%s4771_s1 + $0x188] sm:$0xff] }
 0x148   : > { %v1252_v36 = vpop.f32.mrf.mxu0  ;;  %1861 = vmatpush.bf16.msra.mxu3 %v3620_v9 }
 0x149   : > { %v1015_v22 = vpop.f32.mrf.mxu3  ;;  %v1437_v23 = vpop.f32.mrf.mxu1 }
 0x14a   : > { %v1091_v29 = vadd.f32 %v1015_v22, %v856_v55  ;;  %v2683_v31 = vadd.f32 %v2682_v37, %v1437_v23  ;;  %v2722_v34 = vmul.f32 %v1437_v23, %v1437_v23  ;;  %v674_v37 = vld [vmem:[%s3958_s28 + $0x112] sm:$0xff] }
 0x14b   : > { %822 = vmatmul.bf16.gmra.mxu2 %v693_v0  ;;  %1291 = vmatmul.bf16.gmra.mxu0 %v1162_v3  ;;  %v694_v55 = vpack.c.bf16 %v674_v37, %v673_v48  ;;  %v676_v48 = vld [vmem:[%s3958_s28 + $0x12a] sm:$0xff]  ;;  %v3152_v37 = vld [vmem:[%s3958_s28 + $0x141] sm:$0xff] }
 0x14c   : > { %v2753_v42 = vadd.f32 %v2752_v8, %v2722_v34  ;;  %1476 = vmatmul.bf16.gmra.mxu1 %v1162_v3  ;;  %v4403_v47 = vadd.f32 %v1249_v5, %v1091_v29  ;;  %v3150_v8 = vld [vmem:[%s3958_s28 + $0x129] sm:$0xff]  ;;  %v929_v3 = vpack.c.bf16 %v3070_v2, %v3069_v30 }
 0x14e   : > { %1057 = vmatmul.bf16.gmra.mxu3 %v4087_v18  ;;  %v783_v52 = vpop.f32.mrf.mxu2 }
 0x14f   : > { %v857_v18 = vadd.f32 %v783_v52, %v4238_v1  ;;  %v3149_v1 = vld [vmem:[%s3958_s28 + $0x121] sm:$0xff] }
 0x150   : > { %v1254_v12 = vpop.f32.mrf.mxu0  ;;  %v1163_v22 = vpack.c.bf16 %v3150_v8, %v3149_v1  ;;  %v3071_v1 = vld [vmem:[%s3958_s28 + $0x138] sm:$0xff]  ;;  %v3072_v8 = vld [vmem:[%s3958_s28 + $0x140] sm:$0xff] }
 0x151   : > { %v1018_v51 = vpop.f32.mrf.mxu3  ;;  %v1439_v28 = vpop.f32.mrf.mxu1 }
 0x152   : > { %v1092_v26 = vadd.f32 %v1018_v51, %v857_v18  ;;  %v3736_v53 = vpack.c.bf16 %v1439_v28, %v1437_v23  ;;  %v2723_v61 = vmul.f32 %v1439_v28, %v1439_v28  ;;  %v2684_v62 = vadd.f32 %v2683_v31, %v1439_v28 }
 0x154   : > { %3819 = vst [vmem:[%s4368_s9 + $0x10] sm:$0xff] %v3736_v53   ;;  %v2754_v50 = vadd.f32 %v2753_v42, %v2723_v61  ;;  %v4411_v5 = vadd.f32 %v1252_v36, %v1092_v26  ;;  %v3636_v36 = vld [vmem:[%s4771_s1 + $0x208] sm:$0xff] }
 0x155   : > { %2329 = vmatpush.bf16.msra.mxu1 %v3636_v36 }
 0x156   : > { %v785_v13 = vpop.f32.mrf.mxu2 }
 0x157   : > { %v858_v15 = vadd.f32 %v785_v13, %v4251_v33 }
 0x158   : > { %v1257_v34 = vpop.f32.mrf.mxu0 }
 0x159   : > { %v1020_v41 = vpop.f32.mrf.mxu3  ;;  %v1442_v0 = vpop.f32.mrf.mxu1 }
 0x15a   : > { %v1093_v23 = vadd.f32 %v1020_v41, %v858_v15  ;;  %v2685_v29 = vadd.f32 %v2684_v62, %v1442_v0  ;;  %v2724_v31 = vmul.f32 %v1442_v0, %v1442_v0  ;;  %v675_v62 = vld [vmem:[%s3958_s28 + $0x122] sm:$0xff]  ;;  %v1164_v15 = vpack.c.bf16 %v3152_v37, %v3151_v63  ;;  %v3154_v63 = vld [vmem:[%s3958_s28 + $0x159] sm:$0xff]  ;;  %v3073_v37 = vld [vmem:[%s3958_s28 + $0x150] sm:$0xff] }
 0x15b   : > { %827 = vmatmul.bf16.gmra.mxu2 %v694_v55  ;;  %1296 = vmatmul.bf16.gmra.mxu0 %v1163_v22  ;;  %v695_v13 = vpack.c.bf16 %v676_v48, %v675_v62  ;;  %v930_v55 = vpack.c.bf16 %v3072_v8, %v3071_v1  ;;  %v678_v48 = vld [vmem:[%s3958_s28 + $0x142] sm:$0xff]  ;;  %v3074_v1 = vld [vmem:[%s3958_s28 + $0x158] sm:$0xff] }
 0x15c   : > { %v2755_v42 = vadd.f32 %v2754_v50, %v2724_v31  ;;  %1481 = vmatmul.bf16.gmra.mxu1 %v1163_v22  ;;  %v4422_v44 = vadd.f32 %v1254_v12, %v1093_v23  ;;  %v3611_v31 = vld [vmem:[%s4771_s1 + $0x140] sm:$0xff] }
 0x15d   : > { %1627 = vmatpush.bf16.msra.mxu2 %v3611_v31 }
 0x15e   : > { %1062 = vmatmul.bf16.gmra.mxu3 %v929_v3  ;;  %v788_v33 = vpop.f32.mrf.mxu2 }
 0x15f   : > { %v859_v9 = vadd.f32 %v788_v33, %v4263_v45 }
 0x160   : > { %v1259_v53 = vpop.f32.mrf.mxu0 }
 0x161   : > { %v1023_v52 = vpop.f32.mrf.mxu3  ;;  %v1444_v18 = vpop.f32.mrf.mxu1 }
 0x162   : > { %v1094_v51 = vadd.f32 %v1023_v52, %v859_v9  ;;  %v3741_v28 = vpack.c.bf16 %v1444_v18, %v1442_v0  ;;  %v2725_v26 = vmul.f32 %v1444_v18, %v1444_v18  ;;  %v2686_v61 = vadd.f32 %v2685_v29, %v1444_v18 }
 0x164   : > { %3820 = vst [vmem:[%s4368_s9 + $0x18] sm:$0xff] %v3741_v28   ;;  %v2756_v12 = vadd.f32 %v2755_v42, %v2725_v26  ;;  %v4427_v50 = vadd.f32 %v1257_v34, %v1094_v51 }
 0x166   : > { %v790_v30 = vpop.f32.mrf.mxu2 }
 0x167   : > { %v860_v45 = vadd.f32 %v790_v30, %v4270_v56  ;;  %v3619_v56 = vld [vmem:[%s4771_s1 + $0x180] sm:$0xff] }
 0x168   : > { %v1262_v23 = vpop.f32.mrf.mxu0  ;;  %1862 = vmatpush.bf16.msra.mxu3 %v3619_v56 }
 0x169   : > { %v1025_v2 = vpop.f32.mrf.mxu3  ;;  %v1447_v41 = vpop.f32.mrf.mxu1 }
 0x16a   : > { %v1095_v22 = vadd.f32 %v1025_v2, %v860_v45  ;;  %v2687_v0 = vadd.f32 %v2686_v61, %v1447_v41  ;;  %v2726_v3 = vmul.f32 %v1447_v41, %v1447_v41  ;;  %v677_v61 = vld [vmem:[%s3958_s28 + $0x13a] sm:$0xff] }
 0x16b   : > { %832 = vmatmul.bf16.gmra.mxu2 %v695_v13  ;;  %1301 = vmatmul.bf16.gmra.mxu0 %v1164_v15  ;;  %v696_v2 = vpack.c.bf16 %v678_v48, %v677_v61  ;;  %v680_v61 = vld [vmem:[%s3958_s28 + $0x15a] sm:$0xff]  ;;  %v3156_v48 = vld [vmem:[%s3958_s28 + $0x171] sm:$0xff] }
 0x16c   : > { %v2757_v29 = vadd.f32 %v2756_v12, %v2726_v3  ;;  %1486 = vmatmul.bf16.gmra.mxu1 %v1164_v15  ;;  %v4441_v34 = vadd.f32 %v1259_v53, %v1095_v22  ;;  %v3627_v12 = vld [vmem:[%s4771_s1 + $0x1c0] sm:$0xff] }
 0x16d   : > { %2096 = vmatpush.bf16.msra.mxu0 %v3627_v12  ;;  %v3155_v12 = vld [vmem:[%s3958_s28 + $0x169] sm:$0xff] }
 0x16e   : > { %1067 = vmatmul.bf16.gmra.mxu3 %v930_v55  ;;  %v793_v36 = vpop.f32.mrf.mxu2 }
 0x16f   : > { %v861_v42 = vadd.f32 %v793_v36, %v4276_v35  ;;  %v3153_v35 = vld [vmem:[%s3958_s28 + $0x151] sm:$0xff] }
 0x170   : > { %v1264_v28 = vpop.f32.mrf.mxu0  ;;  %v1165_v13 = vpack.c.bf16 %v3154_v63, %v3153_v35  ;;  %v3075_v35 = vld [vmem:[%s3958_s28 + $0x168] sm:$0xff]  ;;  %v3076_v63 = vld [vmem:[%s3958_s28 + $0x170] sm:$0xff] }
 0x171   : > { %v1028_v33 = vpop.f32.mrf.mxu3  ;;  %v1449_v9 = vpop.f32.mrf.mxu1 }
 0x172   : > { %v1096_v52 = vadd.f32 %v1028_v33, %v861_v42  ;;  %v3746_v18 = vpack.c.bf16 %v1449_v9, %v1447_v41  ;;  %v2727_v51 = vmul.f32 %v1449_v9, %v1449_v9  ;;  %v2688_v26 = vadd.f32 %v2687_v0, %v1449_v9 }
 0x173   : > { %v931_v41 = vpack.c.bf16 %v3074_v1, %v3073_v37 }
 0x174   : > { %3821 = vst [vmem:[%s4368_s9 + $0x20] sm:$0xff] %v3746_v18   ;;  %v2758_v53 = vadd.f32 %v2757_v29, %v2727_v51  ;;  %v4449_v62 = vadd.f32 %v1262_v23, %v1096_v52  ;;  %v3635_v23 = vld [vmem:[%s4771_s1 + $0x200] sm:$0xff] }
 0x175   : > { %2330 = vmatpush.bf16.msra.mxu1 %v3635_v23 }
 0x176   : > { %v795_v8 = vpop.f32.mrf.mxu2 }
 0x177   : > { %v862_v30 = vadd.f32 %v795_v8, %v4289_v21 }
 0x178   : > { %v1267_v3 = vpop.f32.mrf.mxu0 }
 0x179   : > { %v1030_v45 = vpop.f32.mrf.mxu3  ;;  %v1452_v15 = vpop.f32.mrf.mxu1 }
 0x17a   : > { %v1097_v55 = vadd.f32 %v1030_v45, %v862_v30  ;;  %v2689_v22 = vadd.f32 %v2688_v26, %v1452_v15  ;;  %v2728_v0 = vmul.f32 %v1452_v15, %v1452_v15  ;;  %v679_v26 = vld [vmem:[%s3958_s28 + $0x152] sm:$0xff]  ;;  %v1166_v30 = vpack.c.bf16 %v3156_v48, %v3155_v12  ;;  %v3078_v12 = vld [vmem:[%s3958_s28 + $0x188] sm:$0xff] }
 0x17b   : > { %837 = vmatmul.bf16.gmra.mxu2 %v696_v2  ;;  %1306 = vmatmul.bf16.gmra.mxu0 %v1165_v13  ;;  %v697_v8 = vpack.c.bf16 %v680_v61, %v679_v26  ;;  %v932_v2 = vpack.c.bf16 %v3076_v63, %v3075_v35  ;;  %v3158_v26 = vld [vmem:[%s3958_s28 + $0x189] sm:$0xff]  ;;  %v3077_v61 = vld [vmem:[%s3958_s28 + $0x180] sm:$0xff] }
 0x17c   : > { %v2759_v29 = vadd.f32 %v2758_v53, %v2728_v0  ;;  %1491 = vmatmul.bf16.gmra.mxu1 %v1165_v13  ;;  %v4460_v31 = vadd.f32 %v1264_v28, %v1097_v55 }
 0x17e   : > { %1072 = vmatmul.bf16.gmra.mxu3 %v931_v41  ;;  %v798_v21 = vpop.f32.mrf.mxu2 }
 0x17f   : > { %v863_v56 = vadd.f32 %v798_v21, %v4301_v19 }
 0x180   : > { %v1269_v18 = vpop.f32.mrf.mxu0 }
 0x181   : > { %v1033_v36 = vpop.f32.mrf.mxu3  ;;  %v1454_v42 = vpop.f32.mrf.mxu1 }
 0x182   : > { %v1098_v33 = vadd.f32 %v1033_v36, %v863_v56  ;;  %v3751_v9 = vpack.c.bf16 %v1454_v42, %v1452_v15  ;;  %v2729_v52 = vmul.f32 %v1454_v42, %v1454_v42  ;;  %v2690_v51 = vadd.f32 %v2689_v22, %v1454_v42 }
 0x184   : > { %3822 = vst [vmem:[%s4368_s9 + $0x28] sm:$0xff] %v3751_v9   ;;  %v2760_v28 = vadd.f32 %v2759_v29, %v2729_v52  ;;  %v4465_v53 = vadd.f32 %v1267_v3, %v1098_v33  ;;  %v681_v52 = vld [vmem:[%s3958_s28 + $0x16a] sm:$0xff] }
 0x186   : > { %v800_v37 = vpop.f32.mrf.mxu2 }
 0x187   : > { %v864_v19 = vadd.f32 %v800_v37, %v4308_v43 }
 0x188   : > { %v1272_v55 = vpop.f32.mrf.mxu0 }
 0x189   : > { %v1035_v1 = vpop.f32.mrf.mxu3  ;;  %v1457_v45 = vpop.f32.mrf.mxu1 }
 0x18a   : > { %v1099_v13 = vadd.f32 %v1035_v1, %v864_v19  ;;  %v2691_v15 = vadd.f32 %v2690_v51, %v1457_v45  ;;  %v2730_v41 = vmul.f32 %v1457_v45, %v1457_v45  ;;  %v682_v51 = vld [vmem:[%s3958_s28 + $0x172] sm:$0xff]  ;;  %v933_v1 = vpack.c.bf16 %v3078_v12, %v3077_v61 }
 0x18b   : > { %842 = vmatmul.bf16.gmra.mxu2 %v697_v8  ;;  %1311 = vmatmul.bf16.gmra.mxu0 %v1166_v30  ;;  %v698_v63 = vpack.c.bf16 %v682_v51, %v681_v52  ;;  %v3479_v52 = vld [vmem:[%s3958_s28 + $0x32] sm:$0xff]  ;;  %v3480_v51 = vld [vmem:[%s3958_s28 + $0x3a] sm:$0xff] }
 0x18c   : > { %v2761_v22 = vadd.f32 %v2760_v28, %v2730_v41  ;;  %1496 = vmatmul.bf16.gmra.mxu1 %v1166_v30  ;;  %v4473_v0 = vadd.f32 %v1269_v18, %v1099_v13  ;;  %v3157_v28 = vld [vmem:[%s3958_s28 + $0x181] sm:$0xff] }
 0x18d   : > { %v1167_v37 = vpack.c.bf16 %v3158_v26, %v3157_v28  ;;  %v3399_v28 = vld [vmem:[%s3958_s28 + $0x31] sm:$0xff]  ;;  %v3400_v26 = vld [vmem:[%s3958_s28 + $0x39] sm:$0xff] }
 0x18e   : > { %1077 = vmatmul.bf16.gmra.mxu3 %v932_v2  ;;  %v803_v43 = vpop.f32.mrf.mxu2 }
 0x18f   : > { %v865_v3 = vadd.f32 %v803_v43, %v4314_v10 }
 0x190   : > { %v1274_v42 = vpop.f32.mrf.mxu0 }
 0x191   : > { %v1038_v23 = vpop.f32.mrf.mxu3  ;;  %v1459_v29 = vpop.f32.mrf.mxu1 }
 0x192   : > { %v1100_v21 = vadd.f32 %v1038_v23, %v865_v3  ;;  %v3756_v56 = vpack.c.bf16 %v1459_v29, %v1457_v45  ;;  %v2731_v36 = vmul.f32 %v1459_v29, %v1459_v29  ;;  %v2692_v33 = vadd.f32 %v2691_v15, %v1459_v29 }
 0x194   : > { %3823 = vst [vmem:[%s4368_s9 + $0x30] sm:$0xff] %v3756_v56   ;;  %v2762_v9 = vadd.f32 %v2761_v22, %v2731_v36  ;;  %v4478_v18 = vadd.f32 %v1272_v55, %v1100_v21  ;;  %v3239_v36 = vld [vmem:[%s3958_s28 + $0x1a] sm:$0xff] }
 0x196   : > { %v805_v48 = vpop.f32.mrf.mxu2 }
 0x197   : > { %v866_v10 = vadd.f32 %v805_v48, %v4327_v11 }
 0x198   : > { %v1277_v2 = vpop.f32.mrf.mxu0 }
 0x199   : > { %v1040_v35 = vpop.f32.mrf.mxu3  ;;  %v1462_v19 = vpop.f32.mrf.mxu1 }
 0x19a   : > { %v1101_v8 = vadd.f32 %v1040_v35, %v866_v10  ;;  %v2693_v30 = vadd.f32 %v2692_v33, %v1462_v19  ;;  %v2732_v45 = vmul.f32 %v1462_v19, %v1462_v19  ;;  %v2242_v35 = vpack.c.bf16 %v3480_v51, %v3479_v52  ;;  %v3322_v52 = vld [vmem:[%s3958_s28 + $0x50] sm:$0xff] }
 0x19b   : > { %847 = vmatmul.bf16.gmra.mxu2 %v698_v63  ;;  %1316 = vmatmul.bf16.gmra.mxu0 %v1167_v37  ;;  %v3401_v51 = vld [vmem:[%s3958_s28 + $0x49] sm:$0xff] }
 0x19c   : > { %v2763_v13 = vadd.f32 %v2762_v9, %v2732_v45  ;;  %1501 = vmatmul.bf16.gmra.mxu1 %v1167_v37  ;;  %v4486_v15 = vadd.f32 %v1274_v42, %v1101_v8  ;;  %v3240_v42 = vld [vmem:[%s3958_s28 + $0x22] sm:$0xff]  ;;  %v3319_v9 = vld [vmem:[%s3958_s28 + $0x30] sm:$0xff] }
 0x19d   : > { %v1539_v10 = vpack.c.bf16 %v3240_v42, %v3239_v36  ;;  %v3321_v36 = vld [vmem:[%s3958_s28 + $0x48] sm:$0xff] }
 0x19e   : > { %1082 = vmatmul.bf16.gmra.mxu3 %v933_v1  ;;  %v808_v11 = vpop.f32.mrf.mxu2  ;;  %v3481_v42 = vld [vmem:[%s3958_s28 + $0x4a] sm:$0xff] }
 0x19f   : > { %v867_v41 = vadd.f32 %v808_v11, %v4339_v24  ;;  %v3320_v24 = vld [vmem:[%s3958_s28 + $0x38] sm:$0xff] }
 0x1a0   : > { %v1279_v29 = vpop.f32.mrf.mxu0  ;;  %v1774_v37 = vpack.c.bf16 %v3320_v24, %v3319_v9  ;;  %v3482_v9 = vld [vmem:[%s3958_s28 + $0x52] sm:$0xff] }
 0x1a1   : > { %v1043_v55 = vpop.f32.mrf.mxu3  ;;  %v1464_v22 = vpop.f32.mrf.mxu1  ;;  %v3402_v24 = vld [vmem:[%s3958_s28 + $0x51] sm:$0xff] }
 0x1a2   : > { %v1102_v43 = vadd.f32 %v1043_v55, %v867_v41  ;;  %v3761_v3 = vpack.c.bf16 %v1464_v22, %v1462_v19  ;;  %v2733_v23 = vmul.f32 %v1464_v22, %v1464_v22  ;;  %v2694_v21 = vadd.f32 %v2693_v30, %v1464_v22 }
 0x1a3   : > { %v2008_v19 = vpack.c.bf16 %v3400_v26, %v3399_v28 }
 0x1a4   : > { %3824 = vst [vmem:[%s4368_s9 + $0x38] sm:$0xff] %v3761_v3   ;;  %v2764_v56 = vadd.f32 %v2763_v13, %v2733_v23  ;;  %v4492_v33 = vadd.f32 %v1277_v2, %v1102_v43 }
 0x1a6   : > { %v810_v61 = vpop.f32.mrf.mxu2 }
 0x1a7   : > { %v868_v12 = vadd.f32 %v810_v61, %v4346_v39  ;;  %v2243_v61 = vpack.c.bf16 %v3482_v9, %v3481_v42  ;;  %v3403_v42 = vld [vmem:[%s3958_s28 + $0x61] sm:$0xff]  ;;  %v3404_v9 = vld [vmem:[%s3958_s28 + $0x69] sm:$0xff] }
 0x1a8   : > { %v1282_v45 = vpop.f32.mrf.mxu0 }
 0x1a9   : > { %v1045_v48 = vpop.f32.mrf.mxu3  ;;  %v1467_v63 = vpop.f32.mrf.mxu1 }
 0x1aa   : > { %v1103_v1 = vadd.f32 %v1045_v48, %v868_v12  ;;  %v2695_v8 = vadd.f32 %v2694_v21, %v1467_v63  ;;  %v2734_v30 = vmul.f32 %v1467_v63, %v1467_v63  ;;  %v1775_v48 = vpack.c.bf16 %v3322_v52, %v3321_v36  ;;  %v3324_v36 = vld [vmem:[%s3958_s28 + $0x68] sm:$0xff] }
 0x1ab   : > { %1628 = vmatmul.bf16.vlgmr.msra.gmra.mxu2 %v1539_v10  ;;  %2097 = vmatmul.bf16.vlgmr.msra.gmra.mxu0 %v2008_v19  ;;  %v2009_v10 = vpack.c.bf16 %v3402_v24, %v3401_v51 }
 0x1ac   : > { %v2765_v2 = vadd.f32 %v2764_v56, %v2734_v30  ;;  %2331 = vmatmul.bf16.vlgmr.msra.gmra.mxu1 %v2242_v35  ;;  %v4501_v13 = vadd.f32 %v1279_v29, %v1103_v1 }
 0x1ae   : > { %1863 = vmatmul.bf16.vlgmr.msra.gmra.mxu3 %v1774_v37  ;;  %v813_v39 = vpop.f32.mrf.mxu2 }
 0x1af   : > { %v869_v11 = vadd.f32 %v813_v39, %v4211_v46 }
 0x1b0   : > { %v1284_v23 = vpop.f32.mrf.mxu0 }
 0x1b1   : > { %v1048_v41 = vpop.f32.mrf.mxu3  ;;  %v1469_v55 = vpop.f32.mrf.mxu1 }
 0x1b2   : > { %v1104_v22 = vadd.f32 %v1048_v41, %v869_v11  ;;  %v3766_v43 = vpack.c.bf16 %v1469_v55, %v1467_v63  ;;  %v2735_v3 = vmul.f32 %v1469_v55, %v1469_v55  ;;  %v2696_v21 = vadd.f32 %v2695_v8, %v1469_v55 }
 0x1b4   : > { %3825 = vst [vmem:[%s4368_s9 + $0x40] sm:$0xff] %v3766_v43   ;;  %v2766_v29 = vadd.f32 %v2765_v2, %v2735_v3  ;;  %v4505_v56 = vadd.f32 %v1282_v45, %v1104_v22 }
 0x1b6   : > { %v815_v28 = vpop.f32.mrf.mxu2 }
 0x1b7   : > { %v870_v46 = vadd.f32 %v815_v28, %v4220_v60 }
 0x1b8   : > { %v1287_v1 = vpop.f32.mrf.mxu0 }
 0x1b9   : > { %v1050_v26 = vpop.f32.mrf.mxu3  ;;  %v1472_v12 = vpop.f32.mrf.mxu1 }
 0x1ba   : > { %v1105_v63 = vadd.f32 %v1050_v26, %v870_v46  ;;  %v2697_v37 = vadd.f32 %v2696_v21, %v1472_v12  ;;  %v2736_v19 = vmul.f32 %v1472_v12, %v1472_v12  ;;  %v3483_v21 = vld [vmem:[%s3958_s28 + $0x62] sm:$0xff]  ;;  %v2010_v26 = vpack.c.bf16 %v3404_v9, %v3403_v42 }
 0x1bb   : > { %1633 = vmatmul.bf16.gmra.mxu2 %v2242_v35  ;;  %2102 = vmatmul.bf16.gmra.mxu0 %v2009_v10 }
 0x1bc   : > { %v2767_v8 = vadd.f32 %v2766_v29, %v2736_v19  ;;  %2336 = vmatmul.bf16.gmra.mxu1 %v2243_v61  ;;  %v4514_v30 = vadd.f32 %v1284_v23, %v1105_v63  ;;  %v3323_v23 = vld [vmem:[%s3958_s28 + $0x60] sm:$0xff]  ;;  %v3484_v29 = vld [vmem:[%s3958_s28 + $0x6a] sm:$0xff] }
 0x1bd   : > { %v2244_v24 = vpack.c.bf16 %v3484_v29, %v3483_v21  ;;  %v1776_v46 = vpack.c.bf16 %v3324_v36, %v3323_v23 }
 0x1be   : > { %1868 = vmatmul.bf16.gmra.mxu3 %v1775_v48  ;;  %v818_v60 = vpop.f32.mrf.mxu2 }
 0x1bf   : > { %v871_v45 = vadd.f32 %v818_v60, %v4230_v6 }
 0x1c0   : > { %v1289_v35 = vpop.f32.mrf.mxu0 }
 0x1c1   : > { %v1053_v2 = vpop.f32.mrf.mxu3  ;;  %v1474_v39 = vpop.f32.mrf.mxu1 }
 0x1c2   : > { %v1106_v11 = vadd.f32 %v1053_v2, %v871_v45  ;;  %v3771_v41 = vpack.c.bf16 %v1474_v39, %v1472_v12  ;;  %v2737_v55 = vmul.f32 %v1474_v39, %v1474_v39  ;;  %v2698_v22 = vadd.f32 %v2697_v37, %v1474_v39 }
 0x1c4   : > { %3826 = vst [vmem:[%s4368_s9 + $0x48] sm:$0xff] %v3771_v41   ;;  %v2768_v43 = vadd.f32 %v2767_v8, %v2737_v55  ;;  %v4518_v3 = vadd.f32 %v1287_v1, %v1106_v11  ;;  %v3325_v11 = vld [vmem:[%s3958_s28 + $0x78] sm:$0xff]  ;;  %v3486_v55 = vld [vmem:[%s3958_s28 + $0x82] sm:$0xff] }
 0x1c5   : > { %v3485_v41 = vld [vmem:[%s3958_s28 + $0x7a] sm:$0xff] }
 0x1c6   : > { %v820_v52 = vpop.f32.mrf.mxu2  ;;  %v2245_v29 = vpack.c.bf16 %v3486_v55, %v3485_v41 }
 0x1c7   : > { %v872_v6 = vadd.f32 %v820_v52, %v4236_v20 }
 0x1c8   : > { %v1292_v63 = vpop.f32.mrf.mxu0 }
 0x1c9   : > { %v1055_v51 = vpop.f32.mrf.mxu3  ;;  %v1477_v28 = vpop.f32.mrf.mxu1 }
 0x1ca   : > { %v1107_v12 = vadd.f32 %v1055_v51, %v872_v6  ;;  %v4527_v48 = vadd.f32 %v2698_v22, %v1477_v28  ;;  %v2738_v10 = vmul.f32 %v1477_v28, %v1477_v28  ;;  %v3405_v22 = vld [vmem:[%s3958_s28 + $0x79] sm:$0xff] }
 0x1cb   : > { %1638 = vmatmul.bf16.gmra.mxu2 %v2243_v61  ;;  %2107 = vmatmul.bf16.gmra.mxu0 %v2010_v26 }
 0x1cc   : > { %v4529_v37 = vadd.f32 %v2768_v43, %v2738_v10  ;;  %2341 = vmatmul.bf16.gmra.mxu1 %v2244_v24  ;;  %v4531_v20 = vadd.f32 %v1289_v35, %v1107_v12  ;;  %v3326_v35 = vld [vmem:[%s3958_s28 + $0x80] sm:$0xff] }
 0x1cd   : > { %v3406_v43 = vld [vmem:[%s3958_s28 + $0x81] sm:$0xff]  ;;  %v1777_v42 = vpack.c.bf16 %v3326_v35, %v3325_v11 }
 0x1ce   : > { %1873 = vmatmul.bf16.gmra.mxu3 %v1776_v46  ;;  %v823_v19 = vpop.f32.mrf.mxu2  ;;  %v2011_v9 = vpack.c.bf16 %v3406_v43, %v3405_v22 }
 0x1cf   : > { %v873_v1 = vadd.f32 %v823_v19, %v4249_v27  ;;  %v3327_v19 = vld [vmem:[%s3958_s28 + $0x90] sm:$0xff] }
 0x1d0   : > { %v1294_v39 = vpop.f32.mrf.mxu0 }
 0x1d1   : > { %v1058_v8 = vpop.f32.mrf.mxu3  ;;  %v4534_v60 = vpop.f32.mrf.mxu1 }
 0x1d2   : > { %v1108_v45 = vadd.f32 %v1058_v8, %v873_v1  ;;  %v3776_v2 = vpack.c.bf16 %v4534_v60, %v1477_v28  ;;  %v3487_v1 = vld [vmem:[%s3958_s28 + $0x92] sm:$0xff]  ;;  %v3488_v8 = vld [vmem:[%s3958_s28 + $0x9a] sm:$0xff] }
 0x1d3   : > { %v2246_v55 = vpack.c.bf16 %v3488_v8, %v3487_v1  ;;  %v3410_v1 = vld [vmem:[%s3958_s28 + $0xb1] sm:$0xff] }
 0x1d4   : > { %3827 = vst [vmem:[%s4368_s9 + $0x50] sm:$0xff] %v3776_v2   ;;  %v4538_v61 = vadd.f32 %v1292_v63, %v1108_v45  ;;  %v3328_v45 = vld [vmem:[%s3958_s28 + $0x98] sm:$0xff] }
 0x1d5   : > { %v3407_v2 = vld [vmem:[%s3958_s28 + $0x91] sm:$0xff]  ;;  %v1778_v22 = vpack.c.bf16 %v3328_v45, %v3327_v19  ;;  %v3409_v19 = vld [vmem:[%s3958_s28 + $0xa9] sm:$0xff] }
 0x1d6   : > { %v825_v23 = vpop.f32.mrf.mxu2 }
 0x1d7   : > { %v874_v21 = vadd.f32 %v825_v23, %v4258_v40 }
 0x1d8   : > { %v1297_v6 = vpop.f32.mrf.mxu0 }
 0x1d9   : > { %v1060_v27 = vpop.f32.mrf.mxu3  ;;  %v4547_v36 = vpop.f32.mrf.mxu1 }
 0x1da   : > { %v1109_v52 = vadd.f32 %v1060_v27, %v874_v21 }
 0x1db   : > { %1643 = vmatmul.bf16.gmra.mxu2 %v2244_v24  ;;  %2112 = vmatmul.bf16.gmra.mxu0 %v2011_v9 }
 0x1dc   : > { %2346 = vmatmul.bf16.gmra.mxu1 %v2245_v29  ;;  %v4549_v51 = vadd.f32 %v1294_v39, %v1109_v52  ;;  %v3408_v39 = vld [vmem:[%s3958_s28 + $0x99] sm:$0xff] }
 0x1dd   : > { %v2012_v43 = vpack.c.bf16 %v3408_v39, %v3407_v2 }
 0x1de   : > { %1878 = vmatmul.bf16.gmra.mxu3 %v1777_v42  ;;  %v828_v40 = vpop.f32.mrf.mxu2 }
 0x1df   : > { %v875_v28 = vadd.f32 %v828_v40, %v4268_v49 }
 0x1e0   : > { %v1299_v24 = vpop.f32.mrf.mxu0 }
 0x1e1   : > { %v1063_v46 = vpop.f32.mrf.mxu3  ;;  %v4552_v26 = vpop.f32.mrf.mxu1 }
 0x1e2   : > { %v1110_v12 = vadd.f32 %v1063_v46, %v875_v28  ;;  %v3781_v10 = vpack.c.bf16 %v4552_v26, %v4547_v36  ;;  %v3329_v46 = vld [vmem:[%s3958_s28 + $0xa8] sm:$0xff] }
 0x1e4   : > { %3828 = vst [vmem:[%s4368_s9 + $0x58] sm:$0xff] %v3781_v10   ;;  %v4557_v63 = vadd.f32 %v1297_v6, %v1110_v12  ;;  %v3489_v12 = vld [vmem:[%s3958_s28 + $0xaa] sm:$0xff]  ;;  %v3490_v10 = vld [vmem:[%s3958_s28 + $0xb2] sm:$0xff] }
 0x1e5   : > { %v2247_v2 = vpack.c.bf16 %v3490_v10, %v3489_v12  ;;  %v3332_v12 = vld [vmem:[%s3958_s28 + $0xc8] sm:$0xff] }
 0x1e6   : > { %v830_v11 = vpop.f32.mrf.mxu2  ;;  %v3411_v10 = vld [vmem:[%s3958_s28 + $0xc1] sm:$0xff] }
 0x1e7   : > { %v876_v49 = vadd.f32 %v830_v11, %v4274_v4 }
 0x1e8   : > { %v1302_v21 = vpop.f32.mrf.mxu0 }
 0x1e9   : > { %v1065_v41 = vpop.f32.mrf.mxu3  ;;  %v4566_v35 = vpop.f32.mrf.mxu1 }
 0x1ea   : > { %v1111_v23 = vadd.f32 %v1065_v41, %v876_v49  ;;  %v2013_v49 = vpack.c.bf16 %v3410_v1, %v3409_v19 }
 0x1eb   : > { %1648 = vmatmul.bf16.gmra.mxu2 %v2245_v29  ;;  %2117 = vmatmul.bf16.gmra.mxu0 %v2012_v43 }
 0x1ec   : > { %2351 = vmatmul.bf16.gmra.mxu1 %v2246_v55  ;;  %v4568_v27 = vadd.f32 %v1299_v24, %v1111_v23  ;;  %v3330_v24 = vld [vmem:[%s3958_s28 + $0xb0] sm:$0xff] }
 0x1ed   : > { %v1779_v11 = vpack.c.bf16 %v3330_v24, %v3329_v46  ;;  %v3492_v46 = vld [vmem:[%s3958_s28 + $0xca] sm:$0xff] }
 0x1ee   : > { %1883 = vmatmul.bf16.gmra.mxu3 %v1778_v22  ;;  %v833_v4 = vpop.f32.mrf.mxu2  ;;  %v3412_v24 = vld [vmem:[%s3958_s28 + $0xc9] sm:$0xff] }
 0x1ef   : > { %v877_v42 = vadd.f32 %v833_v4, %v4287_v14 }
 0x1f0   : > { %v1304_v29 = vpop.f32.mrf.mxu0 }
 0x1f1   : > { %v1068_v9 = vpop.f32.mrf.mxu3  ;;  %v4571_v52 = vpop.f32.mrf.mxu1 }
 0x1f2   : > { %v1112_v6 = vadd.f32 %v1068_v9, %v877_v42  ;;  %v3786_v40 = vpack.c.bf16 %v4571_v52, %v4566_v35 }
 0x1f4   : > { %3829 = vst [vmem:[%s4368_s9 + $0x60] sm:$0xff] %v3786_v40   ;;  %v4576_v28 = vadd.f32 %v1302_v21, %v1112_v6  ;;  %v3331_v40 = vld [vmem:[%s3958_s28 + $0xc0] sm:$0xff] }
 0x1f6   : > { %v835_v8 = vpop.f32.mrf.mxu2 }
 0x1f7   : > { %v878_v14 = vadd.f32 %v835_v8, %v4296_v25 }
 0x1f8   : > { %v1307_v22 = vpop.f32.mrf.mxu0 }
 0x1f9   : > { %v1070_v45 = vpop.f32.mrf.mxu3  ;;  %v4585_v39 = vpop.f32.mrf.mxu1 }
 0x1fa   : > { %v1113_v41 = vadd.f32 %v1070_v45, %v878_v14  ;;  %v1780_v45 = vpack.c.bf16 %v3332_v12, %v3331_v40 }
 0x1fb   : > { %1653 = vmatmul.bf16.gmra.mxu2 %v2246_v55  ;;  %2122 = vmatmul.bf16.gmra.mxu0 %v2013_v49 }
 0x1fc   : > { %2356 = vmatmul.bf16.gmra.mxu1 %v2247_v2  ;;  %v4587_v43 = vadd.f32 %v1304_v29, %v1113_v41  ;;  %v3491_v29 = vld [vmem:[%s3958_s28 + $0xc2] sm:$0xff] }
 0x1fd   : > { %v4604_v8 = vpack.c.bf16 %v3492_v46, %v3491_v29  ;;  %v2742_v46 = vmul.f32 %v4566_v35, %v4566_v35 }
 0x1fe   : > { %1888 = vmatmul.bf16.gmra.mxu3 %v1779_v11  ;;  %v838_v25 = vpop.f32.mrf.mxu2  ;;  %v2014_v11 = vpack.c.bf16 %v3412_v24, %v3411_v10 }
 0x1ff   : > { %v879_v23 = vadd.f32 %v838_v25, %v4306_v38 }
 0x200   : > { %v1309_v55 = vpop.f32.mrf.mxu0 }
 0x201   : > { %v1073_v21 = vpop.f32.mrf.mxu3  ;;  %v4590_v4 = vpop.f32.mrf.mxu1 }
 0x202   : > { %v1114_v42 = vadd.f32 %v1073_v21, %v879_v23  ;;  %v3791_v9 = vpack.c.bf16 %v4590_v4, %v4585_v39  ;;  %v2700_v23 = vadd.f32 %v4527_v48, %v4534_v60 }
 0x204   : > { %3830 = vst [vmem:[%s4368_s9 + $0x68] sm:$0xff] %v3791_v9   ;;  %v4595_v6 = vadd.f32 %v1307_v22, %v1114_v42  ;;  %v2739_v22 = vmul.f32 %v4534_v60, %v4534_v60  ;;  %v2741_v42 = vmul.f32 %v4552_v26, %v4552_v26  ;;  %v2701_v9 = vadd.f32 %v2700_v23, %v4547_v36  ;;  %v3414_v23 = vld [vmem:[%s3958_s28 + $0xe1] sm:$0xff] }
 0x206   : > { %v840_v19 = vpop.f32.mrf.mxu2  ;;  %v2770_v21 = vadd.f32 %v4529_v37, %v2739_v22  ;;  %v2702_v48 = vadd.f32 %v2701_v9, %v4552_v26  ;;  %v3334_v22 = vld [vmem:[%s3958_s28 + $0xe0] sm:$0xff] }
 0x207   : > { %v880_v38 = vadd.f32 %v840_v19, %v4312_v58  ;;  %v2740_v58 = vmul.f32 %v4547_v36, %v4547_v36 }
 0x208   : > { %v1312_v41 = vpop.f32.mrf.mxu0  ;;  %v2703_v24 = vadd.f32 %v2702_v48, %v4566_v35 }
 0x209   : > { %v1075_v1 = vpop.f32.mrf.mxu3  ;;  %v1497_v14 = vpop.f32.mrf.mxu1  ;;  %v2771_v29 = vadd.f32 %v2770_v21, %v2740_v58  ;;  %v3413_v58 = vld [vmem:[%s3958_s28 + $0xd9] sm:$0xff] }
 0x20a   : > { %v1115_v49 = vadd.f32 %v1075_v1, %v880_v38  ;;  %v2744_v38 = vmul.f32 %v4585_v39, %v4585_v39  ;;  %v3333_v1 = vld [vmem:[%s3958_s28 + $0xd8] sm:$0xff]  ;;  %v2704_v35 = vadd.f32 %v2703_v24, %v4571_v52 }
 0x20b   : > { %1658 = vmatmul.bf16.gmra.mxu2 %v2247_v2  ;;  %2127 = vmatmul.bf16.gmra.mxu0 %v2014_v11  ;;  %v2772_v36 = vadd.f32 %v2771_v29, %v2741_v42  ;;  %v3494_v11 = vld [vmem:[%s3958_s28 + $0xe2] sm:$0xff]  ;;  %v2745_v42 = vmul.f32 %v4590_v4, %v4590_v4 }
 0x20c   : > { %2361 = vmatmul.bf16.gmra.mxu1 %v4604_v8  ;;  %v4609_v25 = vadd.f32 %v1309_v55, %v1115_v49  ;;  %v3867_v49 = vmov 0.0  }
 0x20d   : > { %v2773_v19 = vadd.f32 %v2772_v36, %v2742_v46  ;;  %2788 = vst [vmem:[%s4631_s13 + $0x4] sm:$0xf] %v3867_v49  ;;  %v2746_v46 = vmul.f32 %v1497_v14, %v1497_v14 }
 0x20e   : > { %1893 = vmatmul.bf16.gmra.mxu3 %v1780_v45  ;;  %v843_v2 = vpop.f32.mrf.mxu2  ;;  %v3493_v45 = vld [vmem:[%s3958_s28 + $0xda] sm:$0xff] }
 0x20f   : > { %v881_v55 = vadd.f32 %v843_v2, %v4325_v7  ;;  %v2743_v7 = vmul.f32 %v4571_v52, %v4571_v52  ;;  %v2705_v2 = vadd.f32 %v2704_v35, %v4585_v39 }
 0x210   : > { %v1314_v10 = vpop.f32.mrf.mxu0 }
 0x211   : > { %v1078_v40 = vpop.f32.mrf.mxu3  ;;  %v1499_v12 = vpop.f32.mrf.mxu1  ;;  %v2774_v21 = vadd.f32 %v2773_v19, %v2743_v7  ;;  %v2706_v52 = vadd.f32 %v2705_v2, %v4590_v4 }
 0x212   : > { %v1116_v37 = vadd.f32 %v1078_v40, %v881_v55  ;;  %v3796_v60 = vpack.c.bf16 %v1499_v12, %v1497_v14  ;;  %v2249_v40 = vpack.c.bf16 %v3494_v11, %v3493_v45  ;;  %v2747_v19 = vmul.f32 %v1499_v12, %v1499_v12 }
 0x213   : > { %v2775_v29 = vadd.f32 %v2774_v21, %v2744_v38  ;;  %v2707_v49 = vadd.f32 %v2706_v52, %v1497_v14  ;;  %v3416_v52 = vld [vmem:[%s3958_s28 + $0xf9] sm:$0xff] }
 0x214   : > { %3831 = vst [vmem:[%s4368_s9 + $0x70] sm:$0xff] %v3796_v60   ;;  %v4633_v26 = vadd.f32 %v1312_v41, %v1116_v37  ;;  %v1781_v37 = vpack.c.bf16 %v3334_v22, %v3333_v1  ;;  %v2015_v60 = vpack.c.bf16 %v3414_v23, %v3413_v58 }
 0x215   : > { %v2776_v7 = vadd.f32 %v2775_v29, %v2745_v42  ;;  %v2708_v38 = vadd.f32 %v2707_v49, %v1499_v12  ;;  %v3496_v29 = vld [vmem:[%s3958_s28 + $0xfa] sm:$0xff] }
 0x216   : > { %v845_v41 = vpop.f32.mrf.mxu2 }
 0x217   : > { %v882_v9 = vadd.f32 %v845_v41, %v4334_v57  ;;  %v2777_v57 = vadd.f32 %v2776_v7, %v2746_v46 }
 0x218   : > { %v1317_v24 = vpop.f32.mrf.mxu0 }
 0x219   : > { %v1080_v55 = vpop.f32.mrf.mxu3  ;;  %v1502_v48 = vpop.f32.mrf.mxu1  ;;  %v2778_v1 = vadd.f32 %v2777_v57, %v2747_v19 }
 0x21a   : > { %v1117_v36 = vadd.f32 %v1080_v55, %v882_v9  ;;  %v2748_v35 = vmul.f32 %v1502_v48, %v1502_v48  ;;  %v2709_v4 = vadd.f32 %v2708_v38, %v1502_v48  ;;  %v3335_v9 = vld [vmem:[%s3958_s28 + $0xf0] sm:$0xff] }
 0x21b   : > { %1663 = vmatmul.bf16.gmra.mxu2 %v4604_v8  ;;  %2132 = vmatmul.bf16.gmra.mxu0 %v2015_v60  ;;  %v3495_v55 = vld [vmem:[%s3958_s28 + $0xf2] sm:$0xff] }
 0x21c   : > { %2366 = vmatmul.bf16.gmra.mxu1 %v2249_v40  ;;  %v4651_v39 = vadd.f32 %v1314_v10, %v1117_v36  ;;  %v2779_v22 = vadd.f32 %v2778_v1, %v2748_v35  ;;  %v3415_v60 = vld [vmem:[%s3958_s28 + $0xf1] sm:$0xff]  ;;  %v2250_v57 = vpack.c.bf16 %v3496_v29, %v3495_v55 }
 0x21d   : > { %v3497_v55 = vld [vmem:[%s3958_s28 + $0x10a] sm:$0xff]  ;;  %v3498_v29 = vld [vmem:[%s3958_s28 + $0x112] sm:$0xff] }
 0x21e   : > { %1898 = vmatmul.bf16.gmra.mxu3 %v1781_v37  ;;  %v848_v45 = vpop.f32.mrf.mxu2  ;;  %v3336_v37 = vld [vmem:[%s3958_s28 + $0xf8] sm:$0xff] }
 0x21f   : > { %v883_v11 = vadd.f32 %v848_v45, %v4344_v17  ;;  %v1782_v35 = vpack.c.bf16 %v3336_v37, %v3335_v9  ;;  %v3418_v37 = vld [vmem:[%s3958_s28 + $0x111] sm:$0xff] }
 0x220   : > { %v1319_v42 = vpop.f32.mrf.mxu0 }
 0x221   : > { %v1083_v14 = vpop.f32.mrf.mxu3  ;;  %v1504_v8 = vpop.f32.mrf.mxu1 }
 0x222   : > { %v1118_v10 = vadd.f32 %v1083_v14, %v883_v11  ;;  %v3801_v58 = vpack.c.bf16 %v1504_v8, %v1502_v48  ;;  %v2710_v23 = vadd.f32 %v2709_v4, %v1504_v8  ;;  %v2749_v21 = vmul.f32 %v1504_v8, %v1504_v8 }
 0x224   : > { %3832 = vst [vmem:[%s4368_s9 + $0x78] sm:$0xff] %v3801_v58   ;;  %v2711_v12 = vrot.slane %v2710_v23, 4  ;;  %v2780_v41 = vadd.f32 %v2779_v22, %v2749_v21  ;;  %v4655_v2 = vadd.f32 %v1317_v24, %v1118_v10  ;;  %v2016_v24 = vpack.c.bf16 %v3416_v52, %v3415_v60 }
 0x226   : > { %v2712_v17 = vadd.f32 %v2711_v12, %v2710_v23  ;;  %v2781_v46 = vrot.slane %v2780_v41, 4  ;;  %v850_v36 = vpop.f32.mrf.mxu2 }
 0x227   : > { %v884_v48 = vadd.f32 %v850_v36, %v4350_v54 }
 0x228   : > { %v2713_v7 = vrot.slane %v2712_v17, 2  ;;  %v2782_v19 = vadd.f32 %v2781_v46, %v2780_v41  ;;  %v2098_v11 = vpop.f32.mrf.mxu0  ;;  %v3417_v46 = vld [vmem:[%s3958_s28 + $0x109] sm:$0xff] }
 0x229   : > { %v1085_v49 = vpop.f32.mrf.mxu3  ;;  %v2332_v38 = vpop.f32.mrf.mxu1 }
 0x22a   : > { %v2714_v1 = vadd.f32 %v2713_v7, %v2712_v17  ;;  %v2783_v45 = vrot.slane %v2782_v19, 2  ;;  %v1119_v4 = vadd.f32 %v1085_v49, %v884_v48  ;;  %v3338_v17 = vld [vmem:[%s3958_s28 + $0x110] sm:$0xff]  ;;  %v2017_v49 = vpack.c.bf16 %v3418_v37, %v3417_v46 }
 0x22b   : > { %1668 = vmatmul.bf16.gmra.mxu2 %v2249_v40  ;;  %2137 = vmatmul.bf16.gmra.mxu0 %v2016_v24 }
 0x22c   : > { %v2715_v14 = vrot.slane %v2714_v1, 1  ;;  %v2784_v22 = vadd.f32 %v2783_v45, %v2782_v19  ;;  %2371 = vmatmul.bf16.gmra.mxu1 %v2250_v57  ;;  %v4664_v8 = vadd.f32 %v1319_v42, %v1119_v4  ;;  %v3337_v42 = vld [vmem:[%s3958_s28 + $0x108] sm:$0xff]  ;;  %v2251_v19 = vpack.c.bf16 %v3498_v29, %v3497_v55 }
 0x22d   : > { %v1783_v48 = vpack.c.bf16 %v3338_v17, %v3337_v42  ;;  %v3340_v55 = vld [vmem:[%s3958_s28 + $0x128] sm:$0xff] }
 0x22e   : > { %1903 = vmatmul.bf16.gmra.mxu3 %v1782_v35  ;;  %v2716_v54 = vadd.f32 %v2715_v14, %v2714_v1  ;;  %v2785_v10 = vrot.slane %v2784_v22, 1  ;;  %v1629_v58 = vpop.f32.mrf.mxu2  ;;  %v3419_v29 = vld [vmem:[%s3958_s28 + $0x121] sm:$0xff]  ;;  %v3420_v17 = vld [vmem:[%s3958_s28 + $0x129] sm:$0xff] }
 0x22f   : > { %v1709_v21 = vadd.f32 %v1629_v58, %v4375_v16 }
 0x230   : > { %2717 = vst [vmem:[%s4631_s13 + $0x2] sm:$0x1] %v2716_v54  ;;  %v2786_v23 = vadd.f32 %v2785_v10, %v2784_v22  ;;  %v2100_v41 = vpop.f32.mrf.mxu0 }
 0x231   : > { %v1864_v12 = vpop.f32.mrf.mxu3  ;;  %v2334_v40 = vpop.f32.mrf.mxu1 }
 0x232   : > { %2787 = vst [vmem:[%s4631_s13 + $0x3] sm:$0x1] %v2786_v23  ;;  %v1944_v9 = vadd.f32 %v1864_v12, %v1709_v21 }
 0x234   : > { %v2178_v60 = vadd.f32 %v2098_v11, %v1944_v9  ;;  %v3500_v9 = vld [vmem:[%s3958_s28 + $0x12a] sm:$0xff] }
 0x236   : > { %v1631_v52 = vpop.f32.mrf.mxu2  ;;  %v2412_v1 = vadd.f32 %v2332_v38, %v2178_v60 }
 0x237   : > { %v1710_v36 = vadd.f32 %v1631_v52, %v4384_v59 }
 0x238   : > { %v2103_v24 = vpop.f32.mrf.mxu0  ;;  %v2546_v11 = vmul.f32 %v2412_v1, %v2412_v1 }
 0x239   : > { %v1866_v7 = vpop.f32.mrf.mxu3  ;;  %v2337_v16 = vpop.f32.mrf.mxu1 }
 0x23a   : > { %v1945_v35 = vadd.f32 %v1866_v7, %v1710_v36 }
 0x23b   : > { %1673 = vmatmul.bf16.gmra.mxu2 %v2250_v57  ;;  %2142 = vmatmul.bf16.gmra.mxu0 %v2017_v49  ;;  %v2018_v49 = vpack.c.bf16 %v3420_v17, %v3419_v29 }
 0x23c   : > { %v2179_v45 = vadd.f32 %v2100_v41, %v1945_v35  ;;  %2376 = vmatmul.bf16.gmra.mxu1 %v2251_v19  ;;  %v3499_v41 = vld [vmem:[%s3958_s28 + $0x122] sm:$0xff] }
 0x23d   : > { %v2252_v36 = vpack.c.bf16 %v3500_v9, %v3499_v41  ;;  %v3421_v41 = vld [vmem:[%s3958_s28 + $0x139] sm:$0xff]  ;;  %v3422_v9 = vld [vmem:[%s3958_s28 + $0x141] sm:$0xff] }
 0x23e   : > { %1908 = vmatmul.bf16.gmra.mxu3 %v1783_v48  ;;  %v2413_v4 = vadd.f32 %v2334_v40, %v2179_v45  ;;  %v1634_v59 = vpop.f32.mrf.mxu2  ;;  %v3339_v40 = vld [vmem:[%s3958_s28 + $0x120] sm:$0xff] }
 0x23f   : > { %v1711_v22 = vadd.f32 %v1634_v59, %v4390_v32  ;;  %v1784_v7 = vpack.c.bf16 %v3340_v55, %v3339_v40  ;;  %v3342_v40 = vld [vmem:[%s3958_s28 + $0x140] sm:$0xff] }
 0x240   : > { %v3646_v38 = vpack.c.bf16 %v2413_v4, %v2412_v1  ;;  %v2508_v57 = vadd.f32 %v2413_v4, %v2412_v1  ;;  %v2547_v14 = vmul.f32 %v2413_v4, %v2413_v4  ;;  %v2105_v21 = vpop.f32.mrf.mxu0 }
 0x241   : > { %v1869_v54 = vpop.f32.mrf.mxu3  ;;  %v2339_v10 = vpop.f32.mrf.mxu1 }
 0x242   : > { %3647 = vst [vmem:[%s4681_s15] sm:$0xff] %v3646_v38   ;;  %v2578_v58 = vadd.f32 %v2547_v14, %v2546_v11  ;;  %v1946_v23 = vadd.f32 %v1869_v54, %v1711_v22 }
 0x244   : > { %v2180_v12 = vadd.f32 %v2103_v24, %v1946_v23  ;;  %v3341_v23 = vld [vmem:[%s3958_s28 + $0x138] sm:$0xff] }
 0x246   : > { %v2414_v42 = vadd.f32 %v2337_v16, %v2180_v12  ;;  %v1636_v46 = vpop.f32.mrf.mxu2  ;;  %v3502_v12 = vld [vmem:[%s3958_s28 + $0x142] sm:$0xff] }
 0x247   : > { %v1712_v52 = vadd.f32 %v1636_v46, %v4403_v47 }
 0x248   : > { %v2509_v37 = vadd.f32 %v2508_v57, %v2414_v42  ;;  %v2548_v60 = vmul.f32 %v2414_v42, %v2414_v42  ;;  %v2108_v1 = vpop.f32.mrf.mxu0 }
 0x249   : > { %v1871_v32 = vpop.f32.mrf.mxu3  ;;  %v2342_v48 = vpop.f32.mrf.mxu1 }
 0x24a   : > { %v2579_v35 = vadd.f32 %v2578_v58, %v2548_v60  ;;  %v1947_v24 = vadd.f32 %v1871_v32, %v1712_v52  ;;  %v2019_v52 = vpack.c.bf16 %v3422_v9, %v3421_v41 }
 0x24b   : > { %1678 = vmatmul.bf16.gmra.mxu2 %v2251_v19  ;;  %2147 = vmatmul.bf16.gmra.mxu0 %v2018_v49 }
 0x24c   : > { %v2181_v45 = vadd.f32 %v2105_v21, %v1947_v24  ;;  %2381 = vmatmul.bf16.gmra.mxu1 %v2252_v36  ;;  %v3501_v21 = vld [vmem:[%s3958_s28 + $0x13a] sm:$0xff] }
 0x24d   : > { %v2253_v46 = vpack.c.bf16 %v3502_v12, %v3501_v21 }
 0x24e   : > { %1913 = vmatmul.bf16.gmra.mxu3 %v1784_v7  ;;  %v2415_v16 = vadd.f32 %v2339_v10, %v2181_v45  ;;  %v1639_v4 = vpop.f32.mrf.mxu2 }
 0x24f   : > { %v1713_v38 = vadd.f32 %v1639_v4, %v4411_v5 }
 0x250   : > { %v3651_v47 = vpack.c.bf16 %v2415_v16, %v2414_v42  ;;  %v2510_v11 = vadd.f32 %v2509_v37, %v2415_v16  ;;  %v2549_v59 = vmul.f32 %v2415_v16, %v2415_v16  ;;  %v2110_v54 = vpop.f32.mrf.mxu0  ;;  %v1785_v37 = vpack.c.bf16 %v3342_v40, %v3341_v23  ;;  %v3424_v23 = vld [vmem:[%s3958_s28 + $0x159] sm:$0xff] }
 0x251   : > { %v1874_v57 = vpop.f32.mrf.mxu3  ;;  %v2344_v14 = vpop.f32.mrf.mxu1 }
 0x252   : > { %3803 = vst [vmem:[%s4681_s15 + $0x8] sm:$0xff] %v3651_v47   ;;  %v2580_v19 = vadd.f32 %v2579_v35, %v2549_v59  ;;  %v1948_v22 = vadd.f32 %v1874_v57, %v1713_v38  ;;  %v3343_v57 = vld [vmem:[%s3958_s28 + $0x150] sm:$0xff] }
 0x254   : > { %v2182_v58 = vadd.f32 %v2108_v1, %v1948_v22  ;;  %v3504_v22 = vld [vmem:[%s3958_s28 + $0x15a] sm:$0xff] }
 0x256   : > { %v2416_v10 = vadd.f32 %v2342_v48, %v2182_v58  ;;  %v1641_v42 = vpop.f32.mrf.mxu2  ;;  %v3423_v58 = vld [vmem:[%s3958_s28 + $0x151] sm:$0xff] }
 0x257   : > { %v1714_v17 = vadd.f32 %v1641_v42, %v4422_v44 }
 0x258   : > { %v2511_v55 = vadd.f32 %v2510_v11, %v2416_v10  ;;  %v2550_v29 = vmul.f32 %v2416_v10, %v2416_v10  ;;  %v2113_v49 = vpop.f32.mrf.mxu0 }
 0x259   : > { %v1876_v5 = vpop.f32.mrf.mxu3  ;;  %v2347_v60 = vpop.f32.mrf.mxu1 }
 0x25a   : > { %v2581_v32 = vadd.f32 %v2580_v19, %v2550_v29  ;;  %v1949_v7 = vadd.f32 %v1876_v5, %v1714_v17  ;;  %v3503_v19 = vld [vmem:[%s3958_s28 + $0x152] sm:$0xff] }
 0x25b   : > { %1683 = vmatmul.bf16.gmra.mxu2 %v2252_v36  ;;  %2152 = vmatmul.bf16.gmra.mxu0 %v2019_v52  ;;  %v2254_v41 = vpack.c.bf16 %v3504_v22, %v3503_v19 }
 0x25c   : > { %v2183_v35 = vadd.f32 %v2110_v54, %v1949_v7  ;;  %2386 = vmatmul.bf16.gmra.mxu1 %v2253_v46  ;;  %v3344_v54 = vld [vmem:[%s3958_s28 + $0x158] sm:$0xff] }
 0x25d   : > { %v1786_v9 = vpack.c.bf16 %v3344_v54, %v3343_v57 }
 0x25e   : > { %1918 = vmatmul.bf16.gmra.mxu3 %v1785_v37  ;;  %v2417_v48 = vadd.f32 %v2344_v14, %v2183_v35  ;;  %v1644_v24 = vpop.f32.mrf.mxu2 }
 0x25f   : > { %v1715_v16 = vadd.f32 %v1644_v24, %v4427_v50 }
 0x260   : > { %v3656_v44 = vpack.c.bf16 %v2417_v48, %v2416_v10  ;;  %v2512_v1 = vadd.f32 %v2511_v55, %v2417_v48  ;;  %v2551_v45 = vmul.f32 %v2417_v48, %v2417_v48  ;;  %v2115_v59 = vpop.f32.mrf.mxu0  ;;  %v2020_v55 = vpack.c.bf16 %v3424_v23, %v3423_v58 }
 0x261   : > { %v1879_v4 = vpop.f32.mrf.mxu3  ;;  %v2349_v47 = vpop.f32.mrf.mxu1 }
 0x262   : > { %3804 = vst [vmem:[%s4681_s15 + $0x10] sm:$0xff] %v3656_v44   ;;  %v2582_v36 = vadd.f32 %v2581_v32, %v2551_v45  ;;  %v1950_v11 = vadd.f32 %v1879_v4, %v1715_v16  ;;  %v3345_v45 = vld [vmem:[%s3958_s28 + $0x168] sm:$0xff]  ;;  %v3506_v4 = vld [vmem:[%s3958_s28 + $0x172] sm:$0xff] }
 0x263   : > { %v3505_v16 = vld [vmem:[%s3958_s28 + $0x16a] sm:$0xff] }
 0x264   : > { %v2184_v38 = vadd.f32 %v2113_v49, %v1950_v11  ;;  %v3425_v11 = vld [vmem:[%s3958_s28 + $0x169] sm:$0xff] }
 0x266   : > { %v2418_v14 = vadd.f32 %v2347_v60, %v2184_v38  ;;  %v1646_v21 = vpop.f32.mrf.mxu2 }
 0x267   : > { %v1716_v40 = vadd.f32 %v1646_v21, %v4441_v34 }
 0x268   : > { %v2513_v12 = vadd.f32 %v2512_v1, %v2418_v14  ;;  %v2552_v10 = vmul.f32 %v2418_v14, %v2418_v14  ;;  %v2118_v5 = vpop.f32.mrf.mxu0 }
 0x269   : > { %v1881_v50 = vpop.f32.mrf.mxu3  ;;  %v2352_v42 = vpop.f32.mrf.mxu1 }
 0x26a   : > { %v2583_v29 = vadd.f32 %v2582_v36, %v2552_v10  ;;  %v1951_v17 = vadd.f32 %v1881_v50, %v1716_v40  ;;  %v3346_v36 = vld [vmem:[%s3958_s28 + $0x170] sm:$0xff] }
 0x26b   : > { %1688 = vmatmul.bf16.gmra.mxu2 %v2253_v46  ;;  %2157 = vmatmul.bf16.gmra.mxu0 %v2020_v55  ;;  %v1787_v54 = vpack.c.bf16 %v3346_v36, %v3345_v45 }
 0x26c   : > { %v2185_v37 = vadd.f32 %v2115_v59, %v1951_v17  ;;  %2391 = vmatmul.bf16.gmra.mxu1 %v2254_v41  ;;  %v3426_v59 = vld [vmem:[%s3958_s28 + $0x171] sm:$0xff] }
 0x26d   : > { %v2021_v23 = vpack.c.bf16 %v3426_v59, %v3425_v11 }
 0x26e   : > { %1923 = vmatmul.bf16.gmra.mxu3 %v1786_v9  ;;  %v2419_v60 = vadd.f32 %v2349_v47, %v2185_v37  ;;  %v1649_v52 = vpop.f32.mrf.mxu2 }
 0x26f   : > { %v1717_v49 = vadd.f32 %v1649_v52, %v4449_v62 }
 0x270   : > { %v3661_v34 = vpack.c.bf16 %v2419_v60, %v2418_v14  ;;  %v2514_v32 = vadd.f32 %v2513_v12, %v2419_v60  ;;  %v2553_v7 = vmul.f32 %v2419_v60, %v2419_v60  ;;  %v2120_v44 = vpop.f32.mrf.mxu0  ;;  %v2255_v14 = vpack.c.bf16 %v3506_v4, %v3505_v16 }
 0x271   : > { %v1884_v35 = vpop.f32.mrf.mxu3  ;;  %v2354_v48 = vpop.f32.mrf.mxu1 }
 0x272   : > { %3805 = vst [vmem:[%s4681_s15 + $0x18] sm:$0xff] %v3661_v34   ;;  %v2584_v46 = vadd.f32 %v2583_v29, %v2553_v7  ;;  %v1952_v24 = vadd.f32 %v1884_v35, %v1717_v49  ;;  %v3347_v34 = vld [vmem:[%s3958_s28 + $0x180] sm:$0xff]  ;;  %v3508_v7 = vld [vmem:[%s3958_s28 + $0x18a] sm:$0xff] }
 0x273   : > { %v3348_v35 = vld [vmem:[%s3958_s28 + $0x188] sm:$0xff] }
 0x274   : > { %v2186_v1 = vadd.f32 %v2118_v5, %v1952_v24  ;;  %v1788_v4 = vpack.c.bf16 %v3348_v35, %v3347_v34 }
 0x276   : > { %v2420_v47 = vadd.f32 %v2352_v42, %v2186_v1  ;;  %v1651_v38 = vpop.f32.mrf.mxu2 }
 0x277   : > { %v1718_v22 = vadd.f32 %v1651_v38, %v4460_v31 }
 0x278   : > { %v2515_v57 = vadd.f32 %v2514_v32, %v2420_v47  ;;  %v2554_v19 = vmul.f32 %v2420_v47, %v2420_v47  ;;  %v2123_v10 = vpop.f32.mrf.mxu0  ;;  %v3507_v32 = vld [vmem:[%s3958_s28 + $0x182] sm:$0xff] }
 0x279   : > { %v1886_v62 = vpop.f32.mrf.mxu3  ;;  %v2357_v58 = vpop.f32.mrf.mxu1  ;;  %v2256_v16 = vpack.c.bf16 %v3508_v7, %v3507_v32 }
 0x27a   : > { %v2585_v21 = vadd.f32 %v2584_v46, %v2554_v19  ;;  %v1953_v12 = vadd.f32 %v1886_v62, %v1718_v22  ;;  %v3428_v46 = vld [vmem:[%s3958_s28 + $0x189] sm:$0xff] }
 0x27b   : > { %1693 = vmatmul.bf16.gmra.mxu2 %v2254_v41  ;;  %2162 = vmatmul.bf16.gmra.mxu0 %v2021_v23 }
 0x27c   : > { %v2187_v40 = vadd.f32 %v2120_v44, %v1953_v12  ;;  %2396 = vmatmul.bf16.gmra.mxu1 %v2255_v14 }
 0x27e   : > { %1928 = vmatmul.bf16.gmra.mxu3 %v1787_v54  ;;  %v2421_v50 = vadd.f32 %v2354_v48, %v2187_v40  ;;  %v1654_v9 = vpop.f32.mrf.mxu2  ;;  %v3427_v48 = vld [vmem:[%s3958_s28 + $0x181] sm:$0xff] }
 0x27f   : > { %v1719_v29 = vadd.f32 %v1654_v9, %v4465_v53  ;;  %v2022_v36 = vpack.c.bf16 %v3428_v46, %v3427_v48  ;;  %v3509_v9 = vld [vmem:[%s3958_s28 + $0x19a] sm:$0xff] }
 0x280   : > { %v3666_v31 = vpack.c.bf16 %v2421_v50, %v2420_v47  ;;  %v2516_v42 = vadd.f32 %v2515_v57, %v2421_v50  ;;  %v2555_v55 = vmul.f32 %v2421_v50, %v2421_v50  ;;  %v2125_v60 = vpop.f32.mrf.mxu0  ;;  %v3349_v50 = vld [vmem:[%s3958_s28 + $0x198] sm:$0xff] }
 0x281   : > { %v1889_v17 = vpop.f32.mrf.mxu3  ;;  %v2359_v5 = vpop.f32.mrf.mxu1 }
 0x282   : > { %3806 = vst [vmem:[%s4681_s15 + $0x20] sm:$0xff] %v3666_v31   ;;  %v2586_v41 = vadd.f32 %v2585_v21, %v2555_v55  ;;  %v1954_v37 = vadd.f32 %v1889_v17, %v1719_v29  ;;  %v3510_v31 = vld [vmem:[%s3958_s28 + $0x1a2] sm:$0xff]  ;;  %v3429_v29 = vld [vmem:[%s3958_s28 + $0x199] sm:$0xff] }
 0x283   : > { %v3350_v55 = vld [vmem:[%s3958_s28 + $0x1a0] sm:$0xff] }
 0x284   : > { %v2188_v52 = vadd.f32 %v2123_v10, %v1954_v37  ;;  %v3430_v17 = vld [vmem:[%s3958_s28 + $0x1a1] sm:$0xff]  ;;  %v1789_v34 = vpack.c.bf16 %v3350_v55, %v3349_v50 }
 0x285   : > { %v2023_v7 = vpack.c.bf16 %v3430_v17, %v3429_v29 }
 0x286   : > { %v2422_v49 = vadd.f32 %v2357_v58, %v2188_v52  ;;  %v1656_v24 = vpop.f32.mrf.mxu2  ;;  %v2257_v52 = vpack.c.bf16 %v3510_v31, %v3509_v9 }
 0x287   : > { %v1720_v45 = vadd.f32 %v1656_v24, %v4473_v0 }
 0x288   : > { %v2517_v44 = vadd.f32 %v2516_v42, %v2422_v49  ;;  %v2556_v1 = vmul.f32 %v2422_v49, %v2422_v49  ;;  %v2128_v38 = vpop.f32.mrf.mxu0 }
 0x289   : > { %v1891_v53 = vpop.f32.mrf.mxu3  ;;  %v2362_v47 = vpop.f32.mrf.mxu1 }
 0x28a   : > { %v2587_v11 = vadd.f32 %v2586_v41, %v2556_v1  ;;  %v1955_v59 = vadd.f32 %v1891_v53, %v1720_v45 }
 0x28b   : > { %1698 = vmatmul.bf16.gmra.mxu2 %v2255_v14  ;;  %2167 = vmatmul.bf16.gmra.mxu0 %v2022_v36 }
 0x28c   : > { %v2189_v57 = vadd.f32 %v2125_v60, %v1955_v59  ;;  %2401 = vmatmul.bf16.gmra.mxu1 %v2256_v16 }
 0x28e   : > { %1933 = vmatmul.bf16.gmra.mxu3 %v1788_v4  ;;  %v2423_v19 = vadd.f32 %v2359_v5, %v2189_v57  ;;  %v1659_v22 = vpop.f32.mrf.mxu2 }
 0x28f   : > { %v1721_v58 = vadd.f32 %v1659_v22, %v4478_v18 }
 0x290   : > { %v3671_v0 = vpack.c.bf16 %v2423_v19, %v2422_v49  ;;  %v2518_v62 = vadd.f32 %v2517_v44, %v2423_v19  ;;  %v2557_v54 = vmul.f32 %v2423_v19, %v2423_v19  ;;  %v2130_v10 = vpop.f32.mrf.mxu0 }
 0x291   : > { %v1894_v23 = vpop.f32.mrf.mxu3  ;;  %v2364_v21 = vpop.f32.mrf.mxu1 }
 0x292   : > { %3807 = vst [vmem:[%s4681_s15 + $0x28] sm:$0xff] %v3671_v0   ;;  %v2588_v14 = vadd.f32 %v2587_v11, %v2557_v54  ;;  %v1956_v12 = vadd.f32 %v1894_v23, %v1721_v58 }
 0x294   : > { %v2190_v40 = vadd.f32 %v2128_v38, %v1956_v12 }
 0x296   : > { %v2424_v42 = vadd.f32 %v2362_v47, %v2190_v40  ;;  %v1661_v5 = vpop.f32.mrf.mxu2 }
 0x297   : > { %v1722_v60 = vadd.f32 %v1661_v5, %v4486_v15 }
 0x298   : > { %v2519_v41 = vadd.f32 %v2518_v62, %v2424_v42  ;;  %v2558_v37 = vmul.f32 %v2424_v42, %v2424_v42  ;;  %v2133_v48 = vpop.f32.mrf.mxu0 }
 0x299   : > { %v1896_v18 = vpop.f32.mrf.mxu3  ;;  %v2367_v32 = vpop.f32.mrf.mxu1 }
 0x29a   : > { %v2589_v49 = vadd.f32 %v2588_v14, %v2558_v37  ;;  %v1957_v35 = vadd.f32 %v1896_v18, %v1722_v60 }
 0x29b   : > { %1703 = vmatmul.bf16.gmra.mxu2 %v2256_v16  ;;  %2172 = vmatmul.bf16.gmra.mxu0 %v2023_v7 }
 0x29c   : > { %v2191_v46 = vadd.f32 %v2130_v10, %v1957_v35  ;;  %2406 = vmatmul.bf16.gmra.mxu1 %v2257_v52 }
 0x29e   : > { %1938 = vmatmul.bf16.gmra.mxu3 %v1789_v34  ;;  %v2425_v24 = vadd.f32 %v2364_v21, %v2191_v46  ;;  %v1664_v44 = vpop.f32.mrf.mxu2 }
 0x29f   : > { %v1723_v15 = vadd.f32 %v1664_v44, %v4492_v33 }
 0x2a0   : > { %v3676_v1 = vpack.c.bf16 %v2425_v24, %v2424_v42  ;;  %v2520_v45 = vadd.f32 %v2519_v41, %v2425_v24  ;;  %v2559_v53 = vmul.f32 %v2425_v24, %v2425_v24  ;;  %v2135_v59 = vpop.f32.mrf.mxu0 }
 0x2a1   : > { %v1899_v4 = vpop.f32.mrf.mxu3  ;;  %v2369_v47 = vpop.f32.mrf.mxu1 }
 0x2a2   : > { %3808 = vst [vmem:[%s4681_s15 + $0x30] sm:$0xff] %v3676_v1   ;;  %v2590_v36 = vadd.f32 %v2589_v49, %v2559_v53  ;;  %v1958_v11 = vadd.f32 %v1899_v4, %v1723_v15 }
 0x2a4   : > { %v2192_v38 = vadd.f32 %v2133_v48, %v1958_v11 }
 0x2a6   : > { %v2426_v57 = vadd.f32 %v2367_v32, %v2192_v38  ;;  %v1666_v19 = vpop.f32.mrf.mxu2 }
 0x2a7   : > { %v1724_v0 = vadd.f32 %v1666_v19, %v4501_v13 }
 0x2a8   : > { %v2521_v16 = vadd.f32 %v2520_v45, %v2426_v57  ;;  %v2560_v22 = vmul.f32 %v2426_v57, %v2426_v57  ;;  %v2138_v21 = vpop.f32.mrf.mxu0 }
 0x2a9   : > { %v1901_v62 = vpop.f32.mrf.mxu3  ;;  %v2372_v54 = vpop.f32.mrf.mxu1 }
 0x2aa   : > { %v2591_v58 = vadd.f32 %v2590_v36, %v2560_v22  ;;  %v1959_v23 = vadd.f32 %v1901_v62, %v1724_v0 }
 0x2ac   : > { %v2193_v33 = vadd.f32 %v2135_v59, %v1959_v23 }
 0x2ae   : > { %v2427_v14 = vadd.f32 %v2369_v47, %v2193_v33  ;;  %v1669_v12 = vpop.f32.mrf.mxu2 }
 0x2af   : > { %v1725_v9 = vadd.f32 %v1669_v12, %v4505_v56 }
 0x2b0   : > { %v3681_v10 = vpack.c.bf16 %v2427_v14, %v2426_v57  ;;  %v2522_v40 = vadd.f32 %v2521_v16, %v2427_v14  ;;  %v2561_v50 = vmul.f32 %v2427_v14, %v2427_v14  ;;  %v2140_v17 = vpop.f32.mrf.mxu0 }
 0x2b1   : > { %v1904_v31 = vpop.f32.mrf.mxu3  ;;  %v2374_v42 = vpop.f32.mrf.mxu1 }
 0x2b2   : > { %3809 = vst [vmem:[%s4681_s15 + $0x38] sm:$0xff] %v3681_v10   ;;  %v2592_v55 = vadd.f32 %v2591_v58, %v2561_v50  ;;  %v1960_v29 = vadd.f32 %v1904_v31, %v1725_v9 }
 0x2b4   : > { %v2194_v13 = vadd.f32 %v2138_v21, %v1960_v29 }
 0x2b6   : > { %v2428_v5 = vadd.f32 %v2372_v54, %v2194_v13  ;;  %v1671_v41 = vpop.f32.mrf.mxu2 }
 0x2b7   : > { %v1726_v18 = vadd.f32 %v1671_v41, %v4514_v30 }
 0x2b8   : > { %v2523_v37 = vadd.f32 %v2522_v40, %v2428_v5  ;;  %v2562_v60 = vmul.f32 %v2428_v5, %v2428_v5  ;;  %v2143_v49 = vpop.f32.mrf.mxu0 }
 0x2b9   : > { %v1906_v52 = vpop.f32.mrf.mxu3  ;;  %v2377_v34 = vpop.f32.mrf.mxu1 }
 0x2ba   : > { %v2593_v32 = vadd.f32 %v2592_v55, %v2562_v60  ;;  %v1961_v7 = vadd.f32 %v1906_v52, %v1726_v18 }
 0x2bc   : > { %v2195_v56 = vadd.f32 %v2140_v17, %v1961_v7 }
 0x2be   : > { %v2429_v35 = vadd.f32 %v2374_v42, %v2195_v56  ;;  %v1674_v48 = vpop.f32.mrf.mxu2 }
 0x2bf   : > { %v1727_v1 = vadd.f32 %v1674_v48, %v4518_v3 }
 0x2c0   : > { %v3686_v46 = vpack.c.bf16 %v2429_v35, %v2428_v5  ;;  %v2524_v24 = vadd.f32 %v2523_v37, %v2429_v35  ;;  %v2563_v44 = vmul.f32 %v2429_v35, %v2429_v35  ;;  %v2145_v47 = vpop.f32.mrf.mxu0 }
 0x2c1   : > { %v1909_v45 = vpop.f32.mrf.mxu3  ;;  %v2379_v53 = vpop.f32.mrf.mxu1 }
 0x2c2   : > { %3810 = vst [vmem:[%s4681_s15 + $0x40] sm:$0xff] %v3686_v46   ;;  %v2594_v15 = vadd.f32 %v2593_v32, %v2563_v44  ;;  %v1962_v4 = vadd.f32 %v1909_v45, %v1727_v1 }
 0x2c4   : > { %v2196_v30 = vadd.f32 %v2143_v49, %v1962_v4 }
 0x2c6   : > { %v2430_v36 = vadd.f32 %v2377_v34, %v2196_v30  ;;  %v1676_v11 = vpop.f32.mrf.mxu2 }
 0x2c7   : > { %v1728_v57 = vadd.f32 %v1676_v11, %v4531_v20 }
 0x2c8   : > { %v2525_v59 = vadd.f32 %v2524_v24, %v2430_v36  ;;  %v2564_v38 = vmul.f32 %v2430_v36, %v2430_v36  ;;  %v2148_v62 = vpop.f32.mrf.mxu0 }
 0x2c9   : > { %v1911_v19 = vpop.f32.mrf.mxu3  ;;  %v2382_v16 = vpop.f32.mrf.mxu1 }
 0x2ca   : > { %v2595_v22 = vadd.f32 %v2594_v15, %v2564_v38  ;;  %v1963_v0 = vadd.f32 %v1911_v19, %v1728_v57 }
 0x2cc   : > { %v2197_v3 = vadd.f32 %v2145_v47, %v1963_v0 }
 0x2ce   : > { %v2431_v54 = vadd.f32 %v2379_v53, %v2197_v3  ;;  %v1679_v58 = vpop.f32.mrf.mxu2 }
 0x2cf   : > { %v1729_v14 = vadd.f32 %v1679_v58, %v4538_v61 }
 0x2d0   : > { %v3691_v23 = vpack.c.bf16 %v2431_v54, %v2430_v36  ;;  %v2526_v21 = vadd.f32 %v2525_v59, %v2431_v54  ;;  %v2565_v33 = vmul.f32 %v2431_v54, %v2431_v54  ;;  %v2150_v9 = vpop.f32.mrf.mxu0 }
 0x2d1   : > { %v1914_v12 = vpop.f32.mrf.mxu3  ;;  %v2384_v10 = vpop.f32.mrf.mxu1 }
 0x2d2   : > { %3811 = vst [vmem:[%s4681_s15 + $0x48] sm:$0xff] %v3691_v23   ;;  %v2596_v40 = vadd.f32 %v2595_v22, %v2565_v33  ;;  %v1964_v50 = vadd.f32 %v1914_v12, %v1729_v14 }
 0x2d4   : > { %v2198_v20 = vadd.f32 %v2148_v62, %v1964_v50 }
 0x2d6   : > { %v2432_v31 = vadd.f32 %v2382_v16, %v2198_v20  ;;  %v1681_v42 = vpop.f32.mrf.mxu2 }
 0x2d7   : > { %v1730_v17 = vadd.f32 %v1681_v42, %v4549_v51 }
 0x2d8   : > { %v2527_v55 = vadd.f32 %v2526_v21, %v2432_v31  ;;  %v2566_v29 = vmul.f32 %v2432_v31, %v2432_v31  ;;  %v2153_v60 = vpop.f32.mrf.mxu0 }
 0x2d9   : > { %v1916_v13 = vpop.f32.mrf.mxu3  ;;  %v2387_v5 = vpop.f32.mrf.mxu1 }
 0x2da   : > { %v2597_v41 = vadd.f32 %v2596_v40, %v2566_v29  ;;  %v1965_v37 = vadd.f32 %v1916_v13, %v1730_v17 }
 0x2dc   : > { %v2199_v61 = vadd.f32 %v2150_v9, %v1965_v37 }
 0x2de   : > { %v2433_v18 = vadd.f32 %v2384_v10, %v2199_v61  ;;  %v1684_v52 = vpop.f32.mrf.mxu2 }
 0x2df   : > { %v1731_v49 = vadd.f32 %v1684_v52, %v4557_v63 }
 0x2e0   : > { %v3696_v34 = vpack.c.bf16 %v2433_v18, %v2432_v31  ;;  %v2528_v32 = vadd.f32 %v2527_v55, %v2433_v18  ;;  %v2567_v7 = vmul.f32 %v2433_v18, %v2433_v18  ;;  %v2155_v24 = vpop.f32.mrf.mxu0 }
 0x2e1   : > { %v1919_v56 = vpop.f32.mrf.mxu3  ;;  %v2389_v35 = vpop.f32.mrf.mxu1 }
 0x2e2   : > { %3812 = vst [vmem:[%s4681_s15 + $0x50] sm:$0xff] %v3696_v34   ;;  %v2598_v48 = vadd.f32 %v2597_v41, %v2567_v7  ;;  %v1966_v46 = vadd.f32 %v1919_v56, %v1731_v49 }
 0x2e4   : > { %v2200_v51 = vadd.f32 %v2153_v60, %v1966_v46 }
 0x2e6   : > { %v2434_v44 = vadd.f32 %v2387_v5, %v2200_v51  ;;  %v1686_v1 = vpop.f32.mrf.mxu2 }
 0x2e7   : > { %v1732_v15 = vadd.f32 %v1686_v1, %v4568_v27 }
 0x2e8   : > { %v2529_v45 = vadd.f32 %v2528_v32, %v2434_v44  ;;  %v2568_v53 = vmul.f32 %v2434_v44, %v2434_v44  ;;  %v2158_v11 = vpop.f32.mrf.mxu0 }
 0x2e9   : > { %v1921_v4 = vpop.f32.mrf.mxu3  ;;  %v2392_v47 = vpop.f32.mrf.mxu1 }
 0x2ea   : > { %v2599_v30 = vadd.f32 %v2598_v48, %v2568_v53  ;;  %v1967_v36 = vadd.f32 %v1921_v4, %v1732_v15 }
 0x2ec   : > { %v2201_v63 = vadd.f32 %v2155_v24, %v1967_v36 }
 0x2ee   : > { %v2435_v59 = vadd.f32 %v2389_v35, %v2201_v63  ;;  %v1689_v38 = vpop.f32.mrf.mxu2 }
 0x2ef   : > { %v1733_v22 = vadd.f32 %v1689_v38, %v4576_v28 }
 0x2f0   : > { %v3701_v57 = vpack.c.bf16 %v2435_v59, %v2434_v44  ;;  %v2530_v19 = vadd.f32 %v2529_v45, %v2435_v59  ;;  %v2569_v16 = vmul.f32 %v2435_v59, %v2435_v59  ;;  %v2160_v58 = vpop.f32.mrf.mxu0 }
 0x2f1   : > { %v1924_v0 = vpop.f32.mrf.mxu3  ;;  %v2394_v62 = vpop.f32.mrf.mxu1 }
 0x2f2   : > { %3813 = vst [vmem:[%s4681_s15 + $0x58] sm:$0xff] %v3701_v57   ;;  %v2600_v3 = vadd.f32 %v2599_v30, %v2569_v16  ;;  %v1968_v54 = vadd.f32 %v1924_v0, %v1733_v22 }
 0x2f4   : > { %v2202_v27 = vadd.f32 %v2158_v11, %v1968_v54 }
 0x2f6   : > { %v2436_v23 = vadd.f32 %v2392_v47, %v2202_v27  ;;  %v1691_v21 = vpop.f32.mrf.mxu2 }
 0x2f7   : > { %v1734_v12 = vadd.f32 %v1691_v21, %v4587_v43 }
 0x2f8   : > { %v2531_v33 = vadd.f32 %v2530_v19, %v2436_v23  ;;  %v2570_v14 = vmul.f32 %v2436_v23, %v2436_v23  ;;  %v2163_v9 = vpop.f32.mrf.mxu0 }
 0x2f9   : > { %v1926_v10 = vpop.f32.mrf.mxu3  ;;  %v2397_v20 = vpop.f32.mrf.mxu1 }
 0x2fa   : > { %v2601_v40 = vadd.f32 %v2600_v3, %v2570_v14  ;;  %v1969_v50 = vadd.f32 %v1926_v10, %v1734_v12 }
 0x2fc   : > { %v2203_v28 = vadd.f32 %v2160_v58, %v1969_v50 }
 0x2fe   : > { %v2437_v31 = vadd.f32 %v2394_v62, %v2203_v28  ;;  %v1694_v42 = vpop.f32.mrf.mxu2 }
 0x2ff   : > { %v1735_v13 = vadd.f32 %v1694_v42, %v4595_v6 }
 0x300   : > { %v3706_v55 = vpack.c.bf16 %v2437_v31, %v2436_v23  ;;  %v2532_v29 = vadd.f32 %v2531_v33, %v2437_v31  ;;  %v2571_v17 = vmul.f32 %v2437_v31, %v2437_v31  ;;  %v2165_v60 = vpop.f32.mrf.mxu0 }
 0x301   : > { %v1929_v5 = vpop.f32.mrf.mxu3  ;;  %v2399_v43 = vpop.f32.mrf.mxu1 }
 0x302   : > { %3814 = vst [vmem:[%s4681_s15 + $0x60] sm:$0xff] %v3706_v55   ;;  %v2602_v41 = vadd.f32 %v2601_v40, %v2571_v17  ;;  %v1970_v37 = vadd.f32 %v1929_v5, %v1735_v13 }
 0x304   : > { %v2204_v61 = vadd.f32 %v2163_v9, %v1970_v37 }
 0x306   : > { %v2438_v18 = vadd.f32 %v2397_v20, %v2204_v61  ;;  %v1696_v52 = vpop.f32.mrf.mxu2 }
 0x307   : > { %v1736_v7 = vadd.f32 %v1696_v52, %v4609_v25 }
 0x308   : > { %v2533_v34 = vadd.f32 %v2532_v29, %v2438_v18  ;;  %v2572_v32 = vmul.f32 %v2438_v18, %v2438_v18  ;;  %v2168_v46 = vpop.f32.mrf.mxu0 }
 0x309   : > { %v1931_v49 = vpop.f32.mrf.mxu3  ;;  %v2402_v24 = vpop.f32.mrf.mxu1 }
 0x30a   : > { %v2603_v56 = vadd.f32 %v2602_v41, %v2572_v32  ;;  %v1971_v35 = vadd.f32 %v1931_v49, %v1736_v7 }
 0x30c   : > { %v2205_v48 = vadd.f32 %v2165_v60, %v1971_v35 }
 0x30e   : > { %v2439_v6 = vadd.f32 %v2399_v43, %v2205_v48  ;;  %v1699_v51 = vpop.f32.mrf.mxu2 }
 0x30f   : > { %v1737_v53 = vadd.f32 %v1699_v51, %v4633_v26 }
 0x310   : > { %v3711_v44 = vpack.c.bf16 %v2439_v6, %v2438_v18  ;;  %v2534_v1 = vadd.f32 %v2533_v34, %v2439_v6  ;;  %v2573_v45 = vmul.f32 %v2439_v6, %v2439_v6  ;;  %v2170_v25 = vpop.f32.mrf.mxu0 }
 0x311   : > { %v1934_v15 = vpop.f32.mrf.mxu3  ;;  %v2404_v19 = vpop.f32.mrf.mxu1 }
 0x312   : > { %3815 = vst [vmem:[%s4681_s15 + $0x68] sm:$0xff] %v3711_v44   ;;  %v2604_v4 = vadd.f32 %v2603_v56, %v2573_v45  ;;  %v1972_v47 = vadd.f32 %v1934_v15, %v1737_v53 }
 0x314   : > { %v2206_v30 = vadd.f32 %v2168_v46, %v1972_v47 }
 0x316   : > { %v2440_v36 = vadd.f32 %v2402_v24, %v2206_v30  ;;  %v1701_v11 = vpop.f32.mrf.mxu2 }
 0x317   : > { %v1738_v38 = vadd.f32 %v1701_v11, %v4651_v39 }
 0x318   : > { %v2535_v63 = vadd.f32 %v2534_v1, %v2440_v36  ;;  %v2574_v59 = vmul.f32 %v2440_v36, %v2440_v36  ;;  %v2173_v21 = vpop.f32.mrf.mxu0 }
 0x319   : > { %v1936_v57 = vpop.f32.mrf.mxu3  ;;  %v2407_v12 = vpop.f32.mrf.mxu1 }
 0x31a   : > { %v2605_v16 = vadd.f32 %v2604_v4, %v2574_v59  ;;  %v1973_v22 = vadd.f32 %v1936_v57, %v1738_v38 }
 0x31c   : > { %v2207_v0 = vadd.f32 %v2170_v25, %v1973_v22 }
 0x31e   : > { %v2441_v62 = vadd.f32 %v2404_v19, %v2207_v0  ;;  %v1704_v26 = vpop.f32.mrf.mxu2 }
 0x31f   : > { %v1739_v27 = vadd.f32 %v1704_v26, %v4655_v2 }
 0x320   : > { %v3716_v3 = vpack.c.bf16 %v2441_v62, %v2440_v36  ;;  %v2536_v54 = vadd.f32 %v2535_v63, %v2441_v62  ;;  %v2575_v58 = vmul.f32 %v2441_v62, %v2441_v62  ;;  %v2175_v55 = vpop.f32.mrf.mxu0 }
 0x321   : > { %v1939_v23 = vpop.f32.mrf.mxu3  ;;  %v2409_v2 = vpop.f32.mrf.mxu1 }
 0x322   : > { %3816 = vst [vmem:[%s4681_s15 + $0x70] sm:$0xff] %v3716_v3   ;;  %v2606_v33 = vadd.f32 %v2605_v16, %v2575_v58  ;;  %v1974_v14 = vadd.f32 %v1939_v23, %v1739_v27 }
 0x324   : > { %v2208_v10 = vadd.f32 %v2173_v21, %v1974_v14 }
 0x326   : > { %v2442_v39 = vadd.f32 %v2407_v12, %v2208_v10  ;;  %v1706_v40 = vpop.f32.mrf.mxu2 }
 0x327   : > { %v1740_v20 = vadd.f32 %v1706_v40, %v4664_v8 }
 0x328   : > { %v2537_v50 = vadd.f32 %v2536_v54, %v2442_v39  ;;  %v2576_v9 = vmul.f32 %v2442_v39, %v2442_v39 }
 0x329   : > { %v1941_v28 = vpop.f32.mrf.mxu3 }
 0x32a   : > { %v2607_v31 = vadd.f32 %v2606_v33, %v2576_v9  ;;  %v1975_v42 = vadd.f32 %v1941_v28, %v1740_v20 }
 0x32c   : > { %v2209_v29 = vadd.f32 %v2175_v55, %v1975_v42 }
 0x32e   : > { %v2443_v17 = vadd.f32 %v2409_v2, %v2209_v29 }
 0x330   : > { %v3721_v13 = vpack.c.bf16 %v2443_v17, %v2442_v39  ;;  %v2538_v5 = vadd.f32 %v2537_v50, %v2443_v17  ;;  %v2577_v41 = vmul.f32 %v2443_v17, %v2443_v17 }
 0x332   : > { %3817 = vst [vmem:[%s4681_s15 + $0x78] sm:$0xff] %v3721_v13   ;;  %v2539_v37 = vrot.slane %v2538_v5, 4  ;;  %v2608_v60 = vadd.f32 %v2607_v31, %v2577_v41 }
 0x334   : > { %v2540_v61 = vadd.f32 %v2539_v37, %v2538_v5  ;;  %v2609_v43 = vrot.slane %v2608_v60, 4 }
 0x336   : > { %v2541_v18 = vrot.slane %v2540_v61, 2  ;;  %v2610_v52 = vadd.f32 %v2609_v43, %v2608_v60 }
 0x338   : > { %v2542_v8 = vadd.f32 %v2541_v18, %v2540_v61  ;;  %v2611_v34 = vrot.slane %v2610_v52, 2 }
 0x33a   : > { %v2543_v32 = vrot.slane %v2542_v8, 1  ;;  %v2612_v7 = vadd.f32 %v2611_v34, %v2610_v52 }
 0x33c   : > { %v2544_v49 = vadd.f32 %v2543_v32, %v2542_v8  ;;  %v2613_v56 = vrot.slane %v2612_v7, 1 }
 0x33e   : > { %2545 = vst [vmem:[%s4631_s13] sm:$0x1] %v2544_v49  ;;  %v2614_v35 = vadd.f32 %v2613_v56, %v2612_v7 }
 0x340   : > { %2615 = vst [vmem:[%s4631_s13 + $0x1] sm:$0x1] %v2614_v35 }
 0x341 PF: > { %s16_s18 = sadd.s32 1, %s3865_s18  }
 0x342   : > { %p13_p4 = scmp.ge.s32.totalorder %s16_s18, 4  }
 0x344   :  { %15 = sbr.rel (!%p13_p4) target bundleno = 1 (0x1), region = 96 }

</bundles_post_ra>
